<compile_context>
chip_gen: v5e
topology: v5e:2x2
jax: 0.10.0
libtpu: 0.0.40
codegen_flags: <defaults>
</compile_context>

<pallas_src>
import functools

import jax
import jax.numpy as jnp
from jax.experimental import pallas as pl
from jax.experimental.pallas import tpu as pltpu

LEAKY_SLOPE = 0.01   # nn.LeakyReLU() default negative_slope
RES_SCALE = 0.2
VMEM_LIMIT = 32 * 1024 * 1024


# ----------------------------------------------------------------------------
# Padded-flat layout helpers.
#
# An activation of logical shape (C, H, W) is stored as (C, Lpad) where
# Lpad = (H+2)*(W+2): a zero ring of 1 pixel is flattened together with the
# interior.  A 3x3/stride1/pad1 conv then becomes, for every tap (dy, dx),
# a constant lane shift dy*(W+2)+dx of the flattened array, i.e. a static
# contiguous slice -> one MXU matmul per tap, accumulated in f32.
# The accumulator covers flat positions [Wp+1, H*Wp+W+1) (length Lacc); the
# positions inside that range that fall on the left/right halo columns are
# zeroed with a lane mask so the output is again a valid padded-flat tensor.
# ----------------------------------------------------------------------------
def _flat_dims(H, W):
    Wp = W + 2
    Lpad = (H + 2) * Wp
    Lacc = (H - 1) * Wp + W
    lo = Wp + 1                       # first interior flat position
    return Wp, Lpad, Lacc, lo


def _conv_accum(xb, w_ref, Wp, Lacc):
    """9 accumulated per-tap MXU matmuls: (Cout,Cin)@(Cin,Lacc), bf16 in, f32 acc."""
    acc = None
    for k in range(9):
        dy, dx = divmod(k, 3)
        s = dy * Wp + dx                              # static lane shift
        p = jnp.dot(w_ref[k], xb[:, s:s + Lacc],
                    preferred_element_type=jnp.float32)
        acc = p if acc is None else acc + p
    return acc


def _prep_w(w):
    """(3,3,cin,cout) HWIO -> (9, cout, cin) per-tap weights in bf16.

    NOTE: real PyTorch Conv2d weights are OIHW (cout,cin,kh,kw); transpose to
    HWIO (w.permute(2,3,1,0)) before calling this or results will be wrong.
    """
    kh, kw, cin, cout = w.shape
    return jnp.transpose(w.reshape(kh * kw, cin, cout), (0, 2, 1)).astype(jnp.bfloat16)


def _prep_b(b):
    return b.reshape(-1, 1).astype(jnp.float32)       # (Cout, 1), lane-broadcast


def _make_mask(H, W):
    """(1, Lacc) f32 mask: 1 at interior columns, 0 at left/right halo columns."""
    Wp, _, Lacc, _ = _flat_dims(H, W)
    col = (jnp.arange(Lacc, dtype=jnp.int32) + 1) % Wp
    return ((col >= 1) & (col <= W)).astype(jnp.float32).reshape(1, Lacc)


def _to_padded_flat(x_nchw):
    N, C, H, W = x_nchw.shape
    xp = jnp.pad(x_nchw, ((0, 0), (0, 0), (1, 1), (1, 1)))
    return xp.reshape(N, C, (H + 2) * (W + 2))


def _from_padded_flat(x_flat, H, W):
    N, C, _ = x_flat.shape
    return x_flat.reshape(N, C, H + 2, W + 2)[:, :, 1:H + 1, 1:W + 1]


# ----------------------------------------------------------------------------
# Standalone 3x3 conv kernel (used for conv1): bias + optional LeakyReLU.
# No scratch at all; the 9 tap slices are read straight from the input block.
# ----------------------------------------------------------------------------
def _conv3x3_kernel(x_ref, w_ref, b_ref, mask_ref, o_ref, *, H, W, Cout, leaky):
    Wp, Lpad, Lacc, lo = _flat_dims(H, W)
    xb = x_ref[0].astype(jnp.bfloat16)                 # (Cin, Lpad) bf16 once
    acc = _conv_accum(xb, w_ref, Wp, Lacc) + b_ref[...]
    if leaky:
        acc = jnp.where(acc > 0, acc, LEAKY_SLOPE * acc)
    y = acc * mask_ref[...]
    o_ref[0, :, 0:lo] = jnp.zeros((Cout, lo), jnp.float32)
    o_ref[0, :, lo:lo + Lacc] = y
    o_ref[0, :, lo + Lacc:Lpad] = jnp.zeros((Cout, lo), jnp.float32)


def conv3x3(x_flat, w, b, *, H, W, mask, leaky=False):
    N, Cin, Lpad = x_flat.shape
    Cout = w.shape[-1]
    w9, b2 = _prep_w(w), _prep_b(b)
    kernel = functools.partial(_conv3x3_kernel, H=H, W=W, Cout=Cout, leaky=leaky)
    return pl.pallas_call(
        kernel,
        out_shape=jax.ShapeDtypeStruct((N, Cout, Lpad), jnp.float32),
        grid=(N,),
        in_specs=[
            pl.BlockSpec((1, Cin, Lpad), lambda n: (n, 0, 0)),
            pl.BlockSpec(w9.shape, lambda n: (0, 0, 0)),
            pl.BlockSpec(b2.shape, lambda n: (0, 0)),
            pl.BlockSpec(mask.shape, lambda n: (0, 0)),
        ],
        out_specs=pl.BlockSpec((1, Cout, Lpad), lambda n: (n, 0, 0)),
        compiler_params=pltpu.CompilerParams(
            dimension_semantics=("parallel",),
            vmem_limit_bytes=VMEM_LIMIT),
    )(x_flat, w9, b2, mask)


# ----------------------------------------------------------------------------
# Fused DenseResidualBlock kernel: 5 convs, channel-concat kept as a VMEM slab
# of shape (5F, Lpad), LeakyReLU on b1..b4, out*0.2 + x (and optionally the
# RRDB outer residual y*0.2 + outer) — one pallas_call.
# ----------------------------------------------------------------------------
def _dense_block_kernel(*refs, H, W, F, has_outer):
    Wp, Lpad, Lacc, lo = _flat_dims(H, W)
    i = 0
    x_ref = refs[i]; i += 1
    outer_ref = None
    if has_outer:
        outer_ref = refs[i]; i += 1
    w_refs = refs[i:i + 5]; i += 5
    b_ref = refs[i]; i += 1
    mask_ref = refs[i]; i += 1
    o_ref = refs[i]; i += 1
    slab_ref = refs[i]                                  # (5F, Lpad) f32 scratch

    mask = mask_ref[...]
    xf = x_ref[0]                                       # (F, Lpad) f32
    slab_ref[0:F, :] = xf                               # "concat" band 0 = x
    # Zero only the tiny head/tail halo strips of bands 1..4 (never the full
    # slab).  Interior halo columns of those bands are zeroed by `mask` when
    # each band is written, and each band is written before it is read.
    slab_ref[F:5 * F, 0:lo] = jnp.zeros((4 * F, lo), jnp.float32)
    slab_ref[F:5 * F, Lpad - lo:Lpad] = jnp.zeros((4 * F, lo), jnp.float32)

    out = None
    for j in range(5):                                  # b1..b5; b5 has no nonlinearity
        cin = (j + 1) * F
        xb = slab_ref[0:cin, :].astype(jnp.bfloat16)    # one bf16 cast per conv
        acc = _conv_accum(xb, w_refs[j], Wp, Lacc) + b_ref[j]
        if j < 4:
            acc = jnp.where(acc > 0, acc, LEAKY_SLOPE * acc)
            # torch.cat([inputs, out], 1) == write out into the next F band.
            slab_ref[(j + 1) * F:(j + 2) * F, lo:lo + Lacc] = acc * mask
        else:
            out = acc * mask

    y = out * RES_SCALE + xf[:, lo:lo + Lacc]           # dense-block residual
    if has_outer:
        y = y * RES_SCALE + outer_ref[0, :, lo:lo + Lacc]   # RRDB residual
    o_ref[0, :, 0:lo] = jnp.zeros((F, lo), jnp.float32)
    o_ref[0, :, lo:lo + Lacc] = y
    o_ref[0, :, lo + Lacc:Lpad] = jnp.zeros((F, lo), jnp.float32)


def dense_residual_block(x_flat, convs, *, H, W, mask, outer_res=None):
    """convs = [(w_j, b_j)] with w_j of shape (3, 3, (j+1)*F, F) (HWIO)."""
    N, F, Lpad = x_flat.shape
    ws = [_prep_w(w) for (w, _) in convs]               # (9, F, (j+1)F) bf16 each
    bs = jnp.stack([b for (_, b) in convs]).astype(jnp.float32)[:, :, None]  # (5,F,1)

    inputs = [x_flat]
    in_specs = [pl.BlockSpec((1, F, Lpad), lambda n: (n, 0, 0))]
    if outer_res is not None:
        inputs.append(outer_res)
        in_specs.append(pl.BlockSpec((1, F, Lpad), lambda n: (n, 0, 0)))
    for wj in ws:
        inputs.append(wj)
        in_specs.append(pl.BlockSpec(wj.shape, lambda n: (0, 0, 0)))
    inputs += [bs, mask]
    in_specs += [pl.BlockSpec(bs.shape, lambda n: (0, 0, 0)),
                 pl.BlockSpec(mask.shape, lambda n: (0, 0))]

    kernel = functools.partial(_dense_block_kernel, H=H, W=W, F=F,
                               has_outer=outer_res is not None)
    return pl.pallas_call(
        kernel,
        out_shape=jax.ShapeDtypeStruct((N, F, Lpad), jnp.float32),
        grid=(N,),
        in_specs=in_specs,
        out_specs=pl.BlockSpec((1, F, Lpad), lambda n: (n, 0, 0)),
        scratch_shapes=[pltpu.VMEM((5 * F, Lpad), jnp.float32)],   # concat slab
        compiler_params=pltpu.CompilerParams(
            dimension_semantics=("parallel",),
            vmem_limit_bytes=VMEM_LIMIT),
    )(*inputs)


# ----------------------------------------------------------------------------
# Fused tail: out1 + conv2(out)  ->  conv3a + LeakyReLU  ->  conv3b.
# The two intermediates stay in a single reused VMEM buffer (no HBM trips).
# ----------------------------------------------------------------------------
def _tail_kernel(x_ref, res_ref, w2_ref, b2_ref, w3a_ref, b3a_ref,
                 w3b_ref, b3b_ref, mask_ref, o_ref, buf_ref, *, H, W, F, P):
    Wp, Lpad, Lacc, lo = _flat_dims(H, W)
    mask = mask_ref[...]

    # conv2 + skip add (out1 + conv2(out))
    xb = x_ref[0].astype(jnp.bfloat16)
    y = (_conv_accum(xb, w2_ref, Wp, Lacc) + b2_ref[...]) * mask
    y = y + res_ref[0, :, lo:lo + Lacc]
    buf_ref[:, 0:lo] = jnp.zeros((F, lo), jnp.float32)
    buf_ref[:, lo:lo + Lacc] = y
    buf_ref[:, lo + Lacc:Lpad] = jnp.zeros((F, lo), jnp.float32)

    # conv3a + LeakyReLU (intermediate stays in VMEM, halo already zero)
    xb = buf_ref[...].astype(jnp.bfloat16)
    acc = _conv_accum(xb, w3a_ref, Wp, Lacc) + b3a_ref[...]
    acc = jnp.where(acc > 0, acc, LEAKY_SLOPE * acc)
    buf_ref[:, lo:lo + Lacc] = acc * mask

    # conv3b -> n_predictands channels
    xb = buf_ref[...].astype(jnp.bfloat16)
    y = (_conv_accum(xb, w3b_ref, Wp, Lacc) + b3b_ref[...]) * mask
    o_ref[0, :, 0:lo] = jnp.zeros((P, lo), jnp.float32)
    o_ref[0, :, lo:lo + Lacc] = y
    o_ref[0, :, lo + Lacc:Lpad] = jnp.zeros((P, lo), jnp.float32)


def tail_convs(out_flat, out1_flat, conv2, conv3a, conv3b, *, H, W, mask):
    N, F, Lpad = out_flat.shape
    P = conv3b[0].shape[-1]
    w2, b2 = _prep_w(conv2[0]), _prep_b(conv2[1])
    w3a, b3a = _prep_w(conv3a[0]), _prep_b(conv3a[1])
    w3b, b3b = _prep_w(conv3b[0]), _prep_b(conv3b[1])
    kernel = functools.partial(_tail_kernel, H=H, W=W, F=F, P=P)
    return pl.pallas_call(
        kernel,
        out_shape=jax.ShapeDtypeStruct((N, P, Lpad), jnp.float32),
        grid=(N,),
        in_specs=[
            pl.BlockSpec((1, F, Lpad), lambda n: (n, 0, 0)),
            pl.BlockSpec((1, F, Lpad), lambda n: (n, 0, 0)),
            pl.BlockSpec(w2.shape, lambda n: (0, 0, 0)),
            pl.BlockSpec(b2.shape, lambda n: (0, 0)),
            pl.BlockSpec(w3a.shape, lambda n: (0, 0, 0)),
            pl.BlockSpec(b3a.shape, lambda n: (0, 0)),
            pl.BlockSpec(w3b.shape, lambda n: (0, 0, 0)),
            pl.BlockSpec(b3b.shape, lambda n: (0, 0)),
            pl.BlockSpec(mask.shape, lambda n: (0, 0)),
        ],
        out_specs=pl.BlockSpec((1, P, Lpad), lambda n: (n, 0, 0)),
        scratch_shapes=[pltpu.VMEM((F, Lpad), jnp.float32)],
        compiler_params=pltpu.CompilerParams(
            dimension_semantics=("parallel",),
            vmem_limit_bytes=VMEM_LIMIT),
    )(out_flat, out1_flat, w2, b2, w3a, b3a, w3b, b3b, mask)


# ----------------------------------------------------------------------------
# Parameter construction (deterministic, synthetic; HWIO weight layout)
# ----------------------------------------------------------------------------
def _make_conv_params(key, cin, cout, scale=0.05):
    k1, k2 = jax.random.split(key)
    w = jax.random.normal(k1, (3, 3, cin, cout), jnp.float32) * scale
    b = jax.random.normal(k2, (cout,), jnp.float32) * scale
    return w, b


def make_generator_params(key, filters, channels, n_predictands, num_res_blocks):
    keys = iter(jax.random.split(key, 4 + num_res_blocks * 3 * 5))
    params = {}
    params["conv1"] = _make_conv_params(next(keys), channels, filters)

    res_blocks = []
    for _ in range(num_res_blocks):
        dense_blocks = []
        for _ in range(3):                    # 3 DenseResidualBlocks per RRDB
            convs = []
            for j in range(5):                # b1..b5, input channels grow by F
                cin = (j + 1) * filters
                convs.append(_make_conv_params(next(keys), cin, filters))
            dense_blocks.append(convs)
        res_blocks.append(dense_blocks)
    params["res_blocks"] = res_blocks

    params["conv2"] = _make_conv_params(next(keys), filters, filters)
    params["conv3a"] = _make_conv_params(next(keys), filters, filters)
    params["conv3b"] = _make_conv_params(next(keys), filters, n_predictands)
    return params


# ----------------------------------------------------------------------------
# Forward pass (mirrors the PyTorch module semantics; NCHW in / NCHW out)
# ----------------------------------------------------------------------------
def rrdb(x_flat, dense_blocks, *, H, W, mask):
    out = x_flat
    last = len(dense_blocks) - 1
    for i, convs in enumerate(dense_blocks):
        # The RRDB outer residual is folded into the last dense block's kernel.
        out = dense_residual_block(out, convs, H=H, W=W, mask=mask,
                                   outer_res=x_flat if i == last else None)
    return out


def generator_forward(x_nchw, params):
    x_nchw = x_nchw.astype(jnp.float32)
    N, C, H, W = x_nchw.shape
    mask = _make_mask(H, W)
    x_flat = _to_padded_flat(x_nchw)          # one cheap XLA pad of the raw input

    out1 = conv3x3(x_flat, *params["conv1"], H=H, W=W, mask=mask)
    out = out1
    for dense_blocks in params["res_blocks"]:
        out = rrdb(out, dense_blocks, H=H, W=W, mask=mask)
    out = tail_convs(out, out1, params["conv2"], params["conv3a"],
                     params["conv3b"], H=H, W=W, mask=mask)
    return _from_padded_flat(out, H, W)       # strip the zero ring -> NCHW


# ----------------------------------------------------------------------------
if __name__ == "__main__":
    batch = 2
    channels = 4          # Generator input channels
    spatial = 16          # H = W
    filters = 8
    n_predictands = 2
    num_res_blocks = 2    # small for a quick run (module default is 16)

    key = jax.random.PRNGKey(0)
    k_x, k_p = jax.random.split(key)

    x = jax.random.normal(k_x, (batch, channels, spatial, spatial), jnp.float32)
    params = make_generator_params(k_p, filters, channels, n_predictands,
                                   num_res_blocks)

    fwd = jax.jit(generator_forward)
    out = jax.block_until_ready(fwd(x, params))

    assert out.shape == (batch, n_predictands, spatial, spatial), out.shape
    assert bool(jnp.all(jnp.isfinite(out)))
    print("KERNEL_OK")
</pallas_src>

<mosaic_0001>
module attributes {stable_mosaic.version = 11 : i64} {
  func.func @_conv3x3_kernel(%arg0: i32, %arg1: memref<1x4x324xf32, #tpu.memory_space<vmem>>, %arg2: memref<9x8x4xbf16, #tpu.memory_space<vmem>>, %arg3: memref<8x1xf32, #tpu.memory_space<vmem>>, %arg4: memref<1x286xf32, #tpu.memory_space<vmem>>, %arg5: memref<1x8x324xf32, #tpu.memory_space<vmem>>) attributes {dimension_semantics = [#tpu.dimension_semantics<parallel>], iteration_bounds = array<i64: 2>, scalar_prefetch = 0 : i64, scratch_operands = 0 : i64, tpu.core_type = #tpu.core_type<tc>, window_params = [{transform_indices = @transform_0, window_bounds = array<i64: 1, 4, 324>}, {pipeline_mode = #tpu.pipeline_mode<synchronous>, transform_indices = @transform_1, window_bounds = array<i64: 9, 8, 4>}, {pipeline_mode = #tpu.pipeline_mode<synchronous>, transform_indices = @transform_2, window_bounds = array<i64: 8, 1>}, {pipeline_mode = #tpu.pipeline_mode<synchronous>, transform_indices = @transform_3, window_bounds = array<i64: 1, 286>}, {transform_indices = @transform_4, window_bounds = array<i64: 1, 8, 324>}]} {
    %c0 = arith.constant 0 : index
    %c0_0 = arith.constant 0 : index
    %c0_1 = arith.constant 0 : index
    %0 = vector.load %arg1[%c0, %c0_0, %c0_1] : memref<1x4x324xf32, #tpu.memory_space<vmem>>, vector<1x4x324xf32>
    %1 = vector.shape_cast %0 : vector<1x4x324xf32> to vector<4x324xf32>
    %2 = arith.truncf %1 : vector<4x324xf32> to vector<4x324xbf16>
    %c0_2 = arith.constant 0 : index
    %c0_3 = arith.constant 0 : index
    %c0_4 = arith.constant 0 : index
    %3 = vector.load %arg2[%c0_2, %c0_3, %c0_4] : memref<9x8x4xbf16, #tpu.memory_space<vmem>>, vector<1x8x4xbf16>
    %4 = vector.shape_cast %3 : vector<1x8x4xbf16> to vector<8x4xbf16>
    %5 = vector.extract_strided_slice %2 {offsets = [0, 0], sizes = [4, 286], strides = [1, 1]} : vector<4x324xbf16> to vector<4x286xbf16>
    %cst = arith.constant dense<0.000000e+00> : vector<8x286xf32>
    %6 = tpu.matmul %4, %5, %cst {dimension_numbers = #tpu.dot_dimension_numbers<[1], [0], [0], [1], [0, 0, 1, 1], [], []>} : vector<8x4xbf16>, vector<4x286xbf16>, vector<8x286xf32> -> vector<8x286xf32>
    %c1 = arith.constant 1 : index
    %c0_5 = arith.constant 0 : index
    %c0_6 = arith.constant 0 : index
    %7 = vector.load %arg2[%c1, %c0_5, %c0_6] : memref<9x8x4xbf16, #tpu.memory_space<vmem>>, vector<1x8x4xbf16>
    %8 = vector.shape_cast %7 : vector<1x8x4xbf16> to vector<8x4xbf16>
    %9 = vector.extract_strided_slice %2 {offsets = [0, 1], sizes = [4, 286], strides = [1, 1]} : vector<4x324xbf16> to vector<4x286xbf16>
    %cst_7 = arith.constant dense<0.000000e+00> : vector<8x286xf32>
    %10 = tpu.matmul %8, %9, %cst_7 {dimension_numbers = #tpu.dot_dimension_numbers<[1], [0], [0], [1], [0, 0, 1, 1], [], []>} : vector<8x4xbf16>, vector<4x286xbf16>, vector<8x286xf32> -> vector<8x286xf32>
    %11 = arith.addf %6, %10 : vector<8x286xf32>
    %c2 = arith.constant 2 : index
    %c0_8 = arith.constant 0 : index
    %c0_9 = arith.constant 0 : index
    %12 = vector.load %arg2[%c2, %c0_8, %c0_9] : memref<9x8x4xbf16, #tpu.memory_space<vmem>>, vector<1x8x4xbf16>
    %13 = vector.shape_cast %12 : vector<1x8x4xbf16> to vector<8x4xbf16>
    %14 = vector.extract_strided_slice %2 {offsets = [0, 2], sizes = [4, 286], strides = [1, 1]} : vector<4x324xbf16> to vector<4x286xbf16>
    %cst_10 = arith.constant dense<0.000000e+00> : vector<8x286xf32>
    %15 = tpu.matmul %13, %14, %cst_10 {dimension_numbers = #tpu.dot_dimension_numbers<[1], [0], [0], [1], [0, 0, 1, 1], [], []>} : vector<8x4xbf16>, vector<4x286xbf16>, vector<8x286xf32> -> vector<8x286xf32>
    %16 = arith.addf %11, %15 : vector<8x286xf32>
    %c3 = arith.constant 3 : index
    %c0_11 = arith.constant 0 : index
    %c0_12 = arith.constant 0 : index
    %17 = vector.load %arg2[%c3, %c0_11, %c0_12] : memref<9x8x4xbf16, #tpu.memory_space<vmem>>, vector<1x8x4xbf16>
    %18 = vector.shape_cast %17 : vector<1x8x4xbf16> to vector<8x4xbf16>
    %19 = vector.extract_strided_slice %2 {offsets = [0, 18], sizes = [4, 286], strides = [1, 1]} : vector<4x324xbf16> to vector<4x286xbf16>
    %cst_13 = arith.constant dense<0.000000e+00> : vector<8x286xf32>
    %20 = tpu.matmul %18, %19, %cst_13 {dimension_numbers = #tpu.dot_dimension_numbers<[1], [0], [0], [1], [0, 0, 1, 1], [], []>} : vector<8x4xbf16>, vector<4x286xbf16>, vector<8x286xf32> -> vector<8x286xf32>
    %21 = arith.addf %16, %20 : vector<8x286xf32>
    %c4 = arith.constant 4 : index
    %c0_14 = arith.constant 0 : index
    %c0_15 = arith.constant 0 : index
    %22 = vector.load %arg2[%c4, %c0_14, %c0_15] : memref<9x8x4xbf16, #tpu.memory_space<vmem>>, vector<1x8x4xbf16>
    %23 = vector.shape_cast %22 : vector<1x8x4xbf16> to vector<8x4xbf16>
    %24 = vector.extract_strided_slice %2 {offsets = [0, 19], sizes = [4, 286], strides = [1, 1]} : vector<4x324xbf16> to vector<4x286xbf16>
    %cst_16 = arith.constant dense<0.000000e+00> : vector<8x286xf32>
    %25 = tpu.matmul %23, %24, %cst_16 {dimension_numbers = #tpu.dot_dimension_numbers<[1], [0], [0], [1], [0, 0, 1, 1], [], []>} : vector<8x4xbf16>, vector<4x286xbf16>, vector<8x286xf32> -> vector<8x286xf32>
    %26 = arith.addf %21, %25 : vector<8x286xf32>
    %c5 = arith.constant 5 : index
    %c0_17 = arith.constant 0 : index
    %c0_18 = arith.constant 0 : index
    %27 = vector.load %arg2[%c5, %c0_17, %c0_18] : memref<9x8x4xbf16, #tpu.memory_space<vmem>>, vector<1x8x4xbf16>
    %28 = vector.shape_cast %27 : vector<1x8x4xbf16> to vector<8x4xbf16>
    %29 = vector.extract_strided_slice %2 {offsets = [0, 20], sizes = [4, 286], strides = [1, 1]} : vector<4x324xbf16> to vector<4x286xbf16>
    %cst_19 = arith.constant dense<0.000000e+00> : vector<8x286xf32>
    %30 = tpu.matmul %28, %29, %cst_19 {dimension_numbers = #tpu.dot_dimension_numbers<[1], [0], [0], [1], [0, 0, 1, 1], [], []>} : vector<8x4xbf16>, vector<4x286xbf16>, vector<8x286xf32> -> vector<8x286xf32>
    %31 = arith.addf %26, %30 : vector<8x286xf32>
    %c6 = arith.constant 6 : index
    %c0_20 = arith.constant 0 : index
    %c0_21 = arith.constant 0 : index
    %32 = vector.load %arg2[%c6, %c0_20, %c0_21] : memref<9x8x4xbf16, #tpu.memory_space<vmem>>, vector<1x8x4xbf16>
    %33 = vector.shape_cast %32 : vector<1x8x4xbf16> to vector<8x4xbf16>
    %34 = vector.extract_strided_slice %2 {offsets = [0, 36], sizes = [4, 286], strides = [1, 1]} : vector<4x324xbf16> to vector<4x286xbf16>
    %cst_22 = arith.constant dense<0.000000e+00> : vector<8x286xf32>
    %35 = tpu.matmul %33, %34, %cst_22 {dimension_numbers = #tpu.dot_dimension_numbers<[1], [0], [0], [1], [0, 0, 1, 1], [], []>} : vector<8x4xbf16>, vector<4x286xbf16>, vector<8x286xf32> -> vector<8x286xf32>
    %36 = arith.addf %31, %35 : vector<8x286xf32>
    %c7 = arith.constant 7 : index
    %c0_23 = arith.constant 0 : index
    %c0_24 = arith.constant 0 : index
    %37 = vector.load %arg2[%c7, %c0_23, %c0_24] : memref<9x8x4xbf16, #tpu.memory_space<vmem>>, vector<1x8x4xbf16>
    %38 = vector.shape_cast %37 : vector<1x8x4xbf16> to vector<8x4xbf16>
    %39 = vector.extract_strided_slice %2 {offsets = [0, 37], sizes = [4, 286], strides = [1, 1]} : vector<4x324xbf16> to vector<4x286xbf16>
    %cst_25 = arith.constant dense<0.000000e+00> : vector<8x286xf32>
    %40 = tpu.matmul %38, %39, %cst_25 {dimension_numbers = #tpu.dot_dimension_numbers<[1], [0], [0], [1], [0, 0, 1, 1], [], []>} : vector<8x4xbf16>, vector<4x286xbf16>, vector<8x286xf32> -> vector<8x286xf32>
    %41 = arith.addf %36, %40 : vector<8x286xf32>
    %c8 = arith.constant 8 : index
    %c0_26 = arith.constant 0 : index
    %c0_27 = arith.constant 0 : index
    %42 = vector.load %arg2[%c8, %c0_26, %c0_27] : memref<9x8x4xbf16, #tpu.memory_space<vmem>>, vector<1x8x4xbf16>
    %43 = vector.shape_cast %42 : vector<1x8x4xbf16> to vector<8x4xbf16>
    %44 = vector.extract_strided_slice %2 {offsets = [0, 38], sizes = [4, 286], strides = [1, 1]} : vector<4x324xbf16> to vector<4x286xbf16>
    %cst_28 = arith.constant dense<0.000000e+00> : vector<8x286xf32>
    %45 = tpu.matmul %43, %44, %cst_28 {dimension_numbers = #tpu.dot_dimension_numbers<[1], [0], [0], [1], [0, 0, 1, 1], [], []>} : vector<8x4xbf16>, vector<4x286xbf16>, vector<8x286xf32> -> vector<8x286xf32>
    %46 = arith.addf %41, %45 : vector<8x286xf32>
    %c0_29 = arith.constant 0 : index
    %c0_30 = arith.constant 0 : index
    %47 = vector.load %arg3[%c0_29, %c0_30] : memref<8x1xf32, #tpu.memory_space<vmem>>, vector<8x1xf32>
    %48 = vector.broadcast %47 : vector<8x1xf32> to vector<8x286xf32>
    %49 = arith.addf %46, %48 : vector<8x286xf32>
    %c0_31 = arith.constant 0 : index
    %c0_32 = arith.constant 0 : index
    %50 = vector.load %arg4[%c0_31, %c0_32] : memref<1x286xf32, #tpu.memory_space<vmem>>, vector<1x286xf32>
    %51 = vector.broadcast %50 : vector<1x286xf32> to vector<8x286xf32>
    %52 = arith.mulf %49, %51 : vector<8x286xf32>
    %cst_33 = arith.constant 0.000000e+00 : f32
    %53 = vector.broadcast %cst_33 : f32 to vector<8x19xf32>
    %c0_34 = arith.constant 0 : index
    %c0_35 = arith.constant 0 : index
    %c0_36 = arith.constant 0 : index
    %54 = vector.load %arg5[%c0_34, %c0_35, %c0_36] : memref<1x8x324xf32, #tpu.memory_space<vmem>>, vector<1x8x19xf32>
    %55 = vector.shape_cast %54 : vector<1x8x19xf32> to vector<8x19xf32>
    %56 = vector.shape_cast %53 : vector<8x19xf32> to vector<1x8x19xf32>
    tpu.vector_store %arg5[%c0_34, %c0_35, %c0_36], %56 {strides = array<i32>} : memref<1x8x324xf32, #tpu.memory_space<vmem>>, vector<1x8x19xf32>,
    %c0_37 = arith.constant 0 : index
    %c0_38 = arith.constant 0 : index
    %c19 = arith.constant 19 : index
    %57 = vector.load %arg5[%c0_37, %c0_38, %c19] : memref<1x8x324xf32, #tpu.memory_space<vmem>>, vector<1x8x286xf32>
    %58 = vector.shape_cast %57 : vector<1x8x286xf32> to vector<8x286xf32>
    %59 = vector.shape_cast %52 : vector<8x286xf32> to vector<1x8x286xf32>
    tpu.vector_store %arg5[%c0_37, %c0_38, %c19], %59 {strides = array<i32>} : memref<1x8x324xf32, #tpu.memory_space<vmem>>, vector<1x8x286xf32>,
    %cst_39 = arith.constant 0.000000e+00 : f32
    %60 = vector.broadcast %cst_39 : f32 to vector<8x19xf32>
    %c0_40 = arith.constant 0 : index
    %c0_41 = arith.constant 0 : index
    %c305 = arith.constant 305 : index
    %61 = vector.load %arg5[%c0_40, %c0_41, %c305] : memref<1x8x324xf32, #tpu.memory_space<vmem>>, vector<1x8x19xf32>
    %62 = vector.shape_cast %61 : vector<1x8x19xf32> to vector<8x19xf32>
    %63 = vector.shape_cast %60 : vector<8x19xf32> to vector<1x8x19xf32>
    tpu.vector_store %arg5[%c0_40, %c0_41, %c305], %63 {strides = array<i32>} : memref<1x8x324xf32, #tpu.memory_space<vmem>>, vector<1x8x19xf32>,
    return
  }
  func.func @transform_0(%arg0: i32) -> (i32, i32, i32) {
    %c0_i32 = arith.constant 0 : i32
    %c0_i32_0 = arith.constant 0 : i32
    %c0_i32_1 = arith.constant 0 : i32
    return %arg0, %c0_i32, %c0_i32_0 : i32, i32, i32
  }
  func.func @transform_1(%arg0: i32) -> (i32, i32, i32) {
    %c0_i32 = arith.constant 0 : i32
    %c0_i32_0 = arith.constant 0 : i32
    %c0_i32_1 = arith.constant 0 : i32
    %c0_i32_2 = arith.constant 0 : i32
    return %c0_i32, %c0_i32_0, %c0_i32_1 : i32, i32, i32
  }
  func.func @transform_2(%arg0: i32) -> (i32, i32) {
    %c0_i32 = arith.constant 0 : i32
    %c0_i32_0 = arith.constant 0 : i32
    %c0_i32_1 = arith.constant 0 : i32
    return %c0_i32, %c0_i32_0 : i32, i32
  }
  func.func @transform_3(%arg0: i32) -> (i32, i32) {
    %c0_i32 = arith.constant 0 : i32
    %c0_i32_0 = arith.constant 0 : i32
    %c0_i32_1 = arith.constant 0 : i32
    return %c0_i32, %c0_i32_0 : i32, i32
  }
  func.func @transform_4(%arg0: i32) -> (i32, i32, i32) {
    %c0_i32 = arith.constant 0 : i32
    %c0_i32_0 = arith.constant 0 : i32
    %c0_i32_1 = arith.constant 0 : i32
    return %arg0, %c0_i32, %c0_i32_0 : i32, i32, i32
  }
}

module attributes {stable_mosaic.version = 11 : i64} {
  func.func @_dense_block_kernel(%arg0: i32, %arg1: memref<1x8x324xf32, #tpu.memory_space<vmem>>, %arg2: memref<1x8x324xf32, #tpu.memory_space<vmem>>, %arg3: memref<9x8x8xbf16, #tpu.memory_space<vmem>>, %arg4: memref<9x8x16xbf16, #tpu.memory_space<vmem>>, %arg5: memref<9x8x24xbf16, #tpu.memory_space<vmem>>, %arg6: memref<9x8x32xbf16, #tpu.memory_space<vmem>>, %arg7: memref<9x8x40xbf16, #tpu.memory_space<vmem>>, %arg8: memref<5x8x1xf32, #tpu.memory_space<vmem>>, %arg9: memref<1x286xf32, #tpu.memory_space<vmem>>, %arg10: memref<1x8x324xf32, #tpu.memory_space<vmem>>, %arg11: memref<40x324xf32, #tpu.memory_space<vmem>>) attributes {dimension_semantics = [#tpu.dimension_semantics<parallel>], iteration_bounds = array<i64: 2>, scalar_prefetch = 0 : i64, scratch_operands = 1 : i64, tpu.core_type = #tpu.core_type<tc>, window_params = [{transform_indices = @transform_0, window_bounds = array<i64: 1, 8, 324>}, {transform_indices = @transform_1, window_bounds = array<i64: 1, 8, 324>}, {pipeline_mode = #tpu.pipeline_mode<synchronous>, transform_indices = @transform_2, window_bounds = array<i64: 9, 8, 8>}, {pipeline_mode = #tpu.pipeline_mode<synchronous>, transform_indices = @transform_3, window_bounds = array<i64: 9, 8, 16>}, {pipeline_mode = #tpu.pipeline_mode<synchronous>, transform_indices = @transform_4, window_bounds = array<i64: 9, 8, 24>}, {pipeline_mode = #tpu.pipeline_mode<synchronous>, transform_indices = @transform_5, window_bounds = array<i64: 9, 8, 32>}, {pipeline_mode = #tpu.pipeline_mode<synchronous>, transform_indices = @transform_6, window_bounds = array<i64: 9, 8, 40>}, {pipeline_mode = #tpu.pipeline_mode<synchronous>, transform_indices = @transform_7, window_bounds = array<i64: 5, 8, 1>}, {pipeline_mode = #tpu.pipeline_mode<synchronous>, transform_indices = @transform_8, window_bounds = array<i64: 1, 286>}, {transform_indices = @transform_9, window_bounds = array<i64: 1, 8, 324>}]} {
    %c0 = arith.constant 0 : index
    %c0_0 = arith.constant 0 : index
    %0 = vector.load %arg9[%c0, %c0_0] : memref<1x286xf32, #tpu.memory_space<vmem>>, vector<1x286xf32>
    %c0_1 = arith.constant 0 : index
    %c0_2 = arith.constant 0 : index
    %c0_3 = arith.constant 0 : index
    %1 = vector.load %arg1[%c0_1, %c0_2, %c0_3] : memref<1x8x324xf32, #tpu.memory_space<vmem>>, vector<1x8x324xf32>
    %2 = vector.shape_cast %1 : vector<1x8x324xf32> to vector<8x324xf32>
    %c0_4 = arith.constant 0 : index
    %c0_5 = arith.constant 0 : index
    %3 = vector.load %arg11[%c0_4, %c0_5] : memref<40x324xf32, #tpu.memory_space<vmem>>, vector<8x324xf32>
    tpu.vector_store %arg11[%c0_4, %c0_5], %2 {strides = array<i32>} : memref<40x324xf32, #tpu.memory_space<vmem>>, vector<8x324xf32>,
    %cst = arith.constant 0.000000e+00 : f32
    %4 = vector.broadcast %cst : f32 to vector<32x19xf32>
    %c8 = arith.constant 8 : index
    %c0_6 = arith.constant 0 : index
    %5 = vector.load %arg11[%c8, %c0_6] : memref<40x324xf32, #tpu.memory_space<vmem>>, vector<32x19xf32>
    tpu.vector_store %arg11[%c8, %c0_6], %4 {strides = array<i32>} : memref<40x324xf32, #tpu.memory_space<vmem>>, vector<32x19xf32>,
    %cst_7 = arith.constant 0.000000e+00 : f32
    %6 = vector.broadcast %cst_7 : f32 to vector<32x19xf32>
    %c8_8 = arith.constant 8 : index
    %c305 = arith.constant 305 : index
    %7 = vector.load %arg11[%c8_8, %c305] : memref<40x324xf32, #tpu.memory_space<vmem>>, vector<32x19xf32>
    tpu.vector_store %arg11[%c8_8, %c305], %6 {strides = array<i32>} : memref<40x324xf32, #tpu.memory_space<vmem>>, vector<32x19xf32>,
    %c0_9 = arith.constant 0 : index
    %c0_10 = arith.constant 0 : index
    %8 = vector.load %arg11[%c0_9, %c0_10] : memref<40x324xf32, #tpu.memory_space<vmem>>, vector<8x324xf32>
    %9 = arith.truncf %8 : vector<8x324xf32> to vector<8x324xbf16>
    %c0_11 = arith.constant 0 : index
    %c0_12 = arith.constant 0 : index
    %c0_13 = arith.constant 0 : index
    %10 = vector.load %arg3[%c0_11, %c0_12, %c0_13] : memref<9x8x8xbf16, #tpu.memory_space<vmem>>, vector<1x8x8xbf16>
    %11 = vector.shape_cast %10 : vector<1x8x8xbf16> to vector<8x8xbf16>
    %12 = vector.extract_strided_slice %9 {offsets = [0, 0], sizes = [8, 286], strides = [1, 1]} : vector<8x324xbf16> to vector<8x286xbf16>
    %cst_14 = arith.constant dense<0.000000e+00> : vector<8x286xf32>
    %13 = tpu.matmul %11, %12, %cst_14 {dimension_numbers = #tpu.dot_dimension_numbers<[1], [0], [0], [1], [0, 0, 1, 1], [], []>} : vector<8x8xbf16>, vector<8x286xbf16>, vector<8x286xf32> -> vector<8x286xf32>
    %c1 = arith.constant 1 : index
    %c0_15 = arith.constant 0 : index
    %c0_16 = arith.constant 0 : index
    %14 = vector.load %arg3[%c1, %c0_15, %c0_16] : memref<9x8x8xbf16, #tpu.memory_space<vmem>>, vector<1x8x8xbf16>
    %15 = vector.shape_cast %14 : vector<1x8x8xbf16> to vector<8x8xbf16>
    %16 = vector.extract_strided_slice %9 {offsets = [0, 1], sizes = [8, 286], strides = [1, 1]} : vector<8x324xbf16> to vector<8x286xbf16>
    %cst_17 = arith.constant dense<0.000000e+00> : vector<8x286xf32>
    %17 = tpu.matmul %15, %16, %cst_17 {dimension_numbers = #tpu.dot_dimension_numbers<[1], [0], [0], [1], [0, 0, 1, 1], [], []>} : vector<8x8xbf16>, vector<8x286xbf16>, vector<8x286xf32> -> vector<8x286xf32>
    %18 = arith.addf %13, %17 : vector<8x286xf32>
    %c2 = arith.constant 2 : index
    %c0_18 = arith.constant 0 : index
    %c0_19 = arith.constant 0 : index
    %19 = vector.load %arg3[%c2, %c0_18, %c0_19] : memref<9x8x8xbf16, #tpu.memory_space<vmem>>, vector<1x8x8xbf16>
    %20 = vector.shape_cast %19 : vector<1x8x8xbf16> to vector<8x8xbf16>
    %21 = vector.extract_strided_slice %9 {offsets = [0, 2], sizes = [8, 286], strides = [1, 1]} : vector<8x324xbf16> to vector<8x286xbf16>
    %cst_20 = arith.constant dense<0.000000e+00> : vector<8x286xf32>
    %22 = tpu.matmul %20, %21, %cst_20 {dimension_numbers = #tpu.dot_dimension_numbers<[1], [0], [0], [1], [0, 0, 1, 1], [], []>} : vector<8x8xbf16>, vector<8x286xbf16>, vector<8x286xf32> -> vector<8x286xf32>
    %23 = arith.addf %18, %22 : vector<8x286xf32>
    %c3 = arith.constant 3 : index
    %c0_21 = arith.constant 0 : index
    %c0_22 = arith.constant 0 : index
    %24 = vector.load %arg3[%c3, %c0_21, %c0_22] : memref<9x8x8xbf16, #tpu.memory_space<vmem>>, vector<1x8x8xbf16>
    %25 = vector.shape_cast %24 : vector<1x8x8xbf16> to vector<8x8xbf16>
    %26 = vector.extract_strided_slice %9 {offsets = [0, 18], sizes = [8, 286], strides = [1, 1]} : vector<8x324xbf16> to vector<8x286xbf16>
    %cst_23 = arith.constant dense<0.000000e+00> : vector<8x286xf32>
    %27 = tpu.matmul %25, %26, %cst_23 {dimension_numbers = #tpu.dot_dimension_numbers<[1], [0], [0], [1], [0, 0, 1, 1], [], []>} : vector<8x8xbf16>, vector<8x286xbf16>, vector<8x286xf32> -> vector<8x286xf32>
    %28 = arith.addf %23, %27 : vector<8x286xf32>
    %c4 = arith.constant 4 : index
    %c0_24 = arith.constant 0 : index
    %c0_25 = arith.constant 0 : index
    %29 = vector.load %arg3[%c4, %c0_24, %c0_25] : memref<9x8x8xbf16, #tpu.memory_space<vmem>>, vector<1x8x8xbf16>
    %30 = vector.shape_cast %29 : vector<1x8x8xbf16> to vector<8x8xbf16>
    %31 = vector.extract_strided_slice %9 {offsets = [0, 19], sizes = [8, 286], strides = [1, 1]} : vector<8x324xbf16> to vector<8x286xbf16>
    %cst_26 = arith.constant dense<0.000000e+00> : vector<8x286xf32>
    %32 = tpu.matmul %30, %31, %cst_26 {dimension_numbers = #tpu.dot_dimension_numbers<[1], [0], [0], [1], [0, 0, 1, 1], [], []>} : vector<8x8xbf16>, vector<8x286xbf16>, vector<8x286xf32> -> vector<8x286xf32>
    %33 = arith.addf %28, %32 : vector<8x286xf32>
    %c5 = arith.constant 5 : index
    %c0_27 = arith.constant 0 : index
    %c0_28 = arith.constant 0 : index
    %34 = vector.load %arg3[%c5, %c0_27, %c0_28] : memref<9x8x8xbf16, #tpu.memory_space<vmem>>, vector<1x8x8xbf16>
    %35 = vector.shape_cast %34 : vector<1x8x8xbf16> to vector<8x8xbf16>
    %36 = vector.extract_strided_slice %9 {offsets = [0, 20], sizes = [8, 286], strides = [1, 1]} : vector<8x324xbf16> to vector<8x286xbf16>
    %cst_29 = arith.constant dense<0.000000e+00> : vector<8x286xf32>
    %37 = tpu.matmul %35, %36, %cst_29 {dimension_numbers = #tpu.dot_dimension_numbers<[1], [0], [0], [1], [0, 0, 1, 1], [], []>} : vector<8x8xbf16>, vector<8x286xbf16>, vector<8x286xf32> -> vector<8x286xf32>
    %38 = arith.addf %33, %37 : vector<8x286xf32>
    %c6 = arith.constant 6 : index
    %c0_30 = arith.constant 0 : index
    %c0_31 = arith.constant 0 : index
    %39 = vector.load %arg3[%c6, %c0_30, %c0_31] : memref<9x8x8xbf16, #tpu.memory_space<vmem>>, vector<1x8x8xbf16>
    %40 = vector.shape_cast %39 : vector<1x8x8xbf16> to vector<8x8xbf16>
    %41 = vector.extract_strided_slice %9 {offsets = [0, 36], sizes = [8, 286], strides = [1, 1]} : vector<8x324xbf16> to vector<8x286xbf16>
    %cst_32 = arith.constant dense<0.000000e+00> : vector<8x286xf32>
    %42 = tpu.matmul %40, %41, %cst_32 {dimension_numbers = #tpu.dot_dimension_numbers<[1], [0], [0], [1], [0, 0, 1, 1], [], []>} : vector<8x8xbf16>, vector<8x286xbf16>, vector<8x286xf32> -> vector<8x286xf32>
    %43 = arith.addf %38, %42 : vector<8x286xf32>
    %c7 = arith.constant 7 : index
    %c0_33 = arith.constant 0 : index
    %c0_34 = arith.constant 0 : index
    %44 = vector.load %arg3[%c7, %c0_33, %c0_34] : memref<9x8x8xbf16, #tpu.memory_space<vmem>>, vector<1x8x8xbf16>
    %45 = vector.shape_cast %44 : vector<1x8x8xbf16> to vector<8x8xbf16>
    %46 = vector.extract_strided_slice %9 {offsets = [0, 37], sizes = [8, 286], strides = [1, 1]} : vector<8x324xbf16> to vector<8x286xbf16>
    %cst_35 = arith.constant dense<0.000000e+00> : vector<8x286xf32>
    %47 = tpu.matmul %45, %46, %cst_35 {dimension_numbers = #tpu.dot_dimension_numbers<[1], [0], [0], [1], [0, 0, 1, 1], [], []>} : vector<8x8xbf16>, vector<8x286xbf16>, vector<8x286xf32> -> vector<8x286xf32>
    %48 = arith.addf %43, %47 : vector<8x286xf32>
    %c8_36 = arith.constant 8 : index
    %c0_37 = arith.constant 0 : index
    %c0_38 = arith.constant 0 : index
    %49 = vector.load %arg3[%c8_36, %c0_37, %c0_38] : memref<9x8x8xbf16, #tpu.memory_space<vmem>>, vector<1x8x8xbf16>
    %50 = vector.shape_cast %49 : vector<1x8x8xbf16> to vector<8x8xbf16>
    %51 = vector.extract_strided_slice %9 {offsets = [0, 38], sizes = [8, 286], strides = [1, 1]} : vector<8x324xbf16> to vector<8x286xbf16>
    %cst_39 = arith.constant dense<0.000000e+00> : vector<8x286xf32>
    %52 = tpu.matmul %50, %51, %cst_39 {dimension_numbers = #tpu.dot_dimension_numbers<[1], [0], [0], [1], [0, 0, 1, 1], [], []>} : vector<8x8xbf16>, vector<8x286xbf16>, vector<8x286xf32> -> vector<8x286xf32>
    %53 = arith.addf %48, %52 : vector<8x286xf32>
    %c0_40 = arith.constant 0 : index
    %c0_41 = arith.constant 0 : index
    %c0_42 = arith.constant 0 : index
    %54 = vector.load %arg8[%c0_40, %c0_41, %c0_42] : memref<5x8x1xf32, #tpu.memory_space<vmem>>, vector<1x8x1xf32>
    %55 = vector.shape_cast %54 : vector<1x8x1xf32> to vector<8x1xf32>
    %56 = vector.broadcast %55 : vector<8x1xf32> to vector<8x286xf32>
    %57 = arith.addf %53, %56 : vector<8x286xf32>
    %cst_43 = arith.constant 0.000000e+00 : f32
    %58 = vector.broadcast %cst_43 : f32 to vector<8x286xf32>
    %59 = arith.cmpf ogt, %57, %58 : vector<8x286xf32>
    %cst_44 = arith.constant 0.00999999977 : f32
    %60 = vector.broadcast %cst_44 : f32 to vector<8x286xf32>
    %61 = arith.mulf %60, %57 : vector<8x286xf32>
    %62 = arith.select %59, %57, %61 : vector<8x286xi1>, vector<8x286xf32>
    %63 = vector.broadcast %0 : vector<1x286xf32> to vector<8x286xf32>
    %64 = arith.mulf %62, %63 : vector<8x286xf32>
    %c8_45 = arith.constant 8 : index
    %c19 = arith.constant 19 : index
    %65 = vector.load %arg11[%c8_45, %c19] : memref<40x324xf32, #tpu.memory_space<vmem>>, vector<8x286xf32>
    tpu.vector_store %arg11[%c8_45, %c19], %64 {strides = array<i32>} : memref<40x324xf32, #tpu.memory_space<vmem>>, vector<8x286xf32>,
    %c0_46 = arith.constant 0 : index
    %c0_47 = arith.constant 0 : index
    %66 = vector.load %arg11[%c0_46, %c0_47] : memref<40x324xf32, #tpu.memory_space<vmem>>, vector<16x324xf32>
    %67 = arith.truncf %66 : vector<16x324xf32> to vector<16x324xbf16>
    %c0_48 = arith.constant 0 : index
    %c0_49 = arith.constant 0 : index
    %c0_50 = arith.constant 0 : index
    %68 = vector.load %arg4[%c0_48, %c0_49, %c0_50] : memref<9x8x16xbf16, #tpu.memory_space<vmem>>, vector<1x8x16xbf16>
    %69 = vector.shape_cast %68 : vector<1x8x16xbf16> to vector<8x16xbf16>
    %70 = vector.extract_strided_slice %67 {offsets = [0, 0], sizes = [16, 286], strides = [1, 1]} : vector<16x324xbf16> to vector<16x286xbf16>
    %cst_51 = arith.constant dense<0.000000e+00> : vector<8x286xf32>
    %71 = tpu.matmul %69, %70, %cst_51 {dimension_numbers = #tpu.dot_dimension_numbers<[1], [0], [0], [1], [0, 0, 1, 1], [], []>} : vector<8x16xbf16>, vector<16x286xbf16>, vector<8x286xf32> -> vector<8x286xf32>
    %c1_52 = arith.constant 1 : index
    %c0_53 = arith.constant 0 : index
    %c0_54 = arith.constant 0 : index
    %72 = vector.load %arg4[%c1_52, %c0_53, %c0_54] : memref<9x8x16xbf16, #tpu.memory_space<vmem>>, vector<1x8x16xbf16>
    %73 = vector.shape_cast %72 : vector<1x8x16xbf16> to vector<8x16xbf16>
    %74 = vector.extract_strided_slice %67 {offsets = [0, 1], sizes = [16, 286], strides = [1, 1]} : vector<16x324xbf16> to vector<16x286xbf16>
    %cst_55 = arith.constant dense<0.000000e+00> : vector<8x286xf32>
    %75 = tpu.matmul %73, %74, %cst_55 {dimension_numbers = #tpu.dot_dimension_numbers<[1], [0], [0], [1], [0, 0, 1, 1], [], []>} : vector<8x16xbf16>, vector<16x286xbf16>, vector<8x286xf32> -> vector<8x286xf32>
    %76 = arith.addf %71, %75 : vector<8x286xf32>
    %c2_56 = arith.constant 2 : index
    %c0_57 = arith.constant 0 : index
    %c0_58 = arith.constant 0 : index
    %77 = vector.load %arg4[%c2_56, %c0_57, %c0_58] : memref<9x8x16xbf16, #tpu.memory_space<vmem>>, vector<1x8x16xbf16>
    %78 = vector.shape_cast %77 : vector<1x8x16xbf16> to vector<8x16xbf16>
    %79 = vector.extract_strided_slice %67 {offsets = [0, 2], sizes = [16, 286], strides = [1, 1]} : vector<16x324xbf16> to vector<16x286xbf16>
    %cst_59 = arith.constant dense<0.000000e+00> : vector<8x286xf32>
    %80 = tpu.matmul %78, %79, %cst_59 {dimension_numbers = #tpu.dot_dimension_numbers<[1], [0], [0], [1], [0, 0, 1, 1], [], []>} : vector<8x16xbf16>, vector<16x286xbf16>, vector<8x286xf32> -> vector<8x286xf32>
    %81 = arith.addf %76, %80 : vector<8x286xf32>
    %c3_60 = arith.constant 3 : index
    %c0_61 = arith.constant 0 : index
    %c0_62 = arith.constant 0 : index
    %82 = vector.load %arg4[%c3_60, %c0_61, %c0_62] : memref<9x8x16xbf16, #tpu.memory_space<vmem>>, vector<1x8x16xbf16>
    %83 = vector.shape_cast %82 : vector<1x8x16xbf16> to vector<8x16xbf16>
    %84 = vector.extract_strided_slice %67 {offsets = [0, 18], sizes = [16, 286], strides = [1, 1]} : vector<16x324xbf16> to vector<16x286xbf16>
    %cst_63 = arith.constant dense<0.000000e+00> : vector<8x286xf32>
    %85 = tpu.matmul %83, %84, %cst_63 {dimension_numbers = #tpu.dot_dimension_numbers<[1], [0], [0], [1], [0, 0, 1, 1], [], []>} : vector<8x16xbf16>, vector<16x286xbf16>, vector<8x286xf32> -> vector<8x286xf32>
    %86 = arith.addf %81, %85 : vector<8x286xf32>
    %c4_64 = arith.constant 4 : index
    %c0_65 = arith.constant 0 : index
    %c0_66 = arith.constant 0 : index
    %87 = vector.load %arg4[%c4_64, %c0_65, %c0_66] : memref<9x8x16xbf16, #tpu.memory_space<vmem>>, vector<1x8x16xbf16>
    %88 = vector.shape_cast %87 : vector<1x8x16xbf16> to vector<8x16xbf16>
    %89 = vector.extract_strided_slice %67 {offsets = [0, 19], sizes = [16, 286], strides = [1, 1]} : vector<16x324xbf16> to vector<16x286xbf16>
    %cst_67 = arith.constant dense<0.000000e+00> : vector<8x286xf32>
    %90 = tpu.matmul %88, %89, %cst_67 {dimension_numbers = #tpu.dot_dimension_numbers<[1], [0], [0], [1], [0, 0, 1, 1], [], []>} : vector<8x16xbf16>, vector<16x286xbf16>, vector<8x286xf32> -> vector<8x286xf32>
    %91 = arith.addf %86, %90 : vector<8x286xf32>
    %c5_68 = arith.constant 5 : index
    %c0_69 = arith.constant 0 : index
    %c0_70 = arith.constant 0 : index
    %92 = vector.load %arg4[%c5_68, %c0_69, %c0_70] : memref<9x8x16xbf16, #tpu.memory_space<vmem>>, vector<1x8x16xbf16>
    %93 = vector.shape_cast %92 : vector<1x8x16xbf16> to vector<8x16xbf16>
    %94 = vector.extract_strided_slice %67 {offsets = [0, 20], sizes = [16, 286], strides = [1, 1]} : vector<16x324xbf16> to vector<16x286xbf16>
    %cst_71 = arith.constant dense<0.000000e+00> : vector<8x286xf32>
    %95 = tpu.matmul %93, %94, %cst_71 {dimension_numbers = #tpu.dot_dimension_numbers<[1], [0], [0], [1], [0, 0, 1, 1], [], []>} : vector<8x16xbf16>, vector<16x286xbf16>, vector<8x286xf32> -> vector<8x286xf32>
    %96 = arith.addf %91, %95 : vector<8x286xf32>
    %c6_72 = arith.constant 6 : index
    %c0_73 = arith.constant 0 : index
    %c0_74 = arith.constant 0 : index
    %97 = vector.load %arg4[%c6_72, %c0_73, %c0_74] : memref<9x8x16xbf16, #tpu.memory_space<vmem>>, vector<1x8x16xbf16>
    %98 = vector.shape_cast %97 : vector<1x8x16xbf16> to vector<8x16xbf16>
    %99 = vector.extract_strided_slice %67 {offsets = [0, 36], sizes = [16, 286], strides = [1, 1]} : vector<16x324xbf16> to vector<16x286xbf16>
    %cst_75 = arith.constant dense<0.000000e+00> : vector<8x286xf32>
    %100 = tpu.matmul %98, %99, %cst_75 {dimension_numbers = #tpu.dot_dimension_numbers<[1], [0], [0], [1], [0, 0, 1, 1], [], []>} : vector<8x16xbf16>, vector<16x286xbf16>, vector<8x286xf32> -> vector<8x286xf32>
    %101 = arith.addf %96, %100 : vector<8x286xf32>
    %c7_76 = arith.constant 7 : index
    %c0_77 = arith.constant 0 : index
    %c0_78 = arith.constant 0 : index
    %102 = vector.load %arg4[%c7_76, %c0_77, %c0_78] : memref<9x8x16xbf16, #tpu.memory_space<vmem>>, vector<1x8x16xbf16>
    %103 = vector.shape_cast %102 : vector<1x8x16xbf16> to vector<8x16xbf16>
    %104 = vector.extract_strided_slice %67 {offsets = [0, 37], sizes = [16, 286], strides = [1, 1]} : vector<16x324xbf16> to vector<16x286xbf16>
    %cst_79 = arith.constant dense<0.000000e+00> : vector<8x286xf32>
    %105 = tpu.matmul %103, %104, %cst_79 {dimension_numbers = #tpu.dot_dimension_numbers<[1], [0], [0], [1], [0, 0, 1, 1], [], []>} : vector<8x16xbf16>, vector<16x286xbf16>, vector<8x286xf32> -> vector<8x286xf32>
    %106 = arith.addf %101, %105 : vector<8x286xf32>
    %c8_80 = arith.constant 8 : index
    %c0_81 = arith.constant 0 : index
    %c0_82 = arith.constant 0 : index
    %107 = vector.load %arg4[%c8_80, %c0_81, %c0_82] : memref<9x8x16xbf16, #tpu.memory_space<vmem>>, vector<1x8x16xbf16>
    %108 = vector.shape_cast %107 : vector<1x8x16xbf16> to vector<8x16xbf16>
    %109 = vector.extract_strided_slice %67 {offsets = [0, 38], sizes = [16, 286], strides = [1, 1]} : vector<16x324xbf16> to vector<16x286xbf16>
    %cst_83 = arith.constant dense<0.000000e+00> : vector<8x286xf32>
    %110 = tpu.matmul %108, %109, %cst_83 {dimension_numbers = #tpu.dot_dimension_numbers<[1], [0], [0], [1], [0, 0, 1, 1], [], []>} : vector<8x16xbf16>, vector<16x286xbf16>, vector<8x286xf32> -> vector<8x286xf32>
    %111 = arith.addf %106, %110 : vector<8x286xf32>
    %c1_84 = arith.constant 1 : index
    %c0_85 = arith.constant 0 : index
    %c0_86 = arith.constant 0 : index
    %112 = vector.load %arg8[%c1_84, %c0_85, %c0_86] : memref<5x8x1xf32, #tpu.memory_space<vmem>>, vector<1x8x1xf32>
    %113 = vector.shape_cast %112 : vector<1x8x1xf32> to vector<8x1xf32>
    %114 = vector.broadcast %113 : vector<8x1xf32> to vector<8x286xf32>
    %115 = arith.addf %111, %114 : vector<8x286xf32>
    %cst_87 = arith.constant 0.000000e+00 : f32
    %116 = vector.broadcast %cst_87 : f32 to vector<8x286xf32>
    %117 = arith.cmpf ogt, %115, %116 : vector<8x286xf32>
    %cst_88 = arith.constant 0.00999999977 : f32
    %118 = vector.broadcast %cst_88 : f32 to vector<8x286xf32>
    %119 = arith.mulf %118, %115 : vector<8x286xf32>
    %120 = arith.select %117, %115, %119 : vector<8x286xi1>, vector<8x286xf32>
    %121 = vector.broadcast %0 : vector<1x286xf32> to vector<8x286xf32>
    %122 = arith.mulf %120, %121 : vector<8x286xf32>
    %c16 = arith.constant 16 : index
    %c19_89 = arith.constant 19 : index
    %123 = vector.load %arg11[%c16, %c19_89] : memref<40x324xf32, #tpu.memory_space<vmem>>, vector<8x286xf32>
    tpu.vector_store %arg11[%c16, %c19_89], %122 {strides = array<i32>} : memref<40x324xf32, #tpu.memory_space<vmem>>, vector<8x286xf32>,
    %c0_90 = arith.constant 0 : index
    %c0_91 = arith.constant 0 : index
    %124 = vector.load %arg11[%c0_90, %c0_91] : memref<40x324xf32, #tpu.memory_space<vmem>>, vector<24x324xf32>
    %125 = arith.truncf %124 : vector<24x324xf32> to vector<24x324xbf16>
    %c0_92 = arith.constant 0 : index
    %c0_93 = arith.constant 0 : index
    %c0_94 = arith.constant 0 : index
    %126 = vector.load %arg5[%c0_92, %c0_93, %c0_94] : memref<9x8x24xbf16, #tpu.memory_space<vmem>>, vector<1x8x24xbf16>
    %127 = vector.shape_cast %126 : vector<1x8x24xbf16> to vector<8x24xbf16>
    %128 = vector.extract_strided_slice %125 {offsets = [0, 0], sizes = [24, 286], strides = [1, 1]} : vector<24x324xbf16> to vector<24x286xbf16>
    %cst_95 = arith.constant dense<0.000000e+00> : vector<8x286xf32>
    %129 = tpu.matmul %127, %128, %cst_95 {dimension_numbers = #tpu.dot_dimension_numbers<[1], [0], [0], [1], [0, 0, 1, 1], [], []>} : vector<8x24xbf16>, vector<24x286xbf16>, vector<8x286xf32> -> vector<8x286xf32>
    %c1_96 = arith.constant 1 : index
    %c0_97 = arith.constant 0 : index
    %c0_98 = arith.constant 0 : index
    %130 = vector.load %arg5[%c1_96, %c0_97, %c0_98] : memref<9x8x24xbf16, #tpu.memory_space<vmem>>, vector<1x8x24xbf16>
    %131 = vector.shape_cast %130 : vector<1x8x24xbf16> to vector<8x24xbf16>
    %132 = vector.extract_strided_slice %125 {offsets = [0, 1], sizes = [24, 286], strides = [1, 1]} : vector<24x324xbf16> to vector<24x286xbf16>
    %cst_99 = arith.constant dense<0.000000e+00> : vector<8x286xf32>
    %133 = tpu.matmul %131, %132, %cst_99 {dimension_numbers = #tpu.dot_dimension_numbers<[1], [0], [0], [1], [0, 0, 1, 1], [], []>} : vector<8x24xbf16>, vector<24x286xbf16>, vector<8x286xf32> -> vector<8x286xf32>
    %134 = arith.addf %129, %133 : vector<8x286xf32>
    %c2_100 = arith.constant 2 : index
    %c0_101 = arith.constant 0 : index
    %c0_102 = arith.constant 0 : index
    %135 = vector.load %arg5[%c2_100, %c0_101, %c0_102] : memref<9x8x24xbf16, #tpu.memory_space<vmem>>, vector<1x8x24xbf16>
    %136 = vector.shape_cast %135 : vector<1x8x24xbf16> to vector<8x24xbf16>
    %137 = vector.extract_strided_slice %125 {offsets = [0, 2], sizes = [24, 286], strides = [1, 1]} : vector<24x324xbf16> to vector<24x286xbf16>
    %cst_103 = arith.constant dense<0.000000e+00> : vector<8x286xf32>
    %138 = tpu.matmul %136, %137, %cst_103 {dimension_numbers = #tpu.dot_dimension_numbers<[1], [0], [0], [1], [0, 0, 1, 1], [], []>} : vector<8x24xbf16>, vector<24x286xbf16>, vector<8x286xf32> -> vector<8x286xf32>
    %139 = arith.addf %134, %138 : vector<8x286xf32>
    %c3_104 = arith.constant 3 : index
    %c0_105 = arith.constant 0 : index
    %c0_106 = arith.constant 0 : index
    %140 = vector.load %arg5[%c3_104, %c0_105, %c0_106] : memref<9x8x24xbf16, #tpu.memory_space<vmem>>, vector<1x8x24xbf16>
    %141 = vector.shape_cast %140 : vector<1x8x24xbf16> to vector<8x24xbf16>
    %142 = vector.extract_strided_slice %125 {offsets = [0, 18], sizes = [24, 286], strides = [1, 1]} : vector<24x324xbf16> to vector<24x286xbf16>
    %cst_107 = arith.constant dense<0.000000e+00> : vector<8x286xf32>
    %143 = tpu.matmul %141, %142, %cst_107 {dimension_numbers = #tpu.dot_dimension_numbers<[1], [0], [0], [1], [0, 0, 1, 1], [], []>} : vector<8x24xbf16>, vector<24x286xbf16>, vector<8x286xf32> -> vector<8x286xf32>
    %144 = arith.addf %139, %143 : vector<8x286xf32>
    %c4_108 = arith.constant 4 : index
    %c0_109 = arith.constant 0 : index
    %c0_110 = arith.constant 0 : index
    %145 = vector.load %arg5[%c4_108, %c0_109, %c0_110] : memref<9x8x24xbf16, #tpu.memory_space<vmem>>, vector<1x8x24xbf16>
    %146 = vector.shape_cast %145 : vector<1x8x24xbf16> to vector<8x24xbf16>
    %147 = vector.extract_strided_slice %125 {offsets = [0, 19], sizes = [24, 286], strides = [1, 1]} : vector<24x324xbf16> to vector<24x286xbf16>
    %cst_111 = arith.constant dense<0.000000e+00> : vector<8x286xf32>
    %148 = tpu.matmul %146, %147, %cst_111 {dimension_numbers = #tpu.dot_dimension_numbers<[1], [0], [0], [1], [0, 0, 1, 1], [], []>} : vector<8x24xbf16>, vector<24x286xbf16>, vector<8x286xf32> -> vector<8x286xf32>
    %149 = arith.addf %144, %148 : vector<8x286xf32>
    %c5_112 = arith.constant 5 : index
    %c0_113 = arith.constant 0 : index
    %c0_114 = arith.constant 0 : index
    %150 = vector.load %arg5[%c5_112, %c0_113, %c0_114] : memref<9x8x24xbf16, #tpu.memory_space<vmem>>, vector<1x8x24xbf16>
    %151 = vector.shape_cast %150 : vector<1x8x24xbf16> to vector<8x24xbf16>
    %152 = vector.extract_strided_slice %125 {offsets = [0, 20], sizes = [24, 286], strides = [1, 1]} : vector<24x324xbf16> to vector<24x286xbf16>
    %cst_115 = arith.constant dense<0.000000e+00> : vector<8x286xf32>
    %153 = tpu.matmul %151, %152, %cst_115 {dimension_numbers = #tpu.dot_dimension_numbers<[1], [0], [0], [1], [0, 0, 1, 1], [], []>} : vector<8x24xbf16>, vector<24x286xbf16>, vector<8x286xf32> -> vector<8x286xf32>
    %154 = arith.addf %149, %153 : vector<8x286xf32>
    %c6_116 = arith.constant 6 : index
    %c0_117 = arith.constant 0 : index
    %c0_118 = arith.constant 0 : index
    %155 = vector.load %arg5[%c6_116, %c0_117, %c0_118] : memref<9x8x24xbf16, #tpu.memory_space<vmem>>, vector<1x8x24xbf16>
    %156 = vector.shape_cast %155 : vector<1x8x24xbf16> to vector<8x24xbf16>
    %157 = vector.extract_strided_slice %125 {offsets = [0, 36], sizes = [24, 286], strides = [1, 1]} : vector<24x324xbf16> to vector<24x286xbf16>
    %cst_119 = arith.constant dense<0.000000e+00> : vector<8x286xf32>
    %158 = tpu.matmul %156, %157, %cst_119 {dimension_numbers = #tpu.dot_dimension_numbers<[1], [0], [0], [1], [0, 0, 1, 1], [], []>} : vector<8x24xbf16>, vector<24x286xbf16>, vector<8x286xf32> -> vector<8x286xf32>
    %159 = arith.addf %154, %158 : vector<8x286xf32>
    %c7_120 = arith.constant 7 : index
    %c0_121 = arith.constant 0 : index
    %c0_122 = arith.constant 0 : index
    %160 = vector.load %arg5[%c7_120, %c0_121, %c0_122] : memref<9x8x24xbf16, #tpu.memory_space<vmem>>, vector<1x8x24xbf16>
    %161 = vector.shape_cast %160 : vector<1x8x24xbf16> to vector<8x24xbf16>
    %162 = vector.extract_strided_slice %125 {offsets = [0, 37], sizes = [24, 286], strides = [1, 1]} : vector<24x324xbf16> to vector<24x286xbf16>
    %cst_123 = arith.constant dense<0.000000e+00> : vector<8x286xf32>
    %163 = tpu.matmul %161, %162, %cst_123 {dimension_numbers = #tpu.dot_dimension_numbers<[1], [0], [0], [1], [0, 0, 1, 1], [], []>} : vector<8x24xbf16>, vector<24x286xbf16>, vector<8x286xf32> -> vector<8x286xf32>
    %164 = arith.addf %159, %163 : vector<8x286xf32>
    %c8_124 = arith.constant 8 : index
    %c0_125 = arith.constant 0 : index
    %c0_126 = arith.constant 0 : index
    %165 = vector.load %arg5[%c8_124, %c0_125, %c0_126] : memref<9x8x24xbf16, #tpu.memory_space<vmem>>, vector<1x8x24xbf16>
    %166 = vector.shape_cast %165 : vector<1x8x24xbf16> to vector<8x24xbf16>
    %167 = vector.extract_strided_slice %125 {offsets = [0, 38], sizes = [24, 286], strides = [1, 1]} : vector<24x324xbf16> to vector<24x286xbf16>
    %cst_127 = arith.constant dense<0.000000e+00> : vector<8x286xf32>
    %168 = tpu.matmul %166, %167, %cst_127 {dimension_numbers = #tpu.dot_dimension_numbers<[1], [0], [0], [1], [0, 0, 1, 1], [], []>} : vector<8x24xbf16>, vector<24x286xbf16>, vector<8x286xf32> -> vector<8x286xf32>
    %169 = arith.addf %164, %168 : vector<8x286xf32>
    %c2_128 = arith.constant 2 : index
    %c0_129 = arith.constant 0 : index
    %c0_130 = arith.constant 0 : index
    %170 = vector.load %arg8[%c2_128, %c0_129, %c0_130] : memref<5x8x1xf32, #tpu.memory_space<vmem>>, vector<1x8x1xf32>
    %171 = vector.shape_cast %170 : vector<1x8x1xf32> to vector<8x1xf32>
    %172 = vector.broadcast %171 : vector<8x1xf32> to vector<8x286xf32>
    %173 = arith.addf %169, %172 : vector<8x286xf32>
    %cst_131 = arith.constant 0.000000e+00 : f32
    %174 = vector.broadcast %cst_131 : f32 to vector<8x286xf32>
    %175 = arith.cmpf ogt, %173, %174 : vector<8x286xf32>
    %cst_132 = arith.constant 0.00999999977 : f32
    %176 = vector.broadcast %cst_132 : f32 to vector<8x286xf32>
    %177 = arith.mulf %176, %173 : vector<8x286xf32>
    %178 = arith.select %175, %173, %177 : vector<8x286xi1>, vector<8x286xf32>
    %179 = vector.broadcast %0 : vector<1x286xf32> to vector<8x286xf32>
    %180 = arith.mulf %178, %179 : vector<8x286xf32>
    %c24 = arith.constant 24 : index
    %c19_133 = arith.constant 19 : index
    %181 = vector.load %arg11[%c24, %c19_133] : memref<40x324xf32, #tpu.memory_space<vmem>>, vector<8x286xf32>
    tpu.vector_store %arg11[%c24, %c19_133], %180 {strides = array<i32>} : memref<40x324xf32, #tpu.memory_space<vmem>>, vector<8x286xf32>,
    %c0_134 = arith.constant 0 : index
    %c0_135 = arith.constant 0 : index
    %182 = vector.load %arg11[%c0_134, %c0_135] : memref<40x324xf32, #tpu.memory_space<vmem>>, vector<32x324xf32>
    %183 = arith.truncf %182 : vector<32x324xf32> to vector<32x324xbf16>
    %c0_136 = arith.constant 0 : index
    %c0_137 = arith.constant 0 : index
    %c0_138 = arith.constant 0 : index
    %184 = vector.load %arg6[%c0_136, %c0_137, %c0_138] : memref<9x8x32xbf16, #tpu.memory_space<vmem>>, vector<1x8x32xbf16>
    %185 = vector.shape_cast %184 : vector<1x8x32xbf16> to vector<8x32xbf16>
    %186 = vector.extract_strided_slice %183 {offsets = [0, 0], sizes = [32, 286], strides = [1, 1]} : vector<32x324xbf16> to vector<32x286xbf16>
    %cst_139 = arith.constant dense<0.000000e+00> : vector<8x286xf32>
    %187 = tpu.matmul %185, %186, %cst_139 {dimension_numbers = #tpu.dot_dimension_numbers<[1], [0], [0], [1], [0, 0, 1, 1], [], []>} : vector<8x32xbf16>, vector<32x286xbf16>, vector<8x286xf32> -> vector<8x286xf32>
    %c1_140 = arith.constant 1 : index
    %c0_141 = arith.constant 0 : index
    %c0_142 = arith.constant 0 : index
    %188 = vector.load %arg6[%c1_140, %c0_141, %c0_142] : memref<9x8x32xbf16, #tpu.memory_space<vmem>>, vector<1x8x32xbf16>
    %189 = vector.shape_cast %188 : vector<1x8x32xbf16> to vector<8x32xbf16>
    %190 = vector.extract_strided_slice %183 {offsets = [0, 1], sizes = [32, 286], strides = [1, 1]} : vector<32x324xbf16> to vector<32x286xbf16>
    %cst_143 = arith.constant dense<0.000000e+00> : vector<8x286xf32>
    %191 = tpu.matmul %189, %190, %cst_143 {dimension_numbers = #tpu.dot_dimension_numbers<[1], [0], [0], [1], [0, 0, 1, 1], [], []>} : vector<8x32xbf16>, vector<32x286xbf16>, vector<8x286xf32> -> vector<8x286xf32>
    %192 = arith.addf %187, %191 : vector<8x286xf32>
    %c2_144 = arith.constant 2 : index
    %c0_145 = arith.constant 0 : index
    %c0_146 = arith.constant 0 : index
    %193 = vector.load %arg6[%c2_144, %c0_145, %c0_146] : memref<9x8x32xbf16, #tpu.memory_space<vmem>>, vector<1x8x32xbf16>
    %194 = vector.shape_cast %193 : vector<1x8x32xbf16> to vector<8x32xbf16>
    %195 = vector.extract_strided_slice %183 {offsets = [0, 2], sizes = [32, 286], strides = [1, 1]} : vector<32x324xbf16> to vector<32x286xbf16>
    %cst_147 = arith.constant dense<0.000000e+00> : vector<8x286xf32>
    %196 = tpu.matmul %194, %195, %cst_147 {dimension_numbers = #tpu.dot_dimension_numbers<[1], [0], [0], [1], [0, 0, 1, 1], [], []>} : vector<8x32xbf16>, vector<32x286xbf16>, vector<8x286xf32> -> vector<8x286xf32>
    %197 = arith.addf %192, %196 : vector<8x286xf32>
    %c3_148 = arith.constant 3 : index
    %c0_149 = arith.constant 0 : index
    %c0_150 = arith.constant 0 : index
    %198 = vector.load %arg6[%c3_148, %c0_149, %c0_150] : memref<9x8x32xbf16, #tpu.memory_space<vmem>>, vector<1x8x32xbf16>
    %199 = vector.shape_cast %198 : vector<1x8x32xbf16> to vector<8x32xbf16>
    %200 = vector.extract_strided_slice %183 {offsets = [0, 18], sizes = [32, 286], strides = [1, 1]} : vector<32x324xbf16> to vector<32x286xbf16>
    %cst_151 = arith.constant dense<0.000000e+00> : vector<8x286xf32>
    %201 = tpu.matmul %199, %200, %cst_151 {dimension_numbers = #tpu.dot_dimension_numbers<[1], [0], [0], [1], [0, 0, 1, 1], [], []>} : vector<8x32xbf16>, vector<32x286xbf16>, vector<8x286xf32> -> vector<8x286xf32>
    %202 = arith.addf %197, %201 : vector<8x286xf32>
    %c4_152 = arith.constant 4 : index
    %c0_153 = arith.constant 0 : index
    %c0_154 = arith.constant 0 : index
    %203 = vector.load %arg6[%c4_152, %c0_153, %c0_154] : memref<9x8x32xbf16, #tpu.memory_space<vmem>>, vector<1x8x32xbf16>
    %204 = vector.shape_cast %203 : vector<1x8x32xbf16> to vector<8x32xbf16>
    %205 = vector.extract_strided_slice %183 {offsets = [0, 19], sizes = [32, 286], strides = [1, 1]} : vector<32x324xbf16> to vector<32x286xbf16>
    %cst_155 = arith.constant dense<0.000000e+00> : vector<8x286xf32>
    %206 = tpu.matmul %204, %205, %cst_155 {dimension_numbers = #tpu.dot_dimension_numbers<[1], [0], [0], [1], [0, 0, 1, 1], [], []>} : vector<8x32xbf16>, vector<32x286xbf16>, vector<8x286xf32> -> vector<8x286xf32>
    %207 = arith.addf %202, %206 : vector<8x286xf32>
    %c5_156 = arith.constant 5 : index
    %c0_157 = arith.constant 0 : index
    %c0_158 = arith.constant 0 : index
    %208 = vector.load %arg6[%c5_156, %c0_157, %c0_158] : memref<9x8x32xbf16, #tpu.memory_space<vmem>>, vector<1x8x32xbf16>
    %209 = vector.shape_cast %208 : vector<1x8x32xbf16> to vector<8x32xbf16>
    %210 = vector.extract_strided_slice %183 {offsets = [0, 20], sizes = [32, 286], strides = [1, 1]} : vector<32x324xbf16> to vector<32x286xbf16>
    %cst_159 = arith.constant dense<0.000000e+00> : vector<8x286xf32>
    %211 = tpu.matmul %209, %210, %cst_159 {dimension_numbers = #tpu.dot_dimension_numbers<[1], [0], [0], [1], [0, 0, 1, 1], [], []>} : vector<8x32xbf16>, vector<32x286xbf16>, vector<8x286xf32> -> vector<8x286xf32>
    %212 = arith.addf %207, %211 : vector<8x286xf32>
    %c6_160 = arith.constant 6 : index
    %c0_161 = arith.constant 0 : index
    %c0_162 = arith.constant 0 : index
    %213 = vector.load %arg6[%c6_160, %c0_161, %c0_162] : memref<9x8x32xbf16, #tpu.memory_space<vmem>>, vector<1x8x32xbf16>
    %214 = vector.shape_cast %213 : vector<1x8x32xbf16> to vector<8x32xbf16>
    %215 = vector.extract_strided_slice %183 {offsets = [0, 36], sizes = [32, 286], strides = [1, 1]} : vector<32x324xbf16> to vector<32x286xbf16>
    %cst_163 = arith.constant dense<0.000000e+00> : vector<8x286xf32>
    %216 = tpu.matmul %214, %215, %cst_163 {dimension_numbers = #tpu.dot_dimension_numbers<[1], [0], [0], [1], [0, 0, 1, 1], [], []>} : vector<8x32xbf16>, vector<32x286xbf16>, vector<8x286xf32> -> vector<8x286xf32>
    %217 = arith.addf %212, %216 : vector<8x286xf32>
    %c7_164 = arith.constant 7 : index
    %c0_165 = arith.constant 0 : index
    %c0_166 = arith.constant 0 : index
    %218 = vector.load %arg6[%c7_164, %c0_165, %c0_166] : memref<9x8x32xbf16, #tpu.memory_space<vmem>>, vector<1x8x32xbf16>
    %219 = vector.shape_cast %218 : vector<1x8x32xbf16> to vector<8x32xbf16>
    %220 = vector.extract_strided_slice %183 {offsets = [0, 37], sizes = [32, 286], strides = [1, 1]} : vector<32x324xbf16> to vector<32x286xbf16>
    %cst_167 = arith.constant dense<0.000000e+00> : vector<8x286xf32>
    %221 = tpu.matmul %219, %220, %cst_167 {dimension_numbers = #tpu.dot_dimension_numbers<[1], [0], [0], [1], [0, 0, 1, 1], [], []>} : vector<8x32xbf16>, vector<32x286xbf16>, vector<8x286xf32> -> vector<8x286xf32>
    %222 = arith.addf %217, %221 : vector<8x286xf32>
    %c8_168 = arith.constant 8 : index
    %c0_169 = arith.constant 0 : index
    %c0_170 = arith.constant 0 : index
    %223 = vector.load %arg6[%c8_168, %c0_169, %c0_170] : memref<9x8x32xbf16, #tpu.memory_space<vmem>>, vector<1x8x32xbf16>
    %224 = vector.shape_cast %223 : vector<1x8x32xbf16> to vector<8x32xbf16>
    %225 = vector.extract_strided_slice %183 {offsets = [0, 38], sizes = [32, 286], strides = [1, 1]} : vector<32x324xbf16> to vector<32x286xbf16>
    %cst_171 = arith.constant dense<0.000000e+00> : vector<8x286xf32>
    %226 = tpu.matmul %224, %225, %cst_171 {dimension_numbers = #tpu.dot_dimension_numbers<[1], [0], [0], [1], [0, 0, 1, 1], [], []>} : vector<8x32xbf16>, vector<32x286xbf16>, vector<8x286xf32> -> vector<8x286xf32>
    %227 = arith.addf %222, %226 : vector<8x286xf32>
    %c3_172 = arith.constant 3 : index
    %c0_173 = arith.constant 0 : index
    %c0_174 = arith.constant 0 : index
    %228 = vector.load %arg8[%c3_172, %c0_173, %c0_174] : memref<5x8x1xf32, #tpu.memory_space<vmem>>, vector<1x8x1xf32>
    %229 = vector.shape_cast %228 : vector<1x8x1xf32> to vector<8x1xf32>
    %230 = vector.broadcast %229 : vector<8x1xf32> to vector<8x286xf32>
    %231 = arith.addf %227, %230 : vector<8x286xf32>
    %cst_175 = arith.constant 0.000000e+00 : f32
    %232 = vector.broadcast %cst_175 : f32 to vector<8x286xf32>
    %233 = arith.cmpf ogt, %231, %232 : vector<8x286xf32>
    %cst_176 = arith.constant 0.00999999977 : f32
    %234 = vector.broadcast %cst_176 : f32 to vector<8x286xf32>
    %235 = arith.mulf %234, %231 : vector<8x286xf32>
    %236 = arith.select %233, %231, %235 : vector<8x286xi1>, vector<8x286xf32>
    %237 = vector.broadcast %0 : vector<1x286xf32> to vector<8x286xf32>
    %238 = arith.mulf %236, %237 : vector<8x286xf32>
    %c32 = arith.constant 32 : index
    %c19_177 = arith.constant 19 : index
    %239 = vector.load %arg11[%c32, %c19_177] : memref<40x324xf32, #tpu.memory_space<vmem>>, vector<8x286xf32>
    tpu.vector_store %arg11[%c32, %c19_177], %238 {strides = array<i32>} : memref<40x324xf32, #tpu.memory_space<vmem>>, vector<8x286xf32>,
    %c0_178 = arith.constant 0 : index
    %c0_179 = arith.constant 0 : index
    %240 = vector.load %arg11[%c0_178, %c0_179] : memref<40x324xf32, #tpu.memory_space<vmem>>, vector<40x324xf32>
    %241 = arith.truncf %240 : vector<40x324xf32> to vector<40x324xbf16>
    %c0_180 = arith.constant 0 : index
    %c0_181 = arith.constant 0 : index
    %c0_182 = arith.constant 0 : index
    %242 = vector.load %arg7[%c0_180, %c0_181, %c0_182] : memref<9x8x40xbf16, #tpu.memory_space<vmem>>, vector<1x8x40xbf16>
    %243 = vector.shape_cast %242 : vector<1x8x40xbf16> to vector<8x40xbf16>
    %244 = vector.extract_strided_slice %241 {offsets = [0, 0], sizes = [40, 286], strides = [1, 1]} : vector<40x324xbf16> to vector<40x286xbf16>
    %cst_183 = arith.constant dense<0.000000e+00> : vector<8x286xf32>
    %245 = tpu.matmul %243, %244, %cst_183 {dimension_numbers = #tpu.dot_dimension_numbers<[1], [0], [0], [1], [0, 0, 1, 1], [], []>} : vector<8x40xbf16>, vector<40x286xbf16>, vector<8x286xf32> -> vector<8x286xf32>
    %c1_184 = arith.constant 1 : index
    %c0_185 = arith.constant 0 : index
    %c0_186 = arith.constant 0 : index
    %246 = vector.load %arg7[%c1_184, %c0_185, %c0_186] : memref<9x8x40xbf16, #tpu.memory_space<vmem>>, vector<1x8x40xbf16>
    %247 = vector.shape_cast %246 : vector<1x8x40xbf16> to vector<8x40xbf16>
    %248 = vector.extract_strided_slice %241 {offsets = [0, 1], sizes = [40, 286], strides = [1, 1]} : vector<40x324xbf16> to vector<40x286xbf16>
    %cst_187 = arith.constant dense<0.000000e+00> : vector<8x286xf32>
    %249 = tpu.matmul %247, %248, %cst_187 {dimension_numbers = #tpu.dot_dimension_numbers<[1], [0], [0], [1], [0, 0, 1, 1], [], []>} : vector<8x40xbf16>, vector<40x286xbf16>, vector<8x286xf32> -> vector<8x286xf32>
    %250 = arith.addf %245, %249 : vector<8x286xf32>
    %c2_188 = arith.constant 2 : index
    %c0_189 = arith.constant 0 : index
    %c0_190 = arith.constant 0 : index
    %251 = vector.load %arg7[%c2_188, %c0_189, %c0_190] : memref<9x8x40xbf16, #tpu.memory_space<vmem>>, vector<1x8x40xbf16>
    %252 = vector.shape_cast %251 : vector<1x8x40xbf16> to vector<8x40xbf16>
    %253 = vector.extract_strided_slice %241 {offsets = [0, 2], sizes = [40, 286], strides = [1, 1]} : vector<40x324xbf16> to vector<40x286xbf16>
    %cst_191 = arith.constant dense<0.000000e+00> : vector<8x286xf32>
    %254 = tpu.matmul %252, %253, %cst_191 {dimension_numbers = #tpu.dot_dimension_numbers<[1], [0], [0], [1], [0, 0, 1, 1], [], []>} : vector<8x40xbf16>, vector<40x286xbf16>, vector<8x286xf32> -> vector<8x286xf32>
    %255 = arith.addf %250, %254 : vector<8x286xf32>
    %c3_192 = arith.constant 3 : index
    %c0_193 = arith.constant 0 : index
    %c0_194 = arith.constant 0 : index
    %256 = vector.load %arg7[%c3_192, %c0_193, %c0_194] : memref<9x8x40xbf16, #tpu.memory_space<vmem>>, vector<1x8x40xbf16>
    %257 = vector.shape_cast %256 : vector<1x8x40xbf16> to vector<8x40xbf16>
    %258 = vector.extract_strided_slice %241 {offsets = [0, 18], sizes = [40, 286], strides = [1, 1]} : vector<40x324xbf16> to vector<40x286xbf16>
    %cst_195 = arith.constant dense<0.000000e+00> : vector<8x286xf32>
    %259 = tpu.matmul %257, %258, %cst_195 {dimension_numbers = #tpu.dot_dimension_numbers<[1], [0], [0], [1], [0, 0, 1, 1], [], []>} : vector<8x40xbf16>, vector<40x286xbf16>, vector<8x286xf32> -> vector<8x286xf32>
    %260 = arith.addf %255, %259 : vector<8x286xf32>
    %c4_196 = arith.constant 4 : index
    %c0_197 = arith.constant 0 : index
    %c0_198 = arith.constant 0 : index
    %261 = vector.load %arg7[%c4_196, %c0_197, %c0_198] : memref<9x8x40xbf16, #tpu.memory_space<vmem>>, vector<1x8x40xbf16>
    %262 = vector.shape_cast %261 : vector<1x8x40xbf16> to vector<8x40xbf16>
    %263 = vector.extract_strided_slice %241 {offsets = [0, 19], sizes = [40, 286], strides = [1, 1]} : vector<40x324xbf16> to vector<40x286xbf16>
    %cst_199 = arith.constant dense<0.000000e+00> : vector<8x286xf32>
    %264 = tpu.matmul %262, %263, %cst_199 {dimension_numbers = #tpu.dot_dimension_numbers<[1], [0], [0], [1], [0, 0, 1, 1], [], []>} : vector<8x40xbf16>, vector<40x286xbf16>, vector<8x286xf32> -> vector<8x286xf32>
    %265 = arith.addf %260, %264 : vector<8x286xf32>
    %c5_200 = arith.constant 5 : index
    %c0_201 = arith.constant 0 : index
    %c0_202 = arith.constant 0 : index
    %266 = vector.load %arg7[%c5_200, %c0_201, %c0_202] : memref<9x8x40xbf16, #tpu.memory_space<vmem>>, vector<1x8x40xbf16>
    %267 = vector.shape_cast %266 : vector<1x8x40xbf16> to vector<8x40xbf16>
    %268 = vector.extract_strided_slice %241 {offsets = [0, 20], sizes = [40, 286], strides = [1, 1]} : vector<40x324xbf16> to vector<40x286xbf16>
    %cst_203 = arith.constant dense<0.000000e+00> : vector<8x286xf32>
    %269 = tpu.matmul %267, %268, %cst_203 {dimension_numbers = #tpu.dot_dimension_numbers<[1], [0], [0], [1], [0, 0, 1, 1], [], []>} : vector<8x40xbf16>, vector<40x286xbf16>, vector<8x286xf32> -> vector<8x286xf32>
    %270 = arith.addf %265, %269 : vector<8x286xf32>
    %c6_204 = arith.constant 6 : index
    %c0_205 = arith.constant 0 : index
    %c0_206 = arith.constant 0 : index
    %271 = vector.load %arg7[%c6_204, %c0_205, %c0_206] : memref<9x8x40xbf16, #tpu.memory_space<vmem>>, vector<1x8x40xbf16>
    %272 = vector.shape_cast %271 : vector<1x8x40xbf16> to vector<8x40xbf16>
    %273 = vector.extract_strided_slice %241 {offsets = [0, 36], sizes = [40, 286], strides = [1, 1]} : vector<40x324xbf16> to vector<40x286xbf16>
    %cst_207 = arith.constant dense<0.000000e+00> : vector<8x286xf32>
    %274 = tpu.matmul %272, %273, %cst_207 {dimension_numbers = #tpu.dot_dimension_numbers<[1], [0], [0], [1], [0, 0, 1, 1], [], []>} : vector<8x40xbf16>, vector<40x286xbf16>, vector<8x286xf32> -> vector<8x286xf32>
    %275 = arith.addf %270, %274 : vector<8x286xf32>
    %c7_208 = arith.constant 7 : index
    %c0_209 = arith.constant 0 : index
    %c0_210 = arith.constant 0 : index
    %276 = vector.load %arg7[%c7_208, %c0_209, %c0_210] : memref<9x8x40xbf16, #tpu.memory_space<vmem>>, vector<1x8x40xbf16>
    %277 = vector.shape_cast %276 : vector<1x8x40xbf16> to vector<8x40xbf16>
    %278 = vector.extract_strided_slice %241 {offsets = [0, 37], sizes = [40, 286], strides = [1, 1]} : vector<40x324xbf16> to vector<40x286xbf16>
    %cst_211 = arith.constant dense<0.000000e+00> : vector<8x286xf32>
    %279 = tpu.matmul %277, %278, %cst_211 {dimension_numbers = #tpu.dot_dimension_numbers<[1], [0], [0], [1], [0, 0, 1, 1], [], []>} : vector<8x40xbf16>, vector<40x286xbf16>, vector<8x286xf32> -> vector<8x286xf32>
    %280 = arith.addf %275, %279 : vector<8x286xf32>
    %c8_212 = arith.constant 8 : index
    %c0_213 = arith.constant 0 : index
    %c0_214 = arith.constant 0 : index
    %281 = vector.load %arg7[%c8_212, %c0_213, %c0_214] : memref<9x8x40xbf16, #tpu.memory_space<vmem>>, vector<1x8x40xbf16>
    %282 = vector.shape_cast %281 : vector<1x8x40xbf16> to vector<8x40xbf16>
    %283 = vector.extract_strided_slice %241 {offsets = [0, 38], sizes = [40, 286], strides = [1, 1]} : vector<40x324xbf16> to vector<40x286xbf16>
    %cst_215 = arith.constant dense<0.000000e+00> : vector<8x286xf32>
    %284 = tpu.matmul %282, %283, %cst_215 {dimension_numbers = #tpu.dot_dimension_numbers<[1], [0], [0], [1], [0, 0, 1, 1], [], []>} : vector<8x40xbf16>, vector<40x286xbf16>, vector<8x286xf32> -> vector<8x286xf32>
    %285 = arith.addf %280, %284 : vector<8x286xf32>
    %c4_216 = arith.constant 4 : index
    %c0_217 = arith.constant 0 : index
    %c0_218 = arith.constant 0 : index
    %286 = vector.load %arg8[%c4_216, %c0_217, %c0_218] : memref<5x8x1xf32, #tpu.memory_space<vmem>>, vector<1x8x1xf32>
    %287 = vector.shape_cast %286 : vector<1x8x1xf32> to vector<8x1xf32>
    %288 = vector.broadcast %287 : vector<8x1xf32> to vector<8x286xf32>
    %289 = arith.addf %285, %288 : vector<8x286xf32>
    %290 = vector.broadcast %0 : vector<1x286xf32> to vector<8x286xf32>
    %291 = arith.mulf %289, %290 : vector<8x286xf32>
    %cst_219 = arith.constant 2.000000e-01 : f32
    %292 = vector.broadcast %cst_219 : f32 to vector<8x286xf32>
    %293 = arith.mulf %291, %292 : vector<8x286xf32>
    %294 = vector.extract_strided_slice %2 {offsets = [0, 19], sizes = [8, 286], strides = [1, 1]} : vector<8x324xf32> to vector<8x286xf32>
    %295 = arith.addf %293, %294 : vector<8x286xf32>
    %cst_220 = arith.constant 2.000000e-01 : f32
    %296 = vector.broadcast %cst_220 : f32 to vector<8x286xf32>
    %297 = arith.mulf %295, %296 : vector<8x286xf32>
    %c0_221 = arith.constant 0 : index
    %c0_222 = arith.constant 0 : index
    %c19_223 = arith.constant 19 : index
    %298 = vector.load %arg2[%c0_221, %c0_222, %c19_223] : memref<1x8x324xf32, #tpu.memory_space<vmem>>, vector<1x8x286xf32>
    %299 = vector.shape_cast %298 : vector<1x8x286xf32> to vector<8x286xf32>
    %300 = arith.addf %297, %299 : vector<8x286xf32>
    %cst_224 = arith.constant 0.000000e+00 : f32
    %301 = vector.broadcast %cst_224 : f32 to vector<8x19xf32>
    %c0_225 = arith.constant 0 : index
    %c0_226 = arith.constant 0 : index
    %c0_227 = arith.constant 0 : index
    %302 = vector.load %arg10[%c0_225, %c0_226, %c0_227] : memref<1x8x324xf32, #tpu.memory_space<vmem>>, vector<1x8x19xf32>
    %303 = vector.shape_cast %302 : vector<1x8x19xf32> to vector<8x19xf32>
    %304 = vector.shape_cast %301 : vector<8x19xf32> to vector<1x8x19xf32>
    tpu.vector_store %arg10[%c0_225, %c0_226, %c0_227], %304 {strides = array<i32>} : memref<1x8x324xf32, #tpu.memory_space<vmem>>, vector<1x8x19xf32>,
    %c0_228 = arith.constant 0 : index
    %c0_229 = arith.constant 0 : index
    %c19_230 = arith.constant 19 : index
    %305 = vector.load %arg10[%c0_228, %c0_229, %c19_230] : memref<1x8x324xf32, #tpu.memory_space<vmem>>, vector<1x8x286xf32>
    %306 = vector.shape_cast %305 : vector<1x8x286xf32> to vector<8x286xf32>
    %307 = vector.shape_cast %300 : vector<8x286xf32> to vector<1x8x286xf32>
    tpu.vector_store %arg10[%c0_228, %c0_229, %c19_230], %307 {strides = array<i32>} : memref<1x8x324xf32, #tpu.memory_space<vmem>>, vector<1x8x286xf32>,
    %cst_231 = arith.constant 0.000000e+00 : f32
    %308 = vector.broadcast %cst_231 : f32 to vector<8x19xf32>
    %c0_232 = arith.constant 0 : index
    %c0_233 = arith.constant 0 : index
    %c305_234 = arith.constant 305 : index
    %309 = vector.load %arg10[%c0_232, %c0_233, %c305_234] : memref<1x8x324xf32, #tpu.memory_space<vmem>>, vector<1x8x19xf32>
    %310 = vector.shape_cast %309 : vector<1x8x19xf32> to vector<8x19xf32>
    %311 = vector.shape_cast %308 : vector<8x19xf32> to vector<1x8x19xf32>
    tpu.vector_store %arg10[%c0_232, %c0_233, %c305_234], %311 {strides = array<i32>} : memref<1x8x324xf32, #tpu.memory_space<vmem>>, vector<1x8x19xf32>,
    return
  }
  func.func @transform_0(%arg0: i32) -> (i32, i32, i32) {
    %c0_i32 = arith.constant 0 : i32
    %c0_i32_0 = arith.constant 0 : i32
    %c0_i32_1 = arith.constant 0 : i32
    return %arg0, %c0_i32, %c0_i32_0 : i32, i32, i32
  }
  func.func @transform_1(%arg0: i32) -> (i32, i32, i32) {
    %c0_i32 = arith.constant 0 : i32
    %c0_i32_0 = arith.constant 0 : i32
    %c0_i32_1 = arith.constant 0 : i32
    return %arg0, %c0_i32, %c0_i32_0 : i32, i32, i32
  }
  func.func @transform_2(%arg0: i32) -> (i32, i32, i32) {
    %c0_i32 = arith.constant 0 : i32
    %c0_i32_0 = arith.constant 0 : i32
    %c0_i32_1 = arith.constant 0 : i32
    %c0_i32_2 = arith.constant 0 : i32
    return %c0_i32, %c0_i32_0, %c0_i32_1 : i32, i32, i32
  }
  func.func @transform_3(%arg0: i32) -> (i32, i32, i32) {
    %c0_i32 = arith.constant 0 : i32
    %c0_i32_0 = arith.constant 0 : i32
    %c0_i32_1 = arith.constant 0 : i32
    %c0_i32_2 = arith.constant 0 : i32
    return %c0_i32, %c0_i32_0, %c0_i32_1 : i32, i32, i32
  }
  func.func @transform_4(%arg0: i32) -> (i32, i32, i32) {
    %c0_i32 = arith.constant 0 : i32
    %c0_i32_0 = arith.constant 0 : i32
    %c0_i32_1 = arith.constant 0 : i32
    %c0_i32_2 = arith.constant 0 : i32
    return %c0_i32, %c0_i32_0, %c0_i32_1 : i32, i32, i32
  }
  func.func @transform_5(%arg0: i32) -> (i32, i32, i32) {
    %c0_i32 = arith.constant 0 : i32
    %c0_i32_0 = arith.constant 0 : i32
    %c0_i32_1 = arith.constant 0 : i32
    %c0_i32_2 = arith.constant 0 : i32
    return %c0_i32, %c0_i32_0, %c0_i32_1 : i32, i32, i32
  }
  func.func @transform_6(%arg0: i32) -> (i32, i32, i32) {
    %c0_i32 = arith.constant 0 : i32
    %c0_i32_0 = arith.constant 0 : i32
    %c0_i32_1 = arith.constant 0 : i32
    %c0_i32_2 = arith.constant 0 : i32
    return %c0_i32, %c0_i32_0, %c0_i32_1 : i32, i32, i32
  }
  func.func @transform_7(%arg0: i32) -> (i32, i32, i32) {
    %c0_i32 = arith.constant 0 : i32
    %c0_i32_0 = arith.constant 0 : i32
    %c0_i32_1 = arith.constant 0 : i32
    %c0_i32_2 = arith.constant 0 : i32
    return %c0_i32, %c0_i32_0, %c0_i32_1 : i32, i32, i32
  }
  func.func @transform_8(%arg0: i32) -> (i32, i32) {
    %c0_i32 = arith.constant 0 : i32
    %c0_i32_0 = arith.constant 0 : i32
    %c0_i32_1 = arith.constant 0 : i32
    return %c0_i32, %c0_i32_0 : i32, i32
  }
  func.func @transform_9(%arg0: i32) -> (i32, i32, i32) {
    %c0_i32 = arith.constant 0 : i32
    %c0_i32_0 = arith.constant 0 : i32
    %c0_i32_1 = arith.constant 0 : i32
    return %arg0, %c0_i32, %c0_i32_0 : i32, i32, i32
  }
}

module attributes {stable_mosaic.version = 11 : i64} {
  func.func @_dense_block_kernel(%arg0: i32, %arg1: memref<1x8x324xf32, #tpu.memory_space<vmem>>, %arg2: memref<9x8x8xbf16, #tpu.memory_space<vmem>>, %arg3: memref<9x8x16xbf16, #tpu.memory_space<vmem>>, %arg4: memref<9x8x24xbf16, #tpu.memory_space<vmem>>, %arg5: memref<9x8x32xbf16, #tpu.memory_space<vmem>>, %arg6: memref<9x8x40xbf16, #tpu.memory_space<vmem>>, %arg7: memref<5x8x1xf32, #tpu.memory_space<vmem>>, %arg8: memref<1x286xf32, #tpu.memory_space<vmem>>, %arg9: memref<1x8x324xf32, #tpu.memory_space<vmem>>, %arg10: memref<40x324xf32, #tpu.memory_space<vmem>>) attributes {dimension_semantics = [#tpu.dimension_semantics<parallel>], iteration_bounds = array<i64: 2>, scalar_prefetch = 0 : i64, scratch_operands = 1 : i64, tpu.core_type = #tpu.core_type<tc>, window_params = [{transform_indices = @transform_0, window_bounds = array<i64: 1, 8, 324>}, {pipeline_mode = #tpu.pipeline_mode<synchronous>, transform_indices = @transform_1, window_bounds = array<i64: 9, 8, 8>}, {pipeline_mode = #tpu.pipeline_mode<synchronous>, transform_indices = @transform_2, window_bounds = array<i64: 9, 8, 16>}, {pipeline_mode = #tpu.pipeline_mode<synchronous>, transform_indices = @transform_3, window_bounds = array<i64: 9, 8, 24>}, {pipeline_mode = #tpu.pipeline_mode<synchronous>, transform_indices = @transform_4, window_bounds = array<i64: 9, 8, 32>}, {pipeline_mode = #tpu.pipeline_mode<synchronous>, transform_indices = @transform_5, window_bounds = array<i64: 9, 8, 40>}, {pipeline_mode = #tpu.pipeline_mode<synchronous>, transform_indices = @transform_6, window_bounds = array<i64: 5, 8, 1>}, {pipeline_mode = #tpu.pipeline_mode<synchronous>, transform_indices = @transform_7, window_bounds = array<i64: 1, 286>}, {transform_indices = @transform_8, window_bounds = array<i64: 1, 8, 324>}]} {
    %c0 = arith.constant 0 : index
    %c0_0 = arith.constant 0 : index
    %0 = vector.load %arg8[%c0, %c0_0] : memref<1x286xf32, #tpu.memory_space<vmem>>, vector<1x286xf32>
    %c0_1 = arith.constant 0 : index
    %c0_2 = arith.constant 0 : index
    %c0_3 = arith.constant 0 : index
    %1 = vector.load %arg1[%c0_1, %c0_2, %c0_3] : memref<1x8x324xf32, #tpu.memory_space<vmem>>, vector<1x8x324xf32>
    %2 = vector.shape_cast %1 : vector<1x8x324xf32> to vector<8x324xf32>
    %c0_4 = arith.constant 0 : index
    %c0_5 = arith.constant 0 : index
    %3 = vector.load %arg10[%c0_4, %c0_5] : memref<40x324xf32, #tpu.memory_space<vmem>>, vector<8x324xf32>
    tpu.vector_store %arg10[%c0_4, %c0_5], %2 {strides = array<i32>} : memref<40x324xf32, #tpu.memory_space<vmem>>, vector<8x324xf32>,
    %cst = arith.constant 0.000000e+00 : f32
    %4 = vector.broadcast %cst : f32 to vector<32x19xf32>
    %c8 = arith.constant 8 : index
    %c0_6 = arith.constant 0 : index
    %5 = vector.load %arg10[%c8, %c0_6] : memref<40x324xf32, #tpu.memory_space<vmem>>, vector<32x19xf32>
    tpu.vector_store %arg10[%c8, %c0_6], %4 {strides = array<i32>} : memref<40x324xf32, #tpu.memory_space<vmem>>, vector<32x19xf32>,
    %cst_7 = arith.constant 0.000000e+00 : f32
    %6 = vector.broadcast %cst_7 : f32 to vector<32x19xf32>
    %c8_8 = arith.constant 8 : index
    %c305 = arith.constant 305 : index
    %7 = vector.load %arg10[%c8_8, %c305] : memref<40x324xf32, #tpu.memory_space<vmem>>, vector<32x19xf32>
    tpu.vector_store %arg10[%c8_8, %c305], %6 {strides = array<i32>} : memref<40x324xf32, #tpu.memory_space<vmem>>, vector<32x19xf32>,
    %c0_9 = arith.constant 0 : index
    %c0_10 = arith.constant 0 : index
    %8 = vector.load %arg10[%c0_9, %c0_10] : memref<40x324xf32, #tpu.memory_space<vmem>>, vector<8x324xf32>
    %9 = arith.truncf %8 : vector<8x324xf32> to vector<8x324xbf16>
    %c0_11 = arith.constant 0 : index
    %c0_12 = arith.constant 0 : index
    %c0_13 = arith.constant 0 : index
    %10 = vector.load %arg2[%c0_11, %c0_12, %c0_13] : memref<9x8x8xbf16, #tpu.memory_space<vmem>>, vector<1x8x8xbf16>
    %11 = vector.shape_cast %10 : vector<1x8x8xbf16> to vector<8x8xbf16>
    %12 = vector.extract_strided_slice %9 {offsets = [0, 0], sizes = [8, 286], strides = [1, 1]} : vector<8x324xbf16> to vector<8x286xbf16>
    %cst_14 = arith.constant dense<0.000000e+00> : vector<8x286xf32>
    %13 = tpu.matmul %11, %12, %cst_14 {dimension_numbers = #tpu.dot_dimension_numbers<[1], [0], [0], [1], [0, 0, 1, 1], [], []>} : vector<8x8xbf16>, vector<8x286xbf16>, vector<8x286xf32> -> vector<8x286xf32>
    %c1 = arith.constant 1 : index
    %c0_15 = arith.constant 0 : index
    %c0_16 = arith.constant 0 : index
    %14 = vector.load %arg2[%c1, %c0_15, %c0_16] : memref<9x8x8xbf16, #tpu.memory_space<vmem>>, vector<1x8x8xbf16>
    %15 = vector.shape_cast %14 : vector<1x8x8xbf16> to vector<8x8xbf16>
    %16 = vector.extract_strided_slice %9 {offsets = [0, 1], sizes = [8, 286], strides = [1, 1]} : vector<8x324xbf16> to vector<8x286xbf16>
    %cst_17 = arith.constant dense<0.000000e+00> : vector<8x286xf32>
    %17 = tpu.matmul %15, %16, %cst_17 {dimension_numbers = #tpu.dot_dimension_numbers<[1], [0], [0], [1], [0, 0, 1, 1], [], []>} : vector<8x8xbf16>, vector<8x286xbf16>, vector<8x286xf32> -> vector<8x286xf32>
    %18 = arith.addf %13, %17 : vector<8x286xf32>
    %c2 = arith.constant 2 : index
    %c0_18 = arith.constant 0 : index
    %c0_19 = arith.constant 0 : index
    %19 = vector.load %arg2[%c2, %c0_18, %c0_19] : memref<9x8x8xbf16, #tpu.memory_space<vmem>>, vector<1x8x8xbf16>
    %20 = vector.shape_cast %19 : vector<1x8x8xbf16> to vector<8x8xbf16>
    %21 = vector.extract_strided_slice %9 {offsets = [0, 2], sizes = [8, 286], strides = [1, 1]} : vector<8x324xbf16> to vector<8x286xbf16>
    %cst_20 = arith.constant dense<0.000000e+00> : vector<8x286xf32>
    %22 = tpu.matmul %20, %21, %cst_20 {dimension_numbers = #tpu.dot_dimension_numbers<[1], [0], [0], [1], [0, 0, 1, 1], [], []>} : vector<8x8xbf16>, vector<8x286xbf16>, vector<8x286xf32> -> vector<8x286xf32>
    %23 = arith.addf %18, %22 : vector<8x286xf32>
    %c3 = arith.constant 3 : index
    %c0_21 = arith.constant 0 : index
    %c0_22 = arith.constant 0 : index
    %24 = vector.load %arg2[%c3, %c0_21, %c0_22] : memref<9x8x8xbf16, #tpu.memory_space<vmem>>, vector<1x8x8xbf16>
    %25 = vector.shape_cast %24 : vector<1x8x8xbf16> to vector<8x8xbf16>
    %26 = vector.extract_strided_slice %9 {offsets = [0, 18], sizes = [8, 286], strides = [1, 1]} : vector<8x324xbf16> to vector<8x286xbf16>
    %cst_23 = arith.constant dense<0.000000e+00> : vector<8x286xf32>
    %27 = tpu.matmul %25, %26, %cst_23 {dimension_numbers = #tpu.dot_dimension_numbers<[1], [0], [0], [1], [0, 0, 1, 1], [], []>} : vector<8x8xbf16>, vector<8x286xbf16>, vector<8x286xf32> -> vector<8x286xf32>
    %28 = arith.addf %23, %27 : vector<8x286xf32>
    %c4 = arith.constant 4 : index
    %c0_24 = arith.constant 0 : index
    %c0_25 = arith.constant 0 : index
    %29 = vector.load %arg2[%c4, %c0_24, %c0_25] : memref<9x8x8xbf16, #tpu.memory_space<vmem>>, vector<1x8x8xbf16>
    %30 = vector.shape_cast %29 : vector<1x8x8xbf16> to vector<8x8xbf16>
    %31 = vector.extract_strided_slice %9 {offsets = [0, 19], sizes = [8, 286], strides = [1, 1]} : vector<8x324xbf16> to vector<8x286xbf16>
    %cst_26 = arith.constant dense<0.000000e+00> : vector<8x286xf32>
    %32 = tpu.matmul %30, %31, %cst_26 {dimension_numbers = #tpu.dot_dimension_numbers<[1], [0], [0], [1], [0, 0, 1, 1], [], []>} : vector<8x8xbf16>, vector<8x286xbf16>, vector<8x286xf32> -> vector<8x286xf32>
    %33 = arith.addf %28, %32 : vector<8x286xf32>
    %c5 = arith.constant 5 : index
    %c0_27 = arith.constant 0 : index
    %c0_28 = arith.constant 0 : index
    %34 = vector.load %arg2[%c5, %c0_27, %c0_28] : memref<9x8x8xbf16, #tpu.memory_space<vmem>>, vector<1x8x8xbf16>
    %35 = vector.shape_cast %34 : vector<1x8x8xbf16> to vector<8x8xbf16>
    %36 = vector.extract_strided_slice %9 {offsets = [0, 20], sizes = [8, 286], strides = [1, 1]} : vector<8x324xbf16> to vector<8x286xbf16>
    %cst_29 = arith.constant dense<0.000000e+00> : vector<8x286xf32>
    %37 = tpu.matmul %35, %36, %cst_29 {dimension_numbers = #tpu.dot_dimension_numbers<[1], [0], [0], [1], [0, 0, 1, 1], [], []>} : vector<8x8xbf16>, vector<8x286xbf16>, vector<8x286xf32> -> vector<8x286xf32>
    %38 = arith.addf %33, %37 : vector<8x286xf32>
    %c6 = arith.constant 6 : index
    %c0_30 = arith.constant 0 : index
    %c0_31 = arith.constant 0 : index
    %39 = vector.load %arg2[%c6, %c0_30, %c0_31] : memref<9x8x8xbf16, #tpu.memory_space<vmem>>, vector<1x8x8xbf16>
    %40 = vector.shape_cast %39 : vector<1x8x8xbf16> to vector<8x8xbf16>
    %41 = vector.extract_strided_slice %9 {offsets = [0, 36], sizes = [8, 286], strides = [1, 1]} : vector<8x324xbf16> to vector<8x286xbf16>
    %cst_32 = arith.constant dense<0.000000e+00> : vector<8x286xf32>
    %42 = tpu.matmul %40, %41, %cst_32 {dimension_numbers = #tpu.dot_dimension_numbers<[1], [0], [0], [1], [0, 0, 1, 1], [], []>} : vector<8x8xbf16>, vector<8x286xbf16>, vector<8x286xf32> -> vector<8x286xf32>
    %43 = arith.addf %38, %42 : vector<8x286xf32>
    %c7 = arith.constant 7 : index
    %c0_33 = arith.constant 0 : index
    %c0_34 = arith.constant 0 : index
    %44 = vector.load %arg2[%c7, %c0_33, %c0_34] : memref<9x8x8xbf16, #tpu.memory_space<vmem>>, vector<1x8x8xbf16>
    %45 = vector.shape_cast %44 : vector<1x8x8xbf16> to vector<8x8xbf16>
    %46 = vector.extract_strided_slice %9 {offsets = [0, 37], sizes = [8, 286], strides = [1, 1]} : vector<8x324xbf16> to vector<8x286xbf16>
    %cst_35 = arith.constant dense<0.000000e+00> : vector<8x286xf32>
    %47 = tpu.matmul %45, %46, %cst_35 {dimension_numbers = #tpu.dot_dimension_numbers<[1], [0], [0], [1], [0, 0, 1, 1], [], []>} : vector<8x8xbf16>, vector<8x286xbf16>, vector<8x286xf32> -> vector<8x286xf32>
    %48 = arith.addf %43, %47 : vector<8x286xf32>
    %c8_36 = arith.constant 8 : index
    %c0_37 = arith.constant 0 : index
    %c0_38 = arith.constant 0 : index
    %49 = vector.load %arg2[%c8_36, %c0_37, %c0_38] : memref<9x8x8xbf16, #tpu.memory_space<vmem>>, vector<1x8x8xbf16>
    %50 = vector.shape_cast %49 : vector<1x8x8xbf16> to vector<8x8xbf16>
    %51 = vector.extract_strided_slice %9 {offsets = [0, 38], sizes = [8, 286], strides = [1, 1]} : vector<8x324xbf16> to vector<8x286xbf16>
    %cst_39 = arith.constant dense<0.000000e+00> : vector<8x286xf32>
    %52 = tpu.matmul %50, %51, %cst_39 {dimension_numbers = #tpu.dot_dimension_numbers<[1], [0], [0], [1], [0, 0, 1, 1], [], []>} : vector<8x8xbf16>, vector<8x286xbf16>, vector<8x286xf32> -> vector<8x286xf32>
    %53 = arith.addf %48, %52 : vector<8x286xf32>
    %c0_40 = arith.constant 0 : index
    %c0_41 = arith.constant 0 : index
    %c0_42 = arith.constant 0 : index
    %54 = vector.load %arg7[%c0_40, %c0_41, %c0_42] : memref<5x8x1xf32, #tpu.memory_space<vmem>>, vector<1x8x1xf32>
    %55 = vector.shape_cast %54 : vector<1x8x1xf32> to vector<8x1xf32>
    %56 = vector.broadcast %55 : vector<8x1xf32> to vector<8x286xf32>
    %57 = arith.addf %53, %56 : vector<8x286xf32>
    %cst_43 = arith.constant 0.000000e+00 : f32
    %58 = vector.broadcast %cst_43 : f32 to vector<8x286xf32>
    %59 = arith.cmpf ogt, %57, %58 : vector<8x286xf32>
    %cst_44 = arith.constant 0.00999999977 : f32
    %60 = vector.broadcast %cst_44 : f32 to vector<8x286xf32>
    %61 = arith.mulf %60, %57 : vector<8x286xf32>
    %62 = arith.select %59, %57, %61 : vector<8x286xi1>, vector<8x286xf32>
    %63 = vector.broadcast %0 : vector<1x286xf32> to vector<8x286xf32>
    %64 = arith.mulf %62, %63 : vector<8x286xf32>
    %c8_45 = arith.constant 8 : index
    %c19 = arith.constant 19 : index
    %65 = vector.load %arg10[%c8_45, %c19] : memref<40x324xf32, #tpu.memory_space<vmem>>, vector<8x286xf32>
    tpu.vector_store %arg10[%c8_45, %c19], %64 {strides = array<i32>} : memref<40x324xf32, #tpu.memory_space<vmem>>, vector<8x286xf32>,
    %c0_46 = arith.constant 0 : index
    %c0_47 = arith.constant 0 : index
    %66 = vector.load %arg10[%c0_46, %c0_47] : memref<40x324xf32, #tpu.memory_space<vmem>>, vector<16x324xf32>
    %67 = arith.truncf %66 : vector<16x324xf32> to vector<16x324xbf16>
    %c0_48 = arith.constant 0 : index
    %c0_49 = arith.constant 0 : index
    %c0_50 = arith.constant 0 : index
    %68 = vector.load %arg3[%c0_48, %c0_49, %c0_50] : memref<9x8x16xbf16, #tpu.memory_space<vmem>>, vector<1x8x16xbf16>
    %69 = vector.shape_cast %68 : vector<1x8x16xbf16> to vector<8x16xbf16>
    %70 = vector.extract_strided_slice %67 {offsets = [0, 0], sizes = [16, 286], strides = [1, 1]} : vector<16x324xbf16> to vector<16x286xbf16>
    %cst_51 = arith.constant dense<0.000000e+00> : vector<8x286xf32>
    %71 = tpu.matmul %69, %70, %cst_51 {dimension_numbers = #tpu.dot_dimension_numbers<[1], [0], [0], [1], [0, 0, 1, 1], [], []>} : vector<8x16xbf16>, vector<16x286xbf16>, vector<8x286xf32> -> vector<8x286xf32>
    %c1_52 = arith.constant 1 : index
    %c0_53 = arith.constant 0 : index
    %c0_54 = arith.constant 0 : index
    %72 = vector.load %arg3[%c1_52, %c0_53, %c0_54] : memref<9x8x16xbf16, #tpu.memory_space<vmem>>, vector<1x8x16xbf16>
    %73 = vector.shape_cast %72 : vector<1x8x16xbf16> to vector<8x16xbf16>
    %74 = vector.extract_strided_slice %67 {offsets = [0, 1], sizes = [16, 286], strides = [1, 1]} : vector<16x324xbf16> to vector<16x286xbf16>
    %cst_55 = arith.constant dense<0.000000e+00> : vector<8x286xf32>
    %75 = tpu.matmul %73, %74, %cst_55 {dimension_numbers = #tpu.dot_dimension_numbers<[1], [0], [0], [1], [0, 0, 1, 1], [], []>} : vector<8x16xbf16>, vector<16x286xbf16>, vector<8x286xf32> -> vector<8x286xf32>
    %76 = arith.addf %71, %75 : vector<8x286xf32>
    %c2_56 = arith.constant 2 : index
    %c0_57 = arith.constant 0 : index
    %c0_58 = arith.constant 0 : index
    %77 = vector.load %arg3[%c2_56, %c0_57, %c0_58] : memref<9x8x16xbf16, #tpu.memory_space<vmem>>, vector<1x8x16xbf16>
    %78 = vector.shape_cast %77 : vector<1x8x16xbf16> to vector<8x16xbf16>
    %79 = vector.extract_strided_slice %67 {offsets = [0, 2], sizes = [16, 286], strides = [1, 1]} : vector<16x324xbf16> to vector<16x286xbf16>
    %cst_59 = arith.constant dense<0.000000e+00> : vector<8x286xf32>
    %80 = tpu.matmul %78, %79, %cst_59 {dimension_numbers = #tpu.dot_dimension_numbers<[1], [0], [0], [1], [0, 0, 1, 1], [], []>} : vector<8x16xbf16>, vector<16x286xbf16>, vector<8x286xf32> -> vector<8x286xf32>
    %81 = arith.addf %76, %80 : vector<8x286xf32>
    %c3_60 = arith.constant 3 : index
    %c0_61 = arith.constant 0 : index
    %c0_62 = arith.constant 0 : index
    %82 = vector.load %arg3[%c3_60, %c0_61, %c0_62] : memref<9x8x16xbf16, #tpu.memory_space<vmem>>, vector<1x8x16xbf16>
    %83 = vector.shape_cast %82 : vector<1x8x16xbf16> to vector<8x16xbf16>
    %84 = vector.extract_strided_slice %67 {offsets = [0, 18], sizes = [16, 286], strides = [1, 1]} : vector<16x324xbf16> to vector<16x286xbf16>
    %cst_63 = arith.constant dense<0.000000e+00> : vector<8x286xf32>
    %85 = tpu.matmul %83, %84, %cst_63 {dimension_numbers = #tpu.dot_dimension_numbers<[1], [0], [0], [1], [0, 0, 1, 1], [], []>} : vector<8x16xbf16>, vector<16x286xbf16>, vector<8x286xf32> -> vector<8x286xf32>
    %86 = arith.addf %81, %85 : vector<8x286xf32>
    %c4_64 = arith.constant 4 : index
    %c0_65 = arith.constant 0 : index
    %c0_66 = arith.constant 0 : index
    %87 = vector.load %arg3[%c4_64, %c0_65, %c0_66] : memref<9x8x16xbf16, #tpu.memory_space<vmem>>, vector<1x8x16xbf16>
    %88 = vector.shape_cast %87 : vector<1x8x16xbf16> to vector<8x16xbf16>
    %89 = vector.extract_strided_slice %67 {offsets = [0, 19], sizes = [16, 286], strides = [1, 1]} : vector<16x324xbf16> to vector<16x286xbf16>
    %cst_67 = arith.constant dense<0.000000e+00> : vector<8x286xf32>
    %90 = tpu.matmul %88, %89, %cst_67 {dimension_numbers = #tpu.dot_dimension_numbers<[1], [0], [0], [1], [0, 0, 1, 1], [], []>} : vector<8x16xbf16>, vector<16x286xbf16>, vector<8x286xf32> -> vector<8x286xf32>
    %91 = arith.addf %86, %90 : vector<8x286xf32>
    %c5_68 = arith.constant 5 : index
    %c0_69 = arith.constant 0 : index
    %c0_70 = arith.constant 0 : index
    %92 = vector.load %arg3[%c5_68, %c0_69, %c0_70] : memref<9x8x16xbf16, #tpu.memory_space<vmem>>, vector<1x8x16xbf16>
    %93 = vector.shape_cast %92 : vector<1x8x16xbf16> to vector<8x16xbf16>
    %94 = vector.extract_strided_slice %67 {offsets = [0, 20], sizes = [16, 286], strides = [1, 1]} : vector<16x324xbf16> to vector<16x286xbf16>
    %cst_71 = arith.constant dense<0.000000e+00> : vector<8x286xf32>
    %95 = tpu.matmul %93, %94, %cst_71 {dimension_numbers = #tpu.dot_dimension_numbers<[1], [0], [0], [1], [0, 0, 1, 1], [], []>} : vector<8x16xbf16>, vector<16x286xbf16>, vector<8x286xf32> -> vector<8x286xf32>
    %96 = arith.addf %91, %95 : vector<8x286xf32>
    %c6_72 = arith.constant 6 : index
    %c0_73 = arith.constant 0 : index
    %c0_74 = arith.constant 0 : index
    %97 = vector.load %arg3[%c6_72, %c0_73, %c0_74] : memref<9x8x16xbf16, #tpu.memory_space<vmem>>, vector<1x8x16xbf16>
    %98 = vector.shape_cast %97 : vector<1x8x16xbf16> to vector<8x16xbf16>
    %99 = vector.extract_strided_slice %67 {offsets = [0, 36], sizes = [16, 286], strides = [1, 1]} : vector<16x324xbf16> to vector<16x286xbf16>
    %cst_75 = arith.constant dense<0.000000e+00> : vector<8x286xf32>
    %100 = tpu.matmul %98, %99, %cst_75 {dimension_numbers = #tpu.dot_dimension_numbers<[1], [0], [0], [1], [0, 0, 1, 1], [], []>} : vector<8x16xbf16>, vector<16x286xbf16>, vector<8x286xf32> -> vector<8x286xf32>
    %101 = arith.addf %96, %100 : vector<8x286xf32>
    %c7_76 = arith.constant 7 : index
    %c0_77 = arith.constant 0 : index
    %c0_78 = arith.constant 0 : index
    %102 = vector.load %arg3[%c7_76, %c0_77, %c0_78] : memref<9x8x16xbf16, #tpu.memory_space<vmem>>, vector<1x8x16xbf16>
    %103 = vector.shape_cast %102 : vector<1x8x16xbf16> to vector<8x16xbf16>
    %104 = vector.extract_strided_slice %67 {offsets = [0, 37], sizes = [16, 286], strides = [1, 1]} : vector<16x324xbf16> to vector<16x286xbf16>
    %cst_79 = arith.constant dense<0.000000e+00> : vector<8x286xf32>
    %105 = tpu.matmul %103, %104, %cst_79 {dimension_numbers = #tpu.dot_dimension_numbers<[1], [0], [0], [1], [0, 0, 1, 1], [], []>} : vector<8x16xbf16>, vector<16x286xbf16>, vector<8x286xf32> -> vector<8x286xf32>
    %106 = arith.addf %101, %105 : vector<8x286xf32>
    %c8_80 = arith.constant 8 : index
    %c0_81 = arith.constant 0 : index
    %c0_82 = arith.constant 0 : index
    %107 = vector.load %arg3[%c8_80, %c0_81, %c0_82] : memref<9x8x16xbf16, #tpu.memory_space<vmem>>, vector<1x8x16xbf16>
    %108 = vector.shape_cast %107 : vector<1x8x16xbf16> to vector<8x16xbf16>
    %109 = vector.extract_strided_slice %67 {offsets = [0, 38], sizes = [16, 286], strides = [1, 1]} : vector<16x324xbf16> to vector<16x286xbf16>
    %cst_83 = arith.constant dense<0.000000e+00> : vector<8x286xf32>
    %110 = tpu.matmul %108, %109, %cst_83 {dimension_numbers = #tpu.dot_dimension_numbers<[1], [0], [0], [1], [0, 0, 1, 1], [], []>} : vector<8x16xbf16>, vector<16x286xbf16>, vector<8x286xf32> -> vector<8x286xf32>
    %111 = arith.addf %106, %110 : vector<8x286xf32>
    %c1_84 = arith.constant 1 : index
    %c0_85 = arith.constant 0 : index
    %c0_86 = arith.constant 0 : index
    %112 = vector.load %arg7[%c1_84, %c0_85, %c0_86] : memref<5x8x1xf32, #tpu.memory_space<vmem>>, vector<1x8x1xf32>
    %113 = vector.shape_cast %112 : vector<1x8x1xf32> to vector<8x1xf32>
    %114 = vector.broadcast %113 : vector<8x1xf32> to vector<8x286xf32>
    %115 = arith.addf %111, %114 : vector<8x286xf32>
    %cst_87 = arith.constant 0.000000e+00 : f32
    %116 = vector.broadcast %cst_87 : f32 to vector<8x286xf32>
    %117 = arith.cmpf ogt, %115, %116 : vector<8x286xf32>
    %cst_88 = arith.constant 0.00999999977 : f32
    %118 = vector.broadcast %cst_88 : f32 to vector<8x286xf32>
    %119 = arith.mulf %118, %115 : vector<8x286xf32>
    %120 = arith.select %117, %115, %119 : vector<8x286xi1>, vector<8x286xf32>
    %121 = vector.broadcast %0 : vector<1x286xf32> to vector<8x286xf32>
    %122 = arith.mulf %120, %121 : vector<8x286xf32>
    %c16 = arith.constant 16 : index
    %c19_89 = arith.constant 19 : index
    %123 = vector.load %arg10[%c16, %c19_89] : memref<40x324xf32, #tpu.memory_space<vmem>>, vector<8x286xf32>
    tpu.vector_store %arg10[%c16, %c19_89], %122 {strides = array<i32>} : memref<40x324xf32, #tpu.memory_space<vmem>>, vector<8x286xf32>,
    %c0_90 = arith.constant 0 : index
    %c0_91 = arith.constant 0 : index
    %124 = vector.load %arg10[%c0_90, %c0_91] : memref<40x324xf32, #tpu.memory_space<vmem>>, vector<24x324xf32>
    %125 = arith.truncf %124 : vector<24x324xf32> to vector<24x324xbf16>
    %c0_92 = arith.constant 0 : index
    %c0_93 = arith.constant 0 : index
    %c0_94 = arith.constant 0 : index
    %126 = vector.load %arg4[%c0_92, %c0_93, %c0_94] : memref<9x8x24xbf16, #tpu.memory_space<vmem>>, vector<1x8x24xbf16>
    %127 = vector.shape_cast %126 : vector<1x8x24xbf16> to vector<8x24xbf16>
    %128 = vector.extract_strided_slice %125 {offsets = [0, 0], sizes = [24, 286], strides = [1, 1]} : vector<24x324xbf16> to vector<24x286xbf16>
    %cst_95 = arith.constant dense<0.000000e+00> : vector<8x286xf32>
    %129 = tpu.matmul %127, %128, %cst_95 {dimension_numbers = #tpu.dot_dimension_numbers<[1], [0], [0], [1], [0, 0, 1, 1], [], []>} : vector<8x24xbf16>, vector<24x286xbf16>, vector<8x286xf32> -> vector<8x286xf32>
    %c1_96 = arith.constant 1 : index
    %c0_97 = arith.constant 0 : index
    %c0_98 = arith.constant 0 : index
    %130 = vector.load %arg4[%c1_96, %c0_97, %c0_98] : memref<9x8x24xbf16, #tpu.memory_space<vmem>>, vector<1x8x24xbf16>
    %131 = vector.shape_cast %130 : vector<1x8x24xbf16> to vector<8x24xbf16>
    %132 = vector.extract_strided_slice %125 {offsets = [0, 1], sizes = [24, 286], strides = [1, 1]} : vector<24x324xbf16> to vector<24x286xbf16>
    %cst_99 = arith.constant dense<0.000000e+00> : vector<8x286xf32>
    %133 = tpu.matmul %131, %132, %cst_99 {dimension_numbers = #tpu.dot_dimension_numbers<[1], [0], [0], [1], [0, 0, 1, 1], [], []>} : vector<8x24xbf16>, vector<24x286xbf16>, vector<8x286xf32> -> vector<8x286xf32>
    %134 = arith.addf %129, %133 : vector<8x286xf32>
    %c2_100 = arith.constant 2 : index
    %c0_101 = arith.constant 0 : index
    %c0_102 = arith.constant 0 : index
    %135 = vector.load %arg4[%c2_100, %c0_101, %c0_102] : memref<9x8x24xbf16, #tpu.memory_space<vmem>>, vector<1x8x24xbf16>
    %136 = vector.shape_cast %135 : vector<1x8x24xbf16> to vector<8x24xbf16>
    %137 = vector.extract_strided_slice %125 {offsets = [0, 2], sizes = [24, 286], strides = [1, 1]} : vector<24x324xbf16> to vector<24x286xbf16>
    %cst_103 = arith.constant dense<0.000000e+00> : vector<8x286xf32>
    %138 = tpu.matmul %136, %137, %cst_103 {dimension_numbers = #tpu.dot_dimension_numbers<[1], [0], [0], [1], [0, 0, 1, 1], [], []>} : vector<8x24xbf16>, vector<24x286xbf16>, vector<8x286xf32> -> vector<8x286xf32>
    %139 = arith.addf %134, %138 : vector<8x286xf32>
    %c3_104 = arith.constant 3 : index
    %c0_105 = arith.constant 0 : index
    %c0_106 = arith.constant 0 : index
    %140 = vector.load %arg4[%c3_104, %c0_105, %c0_106] : memref<9x8x24xbf16, #tpu.memory_space<vmem>>, vector<1x8x24xbf16>
    %141 = vector.shape_cast %140 : vector<1x8x24xbf16> to vector<8x24xbf16>
    %142 = vector.extract_strided_slice %125 {offsets = [0, 18], sizes = [24, 286], strides = [1, 1]} : vector<24x324xbf16> to vector<24x286xbf16>
    %cst_107 = arith.constant dense<0.000000e+00> : vector<8x286xf32>
    %143 = tpu.matmul %141, %142, %cst_107 {dimension_numbers = #tpu.dot_dimension_numbers<[1], [0], [0], [1], [0, 0, 1, 1], [], []>} : vector<8x24xbf16>, vector<24x286xbf16>, vector<8x286xf32> -> vector<8x286xf32>
    %144 = arith.addf %139, %143 : vector<8x286xf32>
    %c4_108 = arith.constant 4 : index
    %c0_109 = arith.constant 0 : index
    %c0_110 = arith.constant 0 : index
    %145 = vector.load %arg4[%c4_108, %c0_109, %c0_110] : memref<9x8x24xbf16, #tpu.memory_space<vmem>>, vector<1x8x24xbf16>
    %146 = vector.shape_cast %145 : vector<1x8x24xbf16> to vector<8x24xbf16>
    %147 = vector.extract_strided_slice %125 {offsets = [0, 19], sizes = [24, 286], strides = [1, 1]} : vector<24x324xbf16> to vector<24x286xbf16>
    %cst_111 = arith.constant dense<0.000000e+00> : vector<8x286xf32>
    %148 = tpu.matmul %146, %147, %cst_111 {dimension_numbers = #tpu.dot_dimension_numbers<[1], [0], [0], [1], [0, 0, 1, 1], [], []>} : vector<8x24xbf16>, vector<24x286xbf16>, vector<8x286xf32> -> vector<8x286xf32>
    %149 = arith.addf %144, %148 : vector<8x286xf32>
    %c5_112 = arith.constant 5 : index
    %c0_113 = arith.constant 0 : index
    %c0_114 = arith.constant 0 : index
    %150 = vector.load %arg4[%c5_112, %c0_113, %c0_114] : memref<9x8x24xbf16, #tpu.memory_space<vmem>>, vector<1x8x24xbf16>
    %151 = vector.shape_cast %150 : vector<1x8x24xbf16> to vector<8x24xbf16>
    %152 = vector.extract_strided_slice %125 {offsets = [0, 20], sizes = [24, 286], strides = [1, 1]} : vector<24x324xbf16> to vector<24x286xbf16>
    %cst_115 = arith.constant dense<0.000000e+00> : vector<8x286xf32>
    %153 = tpu.matmul %151, %152, %cst_115 {dimension_numbers = #tpu.dot_dimension_numbers<[1], [0], [0], [1], [0, 0, 1, 1], [], []>} : vector<8x24xbf16>, vector<24x286xbf16>, vector<8x286xf32> -> vector<8x286xf32>
    %154 = arith.addf %149, %153 : vector<8x286xf32>
    %c6_116 = arith.constant 6 : index
    %c0_117 = arith.constant 0 : index
    %c0_118 = arith.constant 0 : index
    %155 = vector.load %arg4[%c6_116, %c0_117, %c0_118] : memref<9x8x24xbf16, #tpu.memory_space<vmem>>, vector<1x8x24xbf16>
    %156 = vector.shape_cast %155 : vector<1x8x24xbf16> to vector<8x24xbf16>
    %157 = vector.extract_strided_slice %125 {offsets = [0, 36], sizes = [24, 286], strides = [1, 1]} : vector<24x324xbf16> to vector<24x286xbf16>
    %cst_119 = arith.constant dense<0.000000e+00> : vector<8x286xf32>
    %158 = tpu.matmul %156, %157, %cst_119 {dimension_numbers = #tpu.dot_dimension_numbers<[1], [0], [0], [1], [0, 0, 1, 1], [], []>} : vector<8x24xbf16>, vector<24x286xbf16>, vector<8x286xf32> -> vector<8x286xf32>
    %159 = arith.addf %154, %158 : vector<8x286xf32>
    %c7_120 = arith.constant 7 : index
    %c0_121 = arith.constant 0 : index
    %c0_122 = arith.constant 0 : index
    %160 = vector.load %arg4[%c7_120, %c0_121, %c0_122] : memref<9x8x24xbf16, #tpu.memory_space<vmem>>, vector<1x8x24xbf16>
    %161 = vector.shape_cast %160 : vector<1x8x24xbf16> to vector<8x24xbf16>
    %162 = vector.extract_strided_slice %125 {offsets = [0, 37], sizes = [24, 286], strides = [1, 1]} : vector<24x324xbf16> to vector<24x286xbf16>
    %cst_123 = arith.constant dense<0.000000e+00> : vector<8x286xf32>
    %163 = tpu.matmul %161, %162, %cst_123 {dimension_numbers = #tpu.dot_dimension_numbers<[1], [0], [0], [1], [0, 0, 1, 1], [], []>} : vector<8x24xbf16>, vector<24x286xbf16>, vector<8x286xf32> -> vector<8x286xf32>
    %164 = arith.addf %159, %163 : vector<8x286xf32>
    %c8_124 = arith.constant 8 : index
    %c0_125 = arith.constant 0 : index
    %c0_126 = arith.constant 0 : index
    %165 = vector.load %arg4[%c8_124, %c0_125, %c0_126] : memref<9x8x24xbf16, #tpu.memory_space<vmem>>, vector<1x8x24xbf16>
    %166 = vector.shape_cast %165 : vector<1x8x24xbf16> to vector<8x24xbf16>
    %167 = vector.extract_strided_slice %125 {offsets = [0, 38], sizes = [24, 286], strides = [1, 1]} : vector<24x324xbf16> to vector<24x286xbf16>
    %cst_127 = arith.constant dense<0.000000e+00> : vector<8x286xf32>
    %168 = tpu.matmul %166, %167, %cst_127 {dimension_numbers = #tpu.dot_dimension_numbers<[1], [0], [0], [1], [0, 0, 1, 1], [], []>} : vector<8x24xbf16>, vector<24x286xbf16>, vector<8x286xf32> -> vector<8x286xf32>
    %169 = arith.addf %164, %168 : vector<8x286xf32>
    %c2_128 = arith.constant 2 : index
    %c0_129 = arith.constant 0 : index
    %c0_130 = arith.constant 0 : index
    %170 = vector.load %arg7[%c2_128, %c0_129, %c0_130] : memref<5x8x1xf32, #tpu.memory_space<vmem>>, vector<1x8x1xf32>
    %171 = vector.shape_cast %170 : vector<1x8x1xf32> to vector<8x1xf32>
    %172 = vector.broadcast %171 : vector<8x1xf32> to vector<8x286xf32>
    %173 = arith.addf %169, %172 : vector<8x286xf32>
    %cst_131 = arith.constant 0.000000e+00 : f32
    %174 = vector.broadcast %cst_131 : f32 to vector<8x286xf32>
    %175 = arith.cmpf ogt, %173, %174 : vector<8x286xf32>
    %cst_132 = arith.constant 0.00999999977 : f32
    %176 = vector.broadcast %cst_132 : f32 to vector<8x286xf32>
    %177 = arith.mulf %176, %173 : vector<8x286xf32>
    %178 = arith.select %175, %173, %177 : vector<8x286xi1>, vector<8x286xf32>
    %179 = vector.broadcast %0 : vector<1x286xf32> to vector<8x286xf32>
    %180 = arith.mulf %178, %179 : vector<8x286xf32>
    %c24 = arith.constant 24 : index
    %c19_133 = arith.constant 19 : index
    %181 = vector.load %arg10[%c24, %c19_133] : memref<40x324xf32, #tpu.memory_space<vmem>>, vector<8x286xf32>
    tpu.vector_store %arg10[%c24, %c19_133], %180 {strides = array<i32>} : memref<40x324xf32, #tpu.memory_space<vmem>>, vector<8x286xf32>,
    %c0_134 = arith.constant 0 : index
    %c0_135 = arith.constant 0 : index
    %182 = vector.load %arg10[%c0_134, %c0_135] : memref<40x324xf32, #tpu.memory_space<vmem>>, vector<32x324xf32>
    %183 = arith.truncf %182 : vector<32x324xf32> to vector<32x324xbf16>
    %c0_136 = arith.constant 0 : index
    %c0_137 = arith.constant 0 : index
    %c0_138 = arith.constant 0 : index
    %184 = vector.load %arg5[%c0_136, %c0_137, %c0_138] : memref<9x8x32xbf16, #tpu.memory_space<vmem>>, vector<1x8x32xbf16>
    %185 = vector.shape_cast %184 : vector<1x8x32xbf16> to vector<8x32xbf16>
    %186 = vector.extract_strided_slice %183 {offsets = [0, 0], sizes = [32, 286], strides = [1, 1]} : vector<32x324xbf16> to vector<32x286xbf16>
    %cst_139 = arith.constant dense<0.000000e+00> : vector<8x286xf32>
    %187 = tpu.matmul %185, %186, %cst_139 {dimension_numbers = #tpu.dot_dimension_numbers<[1], [0], [0], [1], [0, 0, 1, 1], [], []>} : vector<8x32xbf16>, vector<32x286xbf16>, vector<8x286xf32> -> vector<8x286xf32>
    %c1_140 = arith.constant 1 : index
    %c0_141 = arith.constant 0 : index
    %c0_142 = arith.constant 0 : index
    %188 = vector.load %arg5[%c1_140, %c0_141, %c0_142] : memref<9x8x32xbf16, #tpu.memory_space<vmem>>, vector<1x8x32xbf16>
    %189 = vector.shape_cast %188 : vector<1x8x32xbf16> to vector<8x32xbf16>
    %190 = vector.extract_strided_slice %183 {offsets = [0, 1], sizes = [32, 286], strides = [1, 1]} : vector<32x324xbf16> to vector<32x286xbf16>
    %cst_143 = arith.constant dense<0.000000e+00> : vector<8x286xf32>
    %191 = tpu.matmul %189, %190, %cst_143 {dimension_numbers = #tpu.dot_dimension_numbers<[1], [0], [0], [1], [0, 0, 1, 1], [], []>} : vector<8x32xbf16>, vector<32x286xbf16>, vector<8x286xf32> -> vector<8x286xf32>
    %192 = arith.addf %187, %191 : vector<8x286xf32>
    %c2_144 = arith.constant 2 : index
    %c0_145 = arith.constant 0 : index
    %c0_146 = arith.constant 0 : index
    %193 = vector.load %arg5[%c2_144, %c0_145, %c0_146] : memref<9x8x32xbf16, #tpu.memory_space<vmem>>, vector<1x8x32xbf16>
    %194 = vector.shape_cast %193 : vector<1x8x32xbf16> to vector<8x32xbf16>
    %195 = vector.extract_strided_slice %183 {offsets = [0, 2], sizes = [32, 286], strides = [1, 1]} : vector<32x324xbf16> to vector<32x286xbf16>
    %cst_147 = arith.constant dense<0.000000e+00> : vector<8x286xf32>
    %196 = tpu.matmul %194, %195, %cst_147 {dimension_numbers = #tpu.dot_dimension_numbers<[1], [0], [0], [1], [0, 0, 1, 1], [], []>} : vector<8x32xbf16>, vector<32x286xbf16>, vector<8x286xf32> -> vector<8x286xf32>
    %197 = arith.addf %192, %196 : vector<8x286xf32>
    %c3_148 = arith.constant 3 : index
    %c0_149 = arith.constant 0 : index
    %c0_150 = arith.constant 0 : index
    %198 = vector.load %arg5[%c3_148, %c0_149, %c0_150] : memref<9x8x32xbf16, #tpu.memory_space<vmem>>, vector<1x8x32xbf16>
    %199 = vector.shape_cast %198 : vector<1x8x32xbf16> to vector<8x32xbf16>
    %200 = vector.extract_strided_slice %183 {offsets = [0, 18], sizes = [32, 286], strides = [1, 1]} : vector<32x324xbf16> to vector<32x286xbf16>
    %cst_151 = arith.constant dense<0.000000e+00> : vector<8x286xf32>
    %201 = tpu.matmul %199, %200, %cst_151 {dimension_numbers = #tpu.dot_dimension_numbers<[1], [0], [0], [1], [0, 0, 1, 1], [], []>} : vector<8x32xbf16>, vector<32x286xbf16>, vector<8x286xf32> -> vector<8x286xf32>
    %202 = arith.addf %197, %201 : vector<8x286xf32>
    %c4_152 = arith.constant 4 : index
    %c0_153 = arith.constant 0 : index
    %c0_154 = arith.constant 0 : index
    %203 = vector.load %arg5[%c4_152, %c0_153, %c0_154] : memref<9x8x32xbf16, #tpu.memory_space<vmem>>, vector<1x8x32xbf16>
    %204 = vector.shape_cast %203 : vector<1x8x32xbf16> to vector<8x32xbf16>
    %205 = vector.extract_strided_slice %183 {offsets = [0, 19], sizes = [32, 286], strides = [1, 1]} : vector<32x324xbf16> to vector<32x286xbf16>
    %cst_155 = arith.constant dense<0.000000e+00> : vector<8x286xf32>
    %206 = tpu.matmul %204, %205, %cst_155 {dimension_numbers = #tpu.dot_dimension_numbers<[1], [0], [0], [1], [0, 0, 1, 1], [], []>} : vector<8x32xbf16>, vector<32x286xbf16>, vector<8x286xf32> -> vector<8x286xf32>
    %207 = arith.addf %202, %206 : vector<8x286xf32>
    %c5_156 = arith.constant 5 : index
    %c0_157 = arith.constant 0 : index
    %c0_158 = arith.constant 0 : index
    %208 = vector.load %arg5[%c5_156, %c0_157, %c0_158] : memref<9x8x32xbf16, #tpu.memory_space<vmem>>, vector<1x8x32xbf16>
    %209 = vector.shape_cast %208 : vector<1x8x32xbf16> to vector<8x32xbf16>
    %210 = vector.extract_strided_slice %183 {offsets = [0, 20], sizes = [32, 286], strides = [1, 1]} : vector<32x324xbf16> to vector<32x286xbf16>
    %cst_159 = arith.constant dense<0.000000e+00> : vector<8x286xf32>
    %211 = tpu.matmul %209, %210, %cst_159 {dimension_numbers = #tpu.dot_dimension_numbers<[1], [0], [0], [1], [0, 0, 1, 1], [], []>} : vector<8x32xbf16>, vector<32x286xbf16>, vector<8x286xf32> -> vector<8x286xf32>
    %212 = arith.addf %207, %211 : vector<8x286xf32>
    %c6_160 = arith.constant 6 : index
    %c0_161 = arith.constant 0 : index
    %c0_162 = arith.constant 0 : index
    %213 = vector.load %arg5[%c6_160, %c0_161, %c0_162] : memref<9x8x32xbf16, #tpu.memory_space<vmem>>, vector<1x8x32xbf16>
    %214 = vector.shape_cast %213 : vector<1x8x32xbf16> to vector<8x32xbf16>
    %215 = vector.extract_strided_slice %183 {offsets = [0, 36], sizes = [32, 286], strides = [1, 1]} : vector<32x324xbf16> to vector<32x286xbf16>
    %cst_163 = arith.constant dense<0.000000e+00> : vector<8x286xf32>
    %216 = tpu.matmul %214, %215, %cst_163 {dimension_numbers = #tpu.dot_dimension_numbers<[1], [0], [0], [1], [0, 0, 1, 1], [], []>} : vector<8x32xbf16>, vector<32x286xbf16>, vector<8x286xf32> -> vector<8x286xf32>
    %217 = arith.addf %212, %216 : vector<8x286xf32>
    %c7_164 = arith.constant 7 : index
    %c0_165 = arith.constant 0 : index
    %c0_166 = arith.constant 0 : index
    %218 = vector.load %arg5[%c7_164, %c0_165, %c0_166] : memref<9x8x32xbf16, #tpu.memory_space<vmem>>, vector<1x8x32xbf16>
    %219 = vector.shape_cast %218 : vector<1x8x32xbf16> to vector<8x32xbf16>
    %220 = vector.extract_strided_slice %183 {offsets = [0, 37], sizes = [32, 286], strides = [1, 1]} : vector<32x324xbf16> to vector<32x286xbf16>
    %cst_167 = arith.constant dense<0.000000e+00> : vector<8x286xf32>
    %221 = tpu.matmul %219, %220, %cst_167 {dimension_numbers = #tpu.dot_dimension_numbers<[1], [0], [0], [1], [0, 0, 1, 1], [], []>} : vector<8x32xbf16>, vector<32x286xbf16>, vector<8x286xf32> -> vector<8x286xf32>
    %222 = arith.addf %217, %221 : vector<8x286xf32>
    %c8_168 = arith.constant 8 : index
    %c0_169 = arith.constant 0 : index
    %c0_170 = arith.constant 0 : index
    %223 = vector.load %arg5[%c8_168, %c0_169, %c0_170] : memref<9x8x32xbf16, #tpu.memory_space<vmem>>, vector<1x8x32xbf16>
    %224 = vector.shape_cast %223 : vector<1x8x32xbf16> to vector<8x32xbf16>
    %225 = vector.extract_strided_slice %183 {offsets = [0, 38], sizes = [32, 286], strides = [1, 1]} : vector<32x324xbf16> to vector<32x286xbf16>
    %cst_171 = arith.constant dense<0.000000e+00> : vector<8x286xf32>
    %226 = tpu.matmul %224, %225, %cst_171 {dimension_numbers = #tpu.dot_dimension_numbers<[1], [0], [0], [1], [0, 0, 1, 1], [], []>} : vector<8x32xbf16>, vector<32x286xbf16>, vector<8x286xf32> -> vector<8x286xf32>
    %227 = arith.addf %222, %226 : vector<8x286xf32>
    %c3_172 = arith.constant 3 : index
    %c0_173 = arith.constant 0 : index
    %c0_174 = arith.constant 0 : index
    %228 = vector.load %arg7[%c3_172, %c0_173, %c0_174] : memref<5x8x1xf32, #tpu.memory_space<vmem>>, vector<1x8x1xf32>
    %229 = vector.shape_cast %228 : vector<1x8x1xf32> to vector<8x1xf32>
    %230 = vector.broadcast %229 : vector<8x1xf32> to vector<8x286xf32>
    %231 = arith.addf %227, %230 : vector<8x286xf32>
    %cst_175 = arith.constant 0.000000e+00 : f32
    %232 = vector.broadcast %cst_175 : f32 to vector<8x286xf32>
    %233 = arith.cmpf ogt, %231, %232 : vector<8x286xf32>
    %cst_176 = arith.constant 0.00999999977 : f32
    %234 = vector.broadcast %cst_176 : f32 to vector<8x286xf32>
    %235 = arith.mulf %234, %231 : vector<8x286xf32>
    %236 = arith.select %233, %231, %235 : vector<8x286xi1>, vector<8x286xf32>
    %237 = vector.broadcast %0 : vector<1x286xf32> to vector<8x286xf32>
    %238 = arith.mulf %236, %237 : vector<8x286xf32>
    %c32 = arith.constant 32 : index
    %c19_177 = arith.constant 19 : index
    %239 = vector.load %arg10[%c32, %c19_177] : memref<40x324xf32, #tpu.memory_space<vmem>>, vector<8x286xf32>
    tpu.vector_store %arg10[%c32, %c19_177], %238 {strides = array<i32>} : memref<40x324xf32, #tpu.memory_space<vmem>>, vector<8x286xf32>,
    %c0_178 = arith.constant 0 : index
    %c0_179 = arith.constant 0 : index
    %240 = vector.load %arg10[%c0_178, %c0_179] : memref<40x324xf32, #tpu.memory_space<vmem>>, vector<40x324xf32>
    %241 = arith.truncf %240 : vector<40x324xf32> to vector<40x324xbf16>
    %c0_180 = arith.constant 0 : index
    %c0_181 = arith.constant 0 : index
    %c0_182 = arith.constant 0 : index
    %242 = vector.load %arg6[%c0_180, %c0_181, %c0_182] : memref<9x8x40xbf16, #tpu.memory_space<vmem>>, vector<1x8x40xbf16>
    %243 = vector.shape_cast %242 : vector<1x8x40xbf16> to vector<8x40xbf16>
    %244 = vector.extract_strided_slice %241 {offsets = [0, 0], sizes = [40, 286], strides = [1, 1]} : vector<40x324xbf16> to vector<40x286xbf16>
    %cst_183 = arith.constant dense<0.000000e+00> : vector<8x286xf32>
    %245 = tpu.matmul %243, %244, %cst_183 {dimension_numbers = #tpu.dot_dimension_numbers<[1], [0], [0], [1], [0, 0, 1, 1], [], []>} : vector<8x40xbf16>, vector<40x286xbf16>, vector<8x286xf32> -> vector<8x286xf32>
    %c1_184 = arith.constant 1 : index
    %c0_185 = arith.constant 0 : index
    %c0_186 = arith.constant 0 : index
    %246 = vector.load %arg6[%c1_184, %c0_185, %c0_186] : memref<9x8x40xbf16, #tpu.memory_space<vmem>>, vector<1x8x40xbf16>
    %247 = vector.shape_cast %246 : vector<1x8x40xbf16> to vector<8x40xbf16>
    %248 = vector.extract_strided_slice %241 {offsets = [0, 1], sizes = [40, 286], strides = [1, 1]} : vector<40x324xbf16> to vector<40x286xbf16>
    %cst_187 = arith.constant dense<0.000000e+00> : vector<8x286xf32>
    %249 = tpu.matmul %247, %248, %cst_187 {dimension_numbers = #tpu.dot_dimension_numbers<[1], [0], [0], [1], [0, 0, 1, 1], [], []>} : vector<8x40xbf16>, vector<40x286xbf16>, vector<8x286xf32> -> vector<8x286xf32>
    %250 = arith.addf %245, %249 : vector<8x286xf32>
    %c2_188 = arith.constant 2 : index
    %c0_189 = arith.constant 0 : index
    %c0_190 = arith.constant 0 : index
    %251 = vector.load %arg6[%c2_188, %c0_189, %c0_190] : memref<9x8x40xbf16, #tpu.memory_space<vmem>>, vector<1x8x40xbf16>
    %252 = vector.shape_cast %251 : vector<1x8x40xbf16> to vector<8x40xbf16>
    %253 = vector.extract_strided_slice %241 {offsets = [0, 2], sizes = [40, 286], strides = [1, 1]} : vector<40x324xbf16> to vector<40x286xbf16>
    %cst_191 = arith.constant dense<0.000000e+00> : vector<8x286xf32>
    %254 = tpu.matmul %252, %253, %cst_191 {dimension_numbers = #tpu.dot_dimension_numbers<[1], [0], [0], [1], [0, 0, 1, 1], [], []>} : vector<8x40xbf16>, vector<40x286xbf16>, vector<8x286xf32> -> vector<8x286xf32>
    %255 = arith.addf %250, %254 : vector<8x286xf32>
    %c3_192 = arith.constant 3 : index
    %c0_193 = arith.constant 0 : index
    %c0_194 = arith.constant 0 : index
    %256 = vector.load %arg6[%c3_192, %c0_193, %c0_194] : memref<9x8x40xbf16, #tpu.memory_space<vmem>>, vector<1x8x40xbf16>
    %257 = vector.shape_cast %256 : vector<1x8x40xbf16> to vector<8x40xbf16>
    %258 = vector.extract_strided_slice %241 {offsets = [0, 18], sizes = [40, 286], strides = [1, 1]} : vector<40x324xbf16> to vector<40x286xbf16>
    %cst_195 = arith.constant dense<0.000000e+00> : vector<8x286xf32>
    %259 = tpu.matmul %257, %258, %cst_195 {dimension_numbers = #tpu.dot_dimension_numbers<[1], [0], [0], [1], [0, 0, 1, 1], [], []>} : vector<8x40xbf16>, vector<40x286xbf16>, vector<8x286xf32> -> vector<8x286xf32>
    %260 = arith.addf %255, %259 : vector<8x286xf32>
    %c4_196 = arith.constant 4 : index
    %c0_197 = arith.constant 0 : index
    %c0_198 = arith.constant 0 : index
    %261 = vector.load %arg6[%c4_196, %c0_197, %c0_198] : memref<9x8x40xbf16, #tpu.memory_space<vmem>>, vector<1x8x40xbf16>
    %262 = vector.shape_cast %261 : vector<1x8x40xbf16> to vector<8x40xbf16>
    %263 = vector.extract_strided_slice %241 {offsets = [0, 19], sizes = [40, 286], strides = [1, 1]} : vector<40x324xbf16> to vector<40x286xbf16>
    %cst_199 = arith.constant dense<0.000000e+00> : vector<8x286xf32>
    %264 = tpu.matmul %262, %263, %cst_199 {dimension_numbers = #tpu.dot_dimension_numbers<[1], [0], [0], [1], [0, 0, 1, 1], [], []>} : vector<8x40xbf16>, vector<40x286xbf16>, vector<8x286xf32> -> vector<8x286xf32>
    %265 = arith.addf %260, %264 : vector<8x286xf32>
    %c5_200 = arith.constant 5 : index
    %c0_201 = arith.constant 0 : index
    %c0_202 = arith.constant 0 : index
    %266 = vector.load %arg6[%c5_200, %c0_201, %c0_202] : memref<9x8x40xbf16, #tpu.memory_space<vmem>>, vector<1x8x40xbf16>
    %267 = vector.shape_cast %266 : vector<1x8x40xbf16> to vector<8x40xbf16>
    %268 = vector.extract_strided_slice %241 {offsets = [0, 20], sizes = [40, 286], strides = [1, 1]} : vector<40x324xbf16> to vector<40x286xbf16>
    %cst_203 = arith.constant dense<0.000000e+00> : vector<8x286xf32>
    %269 = tpu.matmul %267, %268, %cst_203 {dimension_numbers = #tpu.dot_dimension_numbers<[1], [0], [0], [1], [0, 0, 1, 1], [], []>} : vector<8x40xbf16>, vector<40x286xbf16>, vector<8x286xf32> -> vector<8x286xf32>
    %270 = arith.addf %265, %269 : vector<8x286xf32>
    %c6_204 = arith.constant 6 : index
    %c0_205 = arith.constant 0 : index
    %c0_206 = arith.constant 0 : index
    %271 = vector.load %arg6[%c6_204, %c0_205, %c0_206] : memref<9x8x40xbf16, #tpu.memory_space<vmem>>, vector<1x8x40xbf16>
    %272 = vector.shape_cast %271 : vector<1x8x40xbf16> to vector<8x40xbf16>
    %273 = vector.extract_strided_slice %241 {offsets = [0, 36], sizes = [40, 286], strides = [1, 1]} : vector<40x324xbf16> to vector<40x286xbf16>
    %cst_207 = arith.constant dense<0.000000e+00> : vector<8x286xf32>
    %274 = tpu.matmul %272, %273, %cst_207 {dimension_numbers = #tpu.dot_dimension_numbers<[1], [0], [0], [1], [0, 0, 1, 1], [], []>} : vector<8x40xbf16>, vector<40x286xbf16>, vector<8x286xf32> -> vector<8x286xf32>
    %275 = arith.addf %270, %274 : vector<8x286xf32>
    %c7_208 = arith.constant 7 : index
    %c0_209 = arith.constant 0 : index
    %c0_210 = arith.constant 0 : index
    %276 = vector.load %arg6[%c7_208, %c0_209, %c0_210] : memref<9x8x40xbf16, #tpu.memory_space<vmem>>, vector<1x8x40xbf16>
    %277 = vector.shape_cast %276 : vector<1x8x40xbf16> to vector<8x40xbf16>
    %278 = vector.extract_strided_slice %241 {offsets = [0, 37], sizes = [40, 286], strides = [1, 1]} : vector<40x324xbf16> to vector<40x286xbf16>
    %cst_211 = arith.constant dense<0.000000e+00> : vector<8x286xf32>
    %279 = tpu.matmul %277, %278, %cst_211 {dimension_numbers = #tpu.dot_dimension_numbers<[1], [0], [0], [1], [0, 0, 1, 1], [], []>} : vector<8x40xbf16>, vector<40x286xbf16>, vector<8x286xf32> -> vector<8x286xf32>
    %280 = arith.addf %275, %279 : vector<8x286xf32>
    %c8_212 = arith.constant 8 : index
    %c0_213 = arith.constant 0 : index
    %c0_214 = arith.constant 0 : index
    %281 = vector.load %arg6[%c8_212, %c0_213, %c0_214] : memref<9x8x40xbf16, #tpu.memory_space<vmem>>, vector<1x8x40xbf16>
    %282 = vector.shape_cast %281 : vector<1x8x40xbf16> to vector<8x40xbf16>
    %283 = vector.extract_strided_slice %241 {offsets = [0, 38], sizes = [40, 286], strides = [1, 1]} : vector<40x324xbf16> to vector<40x286xbf16>
    %cst_215 = arith.constant dense<0.000000e+00> : vector<8x286xf32>
    %284 = tpu.matmul %282, %283, %cst_215 {dimension_numbers = #tpu.dot_dimension_numbers<[1], [0], [0], [1], [0, 0, 1, 1], [], []>} : vector<8x40xbf16>, vector<40x286xbf16>, vector<8x286xf32> -> vector<8x286xf32>
    %285 = arith.addf %280, %284 : vector<8x286xf32>
    %c4_216 = arith.constant 4 : index
    %c0_217 = arith.constant 0 : index
    %c0_218 = arith.constant 0 : index
    %286 = vector.load %arg7[%c4_216, %c0_217, %c0_218] : memref<5x8x1xf32, #tpu.memory_space<vmem>>, vector<1x8x1xf32>
    %287 = vector.shape_cast %286 : vector<1x8x1xf32> to vector<8x1xf32>
    %288 = vector.broadcast %287 : vector<8x1xf32> to vector<8x286xf32>
    %289 = arith.addf %285, %288 : vector<8x286xf32>
    %290 = vector.broadcast %0 : vector<1x286xf32> to vector<8x286xf32>
    %291 = arith.mulf %289, %290 : vector<8x286xf32>
    %cst_219 = arith.constant 2.000000e-01 : f32
    %292 = vector.broadcast %cst_219 : f32 to vector<8x286xf32>
    %293 = arith.mulf %291, %292 : vector<8x286xf32>
    %294 = vector.extract_strided_slice %2 {offsets = [0, 19], sizes = [8, 286], strides = [1, 1]} : vector<8x324xf32> to vector<8x286xf32>
    %295 = arith.addf %293, %294 : vector<8x286xf32>
    %cst_220 = arith.constant 0.000000e+00 : f32
    %296 = vector.broadcast %cst_220 : f32 to vector<8x19xf32>
    %c0_221 = arith.constant 0 : index
    %c0_222 = arith.constant 0 : index
    %c0_223 = arith.constant 0 : index
    %297 = vector.load %arg9[%c0_221, %c0_222, %c0_223] : memref<1x8x324xf32, #tpu.memory_space<vmem>>, vector<1x8x19xf32>
    %298 = vector.shape_cast %297 : vector<1x8x19xf32> to vector<8x19xf32>
    %299 = vector.shape_cast %296 : vector<8x19xf32> to vector<1x8x19xf32>
    tpu.vector_store %arg9[%c0_221, %c0_222, %c0_223], %299 {strides = array<i32>} : memref<1x8x324xf32, #tpu.memory_space<vmem>>, vector<1x8x19xf32>,
    %c0_224 = arith.constant 0 : index
    %c0_225 = arith.constant 0 : index
    %c19_226 = arith.constant 19 : index
    %300 = vector.load %arg9[%c0_224, %c0_225, %c19_226] : memref<1x8x324xf32, #tpu.memory_space<vmem>>, vector<1x8x286xf32>
    %301 = vector.shape_cast %300 : vector<1x8x286xf32> to vector<8x286xf32>
    %302 = vector.shape_cast %295 : vector<8x286xf32> to vector<1x8x286xf32>
    tpu.vector_store %arg9[%c0_224, %c0_225, %c19_226], %302 {strides = array<i32>} : memref<1x8x324xf32, #tpu.memory_space<vmem>>, vector<1x8x286xf32>,
    %cst_227 = arith.constant 0.000000e+00 : f32
    %303 = vector.broadcast %cst_227 : f32 to vector<8x19xf32>
    %c0_228 = arith.constant 0 : index
    %c0_229 = arith.constant 0 : index
    %c305_230 = arith.constant 305 : index
    %304 = vector.load %arg9[%c0_228, %c0_229, %c305_230] : memref<1x8x324xf32, #tpu.memory_space<vmem>>, vector<1x8x19xf32>
    %305 = vector.shape_cast %304 : vector<1x8x19xf32> to vector<8x19xf32>
    %306 = vector.shape_cast %303 : vector<8x19xf32> to vector<1x8x19xf32>
    tpu.vector_store %arg9[%c0_228, %c0_229, %c305_230], %306 {strides = array<i32>} : memref<1x8x324xf32, #tpu.memory_space<vmem>>, vector<1x8x19xf32>,
    return
  }
  func.func @transform_0(%arg0: i32) -> (i32, i32, i32) {
    %c0_i32 = arith.constant 0 : i32
    %c0_i32_0 = arith.constant 0 : i32
    %c0_i32_1 = arith.constant 0 : i32
    return %arg0, %c0_i32, %c0_i32_0 : i32, i32, i32
  }
  func.func @transform_1(%arg0: i32) -> (i32, i32, i32) {
    %c0_i32 = arith.constant 0 : i32
    %c0_i32_0 = arith.constant 0 : i32
    %c0_i32_1 = arith.constant 0 : i32
    %c0_i32_2 = arith.constant 0 : i32
    return %c0_i32, %c0_i32_0, %c0_i32_1 : i32, i32, i32
  }
  func.func @transform_2(%arg0: i32) -> (i32, i32, i32) {
    %c0_i32 = arith.constant 0 : i32
    %c0_i32_0 = arith.constant 0 : i32
    %c0_i32_1 = arith.constant 0 : i32
    %c0_i32_2 = arith.constant 0 : i32
    return %c0_i32, %c0_i32_0, %c0_i32_1 : i32, i32, i32
  }
  func.func @transform_3(%arg0: i32) -> (i32, i32, i32) {
    %c0_i32 = arith.constant 0 : i32
    %c0_i32_0 = arith.constant 0 : i32
    %c0_i32_1 = arith.constant 0 : i32
    %c0_i32_2 = arith.constant 0 : i32
    return %c0_i32, %c0_i32_0, %c0_i32_1 : i32, i32, i32
  }
  func.func @transform_4(%arg0: i32) -> (i32, i32, i32) {
    %c0_i32 = arith.constant 0 : i32
    %c0_i32_0 = arith.constant 0 : i32
    %c0_i32_1 = arith.constant 0 : i32
    %c0_i32_2 = arith.constant 0 : i32
    return %c0_i32, %c0_i32_0, %c0_i32_1 : i32, i32, i32
  }
  func.func @transform_5(%arg0: i32) -> (i32, i32, i32) {
    %c0_i32 = arith.constant 0 : i32
    %c0_i32_0 = arith.constant 0 : i32
    %c0_i32_1 = arith.constant 0 : i32
    %c0_i32_2 = arith.constant 0 : i32
    return %c0_i32, %c0_i32_0, %c0_i32_1 : i32, i32, i32
  }
  func.func @transform_6(%arg0: i32) -> (i32, i32, i32) {
    %c0_i32 = arith.constant 0 : i32
    %c0_i32_0 = arith.constant 0 : i32
    %c0_i32_1 = arith.constant 0 : i32
    %c0_i32_2 = arith.constant 0 : i32
    return %c0_i32, %c0_i32_0, %c0_i32_1 : i32, i32, i32
  }
  func.func @transform_7(%arg0: i32) -> (i32, i32) {
    %c0_i32 = arith.constant 0 : i32
    %c0_i32_0 = arith.constant 0 : i32
    %c0_i32_1 = arith.constant 0 : i32
    return %c0_i32, %c0_i32_0 : i32, i32
  }
  func.func @transform_8(%arg0: i32) -> (i32, i32, i32) {
    %c0_i32 = arith.constant 0 : i32
    %c0_i32_0 = arith.constant 0 : i32
    %c0_i32_1 = arith.constant 0 : i32
    return %arg0, %c0_i32, %c0_i32_0 : i32, i32, i32
  }
}

module attributes {stable_mosaic.version = 11 : i64} {
  func.func @_tail_kernel(%arg0: i32, %arg1: memref<1x8x324xf32, #tpu.memory_space<vmem>>, %arg2: memref<1x8x324xf32, #tpu.memory_space<vmem>>, %arg3: memref<9x8x8xbf16, #tpu.memory_space<vmem>>, %arg4: memref<8x1xf32, #tpu.memory_space<vmem>>, %arg5: memref<9x8x8xbf16, #tpu.memory_space<vmem>>, %arg6: memref<8x1xf32, #tpu.memory_space<vmem>>, %arg7: memref<9x2x8xbf16, #tpu.memory_space<vmem>>, %arg8: memref<2x1xf32, #tpu.memory_space<vmem>>, %arg9: memref<1x286xf32, #tpu.memory_space<vmem>>, %arg10: memref<1x2x324xf32, #tpu.memory_space<vmem>>, %arg11: memref<8x324xf32, #tpu.memory_space<vmem>>) attributes {dimension_semantics = [#tpu.dimension_semantics<parallel>], iteration_bounds = array<i64: 2>, scalar_prefetch = 0 : i64, scratch_operands = 1 : i64, tpu.core_type = #tpu.core_type<tc>, window_params = [{transform_indices = @transform_0, window_bounds = array<i64: 1, 8, 324>}, {transform_indices = @transform_1, window_bounds = array<i64: 1, 8, 324>}, {pipeline_mode = #tpu.pipeline_mode<synchronous>, transform_indices = @transform_2, window_bounds = array<i64: 9, 8, 8>}, {pipeline_mode = #tpu.pipeline_mode<synchronous>, transform_indices = @transform_3, window_bounds = array<i64: 8, 1>}, {pipeline_mode = #tpu.pipeline_mode<synchronous>, transform_indices = @transform_4, window_bounds = array<i64: 9, 8, 8>}, {pipeline_mode = #tpu.pipeline_mode<synchronous>, transform_indices = @transform_5, window_bounds = array<i64: 8, 1>}, {pipeline_mode = #tpu.pipeline_mode<synchronous>, transform_indices = @transform_6, window_bounds = array<i64: 9, 2, 8>}, {pipeline_mode = #tpu.pipeline_mode<synchronous>, transform_indices = @transform_7, window_bounds = array<i64: 2, 1>}, {pipeline_mode = #tpu.pipeline_mode<synchronous>, transform_indices = @transform_8, window_bounds = array<i64: 1, 286>}, {transform_indices = @transform_9, window_bounds = array<i64: 1, 2, 324>}]} {
    %c0 = arith.constant 0 : index
    %c0_0 = arith.constant 0 : index
    %0 = vector.load %arg9[%c0, %c0_0] : memref<1x286xf32, #tpu.memory_space<vmem>>, vector<1x286xf32>
    %c0_1 = arith.constant 0 : index
    %c0_2 = arith.constant 0 : index
    %c0_3 = arith.constant 0 : index
    %1 = vector.load %arg1[%c0_1, %c0_2, %c0_3] : memref<1x8x324xf32, #tpu.memory_space<vmem>>, vector<1x8x324xf32>
    %2 = vector.shape_cast %1 : vector<1x8x324xf32> to vector<8x324xf32>
    %3 = arith.truncf %2 : vector<8x324xf32> to vector<8x324xbf16>
    %c0_4 = arith.constant 0 : index
    %c0_5 = arith.constant 0 : index
    %c0_6 = arith.constant 0 : index
    %4 = vector.load %arg3[%c0_4, %c0_5, %c0_6] : memref<9x8x8xbf16, #tpu.memory_space<vmem>>, vector<1x8x8xbf16>
    %5 = vector.shape_cast %4 : vector<1x8x8xbf16> to vector<8x8xbf16>
    %6 = vector.extract_strided_slice %3 {offsets = [0, 0], sizes = [8, 286], strides = [1, 1]} : vector<8x324xbf16> to vector<8x286xbf16>
    %cst = arith.constant dense<0.000000e+00> : vector<8x286xf32>
    %7 = tpu.matmul %5, %6, %cst {dimension_numbers = #tpu.dot_dimension_numbers<[1], [0], [0], [1], [0, 0, 1, 1], [], []>} : vector<8x8xbf16>, vector<8x286xbf16>, vector<8x286xf32> -> vector<8x286xf32>
    %c1 = arith.constant 1 : index
    %c0_7 = arith.constant 0 : index
    %c0_8 = arith.constant 0 : index
    %8 = vector.load %arg3[%c1, %c0_7, %c0_8] : memref<9x8x8xbf16, #tpu.memory_space<vmem>>, vector<1x8x8xbf16>
    %9 = vector.shape_cast %8 : vector<1x8x8xbf16> to vector<8x8xbf16>
    %10 = vector.extract_strided_slice %3 {offsets = [0, 1], sizes = [8, 286], strides = [1, 1]} : vector<8x324xbf16> to vector<8x286xbf16>
    %cst_9 = arith.constant dense<0.000000e+00> : vector<8x286xf32>
    %11 = tpu.matmul %9, %10, %cst_9 {dimension_numbers = #tpu.dot_dimension_numbers<[1], [0], [0], [1], [0, 0, 1, 1], [], []>} : vector<8x8xbf16>, vector<8x286xbf16>, vector<8x286xf32> -> vector<8x286xf32>
    %12 = arith.addf %7, %11 : vector<8x286xf32>
    %c2 = arith.constant 2 : index
    %c0_10 = arith.constant 0 : index
    %c0_11 = arith.constant 0 : index
    %13 = vector.load %arg3[%c2, %c0_10, %c0_11] : memref<9x8x8xbf16, #tpu.memory_space<vmem>>, vector<1x8x8xbf16>
    %14 = vector.shape_cast %13 : vector<1x8x8xbf16> to vector<8x8xbf16>
    %15 = vector.extract_strided_slice %3 {offsets = [0, 2], sizes = [8, 286], strides = [1, 1]} : vector<8x324xbf16> to vector<8x286xbf16>
    %cst_12 = arith.constant dense<0.000000e+00> : vector<8x286xf32>
    %16 = tpu.matmul %14, %15, %cst_12 {dimension_numbers = #tpu.dot_dimension_numbers<[1], [0], [0], [1], [0, 0, 1, 1], [], []>} : vector<8x8xbf16>, vector<8x286xbf16>, vector<8x286xf32> -> vector<8x286xf32>
    %17 = arith.addf %12, %16 : vector<8x286xf32>
    %c3 = arith.constant 3 : index
    %c0_13 = arith.constant 0 : index
    %c0_14 = arith.constant 0 : index
    %18 = vector.load %arg3[%c3, %c0_13, %c0_14] : memref<9x8x8xbf16, #tpu.memory_space<vmem>>, vector<1x8x8xbf16>
    %19 = vector.shape_cast %18 : vector<1x8x8xbf16> to vector<8x8xbf16>
    %20 = vector.extract_strided_slice %3 {offsets = [0, 18], sizes = [8, 286], strides = [1, 1]} : vector<8x324xbf16> to vector<8x286xbf16>
    %cst_15 = arith.constant dense<0.000000e+00> : vector<8x286xf32>
    %21 = tpu.matmul %19, %20, %cst_15 {dimension_numbers = #tpu.dot_dimension_numbers<[1], [0], [0], [1], [0, 0, 1, 1], [], []>} : vector<8x8xbf16>, vector<8x286xbf16>, vector<8x286xf32> -> vector<8x286xf32>
    %22 = arith.addf %17, %21 : vector<8x286xf32>
    %c4 = arith.constant 4 : index
    %c0_16 = arith.constant 0 : index
    %c0_17 = arith.constant 0 : index
    %23 = vector.load %arg3[%c4, %c0_16, %c0_17] : memref<9x8x8xbf16, #tpu.memory_space<vmem>>, vector<1x8x8xbf16>
    %24 = vector.shape_cast %23 : vector<1x8x8xbf16> to vector<8x8xbf16>
    %25 = vector.extract_strided_slice %3 {offsets = [0, 19], sizes = [8, 286], strides = [1, 1]} : vector<8x324xbf16> to vector<8x286xbf16>
    %cst_18 = arith.constant dense<0.000000e+00> : vector<8x286xf32>
    %26 = tpu.matmul %24, %25, %cst_18 {dimension_numbers = #tpu.dot_dimension_numbers<[1], [0], [0], [1], [0, 0, 1, 1], [], []>} : vector<8x8xbf16>, vector<8x286xbf16>, vector<8x286xf32> -> vector<8x286xf32>
    %27 = arith.addf %22, %26 : vector<8x286xf32>
    %c5 = arith.constant 5 : index
    %c0_19 = arith.constant 0 : index
    %c0_20 = arith.constant 0 : index
    %28 = vector.load %arg3[%c5, %c0_19, %c0_20] : memref<9x8x8xbf16, #tpu.memory_space<vmem>>, vector<1x8x8xbf16>
    %29 = vector.shape_cast %28 : vector<1x8x8xbf16> to vector<8x8xbf16>
    %30 = vector.extract_strided_slice %3 {offsets = [0, 20], sizes = [8, 286], strides = [1, 1]} : vector<8x324xbf16> to vector<8x286xbf16>
    %cst_21 = arith.constant dense<0.000000e+00> : vector<8x286xf32>
    %31 = tpu.matmul %29, %30, %cst_21 {dimension_numbers = #tpu.dot_dimension_numbers<[1], [0], [0], [1], [0, 0, 1, 1], [], []>} : vector<8x8xbf16>, vector<8x286xbf16>, vector<8x286xf32> -> vector<8x286xf32>
    %32 = arith.addf %27, %31 : vector<8x286xf32>
    %c6 = arith.constant 6 : index
    %c0_22 = arith.constant 0 : index
    %c0_23 = arith.constant 0 : index
    %33 = vector.load %arg3[%c6, %c0_22, %c0_23] : memref<9x8x8xbf16, #tpu.memory_space<vmem>>, vector<1x8x8xbf16>
    %34 = vector.shape_cast %33 : vector<1x8x8xbf16> to vector<8x8xbf16>
    %35 = vector.extract_strided_slice %3 {offsets = [0, 36], sizes = [8, 286], strides = [1, 1]} : vector<8x324xbf16> to vector<8x286xbf16>
    %cst_24 = arith.constant dense<0.000000e+00> : vector<8x286xf32>
    %36 = tpu.matmul %34, %35, %cst_24 {dimension_numbers = #tpu.dot_dimension_numbers<[1], [0], [0], [1], [0, 0, 1, 1], [], []>} : vector<8x8xbf16>, vector<8x286xbf16>, vector<8x286xf32> -> vector<8x286xf32>
    %37 = arith.addf %32, %36 : vector<8x286xf32>
    %c7 = arith.constant 7 : index
    %c0_25 = arith.constant 0 : index
    %c0_26 = arith.constant 0 : index
    %38 = vector.load %arg3[%c7, %c0_25, %c0_26] : memref<9x8x8xbf16, #tpu.memory_space<vmem>>, vector<1x8x8xbf16>
    %39 = vector.shape_cast %38 : vector<1x8x8xbf16> to vector<8x8xbf16>
    %40 = vector.extract_strided_slice %3 {offsets = [0, 37], sizes = [8, 286], strides = [1, 1]} : vector<8x324xbf16> to vector<8x286xbf16>
    %cst_27 = arith.constant dense<0.000000e+00> : vector<8x286xf32>
    %41 = tpu.matmul %39, %40, %cst_27 {dimension_numbers = #tpu.dot_dimension_numbers<[1], [0], [0], [1], [0, 0, 1, 1], [], []>} : vector<8x8xbf16>, vector<8x286xbf16>, vector<8x286xf32> -> vector<8x286xf32>
    %42 = arith.addf %37, %41 : vector<8x286xf32>
    %c8 = arith.constant 8 : index
    %c0_28 = arith.constant 0 : index
    %c0_29 = arith.constant 0 : index
    %43 = vector.load %arg3[%c8, %c0_28, %c0_29] : memref<9x8x8xbf16, #tpu.memory_space<vmem>>, vector<1x8x8xbf16>
    %44 = vector.shape_cast %43 : vector<1x8x8xbf16> to vector<8x8xbf16>
    %45 = vector.extract_strided_slice %3 {offsets = [0, 38], sizes = [8, 286], strides = [1, 1]} : vector<8x324xbf16> to vector<8x286xbf16>
    %cst_30 = arith.constant dense<0.000000e+00> : vector<8x286xf32>
    %46 = tpu.matmul %44, %45, %cst_30 {dimension_numbers = #tpu.dot_dimension_numbers<[1], [0], [0], [1], [0, 0, 1, 1], [], []>} : vector<8x8xbf16>, vector<8x286xbf16>, vector<8x286xf32> -> vector<8x286xf32>
    %47 = arith.addf %42, %46 : vector<8x286xf32>
    %c0_31 = arith.constant 0 : index
    %c0_32 = arith.constant 0 : index
    %48 = vector.load %arg4[%c0_31, %c0_32] : memref<8x1xf32, #tpu.memory_space<vmem>>, vector<8x1xf32>
    %49 = vector.broadcast %48 : vector<8x1xf32> to vector<8x286xf32>
    %50 = arith.addf %47, %49 : vector<8x286xf32>
    %51 = vector.broadcast %0 : vector<1x286xf32> to vector<8x286xf32>
    %52 = arith.mulf %50, %51 : vector<8x286xf32>
    %c0_33 = arith.constant 0 : index
    %c0_34 = arith.constant 0 : index
    %c19 = arith.constant 19 : index
    %53 = vector.load %arg2[%c0_33, %c0_34, %c19] : memref<1x8x324xf32, #tpu.memory_space<vmem>>, vector<1x8x286xf32>
    %54 = vector.shape_cast %53 : vector<1x8x286xf32> to vector<8x286xf32>
    %55 = arith.addf %52, %54 : vector<8x286xf32>
    %cst_35 = arith.constant 0.000000e+00 : f32
    %56 = vector.broadcast %cst_35 : f32 to vector<8x19xf32>
    %c0_36 = arith.constant 0 : index
    %c0_37 = arith.constant 0 : index
    %57 = vector.load %arg11[%c0_36, %c0_37] : memref<8x324xf32, #tpu.memory_space<vmem>>, vector<8x19xf32>
    tpu.vector_store %arg11[%c0_36, %c0_37], %56 {strides = array<i32>} : memref<8x324xf32, #tpu.memory_space<vmem>>, vector<8x19xf32>,
    %c0_38 = arith.constant 0 : index
    %c19_39 = arith.constant 19 : index
    %58 = vector.load %arg11[%c0_38, %c19_39] : memref<8x324xf32, #tpu.memory_space<vmem>>, vector<8x286xf32>
    tpu.vector_store %arg11[%c0_38, %c19_39], %55 {strides = array<i32>} : memref<8x324xf32, #tpu.memory_space<vmem>>, vector<8x286xf32>,
    %cst_40 = arith.constant 0.000000e+00 : f32
    %59 = vector.broadcast %cst_40 : f32 to vector<8x19xf32>
    %c0_41 = arith.constant 0 : index
    %c305 = arith.constant 305 : index
    %60 = vector.load %arg11[%c0_41, %c305] : memref<8x324xf32, #tpu.memory_space<vmem>>, vector<8x19xf32>
    tpu.vector_store %arg11[%c0_41, %c305], %59 {strides = array<i32>} : memref<8x324xf32, #tpu.memory_space<vmem>>, vector<8x19xf32>,
    %c0_42 = arith.constant 0 : index
    %c0_43 = arith.constant 0 : index
    %61 = vector.load %arg11[%c0_42, %c0_43] : memref<8x324xf32, #tpu.memory_space<vmem>>, vector<8x324xf32>
    %62 = arith.truncf %61 : vector<8x324xf32> to vector<8x324xbf16>
    %c0_44 = arith.constant 0 : index
    %c0_45 = arith.constant 0 : index
    %c0_46 = arith.constant 0 : index
    %63 = vector.load %arg5[%c0_44, %c0_45, %c0_46] : memref<9x8x8xbf16, #tpu.memory_space<vmem>>, vector<1x8x8xbf16>
    %64 = vector.shape_cast %63 : vector<1x8x8xbf16> to vector<8x8xbf16>
    %65 = vector.extract_strided_slice %62 {offsets = [0, 0], sizes = [8, 286], strides = [1, 1]} : vector<8x324xbf16> to vector<8x286xbf16>
    %cst_47 = arith.constant dense<0.000000e+00> : vector<8x286xf32>
    %66 = tpu.matmul %64, %65, %cst_47 {dimension_numbers = #tpu.dot_dimension_numbers<[1], [0], [0], [1], [0, 0, 1, 1], [], []>} : vector<8x8xbf16>, vector<8x286xbf16>, vector<8x286xf32> -> vector<8x286xf32>
    %c1_48 = arith.constant 1 : index
    %c0_49 = arith.constant 0 : index
    %c0_50 = arith.constant 0 : index
    %67 = vector.load %arg5[%c1_48, %c0_49, %c0_50] : memref<9x8x8xbf16, #tpu.memory_space<vmem>>, vector<1x8x8xbf16>
    %68 = vector.shape_cast %67 : vector<1x8x8xbf16> to vector<8x8xbf16>
    %69 = vector.extract_strided_slice %62 {offsets = [0, 1], sizes = [8, 286], strides = [1, 1]} : vector<8x324xbf16> to vector<8x286xbf16>
    %cst_51 = arith.constant dense<0.000000e+00> : vector<8x286xf32>
    %70 = tpu.matmul %68, %69, %cst_51 {dimension_numbers = #tpu.dot_dimension_numbers<[1], [0], [0], [1], [0, 0, 1, 1], [], []>} : vector<8x8xbf16>, vector<8x286xbf16>, vector<8x286xf32> -> vector<8x286xf32>
    %71 = arith.addf %66, %70 : vector<8x286xf32>
    %c2_52 = arith.constant 2 : index
    %c0_53 = arith.constant 0 : index
    %c0_54 = arith.constant 0 : index
    %72 = vector.load %arg5[%c2_52, %c0_53, %c0_54] : memref<9x8x8xbf16, #tpu.memory_space<vmem>>, vector<1x8x8xbf16>
    %73 = vector.shape_cast %72 : vector<1x8x8xbf16> to vector<8x8xbf16>
    %74 = vector.extract_strided_slice %62 {offsets = [0, 2], sizes = [8, 286], strides = [1, 1]} : vector<8x324xbf16> to vector<8x286xbf16>
    %cst_55 = arith.constant dense<0.000000e+00> : vector<8x286xf32>
    %75 = tpu.matmul %73, %74, %cst_55 {dimension_numbers = #tpu.dot_dimension_numbers<[1], [0], [0], [1], [0, 0, 1, 1], [], []>} : vector<8x8xbf16>, vector<8x286xbf16>, vector<8x286xf32> -> vector<8x286xf32>
    %76 = arith.addf %71, %75 : vector<8x286xf32>
    %c3_56 = arith.constant 3 : index
    %c0_57 = arith.constant 0 : index
    %c0_58 = arith.constant 0 : index
    %77 = vector.load %arg5[%c3_56, %c0_57, %c0_58] : memref<9x8x8xbf16, #tpu.memory_space<vmem>>, vector<1x8x8xbf16>
    %78 = vector.shape_cast %77 : vector<1x8x8xbf16> to vector<8x8xbf16>
    %79 = vector.extract_strided_slice %62 {offsets = [0, 18], sizes = [8, 286], strides = [1, 1]} : vector<8x324xbf16> to vector<8x286xbf16>
    %cst_59 = arith.constant dense<0.000000e+00> : vector<8x286xf32>
    %80 = tpu.matmul %78, %79, %cst_59 {dimension_numbers = #tpu.dot_dimension_numbers<[1], [0], [0], [1], [0, 0, 1, 1], [], []>} : vector<8x8xbf16>, vector<8x286xbf16>, vector<8x286xf32> -> vector<8x286xf32>
    %81 = arith.addf %76, %80 : vector<8x286xf32>
    %c4_60 = arith.constant 4 : index
    %c0_61 = arith.constant 0 : index
    %c0_62 = arith.constant 0 : index
    %82 = vector.load %arg5[%c4_60, %c0_61, %c0_62] : memref<9x8x8xbf16, #tpu.memory_space<vmem>>, vector<1x8x8xbf16>
    %83 = vector.shape_cast %82 : vector<1x8x8xbf16> to vector<8x8xbf16>
    %84 = vector.extract_strided_slice %62 {offsets = [0, 19], sizes = [8, 286], strides = [1, 1]} : vector<8x324xbf16> to vector<8x286xbf16>
    %cst_63 = arith.constant dense<0.000000e+00> : vector<8x286xf32>
    %85 = tpu.matmul %83, %84, %cst_63 {dimension_numbers = #tpu.dot_dimension_numbers<[1], [0], [0], [1], [0, 0, 1, 1], [], []>} : vector<8x8xbf16>, vector<8x286xbf16>, vector<8x286xf32> -> vector<8x286xf32>
    %86 = arith.addf %81, %85 : vector<8x286xf32>
    %c5_64 = arith.constant 5 : index
    %c0_65 = arith.constant 0 : index
    %c0_66 = arith.constant 0 : index
    %87 = vector.load %arg5[%c5_64, %c0_65, %c0_66] : memref<9x8x8xbf16, #tpu.memory_space<vmem>>, vector<1x8x8xbf16>
    %88 = vector.shape_cast %87 : vector<1x8x8xbf16> to vector<8x8xbf16>
    %89 = vector.extract_strided_slice %62 {offsets = [0, 20], sizes = [8, 286], strides = [1, 1]} : vector<8x324xbf16> to vector<8x286xbf16>
    %cst_67 = arith.constant dense<0.000000e+00> : vector<8x286xf32>
    %90 = tpu.matmul %88, %89, %cst_67 {dimension_numbers = #tpu.dot_dimension_numbers<[1], [0], [0], [1], [0, 0, 1, 1], [], []>} : vector<8x8xbf16>, vector<8x286xbf16>, vector<8x286xf32> -> vector<8x286xf32>
    %91 = arith.addf %86, %90 : vector<8x286xf32>
    %c6_68 = arith.constant 6 : index
    %c0_69 = arith.constant 0 : index
    %c0_70 = arith.constant 0 : index
    %92 = vector.load %arg5[%c6_68, %c0_69, %c0_70] : memref<9x8x8xbf16, #tpu.memory_space<vmem>>, vector<1x8x8xbf16>
    %93 = vector.shape_cast %92 : vector<1x8x8xbf16> to vector<8x8xbf16>
    %94 = vector.extract_strided_slice %62 {offsets = [0, 36], sizes = [8, 286], strides = [1, 1]} : vector<8x324xbf16> to vector<8x286xbf16>
    %cst_71 = arith.constant dense<0.000000e+00> : vector<8x286xf32>
    %95 = tpu.matmul %93, %94, %cst_71 {dimension_numbers = #tpu.dot_dimension_numbers<[1], [0], [0], [1], [0, 0, 1, 1], [], []>} : vector<8x8xbf16>, vector<8x286xbf16>, vector<8x286xf32> -> vector<8x286xf32>
    %96 = arith.addf %91, %95 : vector<8x286xf32>
    %c7_72 = arith.constant 7 : index
    %c0_73 = arith.constant 0 : index
    %c0_74 = arith.constant 0 : index
    %97 = vector.load %arg5[%c7_72, %c0_73, %c0_74] : memref<9x8x8xbf16, #tpu.memory_space<vmem>>, vector<1x8x8xbf16>
    %98 = vector.shape_cast %97 : vector<1x8x8xbf16> to vector<8x8xbf16>
    %99 = vector.extract_strided_slice %62 {offsets = [0, 37], sizes = [8, 286], strides = [1, 1]} : vector<8x324xbf16> to vector<8x286xbf16>
    %cst_75 = arith.constant dense<0.000000e+00> : vector<8x286xf32>
    %100 = tpu.matmul %98, %99, %cst_75 {dimension_numbers = #tpu.dot_dimension_numbers<[1], [0], [0], [1], [0, 0, 1, 1], [], []>} : vector<8x8xbf16>, vector<8x286xbf16>, vector<8x286xf32> -> vector<8x286xf32>
    %101 = arith.addf %96, %100 : vector<8x286xf32>
    %c8_76 = arith.constant 8 : index
    %c0_77 = arith.constant 0 : index
    %c0_78 = arith.constant 0 : index
    %102 = vector.load %arg5[%c8_76, %c0_77, %c0_78] : memref<9x8x8xbf16, #tpu.memory_space<vmem>>, vector<1x8x8xbf16>
    %103 = vector.shape_cast %102 : vector<1x8x8xbf16> to vector<8x8xbf16>
    %104 = vector.extract_strided_slice %62 {offsets = [0, 38], sizes = [8, 286], strides = [1, 1]} : vector<8x324xbf16> to vector<8x286xbf16>
    %cst_79 = arith.constant dense<0.000000e+00> : vector<8x286xf32>
    %105 = tpu.matmul %103, %104, %cst_79 {dimension_numbers = #tpu.dot_dimension_numbers<[1], [0], [0], [1], [0, 0, 1, 1], [], []>} : vector<8x8xbf16>, vector<8x286xbf16>, vector<8x286xf32> -> vector<8x286xf32>
    %106 = arith.addf %101, %105 : vector<8x286xf32>
    %c0_80 = arith.constant 0 : index
    %c0_81 = arith.constant 0 : index
    %107 = vector.load %arg6[%c0_80, %c0_81] : memref<8x1xf32, #tpu.memory_space<vmem>>, vector<8x1xf32>
    %108 = vector.broadcast %107 : vector<8x1xf32> to vector<8x286xf32>
    %109 = arith.addf %106, %108 : vector<8x286xf32>
    %cst_82 = arith.constant 0.000000e+00 : f32
    %110 = vector.broadcast %cst_82 : f32 to vector<8x286xf32>
    %111 = arith.cmpf ogt, %109, %110 : vector<8x286xf32>
    %cst_83 = arith.constant 0.00999999977 : f32
    %112 = vector.broadcast %cst_83 : f32 to vector<8x286xf32>
    %113 = arith.mulf %112, %109 : vector<8x286xf32>
    %114 = arith.select %111, %109, %113 : vector<8x286xi1>, vector<8x286xf32>
    %115 = vector.broadcast %0 : vector<1x286xf32> to vector<8x286xf32>
    %116 = arith.mulf %114, %115 : vector<8x286xf32>
    %c0_84 = arith.constant 0 : index
    %c19_85 = arith.constant 19 : index
    %117 = vector.load %arg11[%c0_84, %c19_85] : memref<8x324xf32, #tpu.memory_space<vmem>>, vector<8x286xf32>
    tpu.vector_store %arg11[%c0_84, %c19_85], %116 {strides = array<i32>} : memref<8x324xf32, #tpu.memory_space<vmem>>, vector<8x286xf32>,
    %c0_86 = arith.constant 0 : index
    %c0_87 = arith.constant 0 : index
    %118 = vector.load %arg11[%c0_86, %c0_87] : memref<8x324xf32, #tpu.memory_space<vmem>>, vector<8x324xf32>
    %119 = arith.truncf %118 : vector<8x324xf32> to vector<8x324xbf16>
    %c0_88 = arith.constant 0 : index
    %c0_89 = arith.constant 0 : index
    %c0_90 = arith.constant 0 : index
    %120 = vector.load %arg7[%c0_88, %c0_89, %c0_90] : memref<9x2x8xbf16, #tpu.memory_space<vmem>>, vector<1x2x8xbf16>
    %121 = vector.shape_cast %120 : vector<1x2x8xbf16> to vector<2x8xbf16>
    %122 = vector.extract_strided_slice %119 {offsets = [0, 0], sizes = [8, 286], strides = [1, 1]} : vector<8x324xbf16> to vector<8x286xbf16>
    %cst_91 = arith.constant dense<0.000000e+00> : vector<2x286xf32>
    %123 = tpu.matmul %121, %122, %cst_91 {dimension_numbers = #tpu.dot_dimension_numbers<[1], [0], [0], [1], [0, 0, 1, 1], [], []>} : vector<2x8xbf16>, vector<8x286xbf16>, vector<2x286xf32> -> vector<2x286xf32>
    %c1_92 = arith.constant 1 : index
    %c0_93 = arith.constant 0 : index
    %c0_94 = arith.constant 0 : index
    %124 = vector.load %arg7[%c1_92, %c0_93, %c0_94] : memref<9x2x8xbf16, #tpu.memory_space<vmem>>, vector<1x2x8xbf16>
    %125 = vector.shape_cast %124 : vector<1x2x8xbf16> to vector<2x8xbf16>
    %126 = vector.extract_strided_slice %119 {offsets = [0, 1], sizes = [8, 286], strides = [1, 1]} : vector<8x324xbf16> to vector<8x286xbf16>
    %cst_95 = arith.constant dense<0.000000e+00> : vector<2x286xf32>
    %127 = tpu.matmul %125, %126, %cst_95 {dimension_numbers = #tpu.dot_dimension_numbers<[1], [0], [0], [1], [0, 0, 1, 1], [], []>} : vector<2x8xbf16>, vector<8x286xbf16>, vector<2x286xf32> -> vector<2x286xf32>
    %128 = arith.addf %123, %127 : vector<2x286xf32>
    %c2_96 = arith.constant 2 : index
    %c0_97 = arith.constant 0 : index
    %c0_98 = arith.constant 0 : index
    %129 = vector.load %arg7[%c2_96, %c0_97, %c0_98] : memref<9x2x8xbf16, #tpu.memory_space<vmem>>, vector<1x2x8xbf16>
    %130 = vector.shape_cast %129 : vector<1x2x8xbf16> to vector<2x8xbf16>
    %131 = vector.extract_strided_slice %119 {offsets = [0, 2], sizes = [8, 286], strides = [1, 1]} : vector<8x324xbf16> to vector<8x286xbf16>
    %cst_99 = arith.constant dense<0.000000e+00> : vector<2x286xf32>
    %132 = tpu.matmul %130, %131, %cst_99 {dimension_numbers = #tpu.dot_dimension_numbers<[1], [0], [0], [1], [0, 0, 1, 1], [], []>} : vector<2x8xbf16>, vector<8x286xbf16>, vector<2x286xf32> -> vector<2x286xf32>
    %133 = arith.addf %128, %132 : vector<2x286xf32>
    %c3_100 = arith.constant 3 : index
    %c0_101 = arith.constant 0 : index
    %c0_102 = arith.constant 0 : index
    %134 = vector.load %arg7[%c3_100, %c0_101, %c0_102] : memref<9x2x8xbf16, #tpu.memory_space<vmem>>, vector<1x2x8xbf16>
    %135 = vector.shape_cast %134 : vector<1x2x8xbf16> to vector<2x8xbf16>
    %136 = vector.extract_strided_slice %119 {offsets = [0, 18], sizes = [8, 286], strides = [1, 1]} : vector<8x324xbf16> to vector<8x286xbf16>
    %cst_103 = arith.constant dense<0.000000e+00> : vector<2x286xf32>
    %137 = tpu.matmul %135, %136, %cst_103 {dimension_numbers = #tpu.dot_dimension_numbers<[1], [0], [0], [1], [0, 0, 1, 1], [], []>} : vector<2x8xbf16>, vector<8x286xbf16>, vector<2x286xf32> -> vector<2x286xf32>
    %138 = arith.addf %133, %137 : vector<2x286xf32>
    %c4_104 = arith.constant 4 : index
    %c0_105 = arith.constant 0 : index
    %c0_106 = arith.constant 0 : index
    %139 = vector.load %arg7[%c4_104, %c0_105, %c0_106] : memref<9x2x8xbf16, #tpu.memory_space<vmem>>, vector<1x2x8xbf16>
    %140 = vector.shape_cast %139 : vector<1x2x8xbf16> to vector<2x8xbf16>
    %141 = vector.extract_strided_slice %119 {offsets = [0, 19], sizes = [8, 286], strides = [1, 1]} : vector<8x324xbf16> to vector<8x286xbf16>
    %cst_107 = arith.constant dense<0.000000e+00> : vector<2x286xf32>
    %142 = tpu.matmul %140, %141, %cst_107 {dimension_numbers = #tpu.dot_dimension_numbers<[1], [0], [0], [1], [0, 0, 1, 1], [], []>} : vector<2x8xbf16>, vector<8x286xbf16>, vector<2x286xf32> -> vector<2x286xf32>
    %143 = arith.addf %138, %142 : vector<2x286xf32>
    %c5_108 = arith.constant 5 : index
    %c0_109 = arith.constant 0 : index
    %c0_110 = arith.constant 0 : index
    %144 = vector.load %arg7[%c5_108, %c0_109, %c0_110] : memref<9x2x8xbf16, #tpu.memory_space<vmem>>, vector<1x2x8xbf16>
    %145 = vector.shape_cast %144 : vector<1x2x8xbf16> to vector<2x8xbf16>
    %146 = vector.extract_strided_slice %119 {offsets = [0, 20], sizes = [8, 286], strides = [1, 1]} : vector<8x324xbf16> to vector<8x286xbf16>
    %cst_111 = arith.constant dense<0.000000e+00> : vector<2x286xf32>
    %147 = tpu.matmul %145, %146, %cst_111 {dimension_numbers = #tpu.dot_dimension_numbers<[1], [0], [0], [1], [0, 0, 1, 1], [], []>} : vector<2x8xbf16>, vector<8x286xbf16>, vector<2x286xf32> -> vector<2x286xf32>
    %148 = arith.addf %143, %147 : vector<2x286xf32>
    %c6_112 = arith.constant 6 : index
    %c0_113 = arith.constant 0 : index
    %c0_114 = arith.constant 0 : index
    %149 = vector.load %arg7[%c6_112, %c0_113, %c0_114] : memref<9x2x8xbf16, #tpu.memory_space<vmem>>, vector<1x2x8xbf16>
    %150 = vector.shape_cast %149 : vector<1x2x8xbf16> to vector<2x8xbf16>
    %151 = vector.extract_strided_slice %119 {offsets = [0, 36], sizes = [8, 286], strides = [1, 1]} : vector<8x324xbf16> to vector<8x286xbf16>
    %cst_115 = arith.constant dense<0.000000e+00> : vector<2x286xf32>
    %152 = tpu.matmul %150, %151, %cst_115 {dimension_numbers = #tpu.dot_dimension_numbers<[1], [0], [0], [1], [0, 0, 1, 1], [], []>} : vector<2x8xbf16>, vector<8x286xbf16>, vector<2x286xf32> -> vector<2x286xf32>
    %153 = arith.addf %148, %152 : vector<2x286xf32>
    %c7_116 = arith.constant 7 : index
    %c0_117 = arith.constant 0 : index
    %c0_118 = arith.constant 0 : index
    %154 = vector.load %arg7[%c7_116, %c0_117, %c0_118] : memref<9x2x8xbf16, #tpu.memory_space<vmem>>, vector<1x2x8xbf16>
    %155 = vector.shape_cast %154 : vector<1x2x8xbf16> to vector<2x8xbf16>
    %156 = vector.extract_strided_slice %119 {offsets = [0, 37], sizes = [8, 286], strides = [1, 1]} : vector<8x324xbf16> to vector<8x286xbf16>
    %cst_119 = arith.constant dense<0.000000e+00> : vector<2x286xf32>
    %157 = tpu.matmul %155, %156, %cst_119 {dimension_numbers = #tpu.dot_dimension_numbers<[1], [0], [0], [1], [0, 0, 1, 1], [], []>} : vector<2x8xbf16>, vector<8x286xbf16>, vector<2x286xf32> -> vector<2x286xf32>
    %158 = arith.addf %153, %157 : vector<2x286xf32>
    %c8_120 = arith.constant 8 : index
    %c0_121 = arith.constant 0 : index
    %c0_122 = arith.constant 0 : index
    %159 = vector.load %arg7[%c8_120, %c0_121, %c0_122] : memref<9x2x8xbf16, #tpu.memory_space<vmem>>, vector<1x2x8xbf16>
    %160 = vector.shape_cast %159 : vector<1x2x8xbf16> to vector<2x8xbf16>
    %161 = vector.extract_strided_slice %119 {offsets = [0, 38], sizes = [8, 286], strides = [1, 1]} : vector<8x324xbf16> to vector<8x286xbf16>
    %cst_123 = arith.constant dense<0.000000e+00> : vector<2x286xf32>
    %162 = tpu.matmul %160, %161, %cst_123 {dimension_numbers = #tpu.dot_dimension_numbers<[1], [0], [0], [1], [0, 0, 1, 1], [], []>} : vector<2x8xbf16>, vector<8x286xbf16>, vector<2x286xf32> -> vector<2x286xf32>
    %163 = arith.addf %158, %162 : vector<2x286xf32>
    %c0_124 = arith.constant 0 : index
    %c0_125 = arith.constant 0 : index
    %164 = vector.load %arg8[%c0_124, %c0_125] : memref<2x1xf32, #tpu.memory_space<vmem>>, vector<2x1xf32>
    %165 = vector.broadcast %164 : vector<2x1xf32> to vector<2x286xf32>
    %166 = arith.addf %163, %165 : vector<2x286xf32>
    %167 = vector.broadcast %0 : vector<1x286xf32> to vector<2x286xf32>
    %168 = arith.mulf %166, %167 : vector<2x286xf32>
    %cst_126 = arith.constant 0.000000e+00 : f32
    %169 = vector.broadcast %cst_126 : f32 to vector<2x19xf32>
    %c0_127 = arith.constant 0 : index
    %c0_128 = arith.constant 0 : index
    %c0_129 = arith.constant 0 : index
    %170 = vector.load %arg10[%c0_127, %c0_128, %c0_129] : memref<1x2x324xf32, #tpu.memory_space<vmem>>, vector<1x2x19xf32>
    %171 = vector.shape_cast %170 : vector<1x2x19xf32> to vector<2x19xf32>
    %172 = vector.shape_cast %169 : vector<2x19xf32> to vector<1x2x19xf32>
    tpu.vector_store %arg10[%c0_127, %c0_128, %c0_129], %172 {strides = array<i32>} : memref<1x2x324xf32, #tpu.memory_space<vmem>>, vector<1x2x19xf32>,
    %c0_130 = arith.constant 0 : index
    %c0_131 = arith.constant 0 : index
    %c19_132 = arith.constant 19 : index
    %173 = vector.load %arg10[%c0_130, %c0_131, %c19_132] : memref<1x2x324xf32, #tpu.memory_space<vmem>>, vector<1x2x286xf32>
    %174 = vector.shape_cast %173 : vector<1x2x286xf32> to vector<2x286xf32>
    %175 = vector.shape_cast %168 : vector<2x286xf32> to vector<1x2x286xf32>
    tpu.vector_store %arg10[%c0_130, %c0_131, %c19_132], %175 {strides = array<i32>} : memref<1x2x324xf32, #tpu.memory_space<vmem>>, vector<1x2x286xf32>,
    %cst_133 = arith.constant 0.000000e+00 : f32
    %176 = vector.broadcast %cst_133 : f32 to vector<2x19xf32>
    %c0_134 = arith.constant 0 : index
    %c0_135 = arith.constant 0 : index
    %c305_136 = arith.constant 305 : index
    %177 = vector.load %arg10[%c0_134, %c0_135, %c305_136] : memref<1x2x324xf32, #tpu.memory_space<vmem>>, vector<1x2x19xf32>
    %178 = vector.shape_cast %177 : vector<1x2x19xf32> to vector<2x19xf32>
    %179 = vector.shape_cast %176 : vector<2x19xf32> to vector<1x2x19xf32>
    tpu.vector_store %arg10[%c0_134, %c0_135, %c305_136], %179 {strides = array<i32>} : memref<1x2x324xf32, #tpu.memory_space<vmem>>, vector<1x2x19xf32>,
    return
  }
  func.func @transform_0(%arg0: i32) -> (i32, i32, i32) {
    %c0_i32 = arith.constant 0 : i32
    %c0_i32_0 = arith.constant 0 : i32
    %c0_i32_1 = arith.constant 0 : i32
    return %arg0, %c0_i32, %c0_i32_0 : i32, i32, i32
  }
  func.func @transform_1(%arg0: i32) -> (i32, i32, i32) {
    %c0_i32 = arith.constant 0 : i32
    %c0_i32_0 = arith.constant 0 : i32
    %c0_i32_1 = arith.constant 0 : i32
    return %arg0, %c0_i32, %c0_i32_0 : i32, i32, i32
  }
  func.func @transform_2(%arg0: i32) -> (i32, i32, i32) {
    %c0_i32 = arith.constant 0 : i32
    %c0_i32_0 = arith.constant 0 : i32
    %c0_i32_1 = arith.constant 0 : i32
    %c0_i32_2 = arith.constant 0 : i32
    return %c0_i32, %c0_i32_0, %c0_i32_1 : i32, i32, i32
  }
  func.func @transform_3(%arg0: i32) -> (i32, i32) {
    %c0_i32 = arith.constant 0 : i32
    %c0_i32_0 = arith.constant 0 : i32
    %c0_i32_1 = arith.constant 0 : i32
    return %c0_i32, %c0_i32_0 : i32, i32
  }
  func.func @transform_4(%arg0: i32) -> (i32, i32, i32) {
    %c0_i32 = arith.constant 0 : i32
    %c0_i32_0 = arith.constant 0 : i32
    %c0_i32_1 = arith.constant 0 : i32
    %c0_i32_2 = arith.constant 0 : i32
    return %c0_i32, %c0_i32_0, %c0_i32_1 : i32, i32, i32
  }
  func.func @transform_5(%arg0: i32) -> (i32, i32) {
    %c0_i32 = arith.constant 0 : i32
    %c0_i32_0 = arith.constant 0 : i32
    %c0_i32_1 = arith.constant 0 : i32
    return %c0_i32, %c0_i32_0 : i32, i32
  }
  func.func @transform_6(%arg0: i32) -> (i32, i32, i32) {
    %c0_i32 = arith.constant 0 : i32
    %c0_i32_0 = arith.constant 0 : i32
    %c0_i32_1 = arith.constant 0 : i32
    %c0_i32_2 = arith.constant 0 : i32
    return %c0_i32, %c0_i32_0, %c0_i32_1 : i32, i32, i32
  }
  func.func @transform_7(%arg0: i32) -> (i32, i32) {
    %c0_i32 = arith.constant 0 : i32
    %c0_i32_0 = arith.constant 0 : i32
    %c0_i32_1 = arith.constant 0 : i32
    return %c0_i32, %c0_i32_0 : i32, i32
  }
  func.func @transform_8(%arg0: i32) -> (i32, i32) {
    %c0_i32 = arith.constant 0 : i32
    %c0_i32_0 = arith.constant 0 : i32
    %c0_i32_1 = arith.constant 0 : i32
    return %c0_i32, %c0_i32_0 : i32, i32
  }
  func.func @transform_9(%arg0: i32) -> (i32, i32, i32) {
    %c0_i32 = arith.constant 0 : i32
    %c0_i32_0 = arith.constant 0 : i32
    %c0_i32_1 = arith.constant 0 : i32
    return %arg0, %c0_i32, %c0_i32_0 : i32, i32, i32
  }
}

</mosaic_0001>

<bundles_post_ra>
// kernel: generator_forward.8
= control target key start
LH: loop header
LB: loop body
LE: loop exit
PB: predicated region body
PF: predicated region fallthrough
CT: control target
= control target key end

     0   :  { %s1001_s15 = smov 0   ;;  %s1132_s0 = inlined_call_operand.vmem [shape: f32[2,4,324], index: 0, kind: input, shape index: {}]   ;;  %s1133_s1 = inlined_call_operand.vmem [shape: bf16[9,8,4], index: 1, kind: input, shape index: {}]   ;;  %s1134_s2 = inlined_call_operand.vmem [shape: f32[8,1], index: 2, kind: input, shape index: {}]   ;;  %s1135_s3 = inlined_call_operand.vmem [shape: f32[1,286], index: 3, kind: input, shape index: {}]   ;;  %s1136_s4 = inlined_call_operand.vmem [shape: f32[2,8,324], index: 4, kind: output, shape index: {}]  }
   0x1 LB: > { %s891_s16 = sadd.s32 4294967295, %s963_s15   ;;  %p895_p0 = scmp.ge.s32.totalorder %s963_s15, 1  ;;  %s963_s15 = sphi %s1001_s15, %s14_s15  }
   0x2   : > { %p162_p1 = scmp.lt.s32.totalorder %s963_s15, 3 }
   0x4   : > { %p163_p2 = pnand %p895_p0, %p162_p1 }
   0x5   : > { %p188_p3 = scmp.lt.s32.totalorder (!%p163_p2), %s891_s16, 1  ;;  %s965_s21 = smov (!%p163_p2), 127  }
   0x6   : > { %166 = sbr.rel (%p163_p2) target bundleno = 511 (0x1ff), region = 36  ;;  %s966_s22 = smov (!%p163_p2), 126  }
   0x7   : > { %s967_s23 = smov (!%p163_p2), 110   ;;  %s968_s24 = smov (!%p163_p2), 109  }
   0x8   : > { %s969_s25 = smov (!%p163_p2), 108   ;;  %s970_s26 = smov (!%p163_p2), 92  }
   0x9   : > { %s971_s27 = smov (!%p163_p2), 91   ;;  %s972_s28 = smov (!%p163_p2), 90  }
   0xb   : > { %s1138_s16 = smov (!%p188_p3, %s891_s16), 1  ;;  %vm238_vm0 = vcmask 1041408   ;;  %vm234_vm1 = vcmask 31744   ;;  %v1029_v14 = vld [vmem:[%s1133_s1] sm:$0xf]  ;;  %vm346_vm2 = vcmask 1031168  }
   0xc   : > { %s935_s17 = smul.u32 12, %s1138_s16  ;;  %v1038_v19 = vld [vmem:[%s1133_s1 + $0x8] sm:$0xf]  ;;  %v898_v23 = vld [vmem:[%s1133_s1 + $0x4] sm:$0xf]  ;;  %vm231_vm3 = vcmask 1039360  }
   0xd   : > { %vm411_vm4 = vcmask 900096   ;;  %v909_v44 = vld [vmem:[%s1133_s1 + $0xc] sm:$0xf]  ;;  %vm476_vm5 = vcmask 891904   ;;  %vm541_vm6 = vcmask 883712   ;;  %vm606_vm7 = vcmask 752640  }
   0xe   : > { %s192_s20 = scalar_lea.vmem %s1132_s0, %s935_s17  ;;  %v917_v57 = vld [vmem:[%s1133_s1 + $0x14] sm:$0xf]  ;;  %vm671_vm8 = vcmask 744448   ;;  %vm736_vm9 = vcmask 736256   ;;  %vm813_vm10 = vcmask 154624   ;;  %vm832_vm11 = vcmask 400384  }
   0xf   : > { %v200_v0 = vld [vmem:[%s192_s20 + $0x8] sm:$0xf]  ;;  %v199_v1 = vld [vmem:[%s192_s20] sm:$0xff]  ;;  %vm834_vm12 = vcmask 556424   ;;  %vm829_vm13 = vcmask 1047704  }
  0x10   : > { %205 = vst [vmem:[#allocation1 + $0x10] ss:$2 sm:$0xff] %v200_v0 }
  0x11   : > { %203 = vst [vmem:[#allocation1] ss:$2 sm:$0xff] %v199_v1 }
  0x17   : > { %v208_v2 = vld.sshfl [vmem:[#allocation1 + $0x10] sm:$0xff pattern:$0x75316420] }
  0x18   : > { %v213_v3 = vpack.c.bf16 %v208_v2, %v208_v2  ;;  %v206_v4 = vld.sshfl [vmem:[#allocation1] sm:$0xff pattern:$0x75316420]  ;;  %v207_v5 = vld.sshfl [vmem:[#allocation1 + $0x8] sm:$0xff pattern:$0x75316420] }
  0x19   : > { %v212_v6 = vpack.c.bf16 %v207_v5, %v206_v4 }
  0x1a   : > { %v221_v7 = vunpack.c.l.b16 %v213_v3 }
  0x1b   : > { %v219_v8 = vunpack.c.l.b16 %v212_v6  ;;  %v220_v9 = vunpack.c.h.b16 %v212_v6  ;;  %v913_v6 = vld [vmem:[%s1133_s1 + $0x10] sm:$0xf] }
  0x1c   : > { %v224_v10 = vpack.c.b16 %v221_v7, %v221_v7 }
  0x1d   : > { %v222_v11 = vpack.c.b16 %v219_v8, %v219_v8  ;;  %v1015_v12 = vpack.c.b16 %v220_v9, %v220_v9 }
  0x1e   : > { %229 = vrot.lane.b32.xlu0 %v224_v10, %s965_s21  ;;  %v297_v28 = vsel %vm238_vm0, %v224_v10, 0 }
  0x1f   : > { %225 = vrot.lane.b32.xlu1 %v222_v11, %s965_s21  ;;  %342 = vrot.lane.b32.xlu2 %v1015_v12, %s966_s22  ;;  %v291_v13 = vsel %vm238_vm0, %v222_v11, 0  ;;  %v294_v32 = vsel %vm238_vm0, %v1015_v12, 0 }
  0x20   : > { %306 = vmatpush.bf16.msra.mxu3 %v291_v13 }
  0x23   : > { %902 = vmatmul.msk.bf16.vlgmr.msra.gmra.mxu3 %vm234_vm1, %v1029_v14 }
  0x26   : > { %227 = vrot.lane.b32.xlu0 %v1015_v12, %s965_s21 }
  0x27   : > { %340 = vrot.lane.b32.xlu1 %v222_v11, %s966_s22  ;;  %344 = vrot.lane.b32.xlu2 %v224_v10, %s966_s22 }
  0x2e   : > { %407 = vrot.lane.b32.xlu0 %v1015_v12, %s967_s23 }
  0x2f   : > { %409 = vrot.lane.b32.xlu1 %v224_v10, %s967_s23  ;;  %405 = vrot.lane.b32.xlu2 %v222_v11, %s967_s23 }
  0x36   : > { %474 = vrot.lane.b32.xlu0 %v224_v10, %s968_s24 }
  0x37   : > { %472 = vrot.lane.b32.xlu1 %v1015_v12, %s968_s24  ;;  %470 = vrot.lane.b32.xlu2 %v222_v11, %s968_s24 }
  0x3e   : > { %535 = vrot.lane.b32.xlu0 %v222_v11, %s969_s25 }
  0x3f   : > { %537 = vrot.lane.b32.xlu1 %v1015_v12, %s969_s25  ;;  %600 = vrot.lane.b32.xlu2 %v222_v11, %s970_s26 }
  0x46   : > { %602 = vrot.lane.b32.xlu0 %v1015_v12, %s970_s26 }
  0x47   : > { %539 = vrot.lane.b32.xlu1 %v224_v10, %s969_s25  ;;  %604 = vrot.lane.b32.xlu2 %v224_v10, %s970_s26 }
  0x4e   : > { %667 = vrot.lane.b32.xlu0 %v1015_v12, %s971_s27 }
  0x4f   : > { %669 = vrot.lane.b32.xlu1 %v224_v10, %s971_s27  ;;  %665 = vrot.lane.b32.xlu2 %v222_v11, %s971_s27  ;;  %s974_s27 = smov 19  }
  0x56   : > { %734 = vrot.lane.b32.xlu0 %v224_v10, %s972_s28  ;;  %v921_v10 = vld [vmem:[%s1133_s1 + $0x18] sm:$0xf] }
  0x57   : > { %732 = vrot.lane.b32.xlu1 %v1015_v12, %s972_s28  ;;  %730 = vrot.lane.b32.xlu2 %v222_v11, %s972_s28  ;;  %s936_s28 = smul.u32 24, %s1138_s16 }
  0x59   : > { %s197_s5 = scalar_lea.vmem %s1136_s4, %s936_s28 }
  0x79   : > { %v343_v15 = vpop.permute.xlu2 %342 }
  0x81   : > { %v345_v16 = vpop.permute.xlu2 %344 }
  0x82   : > { %v348_v17 = vsel %vm346_vm2, %v343_v15, %v345_v16  ;;  %v359_v35 = vsel %vm238_vm0, %v345_v16, 0 }
  0x83   : > { %v356_v18 = vsel %vm238_vm0, %v348_v17, 0  ;;  %v925_v17 = vld [vmem:[%s1133_s1 + $0x1c] sm:$0xf] }
  0x84   : > { %381 = vmatpush.bf16.msrb.mxu3 %v356_v18 }
  0x87   : > { %907 = vmatmul.msk.bf16.vlgmr.msrb.gmra.mxu3 %vm234_vm1, %v1038_v19 }
  0x89   : > { %v406_v33 = vpop.permute.xlu2 %405 }
  0x90   : > { %v230_v20 = vpop.permute.xlu0 %229 }
  0x91   : > { %v246_v21 = vsel %vm238_vm0, %v230_v20, 0  ;;  %v226_v22 = vpop.permute.xlu1 %225  ;;  %v471_v42 = vpop.permute.xlu2 %470 }
  0x92   : > { %281 = vmatpush.bf16.msra.mxu2 %v246_v21 }
  0x95   : > { %901 = vmatmul.msk.bf16.vlgmr.msra.gmra.mxu2 %vm234_vm1, %v898_v23 }
  0x98   : > { %v228_v24 = vpop.permute.xlu0 %227 }
  0x99   : > { %v232_v25 = vsel %vm231_vm3, %v226_v22, %v228_v24  ;;  %v233_v26 = vsel %vm231_vm3, %v228_v24, %v230_v20  ;;  %v341_v27 = vpop.permute.xlu1 %340  ;;  %v601_v52 = vpop.permute.xlu2 %600  ;;  %v793_v24 = vld [vmem:[%s1134_s2] sm:$0xff] }
  0x9a   : > { %v240_v29 = vsel %vm238_vm0, %v232_v25, 0  ;;  %v243_v30 = vsel %vm238_vm0, %v233_v26, 0  ;;  %v347_v31 = vsel %vm346_vm2, %v341_v27, %v343_v15  ;;  %v973_v25 = vmov 0   ;;  %v929_v26 = vld [vmem:[%s1133_s1 + $0x20] sm:$0xf] }
  0x9b   : > { %255 = vmatpush.bf16.msra.mxu0 %v240_v29  ;;  %268 = vmatpush.bf16.msra.mxu1 %v243_v30  ;;  %v353_v34 = vsel %vm238_vm0, %v347_v31, 0 }
  0x9c   : > { %368 = vmatpush.bf16.msrb.mxu2 %v353_v34  ;;  %956 = vset.pattern.permute.xlu0 %v973_v25 }
  0x9d   : > { %796 = vperm.xlu0 %956, %v793_v24  }
  0x9e   : > { %899 = vmatmul.msk.bf16.vlgmr.msra.gmra.mxu0 %vm234_vm1, %v898_v23  ;;  %900 = vmatmul.msk.bf16.vlgmr.msra.gmra.mxu1 %vm234_vm1, %v898_v23 }
  0x9f   : > { %332 = vmatpush.bf16.msrb.mxu1 %v297_v28  ;;  %319 = vmatpush.bf16.msrb.mxu0 %v294_v32 }
  0xa0   : > { %v408_v36 = vpop.permute.xlu0 %407 }
  0xa1   : > { %v412_v37 = vsel %vm411_vm4, %v406_v33, %v408_v36  ;;  %v410_v38 = vpop.permute.xlu1 %409  ;;  %v605_v58 = vpop.permute.xlu2 %604 }
  0xa2   : > { %v418_v39 = vsel %vm238_vm0, %v412_v37, 0  ;;  %v413_v40 = vsel %vm411_vm4, %v408_v36, %v410_v38  ;;  %v424_v41 = vsel %vm238_vm0, %v410_v38, 0  ;;  %v619_v13 = vsel %vm238_vm0, %v605_v58, 0 }
  0xa3   : > { %394 = vmatpush.bf16.msra.mxu0 %v359_v35  ;;  %v421_v43 = vsel %vm238_vm0, %v413_v40, 0  ;;  %433 = vmatpush.bf16.msra.mxu1 %v418_v39 }
  0xa4   : > { %459 = vmatpush.bf16.msra.mxu3 %v424_v41  ;;  %446 = vmatpush.bf16.msra.mxu2 %v421_v43 }
  0xa5   : > { %906 = vmatmul.msk.bf16.vlgmr.msrb.gmra.mxu2 %vm234_vm1, %v1038_v19 }
  0xa6   : > { %v308_v27 = vpop.f32.mrf.mxu3 }
  0xa7   : > { %912 = vmatmul.msk.bf16.vlgmr.msra.gmra.mxu3 %vm234_vm1, %v909_v44 }
  0xa8   : > { %v475_v45 = vpop.permute.xlu0 %474 }
  0xa9   : > { %v473_v46 = vpop.permute.xlu1 %472  ;;  %v489_v47 = vsel %vm238_vm0, %v475_v45, 0  ;;  %v666_v11 = vpop.permute.xlu2 %665 }
  0xaa   : > { %v478_v48 = vsel %vm476_vm5, %v473_v46, %v475_v45  ;;  %v477_v49 = vsel %vm476_vm5, %v471_v42, %v473_v46  ;;  %524 = vmatpush.bf16.msrb.mxu2 %v489_v47 }
  0xab   : > { %v486_v50 = vsel %vm238_vm0, %v478_v48, 0  ;;  %v483_v51 = vsel %vm238_vm0, %v477_v49, 0 }
  0xae   : > { %903 = vmatmul.msk.bf16.vlgmr.msrb.gmra.mxu0 %vm234_vm1, %v1029_v14  ;;  %904 = vmatmul.msk.bf16.vlgmr.msrb.gmra.mxu1 %vm234_vm1, %v1029_v14  ;;  %v310_v28 = vpop.f32.mrf.mxu3 }
  0xaf   : > { %498 = vmatpush.bf16.msrb.mxu0 %v483_v51  ;;  %511 = vmatpush.bf16.msrb.mxu1 %v486_v50 }
  0xb0   : > { %v536_v53 = vpop.permute.xlu0 %535 }
  0xb1   : > { %v538_v54 = vpop.permute.xlu1 %537  ;;  %v731_v18 = vpop.permute.xlu2 %730 }
  0xb2   : > { %v542_v55 = vsel %vm541_vm6, %v536_v53, %v538_v54 }
  0xb3   : > { %v548_v56 = vsel %vm238_vm0, %v542_v55, 0 }
  0xb4   : > { %563 = vmatpush.bf16.msrb.mxu3 %v548_v56 }
  0xb5   : > { %911 = vmatmul.msk.bf16.vlgmr.msra.gmra.mxu2 %vm234_vm1, %v909_v44 }
  0xb7   : > { %918 = vmatmul.msk.bf16.vlgmr.msrb.gmra.mxu3 %vm234_vm1, %v917_v57 }
  0xb8   : > { %v603_v59 = vpop.permute.xlu0 %602 }
  0xb9   : > { %v540_v60 = vpop.permute.xlu1 %539  ;;  %v607_v61 = vsel %vm606_vm7, %v601_v52, %v603_v59  ;;  %v608_v62 = vsel %vm606_vm7, %v603_v59, %v605_v58 }
  0xba   : > { %v543_v63 = vsel %vm541_vm6, %v538_v54, %v540_v60  ;;  %v613_v0 = vsel %vm238_vm0, %v607_v61, 0  ;;  %v616_v1 = vsel %vm238_vm0, %v608_v62, 0  ;;  %v554_v3 = vsel %vm238_vm0, %v540_v60, 0 }
  0xbb   : > { %628 = vmatpush.bf16.msra.mxu2 %v613_v0  ;;  %641 = vmatpush.bf16.msra.mxu3 %v616_v1  ;;  %v551_v2 = vsel %vm238_vm0, %v543_v63, 0 }
  0xbe   : > { %908 = vmatmul.msk.bf16.vlgmr.msra.gmra.mxu0 %vm234_vm1, %v1038_v19  ;;  %910 = vmatmul.msk.bf16.vlgmr.msra.gmra.mxu1 %vm234_vm1, %v909_v44 }
  0xbf   : > { %576 = vmatpush.bf16.msra.mxu0 %v551_v2  ;;  %589 = vmatpush.bf16.msra.mxu1 %v554_v3 }
  0xc0   : > { %v668_v4 = vpop.permute.xlu0 %667 }
  0xc1   : > { %v670_v5 = vpop.permute.xlu1 %669  ;;  %v672_v12 = vsel %vm671_vm8, %v666_v11, %v668_v4 }
  0xc2   : > { %v673_v7 = vsel %vm671_vm8, %v668_v4, %v670_v5  ;;  %v684_v8 = vsel %vm238_vm0, %v670_v5, 0  ;;  %v678_v14 = vsel %vm238_vm0, %v672_v12, 0 }
  0xc3   : > { %v681_v9 = vsel %vm238_vm0, %v673_v7, 0  ;;  %719 = vmatpush.bf16.msrb.mxu3 %v684_v8 }
  0xc5   : > { %916 = vmatmul.msk.bf16.vlgmr.msrb.gmra.mxu2 %vm234_vm1, %v913_v6 }
  0xc6   : > { %706 = vmatpush.bf16.msrb.mxu2 %v681_v9 }
  0xc7   : > { %923 = vmatmul.msk.bf16.vlgmr.msra.gmra.mxu3 %vm234_vm1, %v921_v10 }
  0xc8   : > { %v735_v15 = vpop.permute.xlu0 %734 }
  0xc9   : > { %v749_v16 = vsel %vm238_vm0, %v735_v15, 0  ;;  %v733_v19 = vpop.permute.xlu1 %732 }
  0xca   : > { %v737_v20 = vsel %vm736_vm9, %v731_v18, %v733_v19  ;;  %v738_v21 = vsel %vm736_vm9, %v733_v19, %v735_v15 }
  0xcb   : > { %v743_v22 = vsel %vm238_vm0, %v737_v20, 0  ;;  %v746_v23 = vsel %vm238_vm0, %v738_v21, 0 }
  0xce   : > { %914 = vmatmul.msk.bf16.vlgmr.msrb.gmra.mxu0 %vm234_vm1, %v913_v6  ;;  %915 = vmatmul.msk.bf16.vlgmr.msrb.gmra.mxu1 %vm234_vm1, %v913_v6 }
  0xcf   : > { %654 = vmatpush.bf16.msrb.mxu0 %v619_v13  ;;  %693 = vmatpush.bf16.msrb.mxu1 %v678_v14 }
  0xd5   : > { %922 = vmatmul.msk.bf16.vlgmr.msra.gmra.mxu2 %vm234_vm1, %v921_v10 }
  0xd6   : > { %784 = vmatpush.bf16.msra.mxu2 %v749_v16 }
  0xd7   : > { %928 = vmatmul.msk.bf16.vlgmr.msrb.gmra.mxu3 %vm234_vm1, %v925_v17 }
  0xde   : > { %919 = vmatmul.msk.bf16.vlgmr.msra.gmra.mxu0 %vm234_vm1, %v917_v57  ;;  %920 = vmatmul.msk.bf16.vlgmr.msra.gmra.mxu1 %vm234_vm1, %v917_v57 }
  0xdf   : > { %758 = vmatpush.bf16.msra.mxu0 %v743_v22  ;;  %771 = vmatpush.bf16.msra.mxu1 %v746_v23 }
  0xe5   : > { %927 = vmatmul.msk.bf16.vlgmr.msrb.gmra.mxu2 %vm234_vm1, %v925_v17 }
  0xee   : > { %924 = vmatmul.msk.bf16.vlgmr.msrb.gmra.mxu0 %vm234_vm1, %v921_v10  ;;  %926 = vmatmul.msk.bf16.vlgmr.msrb.gmra.mxu1 %vm234_vm1, %v925_v17 }
  0xf5   : > { %932 = vmatmul.msk.bf16.vlgmr.msra.gmra.mxu2 %vm234_vm1, %v929_v26 }
  0xfe   : > { %930 = vmatmul.msk.bf16.vlgmr.msra.gmra.mxu0 %vm234_vm1, %v929_v26  ;;  %931 = vmatmul.msk.bf16.vlgmr.msra.gmra.mxu1 %vm234_vm1, %v929_v26 }
 0x10a   : > { %v383_v29 = vpop.f32.mrf.mxu3 }
 0x112   : > { %v385_v30 = vpop.f32.mrf.mxu3 }
 0x118   : > { %v283_v31 = vpop.f32.mrf.mxu2 }
 0x11b   : > { %v257_v32 = vpop.f32.mrf.mxu0  ;;  %v270_v33 = vpop.f32.mrf.mxu1 }
 0x11c   : > { %v309_v34 = vadd.f32 %v308_v27, %v257_v32  ;;  %v802_v27 = vld [vmem:[%s1135_s3] sm:$0x7] }
 0x120   : > { %v285_v35 = vpop.f32.mrf.mxu2 }
 0x123   : > { %v259_v36 = vpop.f32.mrf.mxu0  ;;  %v272_v37 = vpop.f32.mrf.mxu1 }
 0x128   : > { %v370_v38 = vpop.f32.mrf.mxu2 }
 0x129   : > { %v400_v39 = vadd.f32 %v370_v38, %v309_v34 }
 0x12a   : > { %v461_v40 = vpop.f32.mrf.mxu3 }
 0x12b   : > { %v321_v41 = vpop.f32.mrf.mxu0  ;;  %v334_v42 = vpop.f32.mrf.mxu1 }
 0x12c   : > { %v322_v43 = vadd.f32 %v321_v41, %v270_v33  ;;  %v335_v50 = vadd.f32 %v334_v42, %v283_v31  ;;  %v797_v31 = vpop.permute.xlu0 %796  ;;  %v806_v33 = vperm.slane %v802_v27, 2 }
 0x12e   : > { %v401_v44 = vadd.f32 %v383_v29, %v322_v43 }
 0x130   : > { %v372_v45 = vpop.f32.mrf.mxu2 }
 0x132   : > { %v463_v46 = vpop.f32.mrf.mxu3 }
 0x133   : > { %v323_v47 = vpop.f32.mrf.mxu0  ;;  %v336_v48 = vpop.f32.mrf.mxu1 }
 0x138   : > { %v448_v49 = vpop.f32.mrf.mxu2 }
 0x139   : > { %v466_v19 = vadd.f32 %v448_v49, %v401_v44 }
 0x13a   : > { %v565_v51 = vpop.f32.mrf.mxu3 }
 0x13b   : > { %v396_v52 = vpop.f32.mrf.mxu0  ;;  %v435_v53 = vpop.f32.mrf.mxu1 }
 0x13c   : > { %v402_v54 = vadd.f32 %v396_v52, %v335_v50  ;;  %v465_v61 = vadd.f32 %v435_v53, %v400_v39  ;;  %v804_v50 = vperm.slane %v802_v27, 0  ;;  %v975_v52 = vmov 0.0  }
 0x13d   : > { %814 = vst.msk [vmem:[%s197_s5] sm:$0xff] %vm813_vm10, %v975_v52 }
 0x13e   : > { %v467_v55 = vadd.f32 %v461_v40, %v402_v54  ;;  %v805_v40 = vperm.slane %v802_v27, 1 }
 0x140   : > { %v450_v56 = vpop.f32.mrf.mxu2 }
 0x142   : > { %v567_v57 = vpop.f32.mrf.mxu3 }
 0x143   : > { %v398_v58 = vpop.f32.mrf.mxu0  ;;  %v437_v59 = vpop.f32.mrf.mxu1 }
 0x148   : > { %v526_v60 = vpop.f32.mrf.mxu2 }
 0x149   : > { %v532_v18 = vadd.f32 %v526_v60, %v467_v55 }
 0x14a   : > { %v643_v62 = vpop.f32.mrf.mxu3 }
 0x14b   : > { %v500_v63 = vpop.f32.mrf.mxu0  ;;  %v513_v0 = vpop.f32.mrf.mxu1 }
 0x14c   : > { %v530_v1 = vadd.f32 %v500_v63, %v465_v61  ;;  %v531_v22 = vadd.f32 %v513_v0, %v466_v19 }
 0x14e   : > { %v595_v2 = vadd.f32 %v565_v51, %v530_v1 }
 0x150   : > { %v528_v3 = vpop.f32.mrf.mxu2 }
 0x152   : > { %v645_v4 = vpop.f32.mrf.mxu3 }
 0x153   : > { %v502_v5 = vpop.f32.mrf.mxu0  ;;  %v515_v6 = vpop.f32.mrf.mxu1 }
 0x158   : > { %v630_v7 = vpop.f32.mrf.mxu2 }
 0x159   : > { %v660_v38 = vadd.f32 %v630_v7, %v595_v2 }
 0x15a   : > { %v721_v8 = vpop.f32.mrf.mxu3 }
 0x15b   : > { %v578_v9 = vpop.f32.mrf.mxu0  ;;  %v591_v10 = vpop.f32.mrf.mxu1 }
 0x15c   : > { %v597_v21 = vadd.f32 %v591_v10, %v532_v18  ;;  %v596_v26 = vadd.f32 %v578_v9, %v531_v22 }
 0x15e   : > { %v661_v29 = vadd.f32 %v643_v62, %v596_v26 }
 0x160   : > { %v632_v11 = vpop.f32.mrf.mxu2 }
 0x162   : > { %v723_v12 = vpop.f32.mrf.mxu3 }
 0x163   : > { %v580_v13 = vpop.f32.mrf.mxu0  ;;  %v593_v14 = vpop.f32.mrf.mxu1 }
 0x168   : > { %v708_v15 = vpop.f32.mrf.mxu2 }
 0x169   : > { %v726_v34 = vadd.f32 %v708_v15, %v661_v29 }
 0x16b   : > { %v656_v16 = vpop.f32.mrf.mxu0  ;;  %v695_v17 = vpop.f32.mrf.mxu1 }
 0x16c   : > { %v662_v23 = vadd.f32 %v656_v16, %v597_v21  ;;  %v725_v42 = vadd.f32 %v695_v17, %v660_v38 }
 0x16e   : > { %v727_v28 = vadd.f32 %v721_v8, %v662_v23 }
 0x170   : > { %v710_v20 = vpop.f32.mrf.mxu2 }
 0x173   : > { %v658_v24 = vpop.f32.mrf.mxu0  ;;  %v697_v25 = vpop.f32.mrf.mxu1 }
 0x178   : > { %v786_v30 = vpop.f32.mrf.mxu2 }
 0x179   : > { %v792_v32 = vadd.f32 %v786_v30, %v727_v28 }
 0x17b   : > { %v801_v35 = vadd.f32 %v797_v31, %v792_v32  ;;  %v760_v36 = vpop.f32.mrf.mxu0  ;;  %v773_v37 = vpop.f32.mrf.mxu1 }
 0x17c   : > { %v791_v39 = vadd.f32 %v773_v37, %v726_v34  ;;  %v790_v44 = vadd.f32 %v760_v36, %v725_v42 }
 0x17d   : > { %v812_v41 = vmul.f32 %v806_v33, %v801_v35 }
 0x17e   : > { %v800_v43 = vadd.f32 %v797_v31, %v791_v39  ;;  %v799_v49 = vadd.f32 %v797_v31, %v790_v44 }
 0x17f   : > { %822 = vrot.lane.b32.xlu2 %v812_v41, %s974_s27 }
 0x180   : > { %v811_v45 = vmul.f32 %v805_v40, %v800_v43  ;;  %v788_v46 = vpop.f32.mrf.mxu2  ;;  %v810_v51 = vmul.f32 %v804_v50, %v799_v49 }
 0x182   : > { %820 = vrot.lane.b32.xlu1 %v811_v45, %s974_s27 }
 0x183   : > { %v762_v47 = vpop.f32.mrf.mxu0  ;;  %v775_v48 = vpop.f32.mrf.mxu1 }
 0x18a   : > { %818 = vrot.lane.b32.xlu1 %v810_v51, %s974_s27 }
 0x1d9   : > { %v823_v53 = vpop.permute.xlu2 %822 }
 0x1f4   : > { %v821_v54 = vpop.permute.xlu1 %820 }
 0x1f5   : > { %v825_v55 = vsel %vm813_vm10, %v821_v54, %v823_v53 }
 0x1f6   : > { %833 = vst.msk [vmem:[%s197_s5 + $0x10] sm:$0xff] %vm832_vm11, %v825_v55 }
 0x1f7   : > { %835 = vst.msk [vmem:[%s197_s5 + $0x10] sm:$0xff] %vm834_vm12, %v975_v52 }
 0x1fc   : > { %v819_v56 = vpop.permute.xlu1 %818 }
 0x1fd   : > { %v824_v57 = vsel %vm813_vm10, %v819_v56, %v821_v54  ;;  %830 = vst.msk [vmem:[%s197_s5] sm:$0xff] %vm829_vm13, %v819_v56 }
 0x1fe   : > { %831 = vst [vmem:[%s197_s5 + $0x8] sm:$0xff] %v824_v57 }
 0x1ff PF: > { %s14_s15 = sadd.s32 1, %s963_s15  }
 0x200   : > { %p11_p4 = scmp.ge.s32.totalorder %s14_s15, 4  }
 0x202   :  { %13 = sbr.rel (!%p11_p4) target bundleno = 1 (0x1), region = 75 }

// kernel: generator_forward.15
= control target key start
LH: loop header
LB: loop body
LE: loop exit
PB: predicated region body
PF: predicated region fallthrough
CT: control target
= control target key end

     0   :  { %s2497_s30 = smov 0   ;;  %s2968_s0 = inlined_call_operand.vmem [shape: f32[2,8,324], index: 0, kind: input, shape index: {}]   ;;  %s2969_s1 = inlined_call_operand.vmem [shape: f32[2,8,324], index: 1, kind: input, shape index: {}]   ;;  %s2970_s2 = inlined_call_operand.vmem [shape: bf16[9,8,8], index: 2, kind: input, shape index: {}]   ;;  %s2971_s3 = inlined_call_operand.vmem [shape: f32[8,1], index: 3, kind: input, shape index: {}]   ;;  %s2972_s4 = inlined_call_operand.vmem [shape: bf16[9,8,8], index: 4, kind: input, shape index: {}]   ;;  %s2973_s5 = inlined_call_operand.vmem [shape: f32[8,1], index: 5, kind: input, shape index: {}]   ;;  %s2974_s6 = inlined_call_operand.vmem [shape: bf16[9,2,8], index: 6, kind: input, shape index: {}]   ;;  %s2975_s7 = inlined_call_operand.vmem [shape: f32[2,1], index: 7, kind: input, shape index: {}]   ;;  %s2976_s8 = inlined_call_operand.vmem [shape: f32[1,286], index: 8, kind: input, shape index: {}]   ;;  %s2977_s9 = inlined_call_operand.vmem [shape: f32[2,2,324], index: 9, kind: output, shape index: {}]  }
   0x1 LB: > { %s2290_s10 = sadd.s32 4294967295, %s2434_s30   ;;  %p2294_p0 = scmp.ge.s32.totalorder %s2434_s30, 1  ;;  %s2434_s30 = sphi %s2497_s30, %s19_s30  }
   0x2   : > { %p297_p1 = scmp.lt.s32.totalorder %s2434_s30, 3 }
   0x4   : > { %p298_p2 = pnand %p2294_p0, %p297_p1 }
   0x5   : > { %p338_p3 = scmp.lt.s32.totalorder (!%p298_p2), %s2290_s10, 1  ;;  %s2436_s15 = smov (!%p298_p2), 127  }
   0x6   : > { %301 = sbr.rel (%p298_p2) target bundleno = 1471 (0x5bf), region = 56  ;;  %s2437_s16 = smov (!%p298_p2), 126  }
   0x7   : > { %s2438_s17 = smov (!%p298_p2), 110   ;;  %s2439_s18 = smov (!%p298_p2), 109  }
   0x8   : > { %s2440_s19 = smov (!%p298_p2), 108   ;;  %s2441_s20 = smov (!%p298_p2), 92  }
   0x9   : > { %s2442_s21 = smov (!%p298_p2), 91   ;;  %s2443_s22 = smov (!%p298_p2), 90  }
   0xa   : > { %s2446_s27 = smov (!%p298_p2), 19  }
   0xb   : > { %s2979_s10 = smov (!%p338_p3, %s2290_s10), 1  ;;  %vm384_vm0 = vcmask 1043456   ;;  %vm380_vm1 = vcmask 64512   ;;  %v2551_v12 = vld [vmem:[%s2970_s2] sm:$0xf]  ;;  %vm492_vm2 = vcmask 1031168  }
   0xc   : > { %s2405_s11 = smul.u32 24, %s2979_s10  ;;  %v2560_v17 = vld [vmem:[%s2970_s2 + $0x8] sm:$0xf]  ;;  %v2298_v21 = vld [vmem:[%s2970_s2 + $0x4] sm:$0xf]  ;;  %vm377_vm3 = vcmask 1039360  }
   0xd   : > { %vm557_vm4 = vcmask 900096   ;;  %v2309_v43 = vld [vmem:[%s2970_s2 + $0xc] sm:$0xf]  ;;  %vm622_vm5 = vcmask 891904   ;;  %vm687_vm6 = vcmask 883712   ;;  %vm752_vm7 = vcmask 752640  }
   0xe   : > { %s342_s14 = scalar_lea.vmem %s2968_s0, %s2405_s11  ;;  %v2317_v55 = vld [vmem:[%s2970_s2 + $0x14] sm:$0xf]  ;;  %vm817_vm8 = vcmask 744448   ;;  %vm882_vm9 = vcmask 736256   ;;  %s347_s13 = scalar_lea.vmem %s2969_s1, %s2405_s11  ;;  %vm979_vm10 = vcmask 154624   ;;  %vm995_vm11 = vcmask 1047704  }
   0xf   : > { %v357_v0 = vld [vmem:[%s342_s14 + $0x10] sm:$0xff]  ;;  %v355_v1 = vld [vmem:[%s342_s14] sm:$0xff]  ;;  %v356_v2 = vld [vmem:[%s342_s14 + $0x8] sm:$0xff]  ;;  %vm998_vm12 = vcmask 400384   ;;  %vm1000_vm13 = vcmask 556424  }
  0x10   : > { %v359_v3 = vpack.c.bf16 %v357_v0, %v357_v0  ;;  %v358_v4 = vpack.c.bf16 %v356_v2, %v355_v1 }
  0x12   : > { %v367_v5 = vunpack.c.l.b16 %v359_v3  ;;  %v365_v6 = vunpack.c.l.b16 %v358_v4  ;;  %v366_v7 = vunpack.c.h.b16 %v358_v4 }
  0x14   : > { %v2513_v8 = vpack.c.b16 %v367_v5, %v367_v5  ;;  %v368_v9 = vpack.c.b16 %v365_v6, %v365_v6  ;;  %v369_v10 = vpack.c.b16 %v366_v7, %v366_v7  ;;  %v2313_v6 = vld [vmem:[%s2970_s2 + $0x10] sm:$0xf] }
  0x16   : > { %375 = vrot.lane.b32.xlu1 %v2513_v8, %s2436_s15  ;;  %371 = vrot.lane.b32.xlu0 %v368_v9, %s2436_s15  ;;  %v437_v11 = vsel %vm384_vm0, %v368_v9, 0  ;;  %v440_v28 = vsel %vm384_vm0, %v369_v10, 0  ;;  %v443_v32 = vsel %vm384_vm0, %v2513_v8, 0 }
  0x17   : > { %488 = vrot.lane.b32.xlu2 %v369_v10, %s2437_s16  ;;  %452 = vmatpush.bf16.msra.mxu3 %v437_v11 }
  0x1a   : > { %2302 = vmatmul.msk.bf16.vlgmr.msra.gmra.mxu3 %vm380_vm1, %v2551_v12 }
  0x1e   : > { %373 = vrot.lane.b32.xlu0 %v369_v10, %s2436_s15  ;;  %486 = vrot.lane.b32.xlu1 %v368_v9, %s2437_s16 }
  0x1f   : > { %490 = vrot.lane.b32.xlu2 %v2513_v8, %s2437_s16 }
  0x26   : > { %555 = vrot.lane.b32.xlu1 %v2513_v8, %s2438_s17  ;;  %553 = vrot.lane.b32.xlu0 %v369_v10, %s2438_s17 }
  0x27   : > { %551 = vrot.lane.b32.xlu2 %v368_v9, %s2438_s17 }
  0x2e   : > { %618 = vrot.lane.b32.xlu1 %v369_v10, %s2439_s18  ;;  %616 = vrot.lane.b32.xlu0 %v368_v9, %s2439_s18 }
  0x2f   : > { %620 = vrot.lane.b32.xlu2 %v2513_v8, %s2439_s18 }
  0x36   : > { %683 = vrot.lane.b32.xlu1 %v369_v10, %s2440_s19  ;;  %681 = vrot.lane.b32.xlu0 %v368_v9, %s2440_s19 }
  0x37   : > { %746 = vrot.lane.b32.xlu2 %v368_v9, %s2441_s20 }
  0x3e   : > { %748 = vrot.lane.b32.xlu0 %v369_v10, %s2441_s20  ;;  %685 = vrot.lane.b32.xlu1 %v2513_v8, %s2440_s19 }
  0x3f   : > { %750 = vrot.lane.b32.xlu2 %v2513_v8, %s2441_s20 }
  0x46   : > { %815 = vrot.lane.b32.xlu1 %v2513_v8, %s2442_s21  ;;  %813 = vrot.lane.b32.xlu0 %v369_v10, %s2442_s21 }
  0x47   : > { %811 = vrot.lane.b32.xlu2 %v368_v9, %s2442_s21 }
  0x4e   : > { %878 = vrot.lane.b32.xlu1 %v369_v10, %s2443_s22  ;;  %876 = vrot.lane.b32.xlu0 %v368_v9, %s2443_s22 }
  0x4f   : > { %880 = vrot.lane.b32.xlu2 %v2513_v8, %s2443_s22  ;;  %v2321_v8 = vld [vmem:[%s2970_s2 + $0x18] sm:$0xf] }
  0x71   : > { %v489_v13 = vpop.permute.xlu2 %488 }
  0x79   : > { %v491_v14 = vpop.permute.xlu2 %490 }
  0x7a   : > { %v494_v15 = vsel %vm492_vm2, %v489_v13, %v491_v14  ;;  %v505_v33 = vsel %vm384_vm0, %v491_v14, 0 }
  0x7b   : > { %v502_v16 = vsel %vm384_vm0, %v494_v15, 0  ;;  %v2325_v15 = vld [vmem:[%s2970_s2 + $0x1c] sm:$0xf] }
  0x7c   : > { %527 = vmatpush.bf16.msrb.mxu3 %v502_v16 }
  0x7f   : > { %2307 = vmatmul.msk.bf16.vlgmr.msrb.gmra.mxu3 %vm380_vm1, %v2560_v17 }
  0x81   : > { %v552_v22 = vpop.permute.xlu2 %551 }
  0x88   : > { %v376_v18 = vpop.permute.xlu1 %375  ;;  %v372_v19 = vpop.permute.xlu0 %371 }
  0x89   : > { %v392_v20 = vsel %vm384_vm0, %v376_v18, 0  ;;  %v621_v34 = vpop.permute.xlu2 %620 }
  0x8a   : > { %427 = vmatpush.bf16.msra.mxu2 %v392_v20  ;;  %v635_v42 = vsel %vm384_vm0, %v621_v34, 0 }
  0x8d   : > { %2301 = vmatmul.msk.bf16.vlgmr.msra.gmra.mxu2 %vm380_vm1, %v2298_v21 }
  0x90   : > { %v374_v23 = vpop.permute.xlu0 %373  ;;  %v487_v24 = vpop.permute.xlu1 %486 }
  0x91   : > { %v378_v25 = vsel %vm377_vm3, %v372_v19, %v374_v23  ;;  %v379_v26 = vsel %vm377_vm3, %v374_v23, %v376_v18  ;;  %v493_v27 = vsel %vm492_vm2, %v487_v24, %v489_v13  ;;  %v747_v50 = vpop.permute.xlu2 %746  ;;  %v939_v23 = vld [vmem:[%s2971_s3] sm:$0xff]  ;;  %v2444_v24 = vmov 0  }
  0x92   : > { %v386_v29 = vsel %vm384_vm0, %v378_v25, 0  ;;  %v389_v30 = vsel %vm384_vm0, %v379_v26, 0  ;;  %v499_v31 = vsel %vm384_vm0, %v493_v27, 0  ;;  %2426 = vset.pattern.permute.xlu0 %v2444_v24  ;;  %2427 = vset.pattern.permute.xlu2 %v2444_v24  ;;  %v960_v25 = vld [vmem:[%s347_s13 + $0x10] sm:$0xff]  ;;  %v2329_v26 = vld [vmem:[%s2970_s2 + $0x20] sm:$0xf] }
  0x93   : > { %401 = vmatpush.bf16.msra.mxu0 %v386_v29  ;;  %414 = vmatpush.bf16.msra.mxu1 %v389_v30 }
  0x94   : > { %514 = vmatpush.bf16.msrb.mxu2 %v499_v31  ;;  %942 = vperm.xlu0 %2426, %v939_v23  }
  0x96   : > { %2299 = vmatmul.msk.bf16.vlgmr.msra.gmra.mxu0 %vm380_vm1, %v2298_v21  ;;  %2300 = vmatmul.msk.bf16.vlgmr.msra.gmra.mxu1 %vm380_vm1, %v2298_v21 }
  0x97   : > { %465 = vmatpush.bf16.msrb.mxu0 %v440_v28  ;;  %478 = vmatpush.bf16.msrb.mxu1 %v443_v32  ;;  %v959_v28 = vld [vmem:[%s347_s13 + $0x8] sm:$0xff] }
  0x98   : > { %v556_v35 = vpop.permute.xlu1 %555  ;;  %v554_v36 = vpop.permute.xlu0 %553  ;;  %966 = vrot.lane.b32.xlu2 %v959_v28, %s2439_s18 }
  0x99   : > { %v570_v37 = vsel %vm384_vm0, %v556_v35, 0  ;;  %v559_v38 = vsel %vm557_vm4, %v554_v36, %v556_v35  ;;  %v558_v39 = vsel %vm557_vm4, %v552_v22, %v554_v36  ;;  %v751_v56 = vpop.permute.xlu2 %750  ;;  %v958_v22 = vld [vmem:[%s347_s13] sm:$0xff] }
  0x9a   : > { %v567_v40 = vsel %vm384_vm0, %v559_v38, 0  ;;  %v564_v41 = vsel %vm384_vm0, %v558_v39, 0  ;;  %605 = vmatpush.bf16.msra.mxu3 %v570_v37  ;;  %v765_v11 = vsel %vm384_vm0, %v751_v56, 0  ;;  %964 = vrot.lane.b32.xlu1 %v958_v22, %s2439_s18 }
  0x9b   : > { %540 = vmatpush.bf16.msra.mxu0 %v505_v33  ;;  %592 = vmatpush.bf16.msra.mxu2 %v567_v40 }
  0x9c   : > { %579 = vmatpush.bf16.msra.mxu1 %v564_v41 }
  0x9d   : > { %2306 = vmatmul.msk.bf16.vlgmr.msrb.gmra.mxu2 %vm380_vm1, %v2560_v17  ;;  %2312 = vmatmul.msk.bf16.vlgmr.msra.gmra.mxu3 %vm380_vm1, %v2309_v43  ;;  %v454_v27 = vpop.f32.mrf.mxu3 }
  0x9f   : > { %670 = vmatpush.bf16.msrb.mxu2 %v635_v42 }
  0xa0   : > { %v619_v44 = vpop.permute.xlu1 %618  ;;  %v617_v45 = vpop.permute.xlu0 %616 }
  0xa1   : > { %v623_v46 = vsel %vm622_vm5, %v617_v45, %v619_v44  ;;  %v624_v47 = vsel %vm622_vm5, %v619_v44, %v621_v34  ;;  %v812_v9 = vpop.permute.xlu2 %811 }
  0xa2   : > { %v629_v48 = vsel %vm384_vm0, %v623_v46, 0  ;;  %v632_v49 = vsel %vm384_vm0, %v624_v47, 0  ;;  %968 = vrot.lane.b32.xlu1 %v960_v25, %s2439_s18 }
  0xa5   : > { %v456_v29 = vpop.f32.mrf.mxu3 }
  0xa6   : > { %2303 = vmatmul.msk.bf16.vlgmr.msrb.gmra.mxu0 %vm380_vm1, %v2551_v12  ;;  %2304 = vmatmul.msk.bf16.vlgmr.msrb.gmra.mxu1 %vm380_vm1, %v2551_v12 }
  0xa7   : > { %644 = vmatpush.bf16.msrb.mxu0 %v629_v48  ;;  %657 = vmatpush.bf16.msrb.mxu1 %v632_v49 }
  0xa8   : > { %v684_v51 = vpop.permute.xlu1 %683  ;;  %v682_v52 = vpop.permute.xlu0 %681 }
  0xa9   : > { %v688_v53 = vsel %vm687_vm6, %v682_v52, %v684_v51  ;;  %v881_v13 = vpop.permute.xlu2 %880 }
  0xaa   : > { %v694_v54 = vsel %vm384_vm0, %v688_v53, 0  ;;  %v895_v14 = vsel %vm384_vm0, %v881_v13, 0 }
  0xab   : > { %709 = vmatpush.bf16.msrb.mxu3 %v694_v54 }
  0xad   : > { %2311 = vmatmul.msk.bf16.vlgmr.msra.gmra.mxu2 %vm380_vm1, %v2309_v43 }
  0xae   : > { %2318 = vmatmul.msk.bf16.vlgmr.msrb.gmra.mxu3 %vm380_vm1, %v2317_v55 }
  0xb0   : > { %v749_v57 = vpop.permute.xlu0 %748  ;;  %v686_v58 = vpop.permute.xlu1 %685 }
  0xb1   : > { %v753_v59 = vsel %vm752_vm7, %v747_v50, %v749_v57  ;;  %v689_v60 = vsel %vm687_vm6, %v684_v51, %v686_v58  ;;  %v754_v61 = vsel %vm752_vm7, %v749_v57, %v751_v56  ;;  %v700_v1 = vsel %vm384_vm0, %v686_v58, 0 }
  0xb2   : > { %v759_v62 = vsel %vm384_vm0, %v753_v59, 0  ;;  %v762_v63 = vsel %vm384_vm0, %v754_v61, 0  ;;  %v697_v0 = vsel %vm384_vm0, %v689_v60, 0 }
  0xb3   : > { %774 = vmatpush.bf16.msra.mxu2 %v759_v62  ;;  %787 = vmatpush.bf16.msra.mxu3 %v762_v63 }
  0xb6   : > { %2308 = vmatmul.msk.bf16.vlgmr.msra.gmra.mxu0 %vm380_vm1, %v2560_v17  ;;  %2310 = vmatmul.msk.bf16.vlgmr.msra.gmra.mxu1 %vm380_vm1, %v2309_v43 }
  0xb7   : > { %722 = vmatpush.bf16.msra.mxu0 %v697_v0  ;;  %735 = vmatpush.bf16.msra.mxu1 %v700_v1 }
  0xb8   : > { %v816_v2 = vpop.permute.xlu1 %815  ;;  %v814_v3 = vpop.permute.xlu0 %813 }
  0xb9   : > { %v830_v4 = vsel %vm384_vm0, %v816_v2, 0  ;;  %v819_v5 = vsel %vm817_vm8, %v814_v3, %v816_v2  ;;  %v818_v10 = vsel %vm817_vm8, %v812_v9, %v814_v3 }
  0xba   : > { %865 = vmatpush.bf16.msrb.mxu3 %v830_v4  ;;  %v827_v7 = vsel %vm384_vm0, %v819_v5, 0  ;;  %v824_v12 = vsel %vm384_vm0, %v818_v10, 0 }
  0xbd   : > { %2316 = vmatmul.msk.bf16.vlgmr.msrb.gmra.mxu2 %vm380_vm1, %v2313_v6 }
  0xbe   : > { %2323 = vmatmul.msk.bf16.vlgmr.msra.gmra.mxu3 %vm380_vm1, %v2321_v8  ;;  %852 = vmatpush.bf16.msrb.mxu2 %v827_v7 }
  0xc0   : > { %v879_v16 = vpop.permute.xlu1 %878  ;;  %v877_v17 = vpop.permute.xlu0 %876 }
  0xc1   : > { %v884_v18 = vsel %vm882_vm9, %v879_v16, %v881_v13  ;;  %v883_v19 = vsel %vm882_vm9, %v877_v17, %v879_v16  ;;  %v2445_v13 = vmov 0.0  }
  0xc2   : > { %v892_v20 = vsel %vm384_vm0, %v884_v18, 0  ;;  %v889_v21 = vsel %vm384_vm0, %v883_v19, 0  ;;  %980 = vst.msk [vmem:[#allocation2] sm:$0xff] %vm979_vm10, %v2445_v13 }
  0xc6   : > { %2314 = vmatmul.msk.bf16.vlgmr.msrb.gmra.mxu0 %vm380_vm1, %v2313_v6  ;;  %2315 = vmatmul.msk.bf16.vlgmr.msrb.gmra.mxu1 %vm380_vm1, %v2313_v6 }
  0xc7   : > { %800 = vmatpush.bf16.msrb.mxu0 %v765_v11  ;;  %839 = vmatpush.bf16.msrb.mxu1 %v824_v12 }
  0xcd   : > { %2322 = vmatmul.msk.bf16.vlgmr.msra.gmra.mxu2 %vm380_vm1, %v2321_v8 }
  0xce   : > { %2328 = vmatmul.msk.bf16.vlgmr.msrb.gmra.mxu3 %vm380_vm1, %v2325_v15  ;;  %930 = vmatpush.bf16.msra.mxu2 %v895_v14 }
  0xd6   : > { %2319 = vmatmul.msk.bf16.vlgmr.msra.gmra.mxu0 %vm380_vm1, %v2317_v55  ;;  %2320 = vmatmul.msk.bf16.vlgmr.msra.gmra.mxu1 %vm380_vm1, %v2317_v55 }
  0xd7   : > { %904 = vmatpush.bf16.msra.mxu0 %v889_v21  ;;  %917 = vmatpush.bf16.msra.mxu1 %v892_v20 }
  0xdd   : > { %2327 = vmatmul.msk.bf16.vlgmr.msrb.gmra.mxu2 %vm380_vm1, %v2325_v15 }
  0xe6   : > { %2324 = vmatmul.msk.bf16.vlgmr.msrb.gmra.mxu0 %vm380_vm1, %v2321_v8  ;;  %2326 = vmatmul.msk.bf16.vlgmr.msrb.gmra.mxu1 %vm380_vm1, %v2325_v15 }
  0xed   : > { %2332 = vmatmul.msk.bf16.vlgmr.msra.gmra.mxu2 %vm380_vm1, %v2329_v26 }
  0xf6   : > { %2330 = vmatmul.msk.bf16.vlgmr.msra.gmra.mxu0 %vm380_vm1, %v2329_v26  ;;  %2331 = vmatmul.msk.bf16.vlgmr.msra.gmra.mxu1 %vm380_vm1, %v2329_v26 }
 0x102   : > { %v529_v30 = vpop.f32.mrf.mxu3 }
 0x10a   : > { %v531_v31 = vpop.f32.mrf.mxu3 }
 0x10c   : > { %v965_v24 = vpop.permute.xlu1 %964 }
 0x110   : > { %v429_v32 = vpop.f32.mrf.mxu2 }
 0x113   : > { %v403_v33 = vpop.f32.mrf.mxu0  ;;  %v416_v34 = vpop.f32.mrf.mxu1 }
 0x114   : > { %v455_v35 = vadd.f32 %v454_v27, %v403_v33 }
 0x118   : > { %v431_v36 = vpop.f32.mrf.mxu2 }
 0x11b   : > { %v405_v37 = vpop.f32.mrf.mxu0  ;;  %v418_v38 = vpop.f32.mrf.mxu1 }
 0x120   : > { %v516_v39 = vpop.f32.mrf.mxu2  ;;  %v607_v40 = vpop.f32.mrf.mxu3 }
 0x121   : > { %v546_v41 = vadd.f32 %v516_v39, %v455_v35  ;;  %v943_v35 = vpop.permute.xlu0 %942 }
 0x123   : > { %v467_v42 = vpop.f32.mrf.mxu0  ;;  %v480_v43 = vpop.f32.mrf.mxu1 }
 0x124   : > { %v468_v44 = vadd.f32 %v467_v42, %v416_v34  ;;  %v481_v52 = vadd.f32 %v480_v43, %v429_v32 }
 0x126   : > { %v547_v45 = vadd.f32 %v529_v30, %v468_v44  ;;  %v354_v30 = vld [vmem:[%s2976_s8] sm:$0x7] }
 0x127   : > { %v2671_v37 = vperm.slane %v354_v30, 2  ;;  %v2673_v44 = vperm.slane %v354_v30, 0 }
 0x128   : > { %v518_v46 = vpop.f32.mrf.mxu2  ;;  %v609_v47 = vpop.f32.mrf.mxu3 }
 0x129   : > { %v2675_v46 = vperm.slane %v354_v30, 1  ;;  %v969_v47 = vpop.permute.xlu1 %968 }
 0x12b   : > { %v469_v48 = vpop.f32.mrf.mxu0  ;;  %v482_v49 = vpop.f32.mrf.mxu1 }
 0x12c   : > { %v967_v49 = vpop.permute.xlu2 %966 }
 0x130   : > { %v594_v50 = vpop.f32.mrf.mxu2 }
 0x131   : > { %v711_v51 = vpop.f32.mrf.mxu3  ;;  %v612_v18 = vadd.f32 %v594_v50, %v547_v45 }
 0x133   : > { %v542_v53 = vpop.f32.mrf.mxu0  ;;  %v581_v54 = vpop.f32.mrf.mxu1 }
 0x134   : > { %v548_v55 = vadd.f32 %v542_v53, %v481_v52  ;;  %v611_v19 = vadd.f32 %v581_v54, %v546_v41  ;;  %v972_v52 = vsel %vm622_vm5, %v967_v49, %v969_v47 }
 0x136   : > { %v613_v56 = vadd.f32 %v607_v40, %v548_v55 }
 0x138   : > { %v596_v57 = vpop.f32.mrf.mxu2 }
 0x139   : > { %v713_v58 = vpop.f32.mrf.mxu3  ;;  %v971_v57 = vsel %vm622_vm5, %v965_v24, %v967_v49 }
 0x13b   : > { %v544_v59 = vpop.f32.mrf.mxu0  ;;  %v583_v60 = vpop.f32.mrf.mxu1 }
 0x140   : > { %v672_v61 = vpop.f32.mrf.mxu2 }
 0x141   : > { %v789_v62 = vpop.f32.mrf.mxu3  ;;  %v678_v17 = vadd.f32 %v672_v61, %v613_v56 }
 0x143   : > { %v646_v63 = vpop.f32.mrf.mxu0  ;;  %v659_v0 = vpop.f32.mrf.mxu1 }
 0x144   : > { %v676_v22 = vadd.f32 %v646_v63, %v611_v19  ;;  %v677_v23 = vadd.f32 %v659_v0, %v612_v18 }
 0x146   : > { %v741_v29 = vadd.f32 %v711_v51, %v676_v22  ;;  %v2333_v22 = vld [vmem:[%s2972_s4 + $0x4] sm:$0xf] }
 0x148   : > { %v674_v1 = vpop.f32.mrf.mxu2 }
 0x149   : > { %v791_v2 = vpop.f32.mrf.mxu3 }
 0x14b   : > { %v648_v3 = vpop.f32.mrf.mxu0  ;;  %v661_v4 = vpop.f32.mrf.mxu1 }
 0x150   : > { %v776_v5 = vpop.f32.mrf.mxu2 }
 0x151   : > { %v867_v6 = vpop.f32.mrf.mxu3  ;;  %v806_v32 = vadd.f32 %v776_v5, %v741_v29 }
 0x153   : > { %v724_v7 = vpop.f32.mrf.mxu0  ;;  %v737_v8 = vpop.f32.mrf.mxu1 }
 0x154   : > { %v743_v21 = vadd.f32 %v737_v8, %v678_v17  ;;  %v742_v28 = vadd.f32 %v724_v7, %v677_v23 }
 0x156   : > { %v807_v33 = vadd.f32 %v789_v62, %v742_v28 }
 0x158   : > { %v778_v9 = vpop.f32.mrf.mxu2 }
 0x159   : > { %v869_v10 = vpop.f32.mrf.mxu3 }
 0x15b   : > { %v726_v11 = vpop.f32.mrf.mxu0  ;;  %v739_v12 = vpop.f32.mrf.mxu1 }
 0x160   : > { %v854_v14 = vpop.f32.mrf.mxu2 }
 0x161   : > { %v872_v38 = vadd.f32 %v854_v14, %v807_v33 }
 0x163   : > { %v802_v15 = vpop.f32.mrf.mxu0  ;;  %v841_v16 = vpop.f32.mrf.mxu1 }
 0x164   : > { %v808_v25 = vadd.f32 %v802_v15, %v743_v21  ;;  %v871_v39 = vadd.f32 %v841_v16, %v806_v32  ;;  %v1007_v15 = vld [vmem:[%s2972_s4] sm:$0xf] }
 0x166   : > { %v873_v31 = vadd.f32 %v867_v6, %v808_v25 }
 0x168   : > { %v856_v20 = vpop.f32.mrf.mxu2 }
 0x16b   : > { %v804_v26 = vpop.f32.mrf.mxu0  ;;  %v843_v27 = vpop.f32.mrf.mxu1 }
 0x170   : > { %v932_v34 = vpop.f32.mrf.mxu2 }
 0x171   : > { %v938_v36 = vadd.f32 %v932_v34, %v873_v31 }
 0x173   : > { %v947_v40 = vadd.f32 %v943_v35, %v938_v36  ;;  %v906_v41 = vpop.f32.mrf.mxu0  ;;  %v919_v42 = vpop.f32.mrf.mxu1 }
 0x174   : > { %v936_v43 = vadd.f32 %v906_v41, %v871_v39  ;;  %v937_v45 = vadd.f32 %v919_v42, %v872_v38 }
 0x175   : > { %v957_v48 = vmul.f32 %v2671_v37, %v947_v40  ;;  %v2340_v40 = vld [vmem:[%s2972_s4 + $0x8] sm:$0xf] }
 0x176   : > { %v945_v50 = vadd.f32 %v943_v35, %v936_v43  ;;  %v946_v51 = vadd.f32 %v943_v35, %v937_v45 }
 0x177   : > { %v978_v53 = vadd.f32 %v969_v47, %v957_v48 }
 0x178   : > { %v955_v54 = vmul.f32 %v2673_v44, %v945_v50  ;;  %v956_v55 = vmul.f32 %v2675_v46, %v946_v51  ;;  %v934_v56 = vpop.f32.mrf.mxu2 }
 0x179   : > { %988 = vrot.lane.b32.xlu1 %v978_v53, %s2446_s27 }
 0x17a   : > { %v977_v58 = vadd.f32 %v972_v52, %v956_v55  ;;  %v976_v59 = vadd.f32 %v971_v57, %v955_v54 }
 0x17b   : > { %v921_v60 = vpop.f32.mrf.mxu1  ;;  %v908_v61 = vpop.f32.mrf.mxu0 }
 0x17c   : > { %986 = vrot.lane.b32.xlu0 %v977_v58, %s2446_s27  ;;  %984 = vrot.lane.b32.xlu2 %v976_v59, %s2446_s27  ;;  %v2344_v59 = vld [vmem:[%s2972_s4 + $0xc] sm:$0xf] }
 0x1d6   : > { %v985_v62 = vpop.permute.xlu2 %984 }
 0x1d7   : > { %996 = vst.msk [vmem:[#allocation2] sm:$0xff] %vm995_vm11, %v985_v62 }
 0x1de   : > { %v1002_v1 = vld [vmem:[#allocation2] sm:$0xff] }
 0x1eb   : > { %v989_v63 = vpop.permute.xlu1 %988 }
 0x1ee   : > { %v987_v0 = vpop.permute.xlu0 %986 }
 0x1ef   : > { %v990_v2 = vsel %vm979_vm10, %v985_v62, %v987_v0  ;;  %v991_v3 = vsel %vm979_vm10, %v987_v0, %v989_v63 }
 0x1f0   : > { %999 = vst.msk [vmem:[#allocation2 + $0x10] sm:$0xff] %vm998_vm12, %v991_v3  ;;  %v1005_v4 = vpack.c.bf16 %v990_v2, %v1002_v1 }
 0x1f1   : > { %1001 = vst.msk [vmem:[#allocation2 + $0x10] sm:$0xff] %vm1000_vm13, %v2445_v13 }
 0x1f2   : > { %v1012_v5 = vunpack.c.l.b16 %v1005_v4  ;;  %v1013_v6 = vunpack.c.h.b16 %v1005_v4 }
 0x1f4   : > { %v1015_v7 = vpack.c.b16 %v1012_v5, %v1012_v5  ;;  %v1016_v8 = vpack.c.b16 %v1013_v6, %v1013_v6 }
 0x1f6   : > { %1020 = vrot.lane.b32.xlu0 %v1016_v8, %s2436_s15  ;;  %1018 = vrot.lane.b32.xlu2 %v1015_v7, %s2436_s15  ;;  %v1081_v9 = vsel %vm384_vm0, %v1015_v7, 0  ;;  %v1084_v21 = vsel %vm384_vm0, %v1016_v8, 0 }
 0x1f7   : > { %1096 = vmatpush.bf16.msrb.mxu2 %v1081_v9  ;;  %v2352_v9 = vld [vmem:[%s2972_s4 + $0x14] sm:$0xf] }
 0x1f8   : > { %v1004_v10 = vld [vmem:[#allocation2 + $0x10] sm:$0xff] }
 0x1f9   : > { %v1006_v11 = vpack.c.bf16 %v1004_v10, %v1004_v10 }
 0x1fa   : > { %2337 = vmatmul.msk.bf16.vlgmr.msrb.gmra.mxu2 %vm380_vm1, %v1007_v15 }
 0x1fb   : > { %v1014_v12 = vunpack.c.l.b16 %v1006_v11 }
 0x1fd   : > { %v1017_v14 = vpack.c.b16 %v1014_v12, %v1014_v12 }
 0x1fe   : > { %1132 = vrot.lane.b32.xlu0 %v1016_v8, %s2437_s16  ;;  %1130 = vrot.lane.b32.xlu2 %v1015_v7, %s2437_s16 }
 0x1ff   : > { %1022 = vrot.lane.b32.xlu1 %v1017_v14, %s2436_s15  ;;  %v1087_v29 = vsel %vm384_vm0, %v1017_v14, 0 }
 0x206   : > { %1196 = vrot.lane.b32.xlu0 %v1016_v8, %s2438_s17  ;;  %1194 = vrot.lane.b32.xlu2 %v1015_v7, %s2438_s17 }
 0x207   : > { %1134 = vrot.lane.b32.xlu1 %v1017_v14, %s2437_s16 }
 0x20e   : > { %1260 = vrot.lane.b32.xlu0 %v1016_v8, %s2439_s18  ;;  %1258 = vrot.lane.b32.xlu2 %v1015_v7, %s2439_s18 }
 0x20f   : > { %1198 = vrot.lane.b32.xlu1 %v1017_v14, %s2438_s17 }
 0x216   : > { %1324 = vrot.lane.b32.xlu0 %v1016_v8, %s2440_s19  ;;  %1322 = vrot.lane.b32.xlu2 %v1015_v7, %s2440_s19 }
 0x217   : > { %1262 = vrot.lane.b32.xlu1 %v1017_v14, %s2439_s18 }
 0x21e   : > { %1388 = vrot.lane.b32.xlu0 %v1016_v8, %s2441_s20  ;;  %1386 = vrot.lane.b32.xlu2 %v1015_v7, %s2441_s20 }
 0x21f   : > { %1326 = vrot.lane.b32.xlu1 %v1017_v14, %s2440_s19 }
 0x226   : > { %1452 = vrot.lane.b32.xlu0 %v1016_v8, %s2442_s21  ;;  %1450 = vrot.lane.b32.xlu2 %v1015_v7, %s2442_s21 }
 0x227   : > { %1390 = vrot.lane.b32.xlu1 %v1017_v14, %s2441_s20 }
 0x22e   : > { %1516 = vrot.lane.b32.xlu0 %v1016_v8, %s2443_s22  ;;  %1514 = vrot.lane.b32.xlu2 %v1015_v7, %s2443_s22  ;;  %v2348_v7 = vld [vmem:[%s2972_s4 + $0x10] sm:$0xf] }
 0x22f   : > { %1454 = vrot.lane.b32.xlu1 %v1017_v14, %s2442_s21 }
 0x237   : > { %1518 = vrot.lane.b32.xlu1 %v1017_v14, %s2443_s22 }
 0x250   : > { %v1019_v16 = vpop.permute.xlu2 %1018 }
 0x258   : > { %v1131_v19 = vpop.permute.xlu2 %1130 }
 0x260   : > { %v1195_v31 = vpop.permute.xlu2 %1194 }
 0x268   : > { %v1021_v17 = vpop.permute.xlu0 %1020  ;;  %v1259_v41 = vpop.permute.xlu2 %1258 }
 0x269   : > { %v1024_v18 = vsel %vm377_vm3, %v1019_v16, %v1021_v17 }
 0x26a   : > { %v1030_v20 = vsel %vm384_vm0, %v1024_v18, 0 }
 0x26b   : > { %1045 = vmatpush.bf16.msra.mxu3 %v1030_v20 }
 0x26e   : > { %2334 = vmatmul.msk.bf16.vlgmr.msra.gmra.mxu3 %vm380_vm1, %v2333_v22 }
 0x26f   : > { %1109 = vmatpush.bf16.msrb.mxu3 %v1084_v21 }
 0x270   : > { %v1133_v23 = vpop.permute.xlu0 %1132  ;;  %v1323_v51 = vpop.permute.xlu2 %1322 }
 0x271   : > { %v1023_v24 = vpop.permute.xlu1 %1022  ;;  %v1136_v25 = vsel %vm492_vm2, %v1131_v19, %v1133_v23 }
 0x272   : > { %v1025_v26 = vsel %vm377_vm3, %v1021_v17, %v1023_v24  ;;  %v1036_v27 = vsel %vm384_vm0, %v1023_v24, 0  ;;  %v1142_v28 = vsel %vm384_vm0, %v1136_v25, 0 }
 0x273   : > { %v1033_v30 = vsel %vm384_vm0, %v1025_v26, 0  ;;  %1071 = vmatpush.bf16.msrb.mxu1 %v1036_v27 }
 0x274   : > { %1058 = vmatpush.bf16.msrb.mxu0 %v1033_v30 }
 0x276   : > { %2336 = vmatmul.msk.bf16.vlgmr.msrb.gmra.mxu1 %vm380_vm1, %v2333_v22 }
 0x277   : > { %1157 = vmatpush.bf16.msra.mxu1 %v1142_v28  ;;  %2335 = vmatmul.msk.bf16.vlgmr.msrb.gmra.mxu0 %vm380_vm1, %v2333_v22  ;;  %v2356_v22 = vld [vmem:[%s2972_s4 + $0x18] sm:$0xf]  ;;  %v2360_v28 = vld [vmem:[%s2972_s4 + $0x1c] sm:$0xf] }
 0x278   : > { %1122 = vmatpush.bf16.msra.mxu0 %v1087_v29  ;;  %v1197_v32 = vpop.permute.xlu0 %1196  ;;  %v1387_v62 = vpop.permute.xlu2 %1386  ;;  %v2364_v29 = vld [vmem:[%s2972_s4 + $0x20] sm:$0xf] }
 0x279   : > { %v1135_v33 = vpop.permute.xlu1 %1134  ;;  %v1200_v34 = vsel %vm557_vm4, %v1195_v31, %v1197_v32  ;;  %v1576_v31 = vld [vmem:[%s2973_s5] sm:$0xff] }
 0x27a   : > { %v1137_v35 = vsel %vm492_vm2, %v1133_v23, %v1135_v33  ;;  %v1148_v36 = vsel %vm384_vm0, %v1135_v33, 0  ;;  %v1206_v38 = vsel %vm384_vm0, %v1200_v34, 0  ;;  %1579 = vperm.xlu2 %2427, %v1576_v31  }
 0x27b   : > { %v1145_v39 = vsel %vm384_vm0, %v1137_v35, 0  ;;  %1183 = vmatpush.bf16.msra.mxu3 %v1148_v36 }
 0x27c   : > { %1221 = vmatpush.bf16.msrb.mxu0 %v1206_v38  ;;  %1170 = vmatpush.bf16.msra.mxu2 %v1145_v39 }
 0x27d   : > { %v1098_v30 = vpop.f32.mrf.mxu2 }
 0x27e   : > { %2338 = vmatmul.msk.bf16.vlgmr.msrb.gmra.mxu3 %vm380_vm1, %v1007_v15 }
 0x27f   : > { %2342 = vmatmul.msk.bf16.vlgmr.msra.gmra.mxu2 %vm380_vm1, %v2340_v40 }
 0x280   : > { %v1261_v42 = vpop.permute.xlu0 %1260  ;;  %v1451_v11 = vpop.permute.xlu2 %1450 }
 0x281   : > { %v1199_v43 = vpop.permute.xlu1 %1198  ;;  %v1264_v45 = vsel %vm622_vm5, %v1259_v41, %v1261_v42 }
 0x282   : > { %v1201_v47 = vsel %vm557_vm4, %v1197_v32, %v1199_v43  ;;  %v1212_v48 = vsel %vm384_vm0, %v1199_v43, 0  ;;  %v1270_v49 = vsel %vm384_vm0, %v1264_v45, 0 }
 0x283   : > { %v1209_v50 = vsel %vm384_vm0, %v1201_v47, 0  ;;  %1285 = vmatpush.bf16.msrb.mxu3 %v1270_v49  ;;  %1247 = vmatpush.bf16.msrb.mxu2 %v1212_v48 }
 0x284   : > { %1234 = vmatpush.bf16.msrb.mxu1 %v1209_v50 }
 0x285   : > { %v1100_v32 = vpop.f32.mrf.mxu2 }
 0x286   : > { %2341 = vmatmul.msk.bf16.vlgmr.msra.gmra.mxu1 %vm380_vm1, %v2340_v40 }
 0x287   : > { %2339 = vmatmul.msk.bf16.vlgmr.msra.gmra.mxu0 %vm380_vm1, %v1007_v15 }
 0x288   : > { %v1325_v52 = vpop.permute.xlu0 %1324  ;;  %v1515_v20 = vpop.permute.xlu2 %1514 }
 0x289   : > { %v1263_v53 = vpop.permute.xlu1 %1262  ;;  %v1328_v54 = vsel %vm687_vm6, %v1323_v51, %v1325_v52 }
 0x28a   : > { %v1265_v55 = vsel %vm622_vm5, %v1261_v42, %v1263_v53  ;;  %v1276_v56 = vsel %vm384_vm0, %v1263_v53, 0  ;;  %v1334_v57 = vsel %vm384_vm0, %v1328_v54, 0 }
 0x28b   : > { %v1273_v58 = vsel %vm384_vm0, %v1265_v55, 0  ;;  %1349 = vmatpush.bf16.msra.mxu2 %v1334_v57  ;;  %1311 = vmatpush.bf16.msra.mxu1 %v1276_v56 }
 0x28c   : > { %1298 = vmatpush.bf16.msra.mxu0 %v1273_v58 }
 0x28e   : > { %2343 = vmatmul.msk.bf16.vlgmr.msra.gmra.mxu3 %vm380_vm1, %v2340_v40 }
 0x28f   : > { %2347 = vmatmul.msk.bf16.vlgmr.msrb.gmra.mxu2 %vm380_vm1, %v2344_v59 }
 0x290   : > { %v1389_v60 = vpop.permute.xlu0 %1388 }
 0x291   : > { %v1327_v61 = vpop.permute.xlu1 %1326  ;;  %v1392_v1 = vsel %vm752_vm7, %v1387_v62, %v1389_v60 }
 0x292   : > { %v1329_v63 = vsel %vm687_vm6, %v1325_v52, %v1327_v61  ;;  %v1340_v2 = vsel %vm384_vm0, %v1327_v61, 0  ;;  %v1398_v3 = vsel %vm384_vm0, %v1392_v1, 0 }
 0x293   : > { %v1337_v0 = vsel %vm384_vm0, %v1329_v63, 0 }
 0x294   : > { %1362 = vmatpush.bf16.msra.mxu3 %v1337_v0 }
 0x296   : > { %2346 = vmatmul.msk.bf16.vlgmr.msrb.gmra.mxu1 %vm380_vm1, %v2344_v59 }
 0x297   : > { %2345 = vmatmul.msk.bf16.vlgmr.msrb.gmra.mxu0 %vm380_vm1, %v2344_v59  ;;  %1413 = vmatpush.bf16.msrb.mxu1 %v1398_v3 }
 0x298   : > { %1375 = vmatpush.bf16.msrb.mxu0 %v1340_v2  ;;  %v1453_v10 = vpop.permute.xlu0 %1452 }
 0x299   : > { %v1391_v4 = vpop.permute.xlu1 %1390  ;;  %v1456_v16 = vsel %vm817_vm8, %v1451_v11, %v1453_v10 }
 0x29a   : > { %v1393_v5 = vsel %vm752_vm7, %v1389_v60, %v1391_v4  ;;  %v1404_v8 = vsel %vm384_vm0, %v1391_v4, 0  ;;  %v1462_v18 = vsel %vm384_vm0, %v1456_v16, 0 }
 0x29b   : > { %v1401_v6 = vsel %vm384_vm0, %v1393_v5, 0 }
 0x29c   : > { %1426 = vmatpush.bf16.msrb.mxu2 %v1401_v6 }
 0x29e   : > { %2349 = vmatmul.msk.bf16.vlgmr.msrb.gmra.mxu3 %vm380_vm1, %v2348_v7 }
 0x29f   : > { %2353 = vmatmul.msk.bf16.vlgmr.msra.gmra.mxu2 %vm380_vm1, %v2352_v9  ;;  %1439 = vmatpush.bf16.msrb.mxu3 %v1404_v8 }
 0x2a0   : > { %v1517_v19 = vpop.permute.xlu0 %1516 }
 0x2a1   : > { %v1455_v12 = vpop.permute.xlu1 %1454  ;;  %v1520_v21 = vsel %vm882_vm9, %v1515_v20, %v1517_v19 }
 0x2a2   : > { %v1468_v14 = vsel %vm384_vm0, %v1455_v12, 0  ;;  %v1457_v15 = vsel %vm817_vm8, %v1453_v10, %v1455_v12  ;;  %v1526_v23 = vsel %vm384_vm0, %v1520_v21, 0 }
 0x2a3   : > { %1503 = vmatpush.bf16.msra.mxu2 %v1468_v14  ;;  %v1465_v17 = vsel %vm384_vm0, %v1457_v15, 0 }
 0x2a6   : > { %2351 = vmatmul.msk.bf16.vlgmr.msra.gmra.mxu1 %vm380_vm1, %v2348_v7 }
 0x2a7   : > { %1490 = vmatpush.bf16.msra.mxu1 %v1465_v17  ;;  %2350 = vmatmul.msk.bf16.vlgmr.msra.gmra.mxu0 %vm380_vm1, %v2348_v7 }
 0x2a8   : > { %1477 = vmatpush.bf16.msra.mxu0 %v1462_v18 }
 0x2a9   : > { %v1519_v24 = vpop.permute.xlu1 %1518 }
 0x2aa   : > { %v1521_v25 = vsel %vm882_vm9, %v1517_v19, %v1519_v24  ;;  %v1532_v26 = vsel %vm384_vm0, %v1519_v24, 0 }
 0x2ab   : > { %v1529_v27 = vsel %vm384_vm0, %v1521_v25, 0 }
 0x2ae   : > { %2354 = vmatmul.msk.bf16.vlgmr.msra.gmra.mxu3 %vm380_vm1, %v2352_v9 }
 0x2af   : > { %1541 = vmatpush.bf16.msra.mxu3 %v1526_v23  ;;  %2358 = vmatmul.msk.bf16.vlgmr.msrb.gmra.mxu2 %vm380_vm1, %v2356_v22 }
 0x2b6   : > { %2357 = vmatmul.msk.bf16.vlgmr.msrb.gmra.mxu1 %vm380_vm1, %v2356_v22 }
 0x2b7   : > { %2355 = vmatmul.msk.bf16.vlgmr.msrb.gmra.mxu0 %vm380_vm1, %v2352_v9  ;;  %1567 = vmatpush.bf16.msrb.mxu1 %v1532_v26 }
 0x2b8   : > { %1554 = vmatpush.bf16.msrb.mxu0 %v1529_v27 }
 0x2be   : > { %2359 = vmatmul.msk.bf16.vlgmr.msrb.gmra.mxu3 %vm380_vm1, %v2356_v22 }
 0x2bf   : > { %2363 = vmatmul.msk.bf16.vlgmr.msra.gmra.mxu2 %vm380_vm1, %v2360_v28 }
 0x2c6   : > { %2362 = vmatmul.msk.bf16.vlgmr.msra.gmra.mxu1 %vm380_vm1, %v2360_v28 }
 0x2c7   : > { %2361 = vmatmul.msk.bf16.vlgmr.msra.gmra.mxu0 %vm380_vm1, %v2360_v28 }
 0x2ce   : > { %2365 = vmatmul.msk.bf16.vlgmr.msra.gmra.mxu3 %vm380_vm1, %v2364_v29 }
 0x2d6   : > { %2367 = vmatmul.msk.bf16.vlgmr.msrb.gmra.mxu1 %vm380_vm1, %v2364_v29 }
 0x2d7   : > { %2366 = vmatmul.msk.bf16.vlgmr.msrb.gmra.mxu0 %vm380_vm1, %v2364_v29 }
 0x2f1   : > { %v1047_v33 = vpop.f32.mrf.mxu3 }
 0x2f2   : > { %v1099_v34 = vadd.f32 %v1098_v30, %v1047_v33 }
 0x2f3   : > { %v1073_v35 = vpop.f32.mrf.mxu1 }
 0x2f4   : > { %v1060_v36 = vpop.f32.mrf.mxu0 }
 0x2f9   : > { %v1049_v38 = vpop.f32.mrf.mxu3 }
 0x2fb   : > { %v1075_v39 = vpop.f32.mrf.mxu1 }
 0x2fc   : > { %v1062_v40 = vpop.f32.mrf.mxu0  ;;  %v1580_v39 = vpop.permute.xlu2 %1579 }
 0x301   : > { %v1111_v41 = vpop.f32.mrf.mxu3 }
 0x302   : > { %v1112_v42 = vadd.f32 %v1111_v41, %v1060_v36  ;;  %v1172_v43 = vpop.f32.mrf.mxu2 }
 0x303   : > { %v1159_v45 = vpop.f32.mrf.mxu1 }
 0x304   : > { %v1189_v47 = vadd.f32 %v1159_v45, %v1099_v34  ;;  %v1124_v48 = vpop.f32.mrf.mxu0  ;;  %v1190_v49 = vadd.f32 %v1172_v43, %v1112_v42 }
 0x305   : > { %v1125_v50 = vadd.f32 %v1124_v48, %v1073_v35 }
 0x309   : > { %v1113_v51 = vpop.f32.mrf.mxu3 }
 0x30a   : > { %v1174_v52 = vpop.f32.mrf.mxu2 }
 0x30b   : > { %v1161_v53 = vpop.f32.mrf.mxu1 }
 0x30c   : > { %v1126_v54 = vpop.f32.mrf.mxu0 }
 0x311   : > { %v1185_v55 = vpop.f32.mrf.mxu3 }
 0x312   : > { %v1249_v56 = vpop.f32.mrf.mxu2  ;;  %v1191_v19 = vadd.f32 %v1185_v55, %v1125_v50 }
 0x313   : > { %v1236_v57 = vpop.f32.mrf.mxu1 }
 0x314   : > { %v1223_v58 = vpop.f32.mrf.mxu0  ;;  %v1255_v22 = vadd.f32 %v1249_v56, %v1191_v19  ;;  %v1254_v24 = vadd.f32 %v1236_v57, %v1190_v49  ;;  %v1619_v19 = vld [vmem:[%s2974_s6] sm:$0x1] }
 0x315   : > { %v1253_v21 = vadd.f32 %v1223_v58, %v1189_v47 }
 0x319   : > { %v1187_v59 = vpop.f32.mrf.mxu3 }
 0x31a   : > { %v1251_v60 = vpop.f32.mrf.mxu2 }
 0x31b   : > { %v1238_v61 = vpop.f32.mrf.mxu1 }
 0x31c   : > { %v1225_v62 = vpop.f32.mrf.mxu0 }
 0x321   : > { %v1287_v63 = vpop.f32.mrf.mxu3 }
 0x322   : > { %v1351_v0 = vpop.f32.mrf.mxu2  ;;  %v1317_v23 = vadd.f32 %v1287_v63, %v1253_v21 }
 0x323   : > { %v1313_v1 = vpop.f32.mrf.mxu1 }
 0x324   : > { %v1300_v2 = vpop.f32.mrf.mxu0  ;;  %v1319_v26 = vadd.f32 %v1313_v1, %v1255_v22  ;;  %v1381_v30 = vadd.f32 %v1351_v0, %v1317_v23 }
 0x325   : > { %v1318_v28 = vadd.f32 %v1300_v2, %v1254_v24 }
 0x329   : > { %v1289_v3 = vpop.f32.mrf.mxu3 }
 0x32a   : > { %v1353_v4 = vpop.f32.mrf.mxu2 }
 0x32b   : > { %v1315_v5 = vpop.f32.mrf.mxu1 }
 0x32c   : > { %v1302_v6 = vpop.f32.mrf.mxu0 }
 0x331   : > { %v1364_v7 = vpop.f32.mrf.mxu3 }
 0x332   : > { %v1428_v8 = vpop.f32.mrf.mxu2  ;;  %v1382_v33 = vadd.f32 %v1364_v7, %v1318_v28 }
 0x333   : > { %v1415_v9 = vpop.f32.mrf.mxu1 }
 0x334   : > { %v1377_v10 = vpop.f32.mrf.mxu0  ;;  %v1445_v34 = vadd.f32 %v1415_v9, %v1381_v30  ;;  %v1446_v38 = vadd.f32 %v1428_v8, %v1382_v33 }
 0x335   : > { %v1383_v31 = vadd.f32 %v1377_v10, %v1319_v26 }
 0x339   : > { %v1366_v11 = vpop.f32.mrf.mxu3 }
 0x33a   : > { %v1430_v12 = vpop.f32.mrf.mxu2 }
 0x33b   : > { %v1417_v14 = vpop.f32.mrf.mxu1 }
 0x33c   : > { %v1379_v15 = vpop.f32.mrf.mxu0 }
 0x341   : > { %v1441_v16 = vpop.f32.mrf.mxu3 }
 0x342   : > { %v1505_v17 = vpop.f32.mrf.mxu2  ;;  %v1447_v35 = vadd.f32 %v1441_v16, %v1383_v31 }
 0x343   : > { %v1492_v18 = vpop.f32.mrf.mxu1 }
 0x344   : > { %v1479_v20 = vpop.f32.mrf.mxu0  ;;  %v1511_v41 = vadd.f32 %v1505_v17, %v1447_v35  ;;  %v1510_v43 = vadd.f32 %v1492_v18, %v1446_v38  ;;  %v2188_v18 = vld [vmem:[%s2975_s7] sm:$0x3] }
 0x345   : > { %v1509_v36 = vadd.f32 %v1479_v20, %v1445_v34 }
 0x349   : > { %v1443_v25 = vpop.f32.mrf.mxu3 }
 0x34a   : > { %v1507_v27 = vpop.f32.mrf.mxu2  ;;  %v2368_v25 = vld [vmem:[%s2974_s6 + $0x1] sm:$0x1] }
 0x34b   : > { %v1494_v29 = vpop.f32.mrf.mxu1 }
 0x34c   : > { %v1481_v32 = vpop.f32.mrf.mxu0 }
 0x351   : > { %v1543_v40 = vpop.f32.mrf.mxu3 }
 0x352   : > { %v1573_v42 = vadd.f32 %v1543_v40, %v1509_v36 }
 0x353   : > { %v1569_v45 = vpop.f32.mrf.mxu1 }
 0x354   : > { %v1575_v47 = vadd.f32 %v1569_v45, %v1511_v41  ;;  %v1556_v48 = vpop.f32.mrf.mxu0  ;;  %v1582_v49 = vadd.f32 %v1580_v39, %v1573_v42 }
 0x355   : > { %v1574_v50 = vadd.f32 %v1556_v48, %v1510_v43 }
 0x356   : > { %v1584_v51 = vadd.f32 %v1580_v39, %v1575_v47  ;;  %vm1585_vm14 = vcmp.gt.f32.partialorder %v1582_v49, 0.0  ;;  %v1588_v52 = vmul.f32 0.01, %v1582_v49 }
 0x357   : > { %v1583_v53 = vadd.f32 %v1580_v39, %v1574_v50 }
 0x358   : > { %v1590_v54 = vmul.f32 0.01, %v1584_v51  ;;  %vm1587_vm15 = vcmp.gt.f32.partialorder %v1584_v51, 0.0  ;;  %v1591_v55 = vsel %vm1585_vm14, %v1582_v49, %v1588_v52  ;;  %v2375_v49 = vld [vmem:[%s2974_s6 + $0x2] sm:$0x1] }
 0x359   : > { %v1589_v56 = vmul.f32 0.01, %v1583_v53  ;;  %vm1586_vm13 = vcmp.gt.f32.partialorder %v1583_v53, 0.0  ;;  %v1545_v57 = vpop.f32.mrf.mxu3  ;;  %v1594_v58 = vmul.f32 %v1591_v55, %v2673_v44 }
 0x35a   : > { %v1593_v59 = vsel %vm1587_vm15, %v1584_v51, %v1590_v54 }
 0x35b   : > { %v1596_v60 = vmul.f32 %v1593_v59, %v2671_v37  ;;  %v1592_v61 = vsel %vm1586_vm13, %v1583_v53, %v1589_v56  ;;  %1600 = vrot.lane.b32.xlu0 %v1594_v58, %s2446_s27  ;;  %v1571_v62 = vpop.f32.mrf.mxu1 }
 0x35c   : > { %v1558_v63 = vpop.f32.mrf.mxu0  ;;  %v1595_v0 = vmul.f32 %v1592_v61, %v2675_v46 }
 0x35d   : > { %1604 = vrot.lane.b32.xlu2 %v1596_v60, %s2446_s27 }
 0x35e   : > { %1602 = vrot.lane.b32.xlu1 %v1595_v0, %s2446_s27 }
 0x3b7   : > { %v1605_v2 = vpop.permute.xlu2 %1604 }
 0x3cd   : > { %v1601_v1 = vpop.permute.xlu0 %1600 }
 0x3ce   : > { %1611 = vst.msk [vmem:[#allocation2] sm:$0xff] %vm995_vm11, %v1601_v1 }
 0x3d0   : > { %v1603_v3 = vpop.permute.xlu1 %1602 }
 0x3d1   : > { %v1607_v4 = vsel %vm979_vm10, %v1603_v3, %v1605_v2  ;;  %v1606_v5 = vsel %vm979_vm10, %v1601_v1, %v1603_v3  ;;  %v2379_v2 = vld [vmem:[%s2974_s6 + $0x3] sm:$0x1] }
 0x3d2   : > { %1613 = vst.msk [vmem:[#allocation2 + $0x10] sm:$0xff] %vm998_vm12, %v1607_v4 }
 0x3d5   : > { %v1614_v6 = vld [vmem:[#allocation2] sm:$0xff] }
 0x3d6   : > { %v1617_v7 = vpack.c.bf16 %v1606_v5, %v1614_v6 }
 0x3d8   : > { %v1624_v8 = vunpack.c.l.b16 %v1617_v7  ;;  %v1625_v9 = vunpack.c.h.b16 %v1617_v7 }
 0x3d9   : > { %v1616_v10 = vld [vmem:[#allocation2 + $0x10] sm:$0xff] }
 0x3da   : > { %v1618_v11 = vpack.c.bf16 %v1616_v10, %v1616_v10  ;;  %v1627_v12 = vpack.c.b16 %v1624_v8, %v1624_v8  ;;  %v1628_v14 = vpack.c.b16 %v1625_v9, %v1625_v9 }
 0x3dc   : > { %v1626_v15 = vunpack.c.l.b16 %v1618_v11  ;;  %1632 = vrot.lane.b32.xlu0 %v1628_v14, %s2436_s15  ;;  %1630 = vrot.lane.b32.xlu2 %v1627_v12, %s2436_s15  ;;  %v1693_v16 = vsel %vm384_vm0, %v1627_v12, 0  ;;  %v1696_v26 = vsel %vm384_vm0, %v1628_v14, 0  ;;  %v2383_v11 = vld [vmem:[%s2974_s6 + $0x4] sm:$0x1] }
 0x3dd   : > { %1708 = vmatpush.bf16.msra.mxu1 %v1693_v16 }
 0x3de   : > { %v1629_v17 = vpack.c.b16 %v1626_v15, %v1626_v15 }
 0x3e0   : > { %1634 = vrot.lane.b32.xlu1 %v1629_v17, %s2436_s15  ;;  %2372 = vmatmul.msk.bf16.vlgmr.msra.gmra.mxu1 %vm380_vm1, %v1619_v19  ;;  %v1699_v31 = vsel %vm384_vm0, %v1629_v17, 0 }
 0x3e4   : > { %1742 = vrot.lane.b32.xlu0 %v1627_v12, %s2437_s16  ;;  %1806 = vrot.lane.b32.xlu2 %v1627_v12, %s2438_s17 }
 0x3e8   : > { %1744 = vrot.lane.b32.xlu1 %v1628_v14, %s2437_s16 }
 0x3ec   : > { %1808 = vrot.lane.b32.xlu0 %v1628_v14, %s2438_s17  ;;  %1810 = vrot.lane.b32.xlu2 %v1629_v17, %s2438_s17  ;;  %s2406_s17 = smul.u32 6, %s2979_s10 }
 0x3f0   : > { %1746 = vrot.lane.b32.xlu1 %v1629_v17, %s2437_s16 }
 0x3f4   : > { %1872 = vrot.lane.b32.xlu0 %v1628_v14, %s2439_s18  ;;  %1870 = vrot.lane.b32.xlu2 %v1627_v12, %s2439_s18 }
 0x3f8   : > { %1874 = vrot.lane.b32.xlu1 %v1629_v17, %s2439_s18 }
 0x3fc   : > { %1938 = vrot.lane.b32.xlu0 %v1629_v17, %s2440_s19  ;;  %1934 = vrot.lane.b32.xlu2 %v1627_v12, %s2440_s19 }
 0x400   : > { %1936 = vrot.lane.b32.xlu1 %v1628_v14, %s2440_s19 }
 0x404   : > { %1998 = vrot.lane.b32.xlu0 %v1627_v12, %s2441_s20  ;;  %2062 = vrot.lane.b32.xlu2 %v1627_v12, %s2442_s21 }
 0x408   : > { %2000 = vrot.lane.b32.xlu1 %v1628_v14, %s2441_s20 }
 0x40c   : > { %2064 = vrot.lane.b32.xlu0 %v1628_v14, %s2442_s21  ;;  %2066 = vrot.lane.b32.xlu2 %v1629_v17, %s2442_s21 }
 0x410   : > { %2002 = vrot.lane.b32.xlu1 %v1629_v17, %s2441_s20  ;;  %s2952_s20 = scalar_lea.vmem %s2977_s9, %s2406_s17 }
 0x414   : > { %2128 = vrot.lane.b32.xlu0 %v1628_v14, %s2443_s22  ;;  %2126 = vrot.lane.b32.xlu2 %v1627_v12, %s2443_s22 }
 0x418   : > { %2130 = vrot.lane.b32.xlu1 %v1629_v17, %s2443_s22 }
 0x41c   : > { %2191 = vperm.xlu0 %2426, %v2188_v18   ;;  %v2387_v18 = vld [vmem:[%s2974_s6 + $0x5] sm:$0x1] }
 0x436   : > { %v1631_v20 = vpop.permute.xlu2 %1630 }
 0x43e   : > { %v1807_v24 = vpop.permute.xlu2 %1806 }
 0x446   : > { %v1811_v34 = vpop.permute.xlu2 %1810 }
 0x447   : > { %v1824_v50 = vsel %vm384_vm0, %v1811_v34, 0 }
 0x44e   : > { %v1633_v21 = vpop.permute.xlu0 %1632  ;;  %v1871_v51 = vpop.permute.xlu2 %1870 }
 0x44f   : > { %v1636_v22 = vsel %vm377_vm3, %v1631_v20, %v1633_v21 }
 0x450   : > { %v1642_v23 = vsel %vm384_vm0, %v1636_v22, 0 }
 0x451   : > { %1657 = vmatpush.bf16.msrb.mxu2 %v1642_v23 }
 0x452   : > { %v1635_v27 = vpop.permute.xlu1 %1634 }
 0x453   : > { %v1648_v28 = vsel %vm384_vm0, %v1635_v27, 0  ;;  %v1637_v29 = vsel %vm377_vm3, %v1633_v21, %v1635_v27  ;;  %v2391_v27 = vld [vmem:[%s2974_s6 + $0x6] sm:$0x1]  ;;  %vm2215_vm3 = vcmask 1041560  }
 0x454   : > { %1683 = vmatpush.bf16.msra.mxu0 %v1648_v28  ;;  %v1645_v30 = vsel %vm384_vm0, %v1637_v29, 0  ;;  %2369 = vmatmul.msk.bf16.vlgmr.msrb.gmra.mxu2 %vm380_vm1, %v2368_v25 }
 0x455   : > { %1721 = vmatpush.bf16.msra.mxu2 %v1696_v26  ;;  %1670 = vmatpush.bf16.msrb.mxu3 %v1645_v30 }
 0x456   : > { %v1743_v32 = vpop.permute.xlu0 %1742  ;;  %v1935_v60 = vpop.permute.xlu2 %1934 }
 0x457   : > { %2371 = vmatmul.msk.bf16.vlgmr.msra.gmra.mxu0 %vm380_vm1, %v2368_v25 }
 0x458   : > { %2370 = vmatmul.msk.bf16.vlgmr.msrb.gmra.mxu3 %vm380_vm1, %v2368_v25 }
 0x459   : > { %1734 = vmatpush.bf16.msra.mxu3 %v1699_v31 }
 0x45a   : > { %v1745_v33 = vpop.permute.xlu1 %1744 }
 0x45b   : > { %v1748_v35 = vsel %vm492_vm2, %v1743_v32, %v1745_v33  ;;  %v2395_v32 = vld [vmem:[%s2974_s6 + $0x7] sm:$0x1] }
 0x45c   : > { %v1754_v36 = vsel %vm384_vm0, %v1748_v35, 0 }
 0x45d   : > { %1769 = vmatpush.bf16.msrb.mxu0 %v1754_v36 }
 0x45e   : > { %v1809_v38 = vpop.permute.xlu0 %1808  ;;  %v2063_v5 = vpop.permute.xlu2 %2062 }
 0x45f   : > { %v1812_v39 = vsel %vm557_vm4, %v1807_v24, %v1809_v38  ;;  %v1813_v40 = vsel %vm557_vm4, %v1809_v38, %v1811_v34  ;;  %v1710_v34 = vpop.f32.mrf.mxu1  ;;  %vm2216_vm4 = vcmask 1043458  }
 0x460   : > { %v1818_v41 = vsel %vm384_vm0, %v1812_v39, 0  ;;  %v1821_v42 = vsel %vm384_vm0, %v1813_v40, 0 }
 0x461   : > { %1833 = vmatpush.bf16.msrb.mxu3 %v1818_v41  ;;  %1846 = vmatpush.bf16.msra.mxu0 %v1821_v42 }
 0x462   : > { %v1747_v43 = vpop.permute.xlu1 %1746 }
 0x463   : > { %v1749_v45 = vsel %vm492_vm2, %v1745_v33, %v1747_v43  ;;  %v1760_v47 = vsel %vm384_vm0, %v1747_v43, 0  ;;  %v2399_v33 = vld [vmem:[%s2974_s6 + $0x8] sm:$0x1]  ;;  %vm2207_vm2 = vcmask 1041408  }
 0x464   : > { %v1757_v48 = vsel %vm384_vm0, %v1749_v45, 0  ;;  %1795 = vmatpush.bf16.msrb.mxu2 %v1760_v47 }
 0x465   : > { %1782 = vmatpush.bf16.msrb.mxu1 %v1757_v48  ;;  %2373 = vmatmul.msk.bf16.vlgmr.msra.gmra.mxu2 %vm380_vm1, %v1619_v19 }
 0x466   : > { %v1873_v52 = vpop.permute.xlu0 %1872  ;;  %v2067_v12 = vpop.permute.xlu2 %2066 }
 0x467   : > { %2376 = vmatmul.msk.bf16.vlgmr.msrb.gmra.mxu0 %vm380_vm1, %v2375_v49  ;;  %v1876_v53 = vsel %vm622_vm5, %v1871_v51, %v1873_v52  ;;  %v2080_v21 = vsel %vm384_vm0, %v2067_v12, 0  ;;  %v1712_v35 = vpop.f32.mrf.mxu1 }
 0x468   : > { %2377 = vmatmul.msk.bf16.vlgmr.msrb.gmra.mxu1 %vm380_vm1, %v2375_v49  ;;  %2374 = vmatmul.msk.bf16.vlgmr.msra.gmra.mxu3 %vm380_vm1, %v1619_v19  ;;  %v1882_v54 = vsel %vm384_vm0, %v1876_v53, 0 }
 0x469   : > { %1859 = vmatpush.bf16.msra.mxu1 %v1824_v50  ;;  %1897 = vmatpush.bf16.msra.mxu2 %v1882_v54 }
 0x46a   : > { %v1875_v55 = vpop.permute.xlu1 %1874 }
 0x46b   : > { %v1888_v56 = vsel %vm384_vm0, %v1875_v55, 0  ;;  %v1877_v57 = vsel %vm622_vm5, %v1873_v52, %v1875_v55  ;;  %vm2217_vm5 = vmor %vm2216_vm4, %vm2215_vm3 }
 0x46c   : > { %1923 = vmatpush.bf16.msrb.mxu0 %v1888_v56  ;;  %v1885_v58 = vsel %vm384_vm0, %v1877_v57, 0 }
 0x46d   : > { %1910 = vmatpush.bf16.msra.mxu3 %v1885_v58 }
 0x46e   : > { %v1939_v59 = vpop.permute.xlu0 %1938  ;;  %v2127_v24 = vpop.permute.xlu2 %2126 }
 0x46f   : > { %v1952_v4 = vsel %vm384_vm0, %v1939_v59, 0 }
 0x472   : > { %v1937_v61 = vpop.permute.xlu1 %1936 }
 0x473   : > { %v1940_v62 = vsel %vm687_vm6, %v1935_v60, %v1937_v61  ;;  %v1941_v63 = vsel %vm687_vm6, %v1937_v61, %v1939_v59  ;;  %vm2218_vm6 = vcmask 398340  }
 0x474   : > { %v1946_v0 = vsel %vm384_vm0, %v1940_v62, 0  ;;  %v1949_v1 = vsel %vm384_vm0, %v1941_v63, 0 }
 0x475   : > { %1961 = vmatpush.bf16.msrb.mxu1 %v1946_v0  ;;  %2378 = vmatmul.msk.bf16.vlgmr.msrb.gmra.mxu2 %vm380_vm1, %v2375_v49 }
 0x476   : > { %1974 = vmatpush.bf16.msrb.mxu2 %v1949_v1  ;;  %v1999_v3 = vpop.permute.xlu0 %1998 }
 0x477   : > { %2381 = vmatmul.msk.bf16.vlgmr.msra.gmra.mxu0 %vm380_vm1, %v2379_v2 }
 0x478   : > { %2382 = vmatmul.msk.bf16.vlgmr.msra.gmra.mxu1 %vm380_vm1, %v2379_v2  ;;  %2380 = vmatmul.msk.bf16.vlgmr.msrb.gmra.mxu3 %vm380_vm1, %v2379_v2 }
 0x479   : > { %1987 = vmatpush.bf16.msrb.mxu3 %v1952_v4 }
 0x47a   : > { %v2001_v6 = vpop.permute.xlu1 %2000 }
 0x47b   : > { %v2004_v7 = vsel %vm752_vm7, %v1999_v3, %v2001_v6 }
 0x47c   : > { %v2010_v8 = vsel %vm384_vm0, %v2004_v7, 0 }
 0x47d   : > { %2025 = vmatpush.bf16.msra.mxu0 %v2010_v8 }
 0x47e   : > { %v2065_v9 = vpop.permute.xlu0 %2064 }
 0x47f   : > { %v2069_v17 = vsel %vm817_vm8, %v2065_v9, %v2067_v12  ;;  %v2068_v19 = vsel %vm817_vm8, %v2063_v5, %v2065_v9  ;;  %vm2221_vm8 = vcmask 550280  }
 0x480   : > { %v2077_v20 = vsel %vm384_vm0, %v2069_v17, 0  ;;  %v2074_v22 = vsel %vm384_vm0, %v2068_v19, 0 }
 0x482   : > { %v2003_v10 = vpop.permute.xlu1 %2002 }
 0x483   : > { %v2005_v14 = vsel %vm752_vm7, %v2001_v6, %v2003_v10  ;;  %v2016_v15 = vsel %vm384_vm0, %v2003_v10, 0  ;;  %vm2219_vm7 = vmor %vm2218_vm6, %vm2217_vm5 }
 0x484   : > { %v2013_v16 = vsel %vm384_vm0, %v2005_v14, 0 }
 0x485   : > { %2038 = vmatpush.bf16.msra.mxu1 %v2013_v16  ;;  %2384 = vmatmul.msk.bf16.vlgmr.msra.gmra.mxu2 %vm380_vm1, %v2383_v11 }
 0x486   : > { %2051 = vmatpush.bf16.msra.mxu2 %v2016_v15  ;;  %v2129_v23 = vpop.permute.xlu0 %2128 }
 0x487   : > { %2386 = vmatmul.msk.bf16.vlgmr.msrb.gmra.mxu0 %vm380_vm1, %v2383_v11  ;;  %v2132_v25 = vsel %vm882_vm9, %v2127_v24, %v2129_v23 }
 0x488   : > { %2388 = vmatmul.msk.bf16.vlgmr.msrb.gmra.mxu1 %vm380_vm1, %v2387_v18  ;;  %2102 = vmatpush.bf16.msrb.mxu0 %v2077_v20  ;;  %v2138_v28 = vsel %vm384_vm0, %v2132_v25, 0 }
 0x489   : > { %2115 = vmatpush.bf16.msrb.mxu1 %v2080_v21  ;;  %2385 = vmatmul.msk.bf16.vlgmr.msra.gmra.mxu3 %vm380_vm1, %v2383_v11 }
 0x48a   : > { %2089 = vmatpush.bf16.msra.mxu3 %v2074_v22  ;;  %v2131_v26 = vpop.permute.xlu1 %2130 }
 0x48b   : > { %v2133_v29 = vsel %vm882_vm9, %v2129_v23, %v2131_v26  ;;  %v2144_v30 = vsel %vm384_vm0, %v2131_v26, 0 }
 0x48c   : > { %v2141_v31 = vsel %vm384_vm0, %v2133_v29, 0 }
 0x495   : > { %2389 = vmatmul.msk.bf16.vlgmr.msrb.gmra.mxu2 %vm380_vm1, %v2387_v18 }
 0x496   : > { %2153 = vmatpush.bf16.msrb.mxu2 %v2138_v28 }
 0x497   : > { %2392 = vmatmul.msk.bf16.vlgmr.msra.gmra.mxu0 %vm380_vm1, %v2391_v27 }
 0x498   : > { %2179 = vmatpush.bf16.msra.mxu0 %v2144_v30  ;;  %2393 = vmatmul.msk.bf16.vlgmr.msra.gmra.mxu1 %vm380_vm1, %v2391_v27 }
 0x499   : > { %2390 = vmatmul.msk.bf16.vlgmr.msrb.gmra.mxu3 %vm380_vm1, %v2387_v18 }
 0x49a   : > { %2166 = vmatpush.bf16.msrb.mxu3 %v2141_v31 }
 0x4a5   : > { %2394 = vmatmul.msk.bf16.vlgmr.msra.gmra.mxu2 %vm380_vm1, %v2391_v27 }
 0x4a7   : > { %2397 = vmatmul.msk.bf16.vlgmr.msrb.gmra.mxu0 %vm380_vm1, %v2395_v32 }
 0x4a8   : > { %2398 = vmatmul.msk.bf16.vlgmr.msrb.gmra.mxu1 %vm380_vm1, %v2395_v32 }
 0x4a9   : > { %2396 = vmatmul.msk.bf16.vlgmr.msra.gmra.mxu3 %vm380_vm1, %v2395_v32 }
 0x4b5   : > { %2400 = vmatmul.msk.bf16.vlgmr.msrb.gmra.mxu2 %vm380_vm1, %v2399_v33 }
 0x4b7   : > { %2402 = vmatmul.msk.bf16.vlgmr.msra.gmra.mxu0 %vm380_vm1, %v2399_v33 }
 0x4b9   : > { %2401 = vmatmul.msk.bf16.vlgmr.msrb.gmra.mxu3 %vm380_vm1, %v2399_v33  ;;  %vm2200_vm1 = vcmask 148480  }
 0x4ba   : > { %2201 = vst.msk [vmem:[%s2952_s20] sm:$0x3] %vm2200_vm1, %v2445_v13 }
 0x4d4   : > { %v1685_v36 = vpop.f32.mrf.mxu0 }
 0x4d7   : > { %v1659_v38 = vpop.f32.mrf.mxu2 }
 0x4d8   : > { %v1711_v39 = vadd.f32 %v1710_v34, %v1659_v38 }
 0x4db   : > { %v1672_v40 = vpop.f32.mrf.mxu3 }
 0x4dc   : > { %v1687_v41 = vpop.f32.mrf.mxu0 }
 0x4df   : > { %v1661_v42 = vpop.f32.mrf.mxu2 }
 0x4e3   : > { %v1674_v43 = vpop.f32.mrf.mxu3 }
 0x4e4   : > { %v1771_v45 = vpop.f32.mrf.mxu0 }
 0x4e5   : > { %v1801_v47 = vadd.f32 %v1771_v45, %v1711_v39  ;;  %v1784_v48 = vpop.f32.mrf.mxu1 }
 0x4e8   : > { %v1723_v49 = vpop.f32.mrf.mxu2 }
 0x4e9   : > { %v1724_v50 = vadd.f32 %v1723_v49, %v1672_v40  ;;  %v2192_v49 = vpop.permute.xlu0 %2191 }
 0x4eb   : > { %v1736_v51 = vpop.f32.mrf.mxu3  ;;  %v1802_v52 = vadd.f32 %v1784_v48, %v1724_v50 }
 0x4ec   : > { %v1773_v53 = vpop.f32.mrf.mxu0  ;;  %v1737_v54 = vadd.f32 %v1736_v51, %v1685_v36 }
 0x4ed   : > { %v1786_v55 = vpop.f32.mrf.mxu1 }
 0x4f0   : > { %v1725_v56 = vpop.f32.mrf.mxu2 }
 0x4f3   : > { %v1738_v57 = vpop.f32.mrf.mxu3 }
 0x4f4   : > { %v1848_v58 = vpop.f32.mrf.mxu0 }
 0x4f5   : > { %v1861_v59 = vpop.f32.mrf.mxu1  ;;  %v1866_v31 = vadd.f32 %v1848_v58, %v1802_v52 }
 0x4f8   : > { %v1797_v60 = vpop.f32.mrf.mxu2 }
 0x4f9   : > { %v1803_v21 = vadd.f32 %v1797_v60, %v1737_v54 }
 0x4fb   : > { %v1835_v61 = vpop.f32.mrf.mxu3  ;;  %v1867_v23 = vadd.f32 %v1861_v59, %v1803_v21 }
 0x4fc   : > { %v1850_v62 = vpop.f32.mrf.mxu0  ;;  %v1865_v28 = vadd.f32 %v1835_v61, %v1801_v47 }
 0x4fd   : > { %v1863_v63 = vpop.f32.mrf.mxu1 }
 0x500   : > { %v1799_v0 = vpop.f32.mrf.mxu2 }
 0x503   : > { %v1837_v1 = vpop.f32.mrf.mxu3 }
 0x504   : > { %v1925_v2 = vpop.f32.mrf.mxu0 }
 0x505   : > { %v1963_v3 = vpop.f32.mrf.mxu1  ;;  %v1931_v27 = vadd.f32 %v1925_v2, %v1867_v23 }
 0x508   : > { %v1899_v4 = vpop.f32.mrf.mxu2 }
 0x509   : > { %v1929_v32 = vadd.f32 %v1899_v4, %v1865_v28 }
 0x50b   : > { %v1993_v38 = vadd.f32 %v1963_v3, %v1929_v32 }
 0x50c   : > { %v1927_v5 = vpop.f32.mrf.mxu0  ;;  %v1912_v6 = vpop.f32.mrf.mxu3 }
 0x50d   : > { %v1965_v7 = vpop.f32.mrf.mxu1  ;;  %v1930_v34 = vadd.f32 %v1912_v6, %v1866_v31 }
 0x510   : > { %v1901_v8 = vpop.f32.mrf.mxu2 }
 0x514   : > { %v2027_v9 = vpop.f32.mrf.mxu0  ;;  %v1914_v10 = vpop.f32.mrf.mxu3 }
 0x515   : > { %v2040_v11 = vpop.f32.mrf.mxu1  ;;  %v2057_v41 = vadd.f32 %v2027_v9, %v1993_v38 }
 0x518   : > { %v1976_v12 = vpop.f32.mrf.mxu2 }
 0x519   : > { %v1994_v39 = vadd.f32 %v1976_v12, %v1930_v34 }
 0x51b   : > { %v2058_v45 = vadd.f32 %v2040_v11, %v1994_v39 }
 0x51c   : > { %v2029_v14 = vpop.f32.mrf.mxu0  ;;  %v1989_v15 = vpop.f32.mrf.mxu3 }
 0x51d   : > { %v2042_v16 = vpop.f32.mrf.mxu1  ;;  %v1995_v29 = vadd.f32 %v1989_v15, %v1931_v27 }
 0x520   : > { %v1978_v17 = vpop.f32.mrf.mxu2 }
 0x524   : > { %v2104_v18 = vpop.f32.mrf.mxu0  ;;  %v1991_v19 = vpop.f32.mrf.mxu3 }
 0x525   : > { %v2117_v20 = vpop.f32.mrf.mxu1  ;;  %v2122_v50 = vadd.f32 %v2104_v18, %v2058_v45 }
 0x528   : > { %v2053_v22 = vpop.f32.mrf.mxu2 }
 0x529   : > { %v2059_v33 = vadd.f32 %v2053_v22, %v1995_v29 }
 0x52b   : > { %v2123_v40 = vadd.f32 %v2117_v20, %v2059_v33 }
 0x52c   : > { %v2106_v24 = vpop.f32.mrf.mxu0  ;;  %v2091_v25 = vpop.f32.mrf.mxu3 }
 0x52d   : > { %v2119_v26 = vpop.f32.mrf.mxu1  ;;  %v2121_v48 = vadd.f32 %v2091_v25, %v2057_v41 }
 0x530   : > { %v2055_v30 = vpop.f32.mrf.mxu2 }
 0x534   : > { %v2181_v35 = vpop.f32.mrf.mxu0  ;;  %v2093_v36 = vpop.f32.mrf.mxu3 }
 0x535   : > { %v2187_v42 = vadd.f32 %v2181_v35, %v2123_v40 }
 0x537   : > { %v2196_v47 = vadd.f32 %v2192_v49, %v2187_v42 }
 0x538   : > { %v2155_v43 = vpop.f32.mrf.mxu2 }
 0x539   : > { %v2185_v51 = vadd.f32 %v2155_v43, %v2121_v48  ;;  %v2199_v57 = vmul.f32 %v2196_v47, %v2671_v37 }
 0x53b   : > { %v2194_v55 = vadd.f32 %v2192_v49, %v2185_v51  ;;  %v2206_v62 = vrot.slane %v2199_v57, 4 }
 0x53c   : > { %v2168_v53 = vpop.f32.mrf.mxu3  ;;  %v2183_v54 = vpop.f32.mrf.mxu0 }
 0x53d   : > { %v2186_v52 = vadd.f32 %v2168_v53, %v2122_v50  ;;  %v2197_v60 = vmul.f32 %v2194_v55, %v2673_v44 }
 0x53f   : > { %v2195_v56 = vadd.f32 %v2192_v49, %v2186_v52 }
 0x540   : > { %v2157_v58 = vpop.f32.mrf.mxu2 }
 0x541   : > { %v2198_v59 = vmul.f32 %v2195_v56, %v2675_v46 }
 0x543   : > { %v2205_v61 = vrot.slane %v2198_v59, 6 }
 0x544   : > { %v2170_v63 = vpop.f32.mrf.mxu3 }
 0x545   : > { %v2208_v0 = vsel %vm2207_vm2, %v2197_v60, %v2205_v61 }
 0x546   : > { %v2209_v1 = vsel %vm384_vm0, %v2208_v0, %v2206_v62 }
 0x547   : > { %2210 = vrot.lane.b32.xlu1 %v2209_v1, %s2446_s27 }
 0x5b9   : > { %v2211_v37 = vpop.permute.xlu1 %2210 }
 0x5ba   : > { %v2212_v46 = vrot.slane %v2211_v37, 6 }
 0x5bc   : > { %v2213_v44 = vsel %vm979_vm10, %v2212_v46, %v2211_v37 }
 0x5bd   : > { %2220 = vst.msk [vmem:[%s2952_s20] sm:$0x3f] %vm2219_vm7, %v2213_v44 }
 0x5be   : > { %2222 = vst.msk [vmem:[%s2952_s20 + $0x4] sm:$0x3] %vm2221_vm8, %v2445_v13 }
 0x5bf PF: > { %s19_s30 = sadd.s32 1, %s2434_s30  }
 0x5c0   : > { %p16_p4 = scmp.ge.s32.totalorder %s19_s30, 4  }
 0x5c2   :  { %18 = sbr.rel (!%p16_p4) target bundleno = 1 (0x1), region = 113 }

// kernel: generator_forward.9
= control target key start
LH: loop header
LB: loop body
LE: loop exit
PB: predicated region body
PF: predicated region fallthrough
CT: control target
= control target key end

     0   :  { %s4126_s27 = smov 0   ;;  %s5427_s0 = inlined_call_operand.vmem [shape: f32[2,8,324], index: 0, kind: input, shape index: {}]   ;;  %s5428_s1 = inlined_call_operand.vmem [shape: bf16[9,8,8], index: 1, kind: input, shape index: {}]   ;;  %s5429_s2 = inlined_call_operand.vmem [shape: bf16[9,8,16], index: 2, kind: input, shape index: {}]   ;;  %s5430_s3 = inlined_call_operand.vmem [shape: bf16[9,8,24], index: 3, kind: input, shape index: {}]   ;;  %s5431_s4 = inlined_call_operand.vmem [shape: bf16[9,8,32], index: 4, kind: input, shape index: {}]   ;;  %s5432_s5 = inlined_call_operand.vmem [shape: bf16[9,8,40], index: 5, kind: input, shape index: {}]   ;;  %s5433_s6 = inlined_call_operand.vmem [shape: f32[5,8,1], index: 6, kind: input, shape index: {}]   ;;  %s5434_s7 = inlined_call_operand.vmem [shape: f32[1,286], index: 7, kind: input, shape index: {}]   ;;  %s5435_s8 = inlined_call_operand.vmem [shape: f32[2,8,324], index: 8, kind: output, shape index: {}]  }
   0x1 LB: > { %s3849_s28 = sadd.s32 4294967295, %s4068_s27   ;;  %p3853_p0 = scmp.ge.s32.totalorder %s4068_s27, 1  ;;  %s4068_s27 = sphi %s4126_s27, %s18_s27  }
   0x2   : > { %p262_p1 = scmp.lt.s32.totalorder %s4068_s27, 3 }
   0x4   : > { %p263_p2 = pnand %p3853_p0, %p262_p1 }
   0x5   : > { %p296_p3 = scmp.lt.s32.totalorder (!%p263_p2), %s3849_s28, 1  ;;  %s4070_s11 = smov (!%p263_p2), 127  }
   0x6   : > { %266 = sbr.rel (%p263_p2) target bundleno = 2462 (0x99e), region = 52  ;;  %s4071_s12 = smov (!%p263_p2), 126  }
   0x7   : > { %s4072_s13 = smov (!%p263_p2), 110   ;;  %s4073_s14 = smov (!%p263_p2), 109  }
   0x8   : > { %s4074_s15 = smov (!%p263_p2), 108   ;;  %s4075_s16 = smov (!%p263_p2), 92  }
   0x9   : > { %s4076_s17 = smov (!%p263_p2), 91   ;;  %s4077_s18 = smov (!%p263_p2), 90  }
   0xa   : > { %s4079_s19 = smov (!%p263_p2), 19  }
   0xb   : > { %s5437_s28 = smov (!%p296_p3, %s3849_s28), 1  ;;  %vm313_vm0 = vcmask 556032   ;;  %vm354_vm1 = vcmask 1043456   ;;  %vm350_vm2 = vcmask 64512   ;;  %v330_v13 = vld [vmem:[%s5428_s1] sm:$0xf] }
   0xc   : > { %s4037_s29 = smul.u32 24, %s5437_s28  ;;  %vm462_vm3 = vcmask 1031168   ;;  %v4191_v18 = vld [vmem:[%s5428_s1 + $0x8] sm:$0xf]  ;;  %vm347_vm4 = vcmask 1039360   ;;  %vm527_vm5 = vcmask 900096  }
   0xd   : > { %v4199_v22 = vld [vmem:[%s5428_s1 + $0xc] sm:$0xf]  ;;  %v3856_v30 = vld [vmem:[%s5428_s1 + $0x4] sm:$0xf]  ;;  %vm592_vm6 = vcmask 891904   ;;  %vm657_vm7 = vcmask 883712  }
   0xe   : > { %s300_s10 = scalar_lea.vmem %s5427_s0, %s4037_s29  ;;  %v3875_v58 = vld [vmem:[%s5428_s1 + $0x14] sm:$0xf]  ;;  %vm722_vm8 = vcmask 752640   ;;  %vm787_vm9 = vcmask 744448   ;;  %vm852_vm10 = vcmask 736256   ;;  %vm315_vm14 = vcmask 154624  }
   0xf   : > { %v4142_v0 = vld [vmem:[%s300_s10 + $0x10] sm:$0xff]  ;;  %v308_v1 = vld [vmem:[%s300_s10] sm:$0xff]  ;;  %v309_v2 = vld [vmem:[%s300_s10 + $0x8] sm:$0xff]  ;;  %vm320_vm15 = vcmask 556424  }
  0x10   : > { %314 = vst.msk [vmem:[#allocation2 + $0x10] sm:$0xff] %vm313_vm0, %v4142_v0  ;;  %v328_v3 = vpack.c.bf16 %v309_v2, %v308_v1  ;;  %vm951_vm0 = vcmask 1047704  }
  0x11   : > { %311 = vst [vmem:[#allocation2] sm:$0xff] %v308_v1 }
  0x12   : > { %312 = vst [vmem:[#allocation2 + $0x8] sm:$0xff] %v309_v2  ;;  %v4145_v4 = vunpack.c.l.b16 %v328_v3  ;;  %v4147_v5 = vunpack.c.h.b16 %v328_v3 }
  0x14   : > { %v338_v6 = vpack.c.b16 %v4145_v4, %v4145_v4  ;;  %v339_v7 = vpack.c.b16 %v4147_v5, %v4147_v5 }
  0x16   : > { %341 = vrot.lane.b32.xlu0 %v338_v6, %s4070_s11  ;;  %458 = vrot.lane.b32.xlu2 %v339_v7, %s4071_s12  ;;  %v407_v12 = vsel %vm354_vm1, %v338_v6, 0  ;;  %v410_v25 = vsel %vm354_vm1, %v339_v7, 0 }
  0x17   : > { %v327_v8 = vld [vmem:[#allocation2 + $0x10] sm:$0xff]  ;;  %422 = vmatpush.bf16.msra.mxu3 %v407_v12 }
  0x18   : > { %v329_v9 = vpack.c.bf16 %v327_v8, %v327_v8  ;;  %v3871_v12 = vld [vmem:[%s5428_s1 + $0x10] sm:$0xf] }
  0x1a   : > { %v4155_v10 = vunpack.c.l.b16 %v329_v9  ;;  %3860 = vmatmul.msk.bf16.vlgmr.msra.gmra.mxu3 %vm350_vm2, %v330_v13 }
  0x1c   : > { %v340_v11 = vpack.c.b16 %v4155_v10, %v4155_v10 }
  0x1e   : > { %345 = vrot.lane.b32.xlu1 %v340_v11, %s4070_s11  ;;  %343 = vrot.lane.b32.xlu0 %v339_v7, %s4070_s11  ;;  %v413_v29 = vsel %vm354_vm1, %v340_v11, 0 }
  0x1f   : > { %460 = vrot.lane.b32.xlu2 %v340_v11, %s4071_s12 }
  0x26   : > { %456 = vrot.lane.b32.xlu1 %v338_v6, %s4071_s12  ;;  %521 = vrot.lane.b32.xlu0 %v338_v6, %s4072_s13 }
  0x27   : > { %525 = vrot.lane.b32.xlu2 %v340_v11, %s4072_s13 }
  0x2e   : > { %523 = vrot.lane.b32.xlu1 %v339_v7, %s4072_s13  ;;  %586 = vrot.lane.b32.xlu0 %v338_v6, %s4073_s14 }
  0x2f   : > { %590 = vrot.lane.b32.xlu2 %v340_v11, %s4073_s14 }
  0x36   : > { %588 = vrot.lane.b32.xlu1 %v339_v7, %s4073_s14  ;;  %651 = vrot.lane.b32.xlu0 %v338_v6, %s4074_s15 }
  0x37   : > { %655 = vrot.lane.b32.xlu2 %v340_v11, %s4074_s15 }
  0x3e   : > { %653 = vrot.lane.b32.xlu1 %v339_v7, %s4074_s15  ;;  %716 = vrot.lane.b32.xlu0 %v338_v6, %s4075_s16 }
  0x3f   : > { %720 = vrot.lane.b32.xlu2 %v340_v11, %s4075_s16 }
  0x46   : > { %718 = vrot.lane.b32.xlu1 %v339_v7, %s4075_s16  ;;  %781 = vrot.lane.b32.xlu0 %v338_v6, %s4076_s17 }
  0x47   : > { %785 = vrot.lane.b32.xlu2 %v340_v11, %s4076_s17 }
  0x4e   : > { %783 = vrot.lane.b32.xlu1 %v339_v7, %s4076_s17  ;;  %846 = vrot.lane.b32.xlu0 %v338_v6, %s4077_s18 }
  0x4f   : > { %850 = vrot.lane.b32.xlu2 %v340_v11, %s4077_s18 }
  0x56   : > { %848 = vrot.lane.b32.xlu1 %v339_v7, %s4077_s18 }
  0x70   : > { %v459_v14 = vpop.permute.xlu2 %458 }
  0x79   : > { %v461_v15 = vpop.permute.xlu2 %460 }
  0x7a   : > { %v464_v16 = vsel %vm462_vm3, %v459_v14, %v461_v15  ;;  %v475_v33 = vsel %vm354_vm1, %v461_v15, 0 }
  0x7b   : > { %v472_v17 = vsel %vm354_vm1, %v464_v16, 0 }
  0x7c   : > { %497 = vmatpush.bf16.msrb.mxu3 %v472_v17 }
  0x7f   : > { %3865 = vmatmul.msk.bf16.vlgmr.msrb.gmra.mxu3 %vm350_vm2, %v4191_v18 }
  0x81   : > { %v526_v20 = vpop.permute.xlu2 %525 }
  0x82   : > { %v540_v21 = vsel %vm354_vm1, %v526_v20, 0 }
  0x83   : > { %575 = vmatpush.bf16.msra.mxu3 %v540_v21 }
  0x88   : > { %v342_v19 = vpop.permute.xlu0 %341 }
  0x89   : > { %v591_v38 = vpop.permute.xlu2 %590 }
  0x8a   : > { %v605_v45 = vsel %vm354_vm1, %v591_v38, 0 }
  0x8f   : > { %3870 = vmatmul.msk.bf16.vlgmr.msra.gmra.mxu3 %vm350_vm2, %v4199_v22 }
  0x90   : > { %v346_v23 = vpop.permute.xlu1 %345  ;;  %v344_v24 = vpop.permute.xlu0 %343 }
  0x91   : > { %v362_v26 = vsel %vm354_vm1, %v346_v23, 0  ;;  %v348_v27 = vsel %vm347_vm4, %v342_v19, %v344_v24  ;;  %v349_v28 = vsel %vm347_vm4, %v344_v24, %v346_v23  ;;  %v656_v49 = vpop.permute.xlu2 %655  ;;  %v3883_v23 = vld [vmem:[%s5428_s1 + $0x1c] sm:$0xf] }
  0x92   : > { %397 = vmatpush.bf16.msra.mxu2 %v362_v26  ;;  %v356_v31 = vsel %vm354_vm1, %v348_v27, 0  ;;  %v359_v32 = vsel %vm354_vm1, %v349_v28, 0  ;;  %v670_v60 = vsel %vm354_vm1, %v656_v49, 0  ;;  %v909_v27 = vld [vmem:[%s5433_s6] sm:$0xff]  ;;  %v4078_v28 = vmov 0  }
  0x93   : > { %371 = vmatpush.bf16.msra.mxu0 %v356_v31  ;;  %384 = vmatpush.bf16.msra.mxu1 %v359_v32 }
  0x94   : > { %4057 = vset.pattern.permute.xlu0 %v4078_v28  ;;  %4058 = vset.pattern.permute.xlu2 %v4078_v28 }
  0x95   : > { %3859 = vmatmul.msk.bf16.vlgmr.msra.gmra.mxu2 %vm350_vm2, %v3856_v30  ;;  %912 = vperm.xlu0 %4057, %v909_v27  }
  0x96   : > { %3857 = vmatmul.msk.bf16.vlgmr.msra.gmra.mxu0 %vm350_vm2, %v3856_v30  ;;  %3858 = vmatmul.msk.bf16.vlgmr.msra.gmra.mxu1 %vm350_vm2, %v3856_v30 }
  0x97   : > { %435 = vmatpush.bf16.msrb.mxu0 %v410_v25  ;;  %448 = vmatpush.bf16.msrb.mxu1 %v413_v29  ;;  %v3887_v29 = vld [vmem:[%s5428_s1 + $0x20] sm:$0xf] }
  0x98   : > { %v457_v34 = vpop.permute.xlu1 %456  ;;  %v522_v37 = vpop.permute.xlu0 %521  ;;  %4059 = vset.pattern.permute.xlu1 %v4078_v28 }
  0x99   : > { %v463_v35 = vsel %vm462_vm3, %v457_v34, %v459_v14  ;;  %v721_v57 = vpop.permute.xlu2 %720  ;;  %v3879_v14 = vld [vmem:[%s5428_s1 + $0x18] sm:$0xf] }
  0x9a   : > { %v469_v36 = vsel %vm354_vm1, %v463_v35, 0  ;;  %v735_v16 = vsel %vm354_vm1, %v721_v57, 0 }
  0x9b   : > { %510 = vmatpush.bf16.msra.mxu0 %v475_v33  ;;  %484 = vmatpush.bf16.msrb.mxu2 %v469_v36 }
  0x9d   : > { %v424_v30 = vpop.f32.mrf.mxu3 }
  0xa0   : > { %v524_v39 = vpop.permute.xlu1 %523  ;;  %v587_v44 = vpop.permute.xlu0 %586 }
  0xa1   : > { %v529_v40 = vsel %vm527_vm5, %v524_v39, %v526_v20  ;;  %v528_v41 = vsel %vm527_vm5, %v522_v37, %v524_v39  ;;  %v786_v6 = vpop.permute.xlu2 %785 }
  0xa2   : > { %v537_v42 = vsel %vm354_vm1, %v529_v40, 0  ;;  %v534_v43 = vsel %vm354_vm1, %v528_v41, 0  ;;  %v800_v7 = vsel %vm354_vm1, %v786_v6, 0 }
  0xa3   : > { %562 = vmatpush.bf16.msra.mxu2 %v537_v42  ;;  %549 = vmatpush.bf16.msra.mxu1 %v534_v43 }
  0xa5   : > { %3864 = vmatmul.msk.bf16.vlgmr.msrb.gmra.mxu2 %vm350_vm2, %v4191_v18  ;;  %v426_v31 = vpop.f32.mrf.mxu3 }
  0xa6   : > { %3861 = vmatmul.msk.bf16.vlgmr.msrb.gmra.mxu0 %vm350_vm2, %v330_v13  ;;  %3862 = vmatmul.msk.bf16.vlgmr.msrb.gmra.mxu1 %vm350_vm2, %v330_v13 }
  0xa7   : > { %640 = vmatpush.bf16.msrb.mxu2 %v605_v45 }
  0xa8   : > { %v589_v46 = vpop.permute.xlu1 %588  ;;  %v652_v52 = vpop.permute.xlu0 %651 }
  0xa9   : > { %v593_v47 = vsel %vm592_vm6, %v587_v44, %v589_v46  ;;  %v594_v48 = vsel %vm592_vm6, %v589_v46, %v591_v38 }
  0xaa   : > { %v599_v50 = vsel %vm354_vm1, %v593_v47, 0  ;;  %v602_v51 = vsel %vm354_vm1, %v594_v48, 0 }
  0xab   : > { %614 = vmatpush.bf16.msrb.mxu0 %v599_v50  ;;  %627 = vmatpush.bf16.msrb.mxu1 %v602_v51 }
  0xb0   : > { %v654_v53 = vpop.permute.xlu1 %653  ;;  %v717_v61 = vpop.permute.xlu0 %716 }
  0xb1   : > { %v658_v54 = vsel %vm657_vm7, %v652_v52, %v654_v53  ;;  %v659_v55 = vsel %vm657_vm7, %v654_v53, %v656_v49 }
  0xb2   : > { %v664_v56 = vsel %vm354_vm1, %v658_v54, 0  ;;  %v667_v59 = vsel %vm354_vm1, %v659_v55, 0 }
  0xb3   : > { %679 = vmatpush.bf16.msrb.mxu3 %v664_v56 }
  0xb5   : > { %3869 = vmatmul.msk.bf16.vlgmr.msra.gmra.mxu2 %vm350_vm2, %v4199_v22 }
  0xb6   : > { %3866 = vmatmul.msk.bf16.vlgmr.msra.gmra.mxu0 %vm350_vm2, %v4191_v18  ;;  %3868 = vmatmul.msk.bf16.vlgmr.msra.gmra.mxu1 %vm350_vm2, %v4199_v22  ;;  %v851_v18 = vpop.permute.xlu2 %850 }
  0xb7   : > { %3876 = vmatmul.msk.bf16.vlgmr.msrb.gmra.mxu3 %vm350_vm2, %v3875_v58  ;;  %692 = vmatpush.bf16.msra.mxu0 %v667_v59  ;;  %v865_v24 = vsel %vm354_vm1, %v851_v18, 0 }
  0xb8   : > { %v719_v62 = vpop.permute.xlu1 %718  ;;  %705 = vmatpush.bf16.msra.mxu1 %v670_v60  ;;  %v782_v9 = vpop.permute.xlu0 %781 }
  0xb9   : > { %v723_v63 = vsel %vm722_vm8, %v717_v61, %v719_v62  ;;  %v724_v1 = vsel %vm722_vm8, %v719_v62, %v721_v57 }
  0xba   : > { %v729_v2 = vsel %vm354_vm1, %v723_v63, 0  ;;  %v732_v3 = vsel %vm354_vm1, %v724_v1, 0 }
  0xbb   : > { %744 = vmatpush.bf16.msra.mxu2 %v729_v2  ;;  %757 = vmatpush.bf16.msra.mxu3 %v732_v3 }
  0xbf   : > { %835 = vmatpush.bf16.msrb.mxu3 %v800_v7 }
  0xc0   : > { %v784_v8 = vpop.permute.xlu1 %783  ;;  %v847_v20 = vpop.permute.xlu0 %846 }
  0xc1   : > { %v789_v11 = vsel %vm787_vm9, %v784_v8, %v786_v6  ;;  %v788_v13 = vsel %vm787_vm9, %v782_v9, %v784_v8 }
  0xc2   : > { %v797_v15 = vsel %vm354_vm1, %v789_v11, 0  ;;  %v794_v17 = vsel %vm354_vm1, %v788_v13, 0 }
  0xc5   : > { %3874 = vmatmul.msk.bf16.vlgmr.msrb.gmra.mxu2 %vm350_vm2, %v3871_v12 }
  0xc6   : > { %3872 = vmatmul.msk.bf16.vlgmr.msrb.gmra.mxu0 %vm350_vm2, %v3871_v12  ;;  %3873 = vmatmul.msk.bf16.vlgmr.msrb.gmra.mxu1 %vm350_vm2, %v3871_v12 }
  0xc7   : > { %3881 = vmatmul.msk.bf16.vlgmr.msra.gmra.mxu3 %vm350_vm2, %v3879_v14  ;;  %822 = vmatpush.bf16.msrb.mxu2 %v797_v15 }
  0xc8   : > { %770 = vmatpush.bf16.msrb.mxu0 %v735_v16  ;;  %809 = vmatpush.bf16.msrb.mxu1 %v794_v17  ;;  %v849_v19 = vpop.permute.xlu1 %848 }
  0xc9   : > { %v854_v21 = vsel %vm852_vm10, %v849_v19, %v851_v18  ;;  %v853_v22 = vsel %vm852_vm10, %v847_v20, %v849_v19 }
  0xca   : > { %v859_v25 = vsel %vm354_vm1, %v853_v22, 0  ;;  %v862_v26 = vsel %vm354_vm1, %v854_v21, 0 }
  0xd5   : > { %3880 = vmatmul.msk.bf16.vlgmr.msra.gmra.mxu2 %vm350_vm2, %v3879_v14 }
  0xd6   : > { %3877 = vmatmul.msk.bf16.vlgmr.msra.gmra.mxu0 %vm350_vm2, %v3875_v58  ;;  %3878 = vmatmul.msk.bf16.vlgmr.msra.gmra.mxu1 %vm350_vm2, %v3875_v58 }
  0xd7   : > { %3886 = vmatmul.msk.bf16.vlgmr.msrb.gmra.mxu3 %vm350_vm2, %v3883_v23  ;;  %900 = vmatpush.bf16.msra.mxu2 %v865_v24 }
  0xd8   : > { %874 = vmatpush.bf16.msra.mxu0 %v859_v25  ;;  %887 = vmatpush.bf16.msra.mxu1 %v862_v26 }
  0xe5   : > { %3885 = vmatmul.msk.bf16.vlgmr.msrb.gmra.mxu2 %vm350_vm2, %v3883_v23 }
  0xe6   : > { %3882 = vmatmul.msk.bf16.vlgmr.msrb.gmra.mxu0 %vm350_vm2, %v3879_v14  ;;  %3884 = vmatmul.msk.bf16.vlgmr.msrb.gmra.mxu1 %vm350_vm2, %v3883_v23 }
  0xf5   : > { %3890 = vmatmul.msk.bf16.vlgmr.msra.gmra.mxu2 %vm350_vm2, %v3887_v29 }
  0xf6   : > { %3888 = vmatmul.msk.bf16.vlgmr.msra.gmra.mxu0 %vm350_vm2, %v3887_v29  ;;  %3889 = vmatmul.msk.bf16.vlgmr.msra.gmra.mxu1 %vm350_vm2, %v3887_v29  ;;  %vm954_vm2 = vcmask 400384  }
 0x102   : > { %v499_v32 = vpop.f32.mrf.mxu3 }
 0x10a   : > { %v501_v33 = vpop.f32.mrf.mxu3 }
 0x112   : > { %v577_v37 = vpop.f32.mrf.mxu3 }
 0x113   : > { %v373_v34 = vpop.f32.mrf.mxu0  ;;  %v386_v35 = vpop.f32.mrf.mxu1 }
 0x114   : > { %v425_v36 = vadd.f32 %v424_v30, %v373_v34 }
 0x118   : > { %v399_v38 = vpop.f32.mrf.mxu2 }
 0x11a   : > { %v579_v41 = vpop.f32.mrf.mxu3 }
 0x11b   : > { %v375_v39 = vpop.f32.mrf.mxu0  ;;  %v388_v40 = vpop.f32.mrf.mxu1 }
 0x120   : > { %v401_v42 = vpop.f32.mrf.mxu2 }
 0x123   : > { %v437_v43 = vpop.f32.mrf.mxu0  ;;  %v450_v44 = vpop.f32.mrf.mxu1 }
 0x124   : > { %v438_v45 = vadd.f32 %v437_v43, %v386_v35  ;;  %v451_v46 = vadd.f32 %v450_v44, %v399_v38  ;;  %v913_v38 = vpop.permute.xlu0 %912  ;;  %v307_v43 = vld [vmem:[%s5434_s7] sm:$0x7] }
 0x126   : > { %v517_v47 = vadd.f32 %v499_v32, %v438_v45 }
 0x128   : > { %v486_v48 = vpop.f32.mrf.mxu2 }
 0x129   : > { %v516_v20 = vadd.f32 %v486_v48, %v425_v36  ;;  %v4296_v48 = vperm.slane %v307_v43, 0 }
 0x12b   : > { %v439_v49 = vpop.f32.mrf.mxu0  ;;  %v452_v50 = vpop.f32.mrf.mxu1 }
 0x130   : > { %v488_v51 = vpop.f32.mrf.mxu2 }
 0x133   : > { %v512_v52 = vpop.f32.mrf.mxu0  ;;  %v551_v53 = vpop.f32.mrf.mxu1 }
 0x134   : > { %v518_v54 = vadd.f32 %v512_v52, %v451_v46  ;;  %v581_v22 = vadd.f32 %v551_v53, %v516_v20 }
 0x136   : > { %v583_v55 = vadd.f32 %v577_v37, %v518_v54 }
 0x138   : > { %v564_v56 = vpop.f32.mrf.mxu2 }
 0x139   : > { %v582_v21 = vadd.f32 %v564_v56, %v517_v47  ;;  %v4294_v47 = vperm.slane %v307_v43, 1 }
 0x13a   : > { %v681_v57 = vpop.f32.mrf.mxu3 }
 0x13b   : > { %v514_v58 = vpop.f32.mrf.mxu0  ;;  %v553_v59 = vpop.f32.mrf.mxu1 }
 0x140   : > { %v566_v60 = vpop.f32.mrf.mxu2 }
 0x142   : > { %v683_v61 = vpop.f32.mrf.mxu3 }
 0x143   : > { %v616_v62 = vpop.f32.mrf.mxu0  ;;  %v629_v63 = vpop.f32.mrf.mxu1  ;;  %v4302_v61 = vperm.slane %v307_v43, 2 }
 0x144   : > { %v646_v24 = vadd.f32 %v616_v62, %v581_v22  ;;  %v647_v25 = vadd.f32 %v629_v63, %v582_v21 }
 0x146   : > { %v711_v29 = vadd.f32 %v681_v57, %v646_v24 }
 0x148   : > { %v642_v1 = vpop.f32.mrf.mxu2 }
 0x149   : > { %v648_v30 = vadd.f32 %v642_v1, %v583_v55 }
 0x14a   : > { %v759_v2 = vpop.f32.mrf.mxu3 }
 0x14b   : > { %v618_v3 = vpop.f32.mrf.mxu0  ;;  %v631_v6 = vpop.f32.mrf.mxu1 }
 0x150   : > { %v644_v7 = vpop.f32.mrf.mxu2 }
 0x152   : > { %v761_v8 = vpop.f32.mrf.mxu3 }
 0x153   : > { %v694_v9 = vpop.f32.mrf.mxu0  ;;  %v707_v11 = vpop.f32.mrf.mxu1 }
 0x154   : > { %v712_v28 = vadd.f32 %v694_v9, %v647_v25  ;;  %v713_v34 = vadd.f32 %v707_v11, %v648_v30 }
 0x156   : > { %v777_v32 = vadd.f32 %v759_v2, %v712_v28  ;;  %v4080_v2 = vmov 0.0  }
 0x157   : > { %316 = vst.msk [vmem:[#allocation2 + $0x18] sm:$0xff] %vm315_vm14, %v4080_v2 }
 0x158   : > { %v746_v12 = vpop.f32.mrf.mxu2  ;;  %317 = vst.msk [vmem:[#allocation2 + $0x30] sm:$0xff] %vm315_vm14, %v4080_v2 }
 0x159   : > { %v776_v31 = vadd.f32 %v746_v12, %v711_v29  ;;  %318 = vst.msk [vmem:[#allocation2 + $0x48] sm:$0xff] %vm315_vm14, %v4080_v2 }
 0x15a   : > { %v837_v13 = vpop.f32.mrf.mxu3  ;;  %319 = vst.msk [vmem:[#allocation2 + $0x60] sm:$0xff] %vm315_vm14, %v4080_v2 }
 0x15b   : > { %v696_v14 = vpop.f32.mrf.mxu0  ;;  %v709_v15 = vpop.f32.mrf.mxu1  ;;  %321 = vst.msk [vmem:[#allocation2 + $0x28] sm:$0xff] %vm320_vm15, %v4080_v2 }
 0x15c   : > { %322 = vst.msk [vmem:[#allocation2 + $0x40] sm:$0xff] %vm320_vm15, %v4080_v2 }
 0x15d   : > { %323 = vst.msk [vmem:[#allocation2 + $0x58] sm:$0xff] %vm320_vm15, %v4080_v2 }
 0x15e   : > { %324 = vst.msk [vmem:[#allocation2 + $0x70] sm:$0xff] %vm320_vm15, %v4080_v2 }
 0x160   : > { %v748_v16 = vpop.f32.mrf.mxu2 }
 0x162   : > { %v839_v17 = vpop.f32.mrf.mxu3 }
 0x163   : > { %v772_v18 = vpop.f32.mrf.mxu0  ;;  %v811_v19 = vpop.f32.mrf.mxu1 }
 0x164   : > { %v841_v37 = vadd.f32 %v811_v19, %v776_v31  ;;  %v778_v39 = vadd.f32 %v772_v18, %v713_v34 }
 0x166   : > { %v843_v46 = vadd.f32 %v837_v13, %v778_v39 }
 0x168   : > { %v824_v23 = vpop.f32.mrf.mxu2 }
 0x169   : > { %v842_v35 = vadd.f32 %v824_v23, %v777_v32  ;;  %v3891_v23 = vld [vmem:[%s5429_s2 + $0x4] sm:$0xf] }
 0x16b   : > { %v774_v26 = vpop.f32.mrf.mxu0  ;;  %v813_v27 = vpop.f32.mrf.mxu1 }
 0x170   : > { %v826_v33 = vpop.f32.mrf.mxu2 }
 0x171   : > { %v3898_v33 = vld [vmem:[%s5429_s2 + $0x8] sm:$0xf] }
 0x173   : > { %v876_v40 = vpop.f32.mrf.mxu0  ;;  %v889_v36 = vpop.f32.mrf.mxu1 }
 0x174   : > { %v906_v41 = vadd.f32 %v876_v40, %v841_v37  ;;  %v907_v42 = vadd.f32 %v889_v36, %v842_v35 }
 0x176   : > { %v915_v44 = vadd.f32 %v913_v38, %v906_v41  ;;  %v916_v45 = vadd.f32 %v913_v38, %v907_v42 }
 0x178   : > { %v902_v49 = vpop.f32.mrf.mxu2  ;;  %vm918_vm11 = vcmp.gt.f32.partialorder %v915_v44, 0.0  ;;  %v921_v50 = vmul.f32 0.01, %v915_v44  ;;  %vm919_vm12 = vcmp.gt.f32.partialorder %v916_v45, 0.0  ;;  %v922_v51 = vmul.f32 0.01, %v916_v45 }
 0x179   : > { %v908_v52 = vadd.f32 %v902_v49, %v843_v46 }
 0x17a   : > { %v925_v53 = vsel %vm919_vm12, %v916_v45, %v922_v51  ;;  %v924_v54 = vsel %vm918_vm11, %v915_v44, %v921_v50  ;;  %vm993_vm11 = vcmask 130048   ;;  %v3902_v44 = vld [vmem:[%s5429_s2 + $0xc] sm:$0xf] }
 0x17b   : > { %v917_v55 = vadd.f32 %v913_v38, %v908_v52  ;;  %v878_v56 = vpop.f32.mrf.mxu0  ;;  %v935_v57 = vmul.f32 %v4294_v47, %v925_v53  ;;  %v934_v58 = vmul.f32 %v4296_v48, %v924_v54  ;;  %v891_v59 = vpop.f32.mrf.mxu1  ;;  %v3906_v54 = vld [vmem:[%s5429_s2 + $0x10] sm:$0xf] }
 0x17d   : > { %942 = vrot.lane.b32.xlu2 %v935_v57, %s4079_s19  ;;  %940 = vrot.lane.b32.xlu1 %v934_v58, %s4079_s19  ;;  %vm920_vm13 = vcmp.gt.f32.partialorder %v917_v55, 0.0  ;;  %v923_v60 = vmul.f32 0.01, %v917_v55 }
 0x17f   : > { %v926_v63 = vsel %vm920_vm13, %v917_v55, %v923_v60  ;;  %v3910_v55 = vld [vmem:[%s5429_s2 + $0x14] sm:$0xf] }
 0x180   : > { %v904_v62 = vpop.f32.mrf.mxu2  ;;  %v936_v1 = vmul.f32 %v4302_v61, %v926_v63  ;;  %v3914_v63 = vld [vmem:[%s5429_s2 + $0x18] sm:$0xf] }
 0x185   : > { %944 = vrot.lane.b32.xlu1 %v936_v1, %s4079_s19 }
 0x1d7   : > { %v943_v3 = vpop.permute.xlu2 %942 }
 0x1ef   : > { %v941_v6 = vpop.permute.xlu1 %940 }
 0x1f0   : > { %v946_v7 = vsel %vm315_vm14, %v941_v6, %v943_v3  ;;  %952 = vst.msk [vmem:[#allocation2 + $0x18] sm:$0xff] %vm951_vm0, %v941_v6 }
 0x1f7   : > { %v959_v8 = vld [vmem:[#allocation2 + $0x18] sm:$0xff]  ;;  %v945_v9 = vpop.permute.xlu1 %944 }
 0x1f8   : > { %v4324_v11 = vpack.c.bf16 %v946_v7, %v959_v8  ;;  %v947_v12 = vsel %vm315_vm14, %v943_v3, %v945_v9  ;;  %v3918_v8 = vld [vmem:[%s5429_s2 + $0x1c] sm:$0xf]  ;;  %v3922_v9 = vld [vmem:[%s5429_s2 + $0x20] sm:$0xf] }
 0x1f9   : > { %955 = vst.msk [vmem:[#allocation2 + $0x28] sm:$0xff] %vm954_vm2, %v947_v12 }
 0x1fa   : > { %v976_v13 = vunpack.c.l.b16 %v4324_v11  ;;  %v977_v14 = vunpack.c.h.b16 %v4324_v11 }
 0x1fc   : > { %v980_v15 = vpack.c.b16 %v977_v14, %v4147_v5  ;;  %v979_v16 = vpack.c.b16 %v976_v13, %v4145_v4  ;;  %v966_v4 = vld [vmem:[%s5429_s2] sm:$0xf] }
 0x1fe   : > { %984 = vrot.lane.b32.xlu0 %v980_v15, %s4070_s11  ;;  %982 = vrot.lane.b32.xlu2 %v979_v16, %s4070_s11 }
 0x1ff   : > { %1049 = vmatpush.bf16.msrb.mxu2 %v979_v16 }
 0x200   : > { %v961_v17 = vld [vmem:[#allocation2 + $0x28] sm:$0xff] }
 0x201   : > { %v965_v18 = vpack.c.bf16 %v961_v17, %v961_v17 }
 0x202   : > { %3895 = vmatmul.msk.bf16.vlgmr.msrb.gmra.mxu2 %vm993_vm11, %v966_v4 }
 0x203   : > { %v978_v19 = vunpack.c.l.b16 %v965_v18 }
 0x205   : > { %v4339_v20 = vpack.c.b16 %v978_v19, %v4155_v10 }
 0x206   : > { %1085 = vrot.lane.b32.xlu0 %v980_v15, %s4071_s12  ;;  %1083 = vrot.lane.b32.xlu2 %v979_v16, %s4071_s12 }
 0x207   : > { %986 = vrot.lane.b32.xlu1 %v4339_v20, %s4070_s11 }
 0x20e   : > { %1143 = vrot.lane.b32.xlu0 %v980_v15, %s4072_s13  ;;  %1141 = vrot.lane.b32.xlu2 %v979_v16, %s4072_s13 }
 0x20f   : > { %1087 = vrot.lane.b32.xlu1 %v4339_v20, %s4071_s12 }
 0x216   : > { %1201 = vrot.lane.b32.xlu0 %v980_v15, %s4073_s14  ;;  %1199 = vrot.lane.b32.xlu2 %v979_v16, %s4073_s14 }
 0x217   : > { %1145 = vrot.lane.b32.xlu1 %v4339_v20, %s4072_s13 }
 0x21e   : > { %1259 = vrot.lane.b32.xlu0 %v980_v15, %s4074_s15  ;;  %1257 = vrot.lane.b32.xlu2 %v979_v16, %s4074_s15 }
 0x21f   : > { %1203 = vrot.lane.b32.xlu1 %v4339_v20, %s4073_s14 }
 0x226   : > { %1317 = vrot.lane.b32.xlu0 %v980_v15, %s4075_s16  ;;  %1315 = vrot.lane.b32.xlu2 %v979_v16, %s4075_s16 }
 0x227   : > { %1261 = vrot.lane.b32.xlu1 %v4339_v20, %s4074_s15 }
 0x22e   : > { %1375 = vrot.lane.b32.xlu0 %v980_v15, %s4076_s17  ;;  %1373 = vrot.lane.b32.xlu2 %v979_v16, %s4076_s17 }
 0x22f   : > { %1319 = vrot.lane.b32.xlu1 %v4339_v20, %s4075_s16 }
 0x236   : > { %1433 = vrot.lane.b32.xlu0 %v980_v15, %s4077_s18  ;;  %1431 = vrot.lane.b32.xlu2 %v979_v16, %s4077_s18 }
 0x237   : > { %1377 = vrot.lane.b32.xlu1 %v4339_v20, %s4076_s17 }
 0x23f   : > { %1435 = vrot.lane.b32.xlu1 %v4339_v20, %s4077_s18 }
 0x258   : > { %v983_v5 = vpop.permute.xlu2 %982 }
 0x260   : > { %v1084_v22 = vpop.permute.xlu2 %1083 }
 0x268   : > { %v1142_v28 = vpop.permute.xlu2 %1141 }
 0x270   : > { %v985_v10 = vpop.permute.xlu0 %984  ;;  %v1200_v34 = vpop.permute.xlu2 %1199 }
 0x271   : > { %v988_v21 = vsel %vm347_vm4, %v983_v5, %v985_v10 }
 0x272   : > { %1004 = vmatpush.bf16.msra.mxu3 %v988_v21 }
 0x275   : > { %3892 = vmatmul.msk.bf16.vlgmr.msra.gmra.mxu3 %vm993_vm11, %v3891_v23 }
 0x276   : > { %1062 = vmatpush.bf16.msrb.mxu3 %v980_v15  ;;  %v3926_v15 = vld [vmem:[%s5433_s6 + $0x8] sm:$0xff] }
 0x277   : > { %1491 = vperm.xlu2 %4058, %v3926_v15  }
 0x278   : > { %v1086_v24 = vpop.permute.xlu0 %1085  ;;  %v1258_v40 = vpop.permute.xlu2 %1257 }
 0x279   : > { %v987_v25 = vpop.permute.xlu1 %986  ;;  %v1089_v26 = vsel %vm462_vm3, %v1084_v22, %v1086_v24 }
 0x27a   : > { %1030 = vmatpush.bf16.msrb.mxu1 %v987_v25  ;;  %v989_v27 = vsel %vm347_vm4, %v985_v10, %v987_v25 }
 0x27b   : > { %1017 = vmatpush.bf16.msrb.mxu0 %v989_v27 }
 0x27d   : > { %3894 = vmatmul.msk.bf16.vlgmr.msrb.gmra.mxu1 %vm993_vm11, %v3891_v23 }
 0x27e   : > { %1104 = vmatpush.bf16.msra.mxu1 %v1089_v26  ;;  %3893 = vmatmul.msk.bf16.vlgmr.msrb.gmra.mxu0 %vm993_vm11, %v3891_v23 }
 0x27f   : > { %1075 = vmatpush.bf16.msra.mxu0 %v4339_v20 }
 0x280   : > { %v1144_v29 = vpop.permute.xlu0 %1143  ;;  %v1316_v50 = vpop.permute.xlu2 %1315 }
 0x281   : > { %v1088_v30 = vpop.permute.xlu1 %1087  ;;  %v1147_v31 = vsel %vm527_vm5, %v1142_v28, %v1144_v29 }
 0x282   : > { %1130 = vmatpush.bf16.msra.mxu3 %v1088_v30  ;;  %v1090_v32 = vsel %vm462_vm3, %v1086_v24, %v1088_v30 }
 0x283   : > { %1162 = vmatpush.bf16.msrb.mxu0 %v1147_v31  ;;  %1117 = vmatpush.bf16.msra.mxu2 %v1090_v32 }
 0x285   : > { %3896 = vmatmul.msk.bf16.vlgmr.msrb.gmra.mxu3 %vm993_vm11, %v966_v4  ;;  %v1051_v12 = vpop.f32.mrf.mxu2 }
 0x286   : > { %3900 = vmatmul.msk.bf16.vlgmr.msra.gmra.mxu2 %vm993_vm11, %v3898_v33 }
 0x288   : > { %v1202_v35 = vpop.permute.xlu0 %1201  ;;  %v1374_v58 = vpop.permute.xlu2 %1373 }
 0x289   : > { %v1146_v37 = vpop.permute.xlu1 %1145  ;;  %v1205_v38 = vsel %vm592_vm6, %v1200_v34, %v1202_v35 }
 0x28a   : > { %1188 = vmatpush.bf16.msrb.mxu2 %v1146_v37  ;;  %v1148_v39 = vsel %vm527_vm5, %v1144_v29, %v1146_v37  ;;  %1220 = vmatpush.bf16.msrb.mxu3 %v1205_v38 }
 0x28b   : > { %1175 = vmatpush.bf16.msrb.mxu1 %v1148_v39 }
 0x28d   : > { %3899 = vmatmul.msk.bf16.vlgmr.msra.gmra.mxu1 %vm993_vm11, %v3898_v33  ;;  %v1053_v16 = vpop.f32.mrf.mxu2 }
 0x28e   : > { %3897 = vmatmul.msk.bf16.vlgmr.msra.gmra.mxu0 %vm993_vm11, %v966_v4 }
 0x290   : > { %v1260_v36 = vpop.permute.xlu0 %1259  ;;  %v1432_v1 = vpop.permute.xlu2 %1431 }
 0x291   : > { %v1204_v41 = vpop.permute.xlu1 %1203  ;;  %v1263_v42 = vsel %vm657_vm7, %v1258_v40, %v1260_v36 }
 0x292   : > { %1246 = vmatpush.bf16.msra.mxu1 %v1204_v41  ;;  %v1206_v43 = vsel %vm592_vm6, %v1202_v35, %v1204_v41  ;;  %1278 = vmatpush.bf16.msra.mxu2 %v1263_v42 }
 0x293   : > { %1233 = vmatpush.bf16.msra.mxu0 %v1206_v43 }
 0x295   : > { %3901 = vmatmul.msk.bf16.vlgmr.msra.gmra.mxu3 %vm993_vm11, %v3898_v33 }
 0x296   : > { %3905 = vmatmul.msk.bf16.vlgmr.msrb.gmra.mxu2 %vm993_vm11, %v3902_v44 }
 0x298   : > { %v1318_v46 = vpop.permute.xlu0 %1317 }
 0x299   : > { %v1262_v45 = vpop.permute.xlu1 %1261  ;;  %v1321_v51 = vsel %vm722_vm8, %v1316_v50, %v1318_v46 }
 0x29a   : > { %v1264_v49 = vsel %vm657_vm7, %v1260_v36, %v1262_v45 }
 0x29b   : > { %1291 = vmatpush.bf16.msra.mxu3 %v1264_v49 }
 0x29d   : > { %3904 = vmatmul.msk.bf16.vlgmr.msrb.gmra.mxu1 %vm993_vm11, %v3902_v44 }
 0x29e   : > { %1336 = vmatpush.bf16.msrb.mxu1 %v1321_v51  ;;  %3903 = vmatmul.msk.bf16.vlgmr.msrb.gmra.mxu0 %vm993_vm11, %v3902_v44 }
 0x29f   : > { %1304 = vmatpush.bf16.msrb.mxu0 %v1262_v45 }
 0x2a0   : > { %v1376_v56 = vpop.permute.xlu0 %1375 }
 0x2a1   : > { %v1320_v52 = vpop.permute.xlu1 %1319  ;;  %v1379_v60 = vsel %vm787_vm9, %v1374_v58, %v1376_v56 }
 0x2a2   : > { %v1322_v53 = vsel %vm722_vm8, %v1318_v46, %v1320_v52 }
 0x2a3   : > { %1349 = vmatpush.bf16.msrb.mxu2 %v1322_v53 }
 0x2a5   : > { %3907 = vmatmul.msk.bf16.vlgmr.msrb.gmra.mxu3 %vm993_vm11, %v3906_v54 }
 0x2a6   : > { %1362 = vmatpush.bf16.msrb.mxu3 %v1320_v52  ;;  %3911 = vmatmul.msk.bf16.vlgmr.msra.gmra.mxu2 %vm993_vm11, %v3910_v55 }
 0x2a8   : > { %v1434_v62 = vpop.permute.xlu0 %1433 }
 0x2a9   : > { %v1378_v57 = vpop.permute.xlu1 %1377  ;;  %v1437_v3 = vsel %vm852_vm10, %v1432_v1, %v1434_v62 }
 0x2aa   : > { %1420 = vmatpush.bf16.msra.mxu2 %v1378_v57  ;;  %v1380_v59 = vsel %vm787_vm9, %v1376_v56, %v1378_v57 }
 0x2ad   : > { %3909 = vmatmul.msk.bf16.vlgmr.msra.gmra.mxu1 %vm993_vm11, %v3906_v54 }
 0x2ae   : > { %1407 = vmatpush.bf16.msra.mxu1 %v1380_v59  ;;  %3908 = vmatmul.msk.bf16.vlgmr.msra.gmra.mxu0 %vm993_vm11, %v3906_v54 }
 0x2af   : > { %1394 = vmatpush.bf16.msra.mxu0 %v1379_v60 }
 0x2b1   : > { %v1436_v6 = vpop.permute.xlu1 %1435 }
 0x2b2   : > { %v1438_v7 = vsel %vm852_vm10, %v1434_v62, %v1436_v6 }
 0x2b5   : > { %3912 = vmatmul.msk.bf16.vlgmr.msra.gmra.mxu3 %vm993_vm11, %v3910_v55 }
 0x2b6   : > { %1452 = vmatpush.bf16.msra.mxu3 %v1437_v3  ;;  %3916 = vmatmul.msk.bf16.vlgmr.msrb.gmra.mxu2 %vm993_vm11, %v3914_v63 }
 0x2bd   : > { %3915 = vmatmul.msk.bf16.vlgmr.msrb.gmra.mxu1 %vm993_vm11, %v3914_v63 }
 0x2be   : > { %1478 = vmatpush.bf16.msrb.mxu1 %v1436_v6  ;;  %3913 = vmatmul.msk.bf16.vlgmr.msrb.gmra.mxu0 %vm993_vm11, %v3910_v55 }
 0x2bf   : > { %1465 = vmatpush.bf16.msrb.mxu0 %v1438_v7 }
 0x2c5   : > { %3917 = vmatmul.msk.bf16.vlgmr.msrb.gmra.mxu3 %vm993_vm11, %v3914_v63 }
 0x2c6   : > { %3921 = vmatmul.msk.bf16.vlgmr.msra.gmra.mxu2 %vm993_vm11, %v3918_v8 }
 0x2cd   : > { %3920 = vmatmul.msk.bf16.vlgmr.msra.gmra.mxu1 %vm993_vm11, %v3918_v8 }
 0x2ce   : > { %3919 = vmatmul.msk.bf16.vlgmr.msra.gmra.mxu0 %vm993_vm11, %v3918_v8 }
 0x2d5   : > { %3923 = vmatmul.msk.bf16.vlgmr.msra.gmra.mxu3 %vm993_vm11, %v3922_v9 }
 0x2dd   : > { %3925 = vmatmul.msk.bf16.vlgmr.msrb.gmra.mxu1 %vm993_vm11, %v3922_v9 }
 0x2de   : > { %3924 = vmatmul.msk.bf16.vlgmr.msrb.gmra.mxu0 %vm993_vm11, %v3922_v9 }
 0x2f8   : > { %v1006_v17 = vpop.f32.mrf.mxu3 }
 0x2f9   : > { %v1052_v18 = vadd.f32 %v1051_v12, %v1006_v17 }
 0x2fa   : > { %v1032_v19 = vpop.f32.mrf.mxu1 }
 0x2fb   : > { %v1019_v4 = vpop.f32.mrf.mxu0 }
 0x300   : > { %v1008_v5 = vpop.f32.mrf.mxu3 }
 0x302   : > { %v1034_v10 = vpop.f32.mrf.mxu1 }
 0x303   : > { %v1021_v21 = vpop.f32.mrf.mxu0 }
 0x308   : > { %v1064_v22 = vpop.f32.mrf.mxu3 }
 0x309   : > { %v1065_v23 = vadd.f32 %v1064_v22, %v1019_v4  ;;  %v1119_v24 = vpop.f32.mrf.mxu2 }
 0x30a   : > { %v1106_v25 = vpop.f32.mrf.mxu1 }
 0x30b   : > { %v1136_v26 = vadd.f32 %v1106_v25, %v1052_v18  ;;  %v1077_v27 = vpop.f32.mrf.mxu0  ;;  %v1137_v28 = vadd.f32 %v1119_v24, %v1065_v23 }
 0x30c   : > { %v1078_v29 = vadd.f32 %v1077_v27, %v1032_v19  ;;  %v1492_v27 = vpop.permute.xlu2 %1491 }
 0x310   : > { %v1066_v30 = vpop.f32.mrf.mxu3 }
 0x311   : > { %v1121_v31 = vpop.f32.mrf.mxu2 }
 0x312   : > { %v1108_v32 = vpop.f32.mrf.mxu1 }
 0x313   : > { %v1079_v33 = vpop.f32.mrf.mxu0 }
 0x318   : > { %v1132_v34 = vpop.f32.mrf.mxu3 }
 0x319   : > { %v1190_v35 = vpop.f32.mrf.mxu2  ;;  %v1138_v1 = vadd.f32 %v1132_v34, %v1078_v29 }
 0x31a   : > { %v1177_v37 = vpop.f32.mrf.mxu1 }
 0x31b   : > { %v1164_v38 = vpop.f32.mrf.mxu0  ;;  %v1196_v7 = vadd.f32 %v1190_v35, %v1138_v1  ;;  %v1195_v9 = vadd.f32 %v1177_v37, %v1137_v28 }
 0x31c   : > { %v1194_v6 = vadd.f32 %v1164_v38, %v1136_v26  ;;  %v1526_v38 = vld [vmem:[#allocation2] sm:$0xff] }
 0x320   : > { %v1134_v39 = vpop.f32.mrf.mxu3 }
 0x321   : > { %v1192_v40 = vpop.f32.mrf.mxu2  ;;  %v1527_v39 = vld [vmem:[#allocation2 + $0x8] sm:$0xff] }
 0x322   : > { %v1179_v36 = vpop.f32.mrf.mxu1 }
 0x323   : > { %v1166_v41 = vpop.f32.mrf.mxu0 }
 0x328   : > { %v1222_v42 = vpop.f32.mrf.mxu3 }
 0x329   : > { %v1280_v43 = vpop.f32.mrf.mxu2  ;;  %v1252_v8 = vadd.f32 %v1222_v42, %v1194_v6 }
 0x32a   : > { %v1248_v44 = vpop.f32.mrf.mxu1 }
 0x32b   : > { %v1235_v45 = vpop.f32.mrf.mxu0  ;;  %v1254_v15 = vadd.f32 %v1248_v44, %v1196_v7  ;;  %v1310_v19 = vadd.f32 %v1280_v43, %v1252_v8 }
 0x32c   : > { %v1253_v17 = vadd.f32 %v1235_v45, %v1195_v9  ;;  %v1535_v45 = vpack.c.bf16 %v1527_v39, %v1526_v38 }
 0x330   : > { %v1224_v46 = vpop.f32.mrf.mxu3 }
 0x331   : > { %v1282_v49 = vpop.f32.mrf.mxu2 }
 0x332   : > { %v1250_v50 = vpop.f32.mrf.mxu1 }
 0x333   : > { %v1237_v51 = vpop.f32.mrf.mxu0 }
 0x338   : > { %v1293_v52 = vpop.f32.mrf.mxu3 }
 0x339   : > { %v1351_v53 = vpop.f32.mrf.mxu2  ;;  %v1311_v10 = vadd.f32 %v1293_v52, %v1253_v17 }
 0x33a   : > { %v1338_v54 = vpop.f32.mrf.mxu1 }
 0x33b   : > { %v1306_v55 = vpop.f32.mrf.mxu0  ;;  %v1368_v21 = vadd.f32 %v1338_v54, %v1310_v19  ;;  %v1369_v24 = vadd.f32 %v1351_v53, %v1311_v10  ;;  %v1550_v54 = vunpack.c.l.b16 %v1535_v45  ;;  %v1541_v10 = vld [vmem:[%s5430_s3] sm:$0xf] }
 0x33c   : > { %v1312_v4 = vadd.f32 %v1306_v55, %v1254_v15  ;;  %v1551_v55 = vunpack.c.h.b16 %v1535_v45 }
 0x340   : > { %v1295_v56 = vpop.f32.mrf.mxu3 }
 0x341   : > { %v1353_v57 = vpop.f32.mrf.mxu2  ;;  %v4453_v56 = vpack.c.b16 %v976_v13, %v1550_v54 }
 0x342   : > { %v1340_v58 = vpop.f32.mrf.mxu1  ;;  %v4459_v57 = vpack.c.b16 %v977_v14, %v1551_v55 }
 0x343   : > { %v1308_v59 = vpop.f32.mrf.mxu0 }
 0x348   : > { %v1364_v60 = vpop.f32.mrf.mxu3 }
 0x349   : > { %v1422_v62 = vpop.f32.mrf.mxu2  ;;  %v1370_v22 = vadd.f32 %v1364_v60, %v1312_v4 }
 0x34a   : > { %v1409_v63 = vpop.f32.mrf.mxu1 }
 0x34b   : > { %v1396_v3 = vpop.f32.mrf.mxu0  ;;  %v1428_v29 = vadd.f32 %v1422_v62, %v1370_v22  ;;  %v1427_v30 = vadd.f32 %v1409_v63, %v1369_v24  ;;  %v3927_v22 = vld [vmem:[%s5430_s3 + $0x4] sm:$0xf] }
 0x34c   : > { %v1426_v23 = vadd.f32 %v1396_v3, %v1368_v21 }
 0x350   : > { %v1366_v12 = vpop.f32.mrf.mxu3 }
 0x351   : > { %v1424_v16 = vpop.f32.mrf.mxu2 }
 0x352   : > { %v1411_v18 = vpop.f32.mrf.mxu1 }
 0x353   : > { %v1398_v5 = vpop.f32.mrf.mxu0 }
 0x358   : > { %v1454_v25 = vpop.f32.mrf.mxu3 }
 0x359   : > { %v1484_v26 = vadd.f32 %v1454_v25, %v1426_v23  ;;  %v3962_v25 = vld [vmem:[%s5433_s6 + $0x10] sm:$0xff] }
 0x35a   : > { %v1480_v31 = vpop.f32.mrf.mxu1 }
 0x35b   : > { %v1486_v28 = vadd.f32 %v1480_v31, %v1428_v29  ;;  %v1494_v32 = vadd.f32 %v1492_v27, %v1484_v26  ;;  %v1467_v33 = vpop.f32.mrf.mxu0 }
 0x35c   : > { %v1485_v34 = vadd.f32 %v1467_v33, %v1427_v30 }
 0x35d   : > { %v1496_v35 = vadd.f32 %v1492_v27, %v1486_v28  ;;  %vm1497_vm12 = vcmp.gt.f32.partialorder %v1494_v32, 0.0  ;;  %v1500_v37 = vmul.f32 0.01, %v1494_v32 }
 0x35e   : > { %v1495_v40 = vadd.f32 %v1492_v27, %v1485_v34 }
 0x35f   : > { %v1503_v36 = vsel %vm1497_vm12, %v1494_v32, %v1500_v37  ;;  %vm1499_vm13 = vcmp.gt.f32.partialorder %v1496_v35, 0.0  ;;  %v1502_v41 = vmul.f32 0.01, %v1496_v35  ;;  %vm1584_vm12 = vcmask 195584  }
 0x360   : > { %vm1498_vm11 = vcmp.gt.f32.partialorder %v1495_v40, 0.0  ;;  %v1501_v42 = vmul.f32 0.01, %v1495_v40  ;;  %v1456_v43 = vpop.f32.mrf.mxu3  ;;  %v1506_v44 = vmul.f32 %v1503_v36, %v4296_v48 }
 0x361   : > { %v1505_v46 = vsel %vm1499_vm13, %v1496_v35, %v1502_v41 }
 0x362   : > { %1512 = vrot.lane.b32.xlu0 %v1506_v44, %s4079_s19  ;;  %v1508_v49 = vmul.f32 %v1505_v46, %v4302_v61  ;;  %v1504_v50 = vsel %vm1498_vm11, %v1495_v40, %v1501_v42  ;;  %v1482_v51 = vpop.f32.mrf.mxu1 }
 0x363   : > { %v1469_v52 = vpop.f32.mrf.mxu0  ;;  %v1507_v53 = vmul.f32 %v1504_v50, %v4294_v47 }
 0x364   : > { %1516 = vrot.lane.b32.xlu2 %v1508_v49, %s4079_s19 }
 0x365   : > { %1514 = vrot.lane.b32.xlu1 %v1507_v53, %s4079_s19 }
 0x36a   : > { %1565 = vrot.lane.b32.xlu0 %v4453_v56, %s4070_s11 }
 0x36c   : > { %1569 = vrot.lane.b32.xlu2 %v4339_v20, %s4070_s11 }
 0x36d   : > { %1567 = vrot.lane.b32.xlu1 %v4459_v57, %s4070_s11 }
 0x372   : > { %1694 = vrot.lane.b32.xlu0 %v4459_v57, %s4071_s12 }
 0x374   : > { %1692 = vrot.lane.b32.xlu2 %v4453_v56, %s4071_s12 }
 0x375   : > { %1767 = vrot.lane.b32.xlu1 %v4453_v56, %s4072_s13 }
 0x3be   : > { %v1517_v11 = vpop.permute.xlu2 %1516 }
 0x3c6   : > { %v1570_v16 = vpop.permute.xlu2 %1569 }
 0x3ce   : > { %v4552_v17 = vpop.permute.xlu2 %1692 }
 0x3d4   : > { %v1513_v13 = vpop.permute.xlu0 %1512 }
 0x3d5   : > { %1523 = vst.msk [vmem:[#allocation2 + $0x30] sm:$0xff] %vm951_vm0, %v1513_v13 }
 0x3d7   : > { %v1515_v14 = vpop.permute.xlu1 %1514 }
 0x3d8   : > { %v1518_v58 = vsel %vm315_vm14, %v1513_v13, %v1515_v14  ;;  %v1519_v59 = vsel %vm315_vm14, %v1515_v14, %v1517_v11 }
 0x3d9   : > { %1525 = vst.msk [vmem:[#allocation2 + $0x40] sm:$0xff] %vm954_vm2, %v1519_v59 }
 0x3dc   : > { %v1532_v60 = vld [vmem:[#allocation2 + $0x30] sm:$0xff]  ;;  %v1566_v19 = vpop.permute.xlu0 %1565 }
 0x3dd   : > { %v1539_v62 = vpack.c.bf16 %v1518_v58, %v1532_v60  ;;  %v3934_v58 = vld [vmem:[%s5430_s3 + $0x8] sm:$0xf] }
 0x3df   : > { %v4475_v63 = vunpack.c.l.b16 %v1539_v62  ;;  %v4477_v1 = vunpack.c.h.b16 %v1539_v62  ;;  %v1568_v4 = vpop.permute.xlu1 %1567 }
 0x3e0   : > { %v1534_v3 = vld [vmem:[#allocation2 + $0x40] sm:$0xff]  ;;  %v1577_v34 = vsel %vm347_vm4, %v1566_v19, %v1568_v4  ;;  %v1578_v35 = vsel %vm347_vm4, %v1568_v4, %v1570_v16 }
 0x3e1   : > { %v1562_v6 = vpack.c.b16 %v4475_v63, %v4475_v63  ;;  %v4483_v7 = vpack.c.b16 %v4477_v1, %v4477_v1  ;;  %v1540_v8 = vpack.c.bf16 %v1534_v3, %v1534_v3 }
 0x3e3   : > { %1573 = vrot.lane.b32.xlu1 %v4483_v7, %s4070_s11  ;;  %1571 = vrot.lane.b32.xlu0 %v1562_v6, %s4070_s11  ;;  %v1643_v9 = vsel %vm354_vm1, %v1562_v6, 0  ;;  %v4489_v12 = vunpack.c.l.b16 %v1540_v8  ;;  %v1646_v37 = vsel %vm354_vm1, %v4483_v7, 0 }
 0x3e4   : > { %1657 = vmatpush.bf16.msra.mxu1 %v1643_v9  ;;  %v1695_v23 = vpop.permute.xlu0 %1694 }
 0x3e5   : > { %v4493_v15 = vpack.c.b16 %v4489_v12, %v4489_v12  ;;  %v1704_v55 = vsel %vm462_vm3, %v4552_v17, %v1695_v23 }
 0x3e7   : > { %1575 = vrot.lane.b32.xlu2 %v4493_v15, %s4070_s11  ;;  %v4580_v24 = vpop.permute.xlu1 %1767  ;;  %v1649_v38 = vsel %vm354_vm1, %v4493_v15, 0 }
 0x3e8   : > { %1658 = vmatpush.bf16.msra.mxu1 %v4453_v56 }
 0x3eb   : > { %1777 = vrot.lane.b32.xlu1 %v4493_v15, %s4072_s13  ;;  %1702 = vrot.lane.b32.xlu0 %v4493_v15, %s4071_s12 }
 0x3ec   : > { %3931 = vmatmul.msk.bf16.vlgmr.msra.gmra.mxu1 %vm1584_vm12, %v1541_v10 }
 0x3ef   : > { %1769 = vrot.lane.b32.xlu2 %v4459_v57, %s4072_s13 }
 0x3f3   : > { %1844 = vrot.lane.b32.xlu1 %v4459_v57, %s4073_s14  ;;  %1696 = vrot.lane.b32.xlu0 %v4339_v20, %s4071_s12 }
 0x3f7   : > { %1771 = vrot.lane.b32.xlu2 %v4339_v20, %s4072_s13 }
 0x3fb   : > { %1700 = vrot.lane.b32.xlu1 %v4483_v7, %s4071_s12  ;;  %1698 = vrot.lane.b32.xlu0 %v1562_v6, %s4071_s12 }
 0x3ff   : > { %1852 = vrot.lane.b32.xlu2 %v4493_v15, %s4073_s14 }
 0x403   : > { %1773 = vrot.lane.b32.xlu1 %v1562_v6, %s4072_s13  ;;  %1842 = vrot.lane.b32.xlu0 %v4453_v56, %s4073_s14 }
 0x407   : > { %1775 = vrot.lane.b32.xlu2 %v4483_v7, %s4072_s13 }
 0x40b   : > { %1927 = vrot.lane.b32.xlu1 %v4493_v15, %s4074_s15  ;;  %1919 = vrot.lane.b32.xlu0 %v4459_v57, %s4074_s15 }
 0x40f   : > { %1846 = vrot.lane.b32.xlu2 %v4339_v20, %s4073_s14 }
 0x413   : > { %1850 = vrot.lane.b32.xlu1 %v4483_v7, %s4073_s14  ;;  %1848 = vrot.lane.b32.xlu0 %v1562_v6, %s4073_s14 }
 0x417   : > { %1992 = vrot.lane.b32.xlu2 %v4453_v56, %s4075_s16 }
 0x41b   : > { %1921 = vrot.lane.b32.xlu1 %v4339_v20, %s4074_s15  ;;  %1994 = vrot.lane.b32.xlu0 %v4459_v57, %s4075_s16 }
 0x41f   : > { %1923 = vrot.lane.b32.xlu2 %v1562_v6, %s4074_s15 }
 0x423   : > { %1917 = vrot.lane.b32.xlu1 %v4453_v56, %s4074_s15  ;;  %1925 = vrot.lane.b32.xlu0 %v4483_v7, %s4074_s15 }
 0x427   : > { %1998 = vrot.lane.b32.xlu2 %v1562_v6, %s4075_s16 }
 0x42b   : > { %2067 = vrot.lane.b32.xlu1 %v4453_v56, %s4076_s17  ;;  %2000 = vrot.lane.b32.xlu0 %v4483_v7, %s4075_s16 }
 0x42f   : > { %2069 = vrot.lane.b32.xlu2 %v4459_v57, %s4076_s17 }
 0x433   : > { %2073 = vrot.lane.b32.xlu1 %v1562_v6, %s4076_s17  ;;  %2002 = vrot.lane.b32.xlu0 %v4493_v15, %s4075_s16 }
 0x437   : > { %2075 = vrot.lane.b32.xlu2 %v4483_v7, %s4076_s17 }
 0x43b   : > { %2077 = vrot.lane.b32.xlu1 %v4493_v15, %s4076_s17  ;;  %1996 = vrot.lane.b32.xlu0 %v4339_v20, %s4075_s16 }
 0x43f   : > { %2071 = vrot.lane.b32.xlu2 %v4339_v20, %s4076_s17 }
 0x441   : > { %v1576_v18 = vpop.permute.xlu2 %1575 }
 0x442   : > { %v1595_v5 = vsel %vm354_vm1, %v1576_v18, 0 }
 0x443   : > { %2150 = vrot.lane.b32.xlu1 %v4483_v7, %s4077_s18  ;;  %2148 = vrot.lane.b32.xlu0 %v1562_v6, %s4077_s18 }
 0x444   : > { %1629 = vmatpush.bf16.msra.mxu0 %v1595_v5 }
 0x447   : > { %2152 = vrot.lane.b32.xlu2 %v4493_v15, %s4077_s18  ;;  %v3938_v15 = vld [vmem:[%s5430_s3 + $0xc] sm:$0xf] }
 0x448   : > { %1630 = vmatpush.bf16.msra.mxu0 %v1570_v16 }
 0x449   : > { %v4570_v21 = vpop.permute.xlu2 %1769 }
 0x44a   : > { %v1779_v8 = vsel %vm527_vm5, %v4580_v24, %v4570_v21 }
 0x44b   : > { %2144 = vrot.lane.b32.xlu1 %v4459_v57, %s4077_s18  ;;  %2142 = vrot.lane.b32.xlu0 %v4453_v56, %s4077_s18 }
 0x44c   : > { %3930 = vmatmul.msk.bf16.vlgmr.msra.gmra.mxu0 %vm1584_vm12, %v3927_v22 }
 0x44f   : > { %2146 = vrot.lane.b32.xlu2 %v4339_v20, %s4077_s18 }
 0x451   : > { %v1772_v27 = vpop.permute.xlu2 %1771 }
 0x452   : > { %v1780_v6 = vsel %vm527_vm5, %v4570_v21, %v1772_v27 }
 0x453   : > { %2219 = vperm.xlu0 %4057, %v3962_v25  }
 0x455   : > { %v1572_v29 = vpop.permute.xlu0 %1571  ;;  %v1574_v26 = vpop.permute.xlu1 %1573 }
 0x456   : > { %v1579_v30 = vsel %vm347_vm4, %v1572_v29, %v1574_v26  ;;  %v1580_v31 = vsel %vm347_vm4, %v1574_v26, %v1576_v18 }
 0x457   : > { %v1589_v28 = vsel %vm354_vm1, %v1579_v30, 0  ;;  %v1592_v32 = vsel %vm354_vm1, %v1580_v31, 0 }
 0x458   : > { %1603 = vmatpush.bf16.msrb.mxu2 %v1589_v28  ;;  %1616 = vmatpush.bf16.msrb.mxu3 %v1592_v32 }
 0x459   : > { %v4591_v33 = vpop.permute.xlu2 %1852 }
 0x45a   : > { %v1871_v7 = vsel %vm354_vm1, %v4591_v33, 0 }
 0x45c   : > { %1604 = vmatpush.bf16.msrb.mxu2 %v1577_v34  ;;  %1617 = vmatpush.bf16.msrb.mxu3 %v1578_v35 }
 0x45d   : > { %v1703_v39 = vpop.permute.xlu0 %1702  ;;  %v1778_v40 = vpop.permute.xlu1 %1777 }
 0x45e   : > { %v1721_v36 = vsel %vm354_vm1, %v1703_v39, 0  ;;  %v1796_v14 = vsel %vm354_vm1, %v1778_v40, 0 }
 0x45f   : > { %3928 = vmatmul.msk.bf16.vlgmr.msrb.gmra.mxu2 %vm1584_vm12, %v3927_v22  ;;  %3929 = vmatmul.msk.bf16.vlgmr.msrb.gmra.mxu3 %vm1584_vm12, %v3927_v22 }
 0x460   : > { %1670 = vmatpush.bf16.msra.mxu2 %v1646_v37  ;;  %1683 = vmatpush.bf16.msra.mxu3 %v1649_v38 }
 0x461   : > { %v1776_v41 = vpop.permute.xlu2 %1775 }
 0x462   : > { %v1782_v53 = vsel %vm527_vm5, %v1776_v41, %v1778_v40  ;;  %v3946_v40 = vld [vmem:[%s5430_s3 + $0x14] sm:$0xf] }
 0x463   : > { %v1793_v11 = vsel %vm354_vm1, %v1782_v53, 0 }
 0x464   : > { %1671 = vmatpush.bf16.msra.mxu2 %v4459_v57  ;;  %1684 = vmatpush.bf16.msra.mxu3 %v4339_v20 }
 0x465   : > { %v1697_v42 = vpop.permute.xlu0 %1696  ;;  %v1845_v43 = vpop.permute.xlu1 %1844 }
 0x466   : > { %v1705_v13 = vsel %vm462_vm3, %v1695_v23, %v1697_v42 }
 0x468   : > { %1755 = vmatpush.bf16.msrb.mxu2 %v1721_v36 }
 0x469   : > { %v1847_v44 = vpop.permute.xlu2 %1846 }
 0x46a   : > { %v1855_v24 = vsel %vm592_vm6, %v1845_v43, %v1847_v44 }
 0x46c   : > { %1756 = vmatpush.bf16.msrb.mxu2 %v1697_v42 }
 0x46d   : > { %v1699_v45 = vpop.permute.xlu0 %1698  ;;  %v1701_v46 = vpop.permute.xlu1 %1700 }
 0x46e   : > { %v1706_v49 = vsel %vm462_vm3, %v1699_v45, %v1701_v46  ;;  %v1707_v50 = vsel %vm462_vm3, %v1701_v46, %v1703_v39  ;;  %v3950_v46 = vld [vmem:[%s5430_s3 + $0x18] sm:$0xf] }
 0x46f   : > { %3932 = vmatmul.msk.bf16.vlgmr.msra.gmra.mxu2 %vm1584_vm12, %v1541_v10  ;;  %3933 = vmatmul.msk.bf16.vlgmr.msra.gmra.mxu3 %vm1584_vm12, %v1541_v10  ;;  %v1715_v51 = vsel %vm354_vm1, %v1706_v49, 0  ;;  %v1718_v52 = vsel %vm354_vm1, %v1707_v50, 0 }
 0x470   : > { %1729 = vmatpush.bf16.msrb.mxu0 %v1715_v51  ;;  %1742 = vmatpush.bf16.msrb.mxu1 %v1718_v52 }
 0x471   : > { %v4611_v54 = vpop.permute.xlu2 %1992 }
 0x474   : > { %1730 = vmatpush.bf16.msrb.mxu0 %v1704_v55  ;;  %1743 = vmatpush.bf16.msrb.mxu1 %v1705_v13 }
 0x475   : > { %v1843_v59 = vpop.permute.xlu0 %1842  ;;  %v1774_v60 = vpop.permute.xlu1 %1773 }
 0x476   : > { %v1781_v62 = vsel %vm527_vm5, %v1774_v60, %v1776_v41  ;;  %v1854_v23 = vsel %vm592_vm6, %v1843_v59, %v1845_v43 }
 0x477   : > { %v1790_v3 = vsel %vm354_vm1, %v1781_v62, 0  ;;  %3935 = vmatmul.msk.bf16.vlgmr.msrb.gmra.mxu0 %vm1584_vm12, %v3934_v58  ;;  %3936 = vmatmul.msk.bf16.vlgmr.msrb.gmra.mxu1 %vm1584_vm12, %v3934_v58 }
 0x478   : > { %1817 = vmatpush.bf16.msra.mxu0 %v1793_v11  ;;  %1830 = vmatpush.bf16.msra.mxu1 %v1796_v14 }
 0x479   : > { %1804 = vmatpush.bf16.msrb.mxu3 %v1790_v3  ;;  %v1924_v9 = vpop.permute.xlu2 %1923 }
 0x47c   : > { %1818 = vmatpush.bf16.msra.mxu0 %v1780_v6  ;;  %1831 = vmatpush.bf16.msra.mxu1 %v1772_v27  ;;  %v3942_v27 = vld [vmem:[%s5430_s3 + $0x10] sm:$0xf] }
 0x47d   : > { %1805 = vmatpush.bf16.msrb.mxu3 %v1779_v8  ;;  %v1920_v16 = vpop.permute.xlu0 %1919  ;;  %v1928_v17 = vpop.permute.xlu1 %1927 }
 0x47e   : > { %v1946_v25 = vsel %vm354_vm1, %v1928_v17, 0 }
 0x47f   : > { %3937 = vmatmul.msk.bf16.vlgmr.msrb.gmra.mxu2 %vm1584_vm12, %v3934_v58  ;;  %v3954_v58 = vld [vmem:[%s5430_s3 + $0x1c] sm:$0xf] }
 0x480   : > { %1905 = vmatpush.bf16.msrb.mxu0 %v1871_v7  ;;  %3939 = vmatmul.msk.bf16.vlgmr.msrb.gmra.mxu3 %vm1584_vm12, %v3938_v15 }
 0x481   : > { %v1999_v4 = vpop.permute.xlu2 %1998 }
 0x484   : > { %1906 = vmatpush.bf16.msrb.mxu0 %v1847_v44 }
 0x485   : > { %v1849_v18 = vpop.permute.xlu0 %1848  ;;  %v1851_v19 = vpop.permute.xlu1 %1850 }
 0x486   : > { %v1856_v5 = vsel %vm592_vm6, %v1849_v18, %v1851_v19  ;;  %v1857_v10 = vsel %vm592_vm6, %v1851_v19, %v4591_v33 }
 0x487   : > { %3940 = vmatmul.msk.bf16.vlgmr.msra.gmra.mxu0 %vm1584_vm12, %v3938_v15  ;;  %3941 = vmatmul.msk.bf16.vlgmr.msra.gmra.mxu1 %vm1584_vm12, %v3938_v15  ;;  %v1865_v21 = vsel %vm354_vm1, %v1856_v5, 0  ;;  %v1868_v22 = vsel %vm354_vm1, %v1857_v10, 0 }
 0x488   : > { %1879 = vmatpush.bf16.msra.mxu2 %v1865_v21  ;;  %1892 = vmatpush.bf16.msra.mxu3 %v1868_v22 }
 0x489   : > { %v2070_v30 = vpop.permute.xlu2 %2069 }
 0x48c   : > { %1880 = vmatpush.bf16.msra.mxu2 %v1854_v23  ;;  %1893 = vmatpush.bf16.msra.mxu3 %v1855_v24  ;;  %v3958_v23 = vld [vmem:[%s5430_s3 + $0x20] sm:$0xf]  ;;  %v1660_v24 = vpop.f32.mrf.mxu1 }
 0x48d   : > { %v1995_v29 = vpop.permute.xlu0 %1994  ;;  %v1922_v26 = vpop.permute.xlu1 %1921 }
 0x48e   : > { %v1930_v39 = vsel %vm657_vm7, %v1920_v16, %v1922_v26  ;;  %v2004_v44 = vsel %vm722_vm8, %v4611_v54, %v1995_v29 }
 0x48f   : > { %3943 = vmatmul.msk.bf16.vlgmr.msra.gmra.mxu2 %vm1584_vm12, %v3942_v27 }
 0x490   : > { %1980 = vmatpush.bf16.msrb.mxu3 %v1946_v25 }
 0x491   : > { %3944 = vmatmul.msk.bf16.vlgmr.msra.gmra.mxu3 %vm1584_vm12, %v3942_v27  ;;  %v2076_v37 = vpop.permute.xlu2 %2075 }
 0x494   : > { %1981 = vmatpush.bf16.msrb.mxu3 %v1922_v26 }
 0x495   : > { %v1926_v31 = vpop.permute.xlu0 %1925  ;;  %v1918_v28 = vpop.permute.xlu1 %1917 }
 0x496   : > { %v1931_v32 = vsel %vm657_vm7, %v1924_v9, %v1926_v31  ;;  %v1932_v33 = vsel %vm657_vm7, %v1926_v31, %v1928_v17  ;;  %v1929_v38 = vsel %vm657_vm7, %v1918_v28, %v1920_v16 }
 0x497   : > { %3945 = vmatmul.msk.bf16.vlgmr.msrb.gmra.mxu0 %vm1584_vm12, %v3942_v27  ;;  %v1940_v34 = vsel %vm354_vm1, %v1931_v32, 0  ;;  %v1943_v35 = vsel %vm354_vm1, %v1932_v33, 0  ;;  %v1662_v27 = vpop.f32.mrf.mxu1 }
 0x498   : > { %1954 = vmatpush.bf16.msrb.mxu1 %v1940_v34  ;;  %1967 = vmatpush.bf16.msrb.mxu2 %v1943_v35 }
 0x499   : > { %v2072_v45 = vpop.permute.xlu2 %2071 }
 0x49a   : > { %v2080_v7 = vsel %vm787_vm9, %v2070_v30, %v2072_v45 }
 0x49c   : > { %1955 = vmatpush.bf16.msrb.mxu1 %v1929_v38  ;;  %1968 = vmatpush.bf16.msrb.mxu2 %v1930_v39 }
 0x49d   : > { %v2001_v36 = vpop.permute.xlu0 %2000  ;;  %v2068_v41 = vpop.permute.xlu1 %2067 }
 0x49e   : > { %v2006_v42 = vsel %vm722_vm8, %v1999_v4, %v2001_v36  ;;  %v2079_v54 = vsel %vm787_vm9, %v2068_v41, %v2070_v30 }
 0x49f   : > { %3947 = vmatmul.msk.bf16.vlgmr.msrb.gmra.mxu1 %vm1584_vm12, %v3946_v40  ;;  %3948 = vmatmul.msk.bf16.vlgmr.msrb.gmra.mxu2 %vm1584_vm12, %v3946_v40  ;;  %v2015_v43 = vsel %vm354_vm1, %v2006_v42, 0 }
 0x4a0   : > { %2029 = vmatpush.bf16.msra.mxu0 %v2015_v43 }
 0x4a1   : > { %3949 = vmatmul.msk.bf16.vlgmr.msrb.gmra.mxu3 %vm1584_vm12, %v3946_v40  ;;  %v2153_v59 = vpop.permute.xlu2 %2152 }
 0x4a2   : > { %v2171_v8 = vsel %vm354_vm1, %v2153_v59, 0 }
 0x4a4   : > { %2030 = vmatpush.bf16.msra.mxu0 %v2004_v44 }
 0x4a5   : > { %v2003_v49 = vpop.permute.xlu0 %2002  ;;  %v2074_v50 = vpop.permute.xlu1 %2073 }
 0x4a6   : > { %v2007_v51 = vsel %vm722_vm8, %v2001_v36, %v2003_v49  ;;  %v2021_v52 = vsel %vm354_vm1, %v2003_v49, 0  ;;  %v2081_v53 = vsel %vm787_vm9, %v2074_v50, %v2076_v37 }
 0x4a7   : > { %v2018_v55 = vsel %vm354_vm1, %v2007_v51, 0  ;;  %v2090_v13 = vsel %vm354_vm1, %v2081_v53, 0  ;;  %3951 = vmatmul.msk.bf16.vlgmr.msra.gmra.mxu0 %vm1584_vm12, %v3950_v46  ;;  %2055 = vmatpush.bf16.msra.mxu2 %v2021_v52 }
 0x4a8   : > { %2042 = vmatpush.bf16.msra.mxu1 %v2018_v55  ;;  %2104 = vmatpush.bf16.msra.mxu3 %v2090_v13 }
 0x4a9   : > { %v2147_v4 = vpop.permute.xlu2 %2146 }
 0x4ac   : > { %2105 = vmatpush.bf16.msra.mxu3 %v2079_v54 }
 0x4ad   : > { %v1997_v11 = vpop.permute.xlu0 %1996  ;;  %v2078_v14 = vpop.permute.xlu1 %2077 }
 0x4ae   : > { %v2082_v60 = vsel %vm787_vm9, %v2076_v37, %v2078_v14  ;;  %v2096_v62 = vsel %vm354_vm1, %v2078_v14, 0  ;;  %2056 = vmatpush.bf16.msra.mxu2 %v1997_v11  ;;  %v2005_v3 = vsel %vm722_vm8, %v1995_v29, %v1997_v11 }
 0x4af   : > { %v2093_v6 = vsel %vm354_vm1, %v2082_v60, 0  ;;  %2043 = vmatpush.bf16.msra.mxu1 %v2005_v3 }
 0x4b0   : > { %2117 = vmatpush.bf16.msrb.mxu0 %v2093_v6 }
 0x4b1   : > { %3955 = vmatmul.msk.bf16.vlgmr.msra.gmra.mxu3 %vm1584_vm12, %v3954_v58  ;;  %3953 = vmatmul.msk.bf16.vlgmr.msra.gmra.mxu2 %vm1584_vm12, %v3950_v46 }
 0x4b2   : > { %3952 = vmatmul.msk.bf16.vlgmr.msra.gmra.mxu1 %vm1584_vm12, %v3950_v46 }
 0x4b3   : > { %2130 = vmatpush.bf16.msrb.mxu1 %v2096_v62 }
 0x4b4   : > { %2118 = vmatpush.bf16.msrb.mxu0 %v2080_v7 }
 0x4b5   : > { %v2149_v9 = vpop.permute.xlu0 %2148  ;;  %v2151_v15 = vpop.permute.xlu1 %2150 }
 0x4b6   : > { %v2156_v16 = vsel %vm852_vm10, %v2149_v9, %v2151_v15  ;;  %v2157_v17 = vsel %vm852_vm10, %v2151_v15, %v2153_v59 }
 0x4b7   : > { %2131 = vmatpush.bf16.msrb.mxu1 %v2072_v45  ;;  %v2165_v18 = vsel %vm354_vm1, %v2156_v16, 0  ;;  %v2168_v19 = vsel %vm354_vm1, %v2157_v17, 0  ;;  %3956 = vmatmul.msk.bf16.vlgmr.msrb.gmra.mxu0 %vm1584_vm12, %v3954_v58 }
 0x4b8   : > { %2205 = vmatpush.bf16.msra.mxu0 %v2171_v8  ;;  %2179 = vmatpush.bf16.msrb.mxu2 %v2165_v18 }
 0x4b9   : > { %2192 = vmatpush.bf16.msrb.mxu3 %v2168_v19 }
 0x4bc   : > { %2206 = vmatpush.bf16.msra.mxu0 %v2147_v4 }
 0x4bd   : > { %v2143_v5 = vpop.permute.xlu0 %2142  ;;  %v2145_v10 = vpop.permute.xlu1 %2144 }
 0x4be   : > { %v2154_v21 = vsel %vm852_vm10, %v2143_v5, %v2145_v10  ;;  %v2155_v22 = vsel %vm852_vm10, %v2145_v10, %v2147_v4 }
 0x4bf   : > { %2180 = vmatpush.bf16.msrb.mxu2 %v2154_v21  ;;  %2193 = vmatpush.bf16.msrb.mxu3 %v2155_v22 }
 0x4c2   : > { %3957 = vmatmul.msk.bf16.vlgmr.msrb.gmra.mxu1 %vm1584_vm12, %v3954_v58  ;;  %3959 = vmatmul.msk.bf16.vlgmr.msrb.gmra.mxu2 %vm1584_vm12, %v3958_v23 }
 0x4c3   : > { %3960 = vmatmul.msk.bf16.vlgmr.msrb.gmra.mxu3 %vm1584_vm12, %v3958_v23 }
 0x4c7   : > { %3961 = vmatmul.msk.bf16.vlgmr.msra.gmra.mxu0 %vm1584_vm12, %v3958_v23 }
 0x4c9   : > { %v1632_v25 = vpop.f32.mrf.mxu0 }
 0x4d1   : > { %v1634_v29 = vpop.f32.mrf.mxu0 }
 0x4e2   : > { %v1606_v26 = vpop.f32.mrf.mxu2  ;;  %v1619_v30 = vpop.f32.mrf.mxu3 }
 0x4e3   : > { %v1661_v31 = vadd.f32 %v1660_v24, %v1606_v26 }
 0x4ea   : > { %v1608_v28 = vpop.f32.mrf.mxu2  ;;  %v1621_v32 = vpop.f32.mrf.mxu3 }
 0x4f2   : > { %v1673_v33 = vpop.f32.mrf.mxu2  ;;  %v1686_v34 = vpop.f32.mrf.mxu3 }
 0x4f3   : > { %v1674_v35 = vadd.f32 %v1673_v33, %v1619_v30  ;;  %v1687_v37 = vadd.f32 %v1686_v34, %v1632_v25 }
 0x4f4   : > { %v1732_v38 = vpop.f32.mrf.mxu0  ;;  %v1745_v39 = vpop.f32.mrf.mxu1 }
 0x4f5   : > { %v1762_v40 = vadd.f32 %v1732_v38, %v1661_v31  ;;  %v1763_v36 = vadd.f32 %v1745_v39, %v1674_v35 }
 0x4fa   : > { %v1675_v41 = vpop.f32.mrf.mxu2  ;;  %v1688_v42 = vpop.f32.mrf.mxu3 }
 0x4fc   : > { %v1734_v43 = vpop.f32.mrf.mxu0  ;;  %v1747_v44 = vpop.f32.mrf.mxu1 }
 0x502   : > { %v1758_v45 = vpop.f32.mrf.mxu2 }
 0x503   : > { %v1807_v46 = vpop.f32.mrf.mxu3  ;;  %v1764_v4 = vadd.f32 %v1758_v45, %v1687_v37 }
 0x504   : > { %v1820_v49 = vpop.f32.mrf.mxu0  ;;  %v1833_v50 = vpop.f32.mrf.mxu1  ;;  %v1837_v22 = vadd.f32 %v1807_v46, %v1762_v40 }
 0x505   : > { %v1839_v10 = vadd.f32 %v1833_v50, %v1764_v4  ;;  %v1838_v25 = vadd.f32 %v1820_v49, %v1763_v36  ;;  %v2220_v40 = vpop.permute.xlu0 %2219 }
 0x50a   : > { %v1760_v51 = vpop.f32.mrf.mxu2 }
 0x50b   : > { %v1809_v52 = vpop.f32.mrf.mxu3 }
 0x50c   : > { %v1822_v53 = vpop.f32.mrf.mxu0  ;;  %v1835_v55 = vpop.f32.mrf.mxu1 }
 0x512   : > { %v1882_v13 = vpop.f32.mrf.mxu2 }
 0x513   : > { %v1912_v29 = vadd.f32 %v1882_v13, %v1837_v22 }
 0x514   : > { %v1895_v54 = vpop.f32.mrf.mxu3  ;;  %v1908_v11 = vpop.f32.mrf.mxu0 }
 0x515   : > { %v1914_v27 = vadd.f32 %v1908_v11, %v1839_v10  ;;  %v1913_v26 = vadd.f32 %v1895_v54, %v1838_v25 }
 0x51a   : > { %v1884_v14 = vpop.f32.mrf.mxu2 }
 0x51c   : > { %v1897_v58 = vpop.f32.mrf.mxu3  ;;  %v1910_v59 = vpop.f32.mrf.mxu0 }
 0x51d   : > { %v1957_v60 = vpop.f32.mrf.mxu1 }
 0x51e   : > { %v1987_v28 = vadd.f32 %v1957_v60, %v1912_v29  ;;  %v4823_v29 = vld [vmem:[%s5431_s4] sm:$0xf] }
 0x522   : > { %v1970_v62 = vpop.f32.mrf.mxu2 }
 0x523   : > { %v1988_v32 = vadd.f32 %v1970_v62, %v1913_v26 }
 0x524   : > { %v1983_v3 = vpop.f32.mrf.mxu3  ;;  %v2032_v6 = vpop.f32.mrf.mxu0 }
 0x525   : > { %v1959_v7 = vpop.f32.mrf.mxu1  ;;  %v1989_v30 = vadd.f32 %v1983_v3, %v1914_v27  ;;  %v2062_v34 = vadd.f32 %v2032_v6, %v1987_v28 }
 0x52a   : > { %v1972_v8 = vpop.f32.mrf.mxu2 }
 0x52c   : > { %v1985_v9 = vpop.f32.mrf.mxu3  ;;  %v2034_v15 = vpop.f32.mrf.mxu0 }
 0x52f   : > { %v2045_v16 = vpop.f32.mrf.mxu1 }
 0x530   : > { %v2063_v35 = vadd.f32 %v2045_v16, %v1988_v32 }
 0x534   : > { %v2107_v17 = vpop.f32.mrf.mxu3  ;;  %v2058_v18 = vpop.f32.mrf.mxu2 }
 0x535   : > { %v2120_v19 = vpop.f32.mrf.mxu0  ;;  %v2064_v33 = vadd.f32 %v2058_v18, %v1989_v30  ;;  %v2137_v39 = vadd.f32 %v2107_v17, %v2062_v34  ;;  %v3963_v30 = vld [vmem:[%s5431_s4 + $0x4] sm:$0xf] }
 0x536   : > { %v2138_v41 = vadd.f32 %v2120_v19, %v2063_v35  ;;  %v3998_v35 = vld [vmem:[%s5433_s6 + $0x18] sm:$0xff] }
 0x537   : > { %v2047_v5 = vpop.f32.mrf.mxu1 }
 0x53c   : > { %v2109_v21 = vpop.f32.mrf.mxu3  ;;  %v2060_v23 = vpop.f32.mrf.mxu2 }
 0x53d   : > { %v2122_v24 = vpop.f32.mrf.mxu0 }
 0x53f   : > { %v2133_v31 = vpop.f32.mrf.mxu1 }
 0x540   : > { %v2139_v38 = vadd.f32 %v2133_v31, %v2064_v33 }
 0x545   : > { %v2208_v37 = vpop.f32.mrf.mxu0  ;;  %v2182_v43 = vpop.f32.mrf.mxu2 }
 0x546   : > { %v2214_v42 = vadd.f32 %v2208_v37, %v2139_v38  ;;  %v2212_v44 = vadd.f32 %v2182_v43, %v2137_v39  ;;  %v2195_v45 = vpop.f32.mrf.mxu3 }
 0x547   : > { %v2213_v46 = vadd.f32 %v2195_v45, %v2138_v41  ;;  %v2135_v49 = vpop.f32.mrf.mxu1 }
 0x548   : > { %v2224_v36 = vadd.f32 %v2220_v40, %v2214_v42  ;;  %v2222_v50 = vadd.f32 %v2220_v40, %v2212_v44 }
 0x549   : > { %v2223_v52 = vadd.f32 %v2220_v40, %v2213_v46 }
 0x54a   : > { %vm2227_vm13 = vcmp.gt.f32.partialorder %v2224_v36, 0.0  ;;  %v2230_v51 = vmul.f32 0.01, %v2224_v36  ;;  %vm2225_vm11 = vcmp.gt.f32.partialorder %v2222_v50, 0.0  ;;  %v2228_v53 = vmul.f32 0.01, %v2222_v50 }
 0x54b   : > { %vm2226_vm12 = vcmp.gt.f32.partialorder %v2223_v52, 0.0  ;;  %v2229_v55 = vmul.f32 0.01, %v2223_v52 }
 0x54c   : > { %v2233_v13 = vsel %vm2227_vm13, %v2224_v36, %v2230_v51  ;;  %v2231_v11 = vsel %vm2225_vm11, %v2222_v50, %v2228_v53  ;;  %vm2325_vm13 = vcmask 261120  }
 0x54d   : > { %v2236_v54 = vmul.f32 %v2233_v13, %v4302_v61  ;;  %v2210_v14 = vpop.f32.mrf.mxu0  ;;  %v2184_v58 = vpop.f32.mrf.mxu2  ;;  %v2234_v59 = vmul.f32 %v2231_v11, %v4296_v48  ;;  %v2232_v60 = vsel %vm2226_vm12, %v2223_v52, %v2229_v55  ;;  %v3970_v11 = vld [vmem:[%s5431_s4 + $0x8] sm:$0xf] }
 0x54e   : > { %v2235_v62 = vmul.f32 %v2232_v60, %v4294_v47  ;;  %v2197_v3 = vpop.f32.mrf.mxu3 }
 0x54f   : > { %2244 = vrot.lane.b32.xlu0 %v2236_v54, %s4079_s19  ;;  %2240 = vrot.lane.b32.xlu1 %v2234_v59, %s4079_s19 }
 0x550   : > { %2242 = vrot.lane.b32.xlu2 %v2235_v62, %s4079_s19 }
 0x557   : > { %2305 = vrot.lane.b32.xlu0 %v4459_v57, %s4070_s11  ;;  %2307 = vrot.lane.b32.xlu1 %v4339_v20, %s4070_s11 }
 0x558   : > { %2491 = vrot.lane.b32.xlu2 %v4339_v20, %s4072_s13 }
 0x55f   : > { %2303 = vrot.lane.b32.xlu0 %v4453_v56, %s4070_s11  ;;  %2420 = vrot.lane.b32.xlu1 %v4459_v57, %s4071_s12 }
 0x567   : > { %2418 = vrot.lane.b32.xlu0 %v4453_v56, %s4071_s12 }
 0x56f   : > { %2487 = vrot.lane.b32.xlu0 %v4453_v56, %s4072_s13 }
 0x577   : > { %2422 = vrot.lane.b32.xlu0 %v4339_v20, %s4071_s12 }
 0x57f   : > { %2558 = vrot.lane.b32.xlu0 %v4459_v57, %s4073_s14 }
 0x5aa   : > { %v2243_v6 = vpop.permute.xlu2 %2242 }
 0x5b2   : > { %v4810_v24 = vpop.permute.xlu2 %2491 }
 0x5c1   : > { %v2245_v7 = vpop.permute.xlu0 %2244  ;;  %v2241_v9 = vpop.permute.xlu1 %2240 }
 0x5c2   : > { %v2247_v8 = vsel %vm315_vm14, %v2243_v6, %v2245_v7  ;;  %v2246_v15 = vsel %vm315_vm14, %v2241_v9, %v2243_v6  ;;  %2251 = vst.msk [vmem:[#allocation2 + $0x48] sm:$0xff] %vm951_vm0, %v2241_v9 }
 0x5c3   : > { %2253 = vst.msk [vmem:[#allocation2 + $0x58] sm:$0xff] %vm954_vm2, %v2247_v8  ;;  %v3974_v8 = vld [vmem:[%s5431_s4 + $0xc] sm:$0xf] }
 0x5c9   : > { %v2263_v18 = vld [vmem:[#allocation2 + $0x48] sm:$0xff]  ;;  %v2308_v26 = vpop.permute.xlu1 %2307 }
 0x5ca   : > { %v2265_v16 = vld [vmem:[#allocation2 + $0x58] sm:$0xff]  ;;  %v2272_v19 = vpack.c.bf16 %v2246_v15, %v2263_v18 }
 0x5cb   : > { %v2273_v17 = vpack.c.bf16 %v2265_v16, %v2265_v16 }
 0x5cc   : > { %v2294_v5 = vunpack.c.l.b16 %v2272_v19  ;;  %v2295_v10 = vunpack.c.h.b16 %v2272_v19 }
 0x5cd   : > { %v2296_v4 = vunpack.c.l.b16 %v2273_v17 }
 0x5ce   : > { %v4737_v22 = vpack.c.b16 %v2294_v5, %v4475_v63  ;;  %v4740_v23 = vpack.c.b16 %v2295_v10, %v4477_v1  ;;  %v2306_v63 = vpop.permute.xlu0 %2305 }
 0x5cf   : > { %v4734_v21 = vpack.c.b16 %v2296_v4, %v4489_v12  ;;  %v2316_v40 = vsel %vm347_vm4, %v2306_v63, %v2308_v26 }
 0x5d0   : > { %2311 = vrot.lane.b32.xlu1 %v4740_v23, %s4070_s11  ;;  %2383 = vmatpush.bf16.msrb.mxu0 %v4737_v22 }
 0x5d1   : > { %2313 = vrot.lane.b32.xlu2 %v4734_v21, %s4070_s11  ;;  %2495 = vrot.lane.b32.xlu0 %v4740_v23, %s4072_s13  ;;  %v2421_v33 = vpop.permute.xlu1 %2420 }
 0x5d4   : > { %2384 = vmatpush.bf16.msrb.mxu0 %v4453_v56 }
 0x5d6   : > { %v2304_v1 = vpop.permute.xlu0 %2303 }
 0x5d7   : > { %3967 = vmatmul.msk.bf16.vlgmr.msrb.gmra.mxu0 %vm2325_vm13, %v4823_v29  ;;  %v2315_v43 = vsel %vm347_vm4, %v2304_v1, %v2306_v63  ;;  %v3978_v1 = vld [vmem:[%s5431_s4 + $0x10] sm:$0xf] }
 0x5d8   : > { %2489 = vrot.lane.b32.xlu1 %v4459_v57, %s4072_s13 }
 0x5d9   : > { %2309 = vrot.lane.b32.xlu2 %v4737_v22, %s4070_s11  ;;  %2556 = vrot.lane.b32.xlu0 %v4453_v56, %s4073_s14 }
 0x5de   : > { %v4804_v12 = vpop.permute.xlu0 %2418 }
 0x5df   : > { %v2430_v54 = vsel %vm462_vm3, %v4804_v12, %v2421_v33 }
 0x5e0   : > { %2424 = vrot.lane.b32.xlu1 %v4737_v22, %s4071_s12 }
 0x5e1   : > { %2426 = vrot.lane.b32.xlu2 %v4740_v23, %s4071_s12  ;;  %2694 = vrot.lane.b32.xlu0 %v4453_v56, %s4075_s16 }
 0x5e6   : > { %v2488_v25 = vpop.permute.xlu0 %2487 }
 0x5e8   : > { %2560 = vrot.lane.b32.xlu1 %v4339_v20, %s4073_s14 }
 0x5e9   : > { %2493 = vrot.lane.b32.xlu2 %v4737_v22, %s4072_s13  ;;  %2625 = vrot.lane.b32.xlu0 %v4453_v56, %s4074_s15 }
 0x5ee   : > { %v2423_v31 = vpop.permute.xlu0 %2422 }
 0x5ef   : > { %v2431_v13 = vsel %vm462_vm3, %v2421_v33, %v2423_v31  ;;  %v3982_v33 = vld [vmem:[%s5431_s4 + $0x14] sm:$0xf] }
 0x5f0   : > { %2497 = vrot.lane.b32.xlu1 %v4734_v21, %s4072_s13 }
 0x5f1   : > { %2629 = vrot.lane.b32.xlu2 %v4339_v20, %s4074_s15  ;;  %2635 = vrot.lane.b32.xlu0 %v4734_v21, %s4074_s15 }
 0x5f6   : > { %v4841_v34 = vpop.permute.xlu0 %2558 }
 0x5f8   : > { %2696 = vrot.lane.b32.xlu1 %v4459_v57, %s4075_s16 }
 0x5f9   : > { %2428 = vrot.lane.b32.xlu2 %v4734_v21, %s4071_s12  ;;  %2763 = vrot.lane.b32.xlu0 %v4453_v56, %s4076_s17 }
 0x600   : > { %2564 = vrot.lane.b32.xlu1 %v4740_v23, %s4073_s14 }
 0x601   : > { %2566 = vrot.lane.b32.xlu2 %v4734_v21, %s4073_s14  ;;  %2771 = vrot.lane.b32.xlu0 %v4740_v23, %s4076_s17 }
 0x608   : > { %2627 = vrot.lane.b32.xlu1 %v4459_v57, %s4074_s15 }
 0x609   : > { %2562 = vrot.lane.b32.xlu2 %v4737_v22, %s4073_s14  ;;  %2698 = vrot.lane.b32.xlu0 %v4339_v20, %s4075_s16 }
 0x610   : > { %2700 = vrot.lane.b32.xlu1 %v4737_v22, %s4075_s16 }
 0x611   : > { %2702 = vrot.lane.b32.xlu2 %v4740_v23, %s4075_s16  ;;  %2834 = vrot.lane.b32.xlu0 %v4459_v57, %s4077_s18 }
 0x618   : > { %2631 = vrot.lane.b32.xlu1 %v4737_v22, %s4074_s15 }
 0x619   : > { %2633 = vrot.lane.b32.xlu2 %v4740_v23, %s4074_s15  ;;  %2832 = vrot.lane.b32.xlu0 %v4453_v56, %s4077_s18 }
 0x620   : > { %2773 = vrot.lane.b32.xlu1 %v4734_v21, %s4076_s17 }
 0x621   : > { %2769 = vrot.lane.b32.xlu2 %v4737_v22, %s4076_s17  ;;  %3004 = vrot.lane.b32.xlu0 %v4339_v20, %s4070_s11 }
 0x628   : > { %2765 = vrot.lane.b32.xlu1 %v4459_v57, %s4076_s17 }
 0x629   : > { %2704 = vrot.lane.b32.xlu2 %v4734_v21, %s4075_s16  ;;  %3002 = vrot.lane.b32.xlu0 %v4459_v57, %s4070_s11 }
 0x62b   : > { %v2314_v27 = vpop.permute.xlu2 %2313 }
 0x62c   : > { %2361 = vmatpush.bf16.msra.mxu3 %v2314_v27 }
 0x630   : > { %2362 = vmatpush.bf16.msra.mxu3 %v2308_v26  ;;  %2840 = vrot.lane.b32.xlu1 %v4740_v23, %s4077_s18 }
 0x631   : > { %2767 = vrot.lane.b32.xlu2 %v4339_v20, %s4076_s17  ;;  %3010 = vrot.lane.b32.xlu0 %v4734_v21, %s4070_s11 }
 0x633   : > { %v2310_v28 = vpop.permute.xlu2 %2309  ;;  %3966 = vmatmul.msk.bf16.vlgmr.msra.gmra.mxu3 %vm2325_vm13, %v3963_v30 }
 0x638   : > { %2836 = vrot.lane.b32.xlu1 %v4339_v20, %s4077_s18 }
 0x639   : > { %2842 = vrot.lane.b32.xlu2 %v4734_v21, %s4077_s18 }
 0x63b   : > { %v2427_v32 = vpop.permute.xlu2 %2426 }
 0x640   : > { %2903 = vperm.xlu1 %4059, %v3998_v35  }
 0x641   : > { %2838 = vrot.lane.b32.xlu2 %v4737_v22, %s4077_s18 }
 0x642   : > { %v2312_v39 = vpop.permute.xlu1 %2311 }
 0x643   : > { %v2494_v38 = vpop.permute.xlu2 %2493  ;;  %v2317_v37 = vsel %vm347_vm4, %v2310_v28, %v2312_v39  ;;  %v2318_v41 = vsel %vm347_vm4, %v2312_v39, %v2314_v27  ;;  %v2496_v42 = vpop.permute.xlu0 %2495 }
 0x644   : > { %2335 = vmatpush.bf16.msra.mxu1 %v2317_v37  ;;  %2348 = vmatpush.bf16.msra.mxu2 %v2318_v41  ;;  %v2501_v46 = vsel %vm527_vm5, %v2494_v38, %v2496_v42 }
 0x648   : > { %3000 = vrot.lane.b32.xlu1 %v4453_v56, %s4070_s11  ;;  %2336 = vmatpush.bf16.msra.mxu1 %v2315_v43 }
 0x649   : > { %3006 = vrot.lane.b32.xlu2 %v4737_v22, %s4070_s11  ;;  %2349 = vmatpush.bf16.msra.mxu2 %v2316_v40 }
 0x64a   : > { %v2490_v45 = vpop.permute.xlu1 %2489 }
 0x64b   : > { %v4856_v44 = vpop.permute.xlu2 %2629  ;;  %v2557_v36 = vpop.permute.xlu0 %2556  ;;  %3964 = vmatmul.msk.bf16.vlgmr.msra.gmra.mxu1 %vm2325_vm13, %v3963_v30  ;;  %v2499_v52 = vsel %vm527_vm5, %v2488_v25, %v2490_v45  ;;  %v2500_v7 = vsel %vm527_vm5, %v2490_v45, %v4810_v24 }
 0x64c   : > { %2396 = vmatpush.bf16.msrb.mxu1 %v4740_v23  ;;  %3965 = vmatmul.msk.bf16.vlgmr.msra.gmra.mxu2 %vm2325_vm13, %v3963_v30  ;;  %v2568_v5 = vsel %vm592_vm6, %v2557_v36, %v4841_v34 }
 0x64d   : > { %2409 = vmatpush.bf16.msrb.mxu2 %v4734_v21 }
 0x650   : > { %2397 = vmatpush.bf16.msrb.mxu1 %v4459_v57  ;;  %3008 = vrot.lane.b32.xlu1 %v4740_v23, %s4070_s11 }
 0x651   : > { %2410 = vmatpush.bf16.msrb.mxu2 %v4339_v20  ;;  %3149 = vrot.lane.b32.xlu2 %v4740_v23, %s4071_s12 }
 0x652   : > { %v2425_v51 = vpop.permute.xlu1 %2424 }
 0x653   : > { %v2429_v49 = vpop.permute.xlu2 %2428  ;;  %v2432_v53 = vsel %vm462_vm3, %v2425_v51, %v2427_v32  ;;  %v4872_v55 = vpop.permute.xlu0 %2694 }
 0x654   : > { %v2433_v50 = vsel %vm462_vm3, %v2427_v32, %v2429_v49  ;;  %2475 = vmatpush.bf16.msra.mxu1 %v2429_v49  ;;  %2449 = vmatpush.bf16.msrb.mxu3 %v2432_v53 }
 0x655   : > { %2518 = vmatpush.bf16.msra.mxu2 %v2501_v46  ;;  %2462 = vmatpush.bf16.msra.mxu0 %v2433_v50  ;;  %v3990_v50 = vld [vmem:[%s5431_s4 + $0x1c] sm:$0xf] }
 0x658   : > { %2476 = vmatpush.bf16.msra.mxu1 %v2423_v31  ;;  %3147 = vrot.lane.b32.xlu1 %v4737_v22, %s4071_s12 }
 0x659   : > { %2519 = vmatpush.bf16.msra.mxu2 %v2499_v52  ;;  %3151 = vrot.lane.b32.xlu2 %v4734_v21, %s4071_s12 }
 0x65a   : > { %2463 = vmatpush.bf16.msra.mxu0 %v2431_v13  ;;  %2450 = vmatpush.bf16.msrb.mxu3 %v2430_v54  ;;  %v2561_v58 = vpop.permute.xlu1 %2560 }
 0x65b   : > { %v2567_v14 = vpop.permute.xlu2 %2566  ;;  %3968 = vmatmul.msk.bf16.vlgmr.msrb.gmra.mxu1 %vm2325_vm13, %v4823_v29  ;;  %v4890_v59 = vpop.permute.xlu0 %2625  ;;  %v2569_v10 = vsel %vm592_vm6, %v4841_v34, %v2561_v58  ;;  %v3986_v34 = vld [vmem:[%s5431_s4 + $0x18] sm:$0xf] }
 0x65c   : > { %3969 = vmatmul.msk.bf16.vlgmr.msrb.gmra.mxu2 %vm2325_vm13, %v4823_v29 }
 0x65d   : > { %3972 = vmatmul.msk.bf16.vlgmr.msra.gmra.mxu0 %vm2325_vm13, %v3970_v11  ;;  %3971 = vmatmul.msk.bf16.vlgmr.msrb.gmra.mxu3 %vm2325_vm13, %v3970_v11 }
 0x662   : > { %v2498_v62 = vpop.permute.xlu1 %2497 }
 0x663   : > { %v2563_v60 = vpop.permute.xlu2 %2562  ;;  %v2502_v3 = vsel %vm527_vm5, %v2496_v42, %v2498_v62  ;;  %2544 = vmatpush.bf16.msrb.mxu0 %v2498_v62  ;;  %v2636_v6 = vpop.permute.xlu0 %2635 }
 0x664   : > { %2531 = vmatpush.bf16.msra.mxu3 %v2502_v3 }
 0x667   : > { %2545 = vmatpush.bf16.msrb.mxu0 %v4810_v24 }
 0x668   : > { %2532 = vmatpush.bf16.msra.mxu3 %v2500_v7 }
 0x66a   : > { %v2697_v15 = vpop.permute.xlu1 %2696 }
 0x66b   : > { %v2703_v9 = vpop.permute.xlu2 %2702  ;;  %3973 = vmatmul.msk.bf16.vlgmr.msra.gmra.mxu1 %vm2325_vm13, %v3970_v11  ;;  %v2764_v16 = vpop.permute.xlu0 %2763  ;;  %v2706_v32 = vsel %vm722_vm8, %v4872_v55, %v2697_v15  ;;  %v3994_v11 = vld [vmem:[%s5431_s4 + $0x20] sm:$0xf] }
 0x66c   : > { %2613 = vmatpush.bf16.msrb.mxu3 %v2567_v14  ;;  %3975 = vmatmul.msk.bf16.vlgmr.msra.gmra.mxu2 %vm2325_vm13, %v3974_v8 }
 0x66d   : > { %3977 = vmatmul.msk.bf16.vlgmr.msrb.gmra.mxu0 %vm2325_vm13, %v3974_v8  ;;  %3976 = vmatmul.msk.bf16.vlgmr.msra.gmra.mxu3 %vm2325_vm13, %v3974_v8 }
 0x670   : > { %2614 = vmatpush.bf16.msrb.mxu3 %v2561_v58  ;;  %v2386_v58 = vpop.f32.mrf.mxu0 }
 0x672   : > { %v2565_v18 = vpop.permute.xlu1 %2564 }
 0x673   : > { %v2634_v17 = vpop.permute.xlu2 %2633  ;;  %v2570_v19 = vsel %vm592_vm6, %v2563_v60, %v2565_v18  ;;  %v2571_v4 = vsel %vm592_vm6, %v2565_v18, %v2567_v14  ;;  %v2772_v25 = vpop.permute.xlu0 %2771 }
 0x674   : > { %2587 = vmatpush.bf16.msrb.mxu1 %v2570_v19  ;;  %2600 = vmatpush.bf16.msrb.mxu2 %v2571_v4  ;;  %v2640_v63 = vsel %vm657_vm7, %v2634_v17, %v2636_v6 }
 0x678   : > { %2588 = vmatpush.bf16.msrb.mxu1 %v2568_v5  ;;  %2601 = vmatpush.bf16.msrb.mxu2 %v2569_v10  ;;  %v2388_v3 = vpop.f32.mrf.mxu0 }
 0x67a   : > { %v2628_v24 = vpop.permute.xlu1 %2627 }
 0x67b   : > { %v2770_v12 = vpop.permute.xlu2 %2769  ;;  %3979 = vmatmul.msk.bf16.vlgmr.msrb.gmra.mxu1 %vm2325_vm13, %v3978_v1  ;;  %v2638_v27 = vsel %vm657_vm7, %v2628_v24, %v4856_v44  ;;  %v2699_v28 = vpop.permute.xlu0 %2698  ;;  %v2637_v37 = vsel %vm657_vm7, %v4890_v59, %v2628_v24 }
 0x67c   : > { %2669 = vmatpush.bf16.msra.mxu1 %v2640_v63  ;;  %2682 = vmatpush.bf16.msra.mxu2 %v2636_v6  ;;  %v2777_v29 = vsel %vm787_vm9, %v2770_v12, %v2772_v25  ;;  %v2707_v40 = vsel %vm722_vm8, %v2697_v15, %v2699_v28 }
 0x67d   : > { %3981 = vmatmul.msk.bf16.vlgmr.msrb.gmra.mxu3 %vm2325_vm13, %v3978_v1  ;;  %3980 = vmatmul.msk.bf16.vlgmr.msrb.gmra.mxu2 %vm2325_vm13, %v3978_v1 }
 0x680   : > { %2670 = vmatpush.bf16.msra.mxu1 %v2638_v27  ;;  %2683 = vmatpush.bf16.msra.mxu2 %v4856_v44 }
 0x682   : > { %v2701_v30 = vpop.permute.xlu1 %2700 }
 0x683   : > { %v2705_v26 = vpop.permute.xlu2 %2704  ;;  %v2708_v31 = vsel %vm722_vm8, %v2701_v30, %v2703_v9  ;;  %v2835_v45 = vpop.permute.xlu0 %2834 }
 0x684   : > { %2794 = vmatpush.bf16.msrb.mxu2 %v2777_v29  ;;  %2751 = vmatpush.bf16.msrb.mxu1 %v2705_v26  ;;  %v2709_v41 = vsel %vm722_vm8, %v2703_v9, %v2705_v26 }
 0x685   : > { %2725 = vmatpush.bf16.msra.mxu3 %v2708_v31 }
 0x688   : > { %2752 = vmatpush.bf16.msrb.mxu1 %v2699_v28 }
 0x689   : > { %2726 = vmatpush.bf16.msra.mxu3 %v2706_v32 }
 0x68a   : > { %v2632_v35 = vpop.permute.xlu1 %2631 }
 0x68b   : > { %v2639_v38 = vsel %vm657_vm7, %v2632_v35, %v2634_v17  ;;  %3984 = vmatmul.msk.bf16.vlgmr.msra.gmra.mxu1 %vm2325_vm13, %v3982_v33  ;;  %v2768_v39 = vpop.permute.xlu2 %2767  ;;  %v2833_v13 = vpop.permute.xlu0 %2832 }
 0x68c   : > { %2656 = vmatpush.bf16.msra.mxu0 %v2639_v38  ;;  %v2844_v54 = vsel %vm852_vm10, %v2833_v13, %v2835_v45 }
 0x68d   : > { %3987 = vmatmul.msk.bf16.vlgmr.msra.gmra.mxu3 %vm2325_vm13, %v3986_v34  ;;  %3985 = vmatmul.msk.bf16.vlgmr.msra.gmra.mxu2 %vm2325_vm13, %v3982_v33 }
 0x690   : > { %2657 = vmatpush.bf16.msra.mxu0 %v2637_v37 }
 0x692   : > { %v2774_v42 = vpop.permute.xlu1 %2773 }
 0x693   : > { %v2778_v43 = vsel %vm787_vm9, %v2772_v25, %v2774_v42  ;;  %3983 = vmatmul.msk.bf16.vlgmr.msra.gmra.mxu0 %vm2325_vm13, %v3982_v33  ;;  %v2843_v44 = vpop.permute.xlu2 %2842  ;;  %v4958_v60 = vpop.permute.xlu0 %3004 }
 0x694   : > { %2738 = vmatpush.bf16.msrb.mxu0 %v2709_v41  ;;  %2807 = vmatpush.bf16.msrb.mxu3 %v2778_v43 }
 0x698   : > { %2739 = vmatpush.bf16.msrb.mxu0 %v2707_v40 }
 0x69a   : > { %v2766_v36 = vpop.permute.xlu1 %2765 }
 0x69b   : > { %3989 = vmatmul.msk.bf16.vlgmr.msrb.gmra.mxu1 %vm2325_vm13, %v3986_v34  ;;  %v2775_v46 = vsel %vm787_vm9, %v2764_v16, %v2766_v36  ;;  %v2776_v49 = vsel %vm787_vm9, %v2766_v36, %v2768_v39  ;;  %v2839_v51 = vpop.permute.xlu2 %2838  ;;  %v4963_v7 = vpop.permute.xlu0 %3002 }
 0x69c   : > { %2820 = vmatpush.bf16.msra.mxu0 %v2774_v42  ;;  %2795 = vmatpush.bf16.msrb.mxu2 %v2775_v46 }
 0x69d   : > { %2808 = vmatpush.bf16.msrb.mxu3 %v2776_v49 }
 0x69f   : > { %3991 = vmatmul.msk.bf16.vlgmr.msrb.gmra.mxu2 %vm2325_vm13, %v3990_v50 }
 0x6a0   : > { %2821 = vmatpush.bf16.msra.mxu0 %v2768_v39  ;;  %3992 = vmatmul.msk.bf16.vlgmr.msrb.gmra.mxu3 %vm2325_vm13, %v3990_v50 }
 0x6a1   : > { %2889 = vmatpush.bf16.msra.mxu3 %v2843_v44 }
 0x6a2   : > { %v2841_v52 = vpop.permute.xlu1 %2840 }
 0x6a3   : > { %v2846_v53 = vsel %vm852_vm10, %v2839_v51, %v2841_v52  ;;  %v2847_v55 = vsel %vm852_vm10, %v2841_v52, %v2843_v44  ;;  %3988 = vmatmul.msk.bf16.vlgmr.msrb.gmra.mxu0 %vm2325_vm13, %v3986_v34  ;;  %v3007_v16 = vpop.permute.xlu2 %3006 }
 0x6a4   : > { %2863 = vmatpush.bf16.msra.mxu1 %v2846_v53  ;;  %2876 = vmatpush.bf16.msra.mxu2 %v2847_v55 }
 0x6a8   : > { %2864 = vmatpush.bf16.msra.mxu1 %v2844_v54 }
 0x6aa   : > { %v2837_v14 = vpop.permute.xlu1 %2836 }
 0x6ab   : > { %3995 = vmatmul.msk.bf16.vlgmr.msra.gmra.mxu1 %vm2325_vm13, %v3994_v11  ;;  %2890 = vmatpush.bf16.msra.mxu3 %v2837_v14  ;;  %v2845_v59 = vsel %vm852_vm10, %v2835_v45, %v2837_v14 }
 0x6ac   : > { %2877 = vmatpush.bf16.msra.mxu2 %v2845_v59 }
 0x6af   : > { %3996 = vmatmul.msk.bf16.vlgmr.msra.gmra.mxu2 %vm2325_vm13, %v3994_v11 }
 0x6b0   : > { %3997 = vmatmul.msk.bf16.vlgmr.msra.gmra.mxu3 %vm2325_vm13, %v3994_v11 }
 0x6b2   : > { %v4960_v62 = vpop.permute.xlu1 %2903 }
 0x6b3   : > { %3993 = vmatmul.msk.bf16.vlgmr.msra.gmra.mxu0 %vm2325_vm13, %v3990_v50 }
 0x6b6   : > { %v2364_v6 = vpop.f32.mrf.mxu3 }
 0x6ba   : > { %v3001_v8 = vpop.permute.xlu1 %3000 }
 0x6bb   : > { %v4967_v9 = vsel %vm347_vm4, %v3001_v8, %v4963_v7 }
 0x6be   : > { %v2366_v15 = vpop.f32.mrf.mxu3 }
 0x6c2   : > { %v4969_v17 = vpop.permute.xlu1 %3008 }
 0x6c3   : > { %v4973_v18 = vsel %vm347_vm4, %v3007_v16, %v4969_v17 }
 0x6c8   : > { %v2338_v19 = vpop.f32.mrf.mxu1 }
 0x6c9   : > { %v2387_v4 = vadd.f32 %v2386_v58, %v2338_v19 }
 0x6cf   : > { %v2351_v5 = vpop.f32.mrf.mxu2 }
 0x6d0   : > { %v2340_v10 = vpop.f32.mrf.mxu1 }
 0x6d7   : > { %v2353_v63 = vpop.f32.mrf.mxu2 }
 0x6d8   : > { %v2399_v12 = vpop.f32.mrf.mxu1 }
 0x6d9   : > { %v2400_v24 = vadd.f32 %v2399_v12, %v2351_v5 }
 0x6da   : > { %v2465_v1 = vpop.f32.mrf.mxu0 }
 0x6db   : > { %v2483_v25 = vadd.f32 %v2465_v1, %v2400_v24 }
 0x6df   : > { %v2412_v29 = vpop.f32.mrf.mxu2 }
 0x6e0   : > { %v2452_v27 = vpop.f32.mrf.mxu3  ;;  %v2413_v30 = vadd.f32 %v2412_v29, %v2364_v6  ;;  %v2401_v31 = vpop.f32.mrf.mxu1 }
 0x6e1   : > { %v2482_v59 = vadd.f32 %v2452_v27, %v2387_v4 }
 0x6e2   : > { %v2467_v26 = vpop.f32.mrf.mxu0 }
 0x6e7   : > { %v2414_v32 = vpop.f32.mrf.mxu2 }
 0x6e8   : > { %v2454_v28 = vpop.f32.mrf.mxu3  ;;  %v2478_v34 = vpop.f32.mrf.mxu1 }
 0x6e9   : > { %v2484_v35 = vadd.f32 %v2478_v34, %v2413_v30 }
 0x6ea   : > { %v2547_v33 = vpop.f32.mrf.mxu0 }
 0x6eb   : > { %v2553_v38 = vadd.f32 %v2547_v33, %v2484_v35 }
 0x6ef   : > { %v2521_v37 = vpop.f32.mrf.mxu2 }
 0x6f0   : > { %v2534_v39 = vpop.f32.mrf.mxu3  ;;  %v2480_v42 = vpop.f32.mrf.mxu1  ;;  %v2551_v3 = vadd.f32 %v2521_v37, %v2482_v59 }
 0x6f1   : > { %v2552_v63 = vadd.f32 %v2534_v39, %v2483_v25 }
 0x6f2   : > { %v2549_v41 = vpop.f32.mrf.mxu0 }
 0x6f7   : > { %v2523_v40 = vpop.f32.mrf.mxu2 }
 0x6f8   : > { %v2536_v43 = vpop.f32.mrf.mxu3  ;;  %v2590_v44 = vpop.f32.mrf.mxu1 }
 0x6f9   : > { %v2620_v6 = vadd.f32 %v2590_v44, %v2551_v3 }
 0x700   : > { %v2616_v45 = vpop.f32.mrf.mxu3  ;;  %v2603_v36 = vpop.f32.mrf.mxu2 }
 0x701   : > { %v2592_v46 = vpop.f32.mrf.mxu1  ;;  %v2621_v29 = vadd.f32 %v2603_v36, %v2552_v63  ;;  %v2622_v28 = vadd.f32 %v2616_v45, %v2553_v38 }
 0x708   : > { %v2618_v49 = vpop.f32.mrf.mxu3  ;;  %v2605_v50 = vpop.f32.mrf.mxu2 }
 0x709   : > { %v2672_v51 = vpop.f32.mrf.mxu1 }
 0x70a   : > { %v2690_v32 = vadd.f32 %v2672_v51, %v2621_v29 }
 0x710   : > { %v2728_v52 = vpop.f32.mrf.mxu3  ;;  %v2685_v53 = vpop.f32.mrf.mxu2 }
 0x711   : > { %v2659_v55 = vpop.f32.mrf.mxu0  ;;  %v2674_v13 = vpop.f32.mrf.mxu1  ;;  %v2691_v27 = vadd.f32 %v2685_v53, %v2622_v28 }
 0x712   : > { %v2689_v16 = vadd.f32 %v2659_v55, %v2620_v6 }
 0x714   : > { %v2758_v10 = vadd.f32 %v2728_v52, %v2689_v16 }
 0x718   : > { %v2730_v54 = vpop.f32.mrf.mxu3  ;;  %v2687_v11 = vpop.f32.mrf.mxu2 }
 0x719   : > { %v2661_v14 = vpop.f32.mrf.mxu0  ;;  %v2754_v58 = vpop.f32.mrf.mxu1 }
 0x71a   : > { %v2760_v35 = vadd.f32 %v2754_v58, %v2691_v27  ;;  %v5024_v58 = vpop.permute.xlu1 %3147 }
 0x721   : > { %v2741_v8 = vpop.f32.mrf.mxu0  ;;  %v2756_v15 = vpop.f32.mrf.mxu1 }
 0x722   : > { %v2797_v19 = vpop.f32.mrf.mxu2  ;;  %v2759_v33 = vadd.f32 %v2741_v8, %v2690_v32  ;;  %v5028_v8 = vpop.permute.xlu0 %3010 }
 0x723   : > { %v2810_v5 = vpop.f32.mrf.mxu3  ;;  %v2827_v1 = vadd.f32 %v2797_v19, %v2758_v10 }
 0x724   : > { %v2828_v42 = vadd.f32 %v2810_v5, %v2759_v33 }
 0x729   : > { %v2743_v12 = vpop.f32.mrf.mxu0  ;;  %v2866_v24 = vpop.f32.mrf.mxu1 }
 0x72a   : > { %v2896_v26 = vadd.f32 %v2866_v24, %v2827_v1  ;;  %v2799_v30 = vpop.f32.mrf.mxu2 }
 0x72b   : > { %v2812_v31 = vpop.f32.mrf.mxu3 }
 0x72c   : > { %v2906_v4 = vadd.f32 %v4960_v62, %v2896_v26 }
 0x72e   : > { %vm2909_vm11 = vcmp.gt.f32.partialorder %v2906_v4, 0.0  ;;  %v2912_v34 = vmul.f32 0.01, %v2906_v4 }
 0x730   : > { %v2915_v37 = vsel %vm2909_vm11, %v2906_v4, %v2912_v34  ;;  %vm3030_vm11 = vcmask 326656  }
 0x731   : > { %v2823_v41 = vpop.f32.mrf.mxu0  ;;  %v2918_v25 = vmul.f32 %v2915_v37, %v4296_v48  ;;  %v2868_v39 = vpop.f32.mrf.mxu1 }
 0x732   : > { %v2829_v43 = vadd.f32 %v2823_v41, %v2760_v35  ;;  %v2879_v40 = vpop.f32.mrf.mxu2 }
 0x733   : > { %v2892_v44 = vpop.f32.mrf.mxu3  ;;  %2924 = vrot.lane.b32.xlu1 %v2918_v25, %s4079_s19  ;;  %v2897_v38 = vadd.f32 %v2879_v40, %v2828_v42 }
 0x734   : > { %v2898_v45 = vadd.f32 %v2892_v44, %v2829_v43 }
 0x735   : > { %v2907_v36 = vadd.f32 %v4960_v62, %v2897_v38 }
 0x736   : > { %v2908_v46 = vadd.f32 %v4960_v62, %v2898_v45  ;;  %v5020_v62 = vpop.permute.xlu2 %3149 }
 0x737   : > { %vm2910_vm12 = vcmp.gt.f32.partialorder %v2907_v36, 0.0  ;;  %v2913_v49 = vmul.f32 0.01, %v2907_v36 }
 0x738   : > { %vm2911_vm13 = vcmp.gt.f32.partialorder %v2908_v46, 0.0  ;;  %v2914_v50 = vmul.f32 0.01, %v2908_v46 }
 0x739   : > { %v2825_v51 = vpop.f32.mrf.mxu0  ;;  %v2916_v52 = vsel %vm2910_vm12, %v2907_v36, %v2913_v49 }
 0x73a   : > { %v2917_v53 = vsel %vm2911_vm13, %v2908_v46, %v2914_v50  ;;  %v2919_v13 = vmul.f32 %v2916_v52, %v4294_v47  ;;  %v2881_v11 = vpop.f32.mrf.mxu2  ;;  %v4060_v52 = vld [vmem:[#allocation2 + $0x8] sm:$0xff] }
 0x73b   : > { %v2894_v55 = vpop.f32.mrf.mxu3  ;;  %3143 = vrot.lane.b32.xlu1 %v4459_v57, %s4071_s12  ;;  %v2920_v54 = vmul.f32 %v2917_v53, %v4302_v61  ;;  %v3999_v11 = vld [vmem:[%s5432_s5 + $0x4] sm:$0xf] }
 0x73c   : > { %2926 = vrot.lane.b32.xlu2 %v2919_v13, %s4079_s19  ;;  %v5172_v13 = vld [vmem:[%s5432_s5] sm:$0xf] }
 0x73d   : > { %2928 = vrot.lane.b32.xlu0 %v2920_v54, %s4079_s19 }
 0x73e   : > { %v5022_v14 = vpop.permute.xlu2 %3151 }
 0x743   : > { %3237 = vrot.lane.b32.xlu1 %v4734_v21, %s4072_s13 }
 0x744   : > { %3231 = vrot.lane.b32.xlu2 %v4339_v20, %s4072_s13 }
 0x745   : > { %3141 = vrot.lane.b32.xlu0 %v4453_v56, %s4071_s12 }
 0x74b   : > { %3229 = vrot.lane.b32.xlu1 %v4459_v57, %s4072_s13 }
 0x74c   : > { %3319 = vrot.lane.b32.xlu2 %v4737_v22, %s4073_s14 }
 0x74d   : > { %3235 = vrot.lane.b32.xlu0 %v4740_v23, %s4072_s13 }
 0x753   : > { %3227 = vrot.lane.b32.xlu1 %v4453_v56, %s4072_s13 }
 0x754   : > { %3315 = vrot.lane.b32.xlu2 %v4459_v57, %s4073_s14 }
 0x755   : > { %3145 = vrot.lane.b32.xlu0 %v4339_v20, %s4071_s12 }
 0x75b   : > { %3321 = vrot.lane.b32.xlu1 %v4740_v23, %s4073_s14 }
 0x75c   : > { %3491 = vrot.lane.b32.xlu2 %v4737_v22, %s4075_s16 }
 0x75d   : > { %3233 = vrot.lane.b32.xlu0 %v4737_v22, %s4072_s13 }
 0x763   : > { %3407 = vrot.lane.b32.xlu1 %v4740_v23, %s4074_s15 }
 0x765   : > { %3323 = vrot.lane.b32.xlu0 %v4734_v21, %s4073_s14 }
 0x76d   : > { %3317 = vrot.lane.b32.xlu0 %v4339_v20, %s4073_s14 }
 0x775   : > { %3313 = vrot.lane.b32.xlu0 %v4453_v56, %s4073_s14 }
 0x77d   : > { %3405 = vrot.lane.b32.xlu0 %v4737_v22, %s4074_s15 }
 0x796   : > { %v2927_v59 = vpop.permute.xlu2 %2926 }
 0x79e   : > { %v5062_v34 = vpop.permute.xlu2 %3231 }
 0x7a5   : > { %v2925_v3 = vpop.permute.xlu1 %2924 }
 0x7a6   : > { %v2930_v6 = vsel %vm315_vm14, %v2925_v3, %v2927_v59  ;;  %2935 = vst.msk [vmem:[#allocation2 + $0x60] sm:$0xff] %vm951_vm0, %v2925_v3  ;;  %v3320_v25 = vpop.permute.xlu2 %3319 }
 0x7ad   : > { %v2950_v15 = vld [vmem:[#allocation2 + $0x60] sm:$0xff]  ;;  %v5030_v16 = vpop.permute.xlu1 %3143 }
 0x7ae   : > { %v2961_v19 = vpack.c.bf16 %v2930_v6, %v2950_v15  ;;  %v5112_v45 = vpop.permute.xlu2 %3315 }
 0x7af   : > { %v2929_v5 = vpop.permute.xlu0 %2928 }
 0x7b0   : > { %v2988_v10 = vunpack.c.l.b16 %v2961_v19  ;;  %v2989_v63 = vunpack.c.h.b16 %v2961_v19  ;;  %v2931_v1 = vsel %vm315_vm14, %v2927_v59, %v2929_v5 }
 0x7b1   : > { %2937 = vst.msk [vmem:[#allocation2 + $0x70] sm:$0xff] %vm954_vm2, %v2931_v1  ;;  %v3021_v1 = vsel %vm347_vm4, %v4969_v17, %v5028_v8  ;;  %v3019_v17 = vsel %vm347_vm4, %v4963_v7, %v4958_v60 }
 0x7b2   : > { %v5034_v12 = vpack.c.b16 %v2988_v10, %v2988_v10  ;;  %v5036_v24 = vpack.c.b16 %v2989_v63, %v2989_v63 }
 0x7b4   : > { %3155 = vrot.lane.b32.xlu0 %v5036_v24, %s4071_s12  ;;  %3014 = vrot.lane.b32.xlu1 %v5036_v24, %s4070_s11  ;;  %v3092_v29 = vsel %vm354_vm1, %v5034_v12, 0 }
 0x7b5   : > { %v5044_v26 = vpop.permute.xlu1 %3237  ;;  %3105 = vmatpush.bf16.msrb.mxu3 %v3092_v29 }
 0x7b6   : > { %v5150_v49 = vpop.permute.xlu2 %3491 }
 0x7b7   : > { %v5046_v30 = vpop.permute.xlu0 %3141 }
 0x7b8   : > { %v2952_v31 = vld [vmem:[#allocation2 + $0x70] sm:$0xff] }
 0x7b9   : > { %v2962_v28 = vpack.c.bf16 %v2952_v31, %v2952_v31  ;;  %3106 = vmatpush.bf16.msrb.mxu3 %v4737_v22 }
 0x7bb   : > { %v2990_v32 = vunpack.c.l.b16 %v2962_v28  ;;  %v3161_v28 = vsel %vm462_vm3, %v5024_v58, %v5020_v62  ;;  %v3159_v58 = vsel %vm462_vm3, %v5046_v30, %v5030_v16 }
 0x7bc   : > { %3493 = vrot.lane.b32.xlu0 %v4740_v23, %s4075_s16  ;;  %3399 = vrot.lane.b32.xlu1 %v4453_v56, %s4074_s15 }
 0x7bd   : > { %v5053_v4 = vpack.c.b16 %v2990_v32, %v2990_v32  ;;  %v5055_v27 = vpop.permute.xlu1 %3229  ;;  %3107 = vmatpush.bf16.msrb.mxu3 %v4453_v56 }
 0x7bf   : > { %3016 = vrot.lane.b32.xlu2 %v5053_v4, %s4070_s11  ;;  %v5060_v33 = vpop.permute.xlu0 %3235 }
 0x7c0   : > { %4003 = vmatmul.msk.bf16.vlgmr.msrb.gmra.mxu3 %vm3030_vm11, %v5172_v13 }
 0x7c4   : > { %3241 = vrot.lane.b32.xlu0 %v5036_v24, %s4072_s13  ;;  %3485 = vrot.lane.b32.xlu1 %v4453_v56, %s4075_s16 }
 0x7c5   : > { %v3228_v35 = vpop.permute.xlu1 %3227 }
 0x7c6   : > { %v5070_v37 = vsel %vm527_vm5, %v3228_v35, %v5055_v27 }
 0x7c7   : > { %v5072_v41 = vpop.permute.xlu0 %3145  ;;  %3012 = vrot.lane.b32.xlu2 %v5034_v12, %s4070_s11 }
 0x7cc   : > { %3409 = vrot.lane.b32.xlu0 %v4734_v21, %s4074_s15  ;;  %3243 = vrot.lane.b32.xlu1 %v5053_v4, %s4072_s13 }
 0x7cd   : > { %v5080_v39 = vpop.permute.xlu1 %3321 }
 0x7ce   : > { %v5084_v42 = vsel %vm592_vm6, %v3320_v25, %v5080_v39 }
 0x7cf   : > { %v3234_v43 = vpop.permute.xlu0 %3233  ;;  %3153 = vrot.lane.b32.xlu2 %v5034_v12, %s4071_s12 }
 0x7d0   : > { %v5090_v40 = vsel %vm527_vm5, %v3234_v43, %v5060_v33 }
 0x7d4   : > { %3327 = vrot.lane.b32.xlu1 %v5036_v24, %s4073_s14  ;;  %3411 = vrot.lane.b32.xlu0 %v5034_v12, %s4074_s15 }
 0x7d5   : > { %v5162_v53 = vpop.permute.xlu1 %3407 }
 0x7d7   : > { %v5096_v44 = vpop.permute.xlu0 %3323  ;;  %3401 = vrot.lane.b32.xlu2 %v4459_v57, %s4074_s15 }
 0x7dc   : > { %3413 = vrot.lane.b32.xlu1 %v5036_v24, %s4074_s15  ;;  %3579 = vrot.lane.b32.xlu0 %v4740_v23, %s4076_s17 }
 0x7df   : > { %v5104_v38 = vpop.permute.xlu0 %3317  ;;  %3487 = vrot.lane.b32.xlu2 %v4459_v57, %s4075_s16 }
 0x7e4   : > { %3497 = vrot.lane.b32.xlu1 %v5034_v12, %s4075_s16  ;;  %3489 = vrot.lane.b32.xlu0 %v4339_v20, %s4075_s16 }
 0x7e7   : > { %v3314_v36 = vpop.permute.xlu0 %3313  ;;  %3157 = vrot.lane.b32.xlu2 %v5053_v4, %s4071_s12 }
 0x7e8   : > { %v5118_v46 = vsel %vm592_vm6, %v3314_v36, %v5112_v45  ;;  %v3162_v36 = vsel %vm462_vm3, %v5020_v62, %v5022_v14 }
 0x7ec   : > { %3581 = vrot.lane.b32.xlu1 %v4734_v21, %s4076_s17  ;;  %3415 = vrot.lane.b32.xlu0 %v5053_v4, %s4074_s15 }
 0x7ef   : > { %3403 = vrot.lane.b32.xlu2 %v4339_v20, %s4074_s15  ;;  %v5164_v55 = vpop.permute.xlu0 %3405 }
 0x7f4   : > { %3573 = vrot.lane.b32.xlu1 %v4459_v57, %s4076_s17  ;;  %3585 = vrot.lane.b32.xlu0 %v5036_v24, %s4076_s17 }
 0x7f7   : > { %3239 = vrot.lane.b32.xlu2 %v5034_v12, %s4072_s13 }
 0x7fc   : > { %3501 = vrot.lane.b32.xlu1 %v5053_v4, %s4075_s16  ;;  %3577 = vrot.lane.b32.xlu0 %v4737_v22, %s4076_s17 }
 0x7ff   : > { %3329 = vrot.lane.b32.xlu2 %v5053_v4, %s4073_s14 }
 0x804   : > { %3587 = vrot.lane.b32.xlu1 %v5053_v4, %s4076_s17  ;;  %3667 = vrot.lane.b32.xlu0 %v4734_v21, %s4077_s18 }
 0x807   : > { %3325 = vrot.lane.b32.xlu2 %v5034_v12, %s4073_s14 }
 0x80c   : > { %3571 = vrot.lane.b32.xlu1 %v4453_v56, %s4076_s17  ;;  %3661 = vrot.lane.b32.xlu0 %v4339_v20, %s4077_s18 }
 0x80f   : > { %3499 = vrot.lane.b32.xlu2 %v5036_v24, %s4075_s16 }
 0x814   : > { %3671 = vrot.lane.b32.xlu1 %v5036_v24, %s4077_s18  ;;  %3659 = vrot.lane.b32.xlu0 %v4459_v57, %s4077_s18 }
 0x817   : > { %3495 = vrot.lane.b32.xlu2 %v4734_v21, %s4075_s16  ;;  %s5401_s16 = scalar_lea.vmem %s5435_s8, %s4037_s29 }
 0x818   : > { %3775 = vst.msk [vmem:[%s5401_s16] sm:$0xff] %vm315_vm14, %v4080_v2 }
 0x819   : > { %v3017_v50 = vpop.permute.xlu2 %3016 }
 0x81a   : > { %v3041_v51 = vsel %vm354_vm1, %v3017_v50, 0 }
 0x81b   : > { %3074 = vmatpush.bf16.msrb.mxu2 %v3041_v51  ;;  %v4010_v51 = vld [vmem:[%s5432_s5 + $0xc] sm:$0xf] }
 0x81c   : > { %3665 = vrot.lane.b32.xlu1 %v4740_v23, %s4077_s18  ;;  %3762 = vrot.lane.b32.xlu0 %v4060_v52, %s4073_s14  ;;  %v3160_v52 = vsel %vm462_vm3, %v5030_v16, %v5072_v41 }
 0x81f   : > { %3075 = vmatpush.bf16.msrb.mxu2 %v5028_v8  ;;  %3575 = vrot.lane.b32.xlu2 %v4339_v20, %s4076_s17  ;;  %v3098_v8 = vsel %vm354_vm1, %v5053_v4, 0 }
 0x821   : > { %v3013_v54 = vpop.permute.xlu2 %3012 }
 0x823   : > { %3076 = vmatpush.bf16.msrb.mxu2 %v4958_v60  ;;  %v4006_v60 = vld [vmem:[%s5432_s5 + $0x8] sm:$0xf] }
 0x824   : > { %3657 = vrot.lane.b32.xlu1 %v4453_v56, %s4077_s18 }
 0x826   : > { %v3156_v59 = vpop.permute.xlu0 %3155  ;;  %v3015_v3 = vpop.permute.xlu1 %3014  ;;  %4002 = vmatmul.msk.bf16.vlgmr.msrb.gmra.mxu2 %vm3030_vm11, %v3999_v11 }
 0x827   : > { %3583 = vrot.lane.b32.xlu2 %v5034_v12, %s4076_s17  ;;  %v3022_v6 = vsel %vm347_vm4, %v3013_v54, %v3015_v3  ;;  %v3023_v15 = vsel %vm347_vm4, %v3015_v3, %v3017_v50 }
 0x828   : > { %v3035_v19 = vsel %vm354_vm1, %v3022_v6, 0  ;;  %v3038_v5 = vsel %vm354_vm1, %v3023_v15, 0  ;;  %v3419_v15 = vsel %vm657_vm7, %v5164_v55, %v5162_v53  ;;  %v3334_v55 = vsel %vm592_vm6, %v5080_v39, %v5096_v44 }
 0x829   : > { %v3154_v10 = vpop.permute.xlu2 %3153  ;;  %3048 = vmatpush.bf16.msrb.mxu0 %v3035_v19  ;;  %3061 = vmatpush.bf16.msrb.mxu1 %v3038_v5 }
 0x82a   : > { %v3163_v56 = vsel %vm462_vm3, %v3154_v10, %v3156_v59 }
 0x82b   : > { %v3175_v63 = vsel %vm354_vm1, %v3163_v56, 0 }
 0x82c   : > { %3188 = vmatpush.bf16.msra.mxu2 %v3175_v63  ;;  %3764 = vrot.lane.b32.xlu1 %v4142_v0, %s4073_s14 }
 0x82d   : > { %3049 = vmatpush.bf16.msrb.mxu0 %v4973_v18  ;;  %3062 = vmatpush.bf16.msrb.mxu1 %v3021_v1  ;;  %v3095_v18 = vsel %vm354_vm1, %v5036_v24, 0 }
 0x82e   : > { %v5197_v29 = vpop.permute.xlu0 %3493  ;;  %v5199_v31 = vpop.permute.xlu1 %3399 }
 0x82f   : > { %3673 = vrot.lane.b32.xlu2 %v5053_v4, %s4077_s18 }
 0x830   : > { %3189 = vmatpush.bf16.msra.mxu2 %v3161_v28  ;;  %v4014_v28 = vld [vmem:[%s5432_s5 + $0x10] sm:$0xf] }
 0x831   : > { %v5209_v0 = vpop.permute.xlu2 %3401  ;;  %3050 = vmatpush.bf16.msrb.mxu0 %v4967_v9  ;;  %3063 = vmatpush.bf16.msrb.mxu1 %v3019_v17 }
 0x834   : > { %3190 = vmatpush.bf16.msra.mxu2 %v3159_v58  ;;  %4000 = vmatmul.msk.bf16.vlgmr.msrb.gmra.mxu0 %vm3030_vm11, %v3999_v11 }
 0x835   : > { %3118 = vmatpush.bf16.msra.mxu0 %v3095_v18  ;;  %3131 = vmatpush.bf16.msra.mxu1 %v3098_v8 }
 0x836   : > { %4001 = vmatmul.msk.bf16.vlgmr.msrb.gmra.mxu1 %vm3030_vm11, %v3999_v11  ;;  %v3242_v7 = vpop.permute.xlu0 %3241  ;;  %v5226_v9 = vpop.permute.xlu1 %3485 }
 0x837   : > { %3669 = vrot.lane.b32.xlu2 %v5034_v12, %s4077_s18  ;;  %4007 = vmatmul.msk.bf16.vlgmr.msra.gmra.mxu2 %vm3030_vm11, %v4006_v60 }
 0x839   : > { %3119 = vmatpush.bf16.msra.mxu0 %v4740_v23  ;;  %3132 = vmatpush.bf16.msra.mxu1 %v4734_v21  ;;  %v5231_v24 = vpop.permute.xlu2 %3487 }
 0x83d   : > { %3120 = vmatpush.bf16.msra.mxu0 %v4459_v57  ;;  %3133 = vmatpush.bf16.msra.mxu1 %v4339_v20  ;;  %v3248_v20 = vsel %vm527_vm5, %v5060_v33, %v5044_v26  ;;  %v3246_v33 = vsel %vm527_vm5, %v5055_v27, %v5062_v34 }
 0x83e   : > { %v5235_v30 = vpop.permute.xlu0 %3409  ;;  %v3244_v32 = vpop.permute.xlu1 %3243 }
 0x83f   : > { %3663 = vrot.lane.b32.xlu2 %v4737_v22, %s4077_s18  ;;  %v3250_v21 = vsel %vm527_vm5, %v3242_v7, %v3244_v32  ;;  %v4034_v22 = vld [vmem:[%s5433_s6 + $0x20] sm:$0xff]  ;;  %v3267_v62 = vsel %vm354_vm1, %v3244_v32, 0  ;;  %v3505_v32 = vsel %vm722_vm8, %v5150_v49, %v5197_v29 }
 0x840   : > { %v3264_v23 = vsel %vm354_vm1, %v3250_v21, 0  ;;  %v3420_v21 = vsel %vm657_vm7, %v5162_v53, %v5235_v30  ;;  %v4022_v53 = vld [vmem:[%s5432_s5 + $0x18] sm:$0xf] }
 0x841   : > { %v3158_v4 = vpop.permute.xlu2 %3157  ;;  %3287 = vmatpush.bf16.msrb.mxu2 %v3264_v23 }
 0x842   : > { %v3164_v12 = vsel %vm462_vm3, %v3156_v59, %v3158_v4  ;;  %v3181_v35 = vsel %vm354_vm1, %v3158_v4, 0 }
 0x843   : > { %v3178_v57 = vsel %vm354_vm1, %v3164_v12, 0  ;;  %3214 = vmatpush.bf16.msrb.mxu0 %v3181_v35  ;;  %v3503_v12 = vsel %vm722_vm8, %v5226_v9, %v5231_v24 }
 0x844   : > { %3201 = vmatpush.bf16.msra.mxu3 %v3178_v57  ;;  %4004 = vmatmul.msk.bf16.vlgmr.msra.gmra.mxu0 %vm3030_vm11, %v5172_v13 }
 0x845   : > { %3288 = vmatpush.bf16.msrb.mxu2 %v3248_v20 }
 0x846   : > { %4005 = vmatmul.msk.bf16.vlgmr.msra.gmra.mxu1 %vm3030_vm11, %v5172_v13  ;;  %v3412_v25 = vpop.permute.xlu0 %3411  ;;  %v3328_v43 = vpop.permute.xlu1 %3327  ;;  %v4061_v13 = vld [vmem:[#allocation2] sm:$0xff] }
 0x847   : > { %3745 = vperm.xlu2 %4058, %v4034_v22   ;;  %3215 = vmatpush.bf16.msrb.mxu0 %v5022_v14 }
 0x848   : > { %3202 = vmatpush.bf16.msra.mxu3 %v3162_v36 }
 0x849   : > { %v5261_v50 = vpop.permute.xlu2 %3403  ;;  %3289 = vmatpush.bf16.msrb.mxu2 %v3246_v33 }
 0x84a   : > { %v3418_v49 = vsel %vm657_vm7, %v5209_v0, %v5261_v50 }
 0x84b   : > { %3216 = vmatpush.bf16.msrb.mxu0 %v5072_v41 }
 0x84c   : > { %3203 = vmatpush.bf16.msra.mxu3 %v3160_v52  ;;  %4012 = vmatmul.msk.bf16.vlgmr.msrb.gmra.mxu2 %vm3030_vm11, %v4010_v51  ;;  %v4026_v52 = vld [vmem:[%s5432_s5 + $0x1c] sm:$0xf] }
 0x84e   : > { %v5272_v14 = vpop.permute.xlu0 %3579  ;;  %v3414_v27 = vpop.permute.xlu1 %3413 }
 0x84f   : > { %4008 = vmatmul.msk.bf16.vlgmr.msra.gmra.mxu3 %vm3030_vm11, %v4006_v60  ;;  %3760 = vrot.lane.b32.xlu2 %v4061_v13, %s4073_s14  ;;  %v3421_v11 = vsel %vm657_vm7, %v3412_v25, %v3414_v27 }
 0x850   : > { %3300 = vmatpush.bf16.msrb.mxu3 %v3267_v62  ;;  %v3433_v59 = vsel %vm354_vm1, %v3421_v11, 0 }
 0x851   : > { %v3240_v54 = vpop.permute.xlu2 %3239 }
 0x852   : > { %v3249_v16 = vsel %vm527_vm5, %v3240_v54, %v3242_v7 }
 0x853   : > { %v3261_v41 = vsel %vm354_vm1, %v3249_v16, 0 }
 0x854   : > { %3301 = vmatpush.bf16.msrb.mxu3 %v5044_v26  ;;  %3274 = vmatpush.bf16.msrb.mxu1 %v3261_v41 }
 0x855   : > { %4009 = vmatmul.msk.bf16.vlgmr.msrb.gmra.mxu0 %vm3030_vm11, %v4006_v60 }
 0x856   : > { %v5283_v3 = vpop.permute.xlu0 %3489  ;;  %v3498_v6 = vpop.permute.xlu1 %3497 }
 0x858   : > { %3302 = vmatpush.bf16.msrb.mxu3 %v5062_v34  ;;  %3275 = vmatpush.bf16.msrb.mxu1 %v5090_v40  ;;  %v3417_v34 = vsel %vm657_vm7, %v5199_v31, %v5209_v0  ;;  %v3332_v31 = vsel %vm592_vm6, %v5112_v45, %v5104_v38 }
 0x859   : > { %v3330_v26 = vpop.permute.xlu2 %3329 }
 0x85a   : > { %v3336_v19 = vsel %vm592_vm6, %v3328_v43, %v3330_v26  ;;  %v3353_v5 = vsel %vm354_vm1, %v3330_v26, 0 }
 0x85b   : > { %v3350_v10 = vsel %vm354_vm1, %v3336_v19, 0  ;;  %3386 = vmatpush.bf16.msra.mxu2 %v3353_v5 }
 0x85c   : > { %3446 = vmatpush.bf16.msra.mxu3 %v3433_v59  ;;  %3276 = vmatpush.bf16.msrb.mxu1 %v5070_v37 }
 0x85e   : > { %v5296_v40 = vpop.permute.xlu1 %3581  ;;  %v3416_v56 = vpop.permute.xlu0 %3415 }
 0x85f   : > { %4011 = vmatmul.msk.bf16.vlgmr.msrb.gmra.mxu1 %vm3030_vm11, %v4010_v51  ;;  %4013 = vmatmul.msk.bf16.vlgmr.msrb.gmra.mxu3 %vm3030_vm11, %v4010_v51  ;;  %v3439_v17 = vsel %vm354_vm1, %v3416_v56, 0  ;;  %v3592_v25 = vsel %vm787_vm9, %v5272_v14, %v5296_v40 }
 0x860   : > { %3447 = vmatpush.bf16.msra.mxu3 %v3419_v15  ;;  %3373 = vmatpush.bf16.msra.mxu1 %v3350_v10  ;;  %v4030_v10 = vld [vmem:[%s5432_s5 + $0x20] sm:$0xf] }
 0x861   : > { %3387 = vmatpush.bf16.msra.mxu2 %v5096_v44  ;;  %v3326_v37 = vpop.permute.xlu2 %3325  ;;  %v3422_v44 = vsel %vm657_vm7, %v3414_v27, %v3416_v56 }
 0x862   : > { %v3335_v63 = vsel %vm592_vm6, %v3326_v37, %v3328_v43  ;;  %v3436_v58 = vsel %vm354_vm1, %v3422_v44, 0  ;;  %v3109_v37 = vpop.f32.mrf.mxu3 }
 0x863   : > { %v3347_v1 = vsel %vm354_vm1, %v3335_v63, 0 }
 0x864   : > { %3448 = vmatpush.bf16.msra.mxu3 %v3417_v34  ;;  %3374 = vmatpush.bf16.msra.mxu1 %v3334_v55 }
 0x865   : > { %3388 = vmatpush.bf16.msra.mxu2 %v5104_v38  ;;  %3360 = vmatpush.bf16.msra.mxu0 %v3347_v1 }
 0x866   : > { %v5314_v39 = vpop.permute.xlu1 %3573  ;;  %v3586_v18 = vpop.permute.xlu0 %3585 }
 0x868   : > { %3375 = vmatpush.bf16.msra.mxu1 %v3332_v31  ;;  %4017 = vmatmul.msk.bf16.vlgmr.msra.gmra.mxu2 %vm3030_vm11, %v4014_v28 }
 0x869   : > { %3361 = vmatpush.bf16.msra.mxu0 %v5084_v42  ;;  %v3500_v8 = vpop.permute.xlu2 %3499  ;;  %v4018_v42 = vld [vmem:[%s5432_s5 + $0x14] sm:$0xf] }
 0x86a   : > { %v3507_v38 = vsel %vm722_vm8, %v3498_v6, %v3500_v8  ;;  %v3111_v1 = vpop.f32.mrf.mxu3 }
 0x86b   : > { %v3519_v45 = vsel %vm354_vm1, %v3507_v38, 0 }
 0x86c   : > { %3472 = vmatpush.bf16.msrb.mxu1 %v3439_v17  ;;  %3532 = vmatpush.bf16.msrb.mxu2 %v3519_v45 }
 0x86d   : > { %3362 = vmatpush.bf16.msra.mxu0 %v5118_v46 }
 0x86e   : > { %v3502_v60 = vpop.permute.xlu1 %3501  ;;  %v3578_v4 = vpop.permute.xlu0 %3577 }
 0x86f   : > { %4016 = vmatmul.msk.bf16.vlgmr.msra.gmra.mxu1 %vm3030_vm11, %v4014_v28  ;;  %v3508_v7 = vsel %vm722_vm8, %v3500_v8, %v3502_v60  ;;  %4019 = vmatmul.msk.bf16.vlgmr.msra.gmra.mxu3 %vm3030_vm11, %v4018_v42  ;;  %v3591_v13 = vsel %vm787_vm9, %v3578_v4, %v5272_v14 }
 0x870   : > { %3473 = vmatpush.bf16.msrb.mxu1 %v5235_v30  ;;  %4015 = vmatmul.msk.bf16.vlgmr.msra.gmra.mxu0 %vm3030_vm11, %v4014_v28  ;;  %v3522_v46 = vsel %vm354_vm1, %v3508_v7, 0  ;;  %v3525_v30 = vsel %vm354_vm1, %v3502_v60, 0 }
 0x871   : > { %3459 = vmatpush.bf16.msrb.mxu0 %v3436_v58  ;;  %3533 = vmatpush.bf16.msrb.mxu2 %v3505_v32  ;;  %v3496_v23 = vpop.permute.xlu2 %3495 }
 0x872   : > { %3545 = vmatpush.bf16.msrb.mxu3 %v3522_v46  ;;  %v3506_v35 = vsel %vm722_vm8, %v5197_v29, %v3496_v23  ;;  %v3504_v29 = vsel %vm722_vm8, %v5231_v24, %v5283_v3 }
 0x874   : > { %3474 = vmatpush.bf16.msrb.mxu1 %v5261_v50 }
 0x875   : > { %3460 = vmatpush.bf16.msrb.mxu0 %v3420_v21  ;;  %3534 = vmatpush.bf16.msrb.mxu2 %v3503_v12 }
 0x876   : > { %3546 = vmatpush.bf16.msrb.mxu3 %v3506_v35  ;;  %v3588_v57 = vpop.permute.xlu1 %3587  ;;  %v3668_v43 = vpop.permute.xlu0 %3667 }
 0x877   : > { %v3594_v9 = vsel %vm787_vm9, %v3586_v18, %v3588_v57  ;;  %v3611_v0 = vsel %vm354_vm1, %v3588_v57, 0 }
 0x878   : > { %4023 = vmatmul.msk.bf16.vlgmr.msrb.gmra.mxu2 %vm3030_vm11, %v4022_v53  ;;  %v3608_v20 = vsel %vm354_vm1, %v3594_v9, 0 }
 0x879   : > { %3461 = vmatpush.bf16.msrb.mxu0 %v3418_v49  ;;  %v3576_v22 = vpop.permute.xlu2 %3575  ;;  %3631 = vmatpush.bf16.msra.mxu2 %v3608_v20 }
 0x87a   : > { %3547 = vmatpush.bf16.msrb.mxu3 %v3504_v29  ;;  %v3590_v24 = vsel %vm787_vm9, %v5314_v39, %v3576_v22 }
 0x87d   : > { %3558 = vmatpush.bf16.msra.mxu0 %v3525_v30  ;;  %3632 = vmatpush.bf16.msra.mxu2 %v3592_v25 }
 0x87e   : > { %3644 = vmatpush.bf16.msra.mxu3 %v3611_v0  ;;  %v3572_v36 = vpop.permute.xlu1 %3571  ;;  %v3662_v27 = vpop.permute.xlu0 %3661 }
 0x87f   : > { %4021 = vmatmul.msk.bf16.vlgmr.msrb.gmra.mxu1 %vm3030_vm11, %v4018_v42  ;;  %4024 = vmatmul.msk.bf16.vlgmr.msrb.gmra.mxu3 %vm3030_vm11, %v4022_v53  ;;  %v3589_v59 = vsel %vm787_vm9, %v3572_v36, %v5314_v39 }
 0x880   : > { %4020 = vmatmul.msk.bf16.vlgmr.msrb.gmra.mxu0 %vm3030_vm11, %v4018_v42 }
 0x881   : > { %3559 = vmatpush.bf16.msra.mxu0 %v3496_v23  ;;  %v3584_v33 = vpop.permute.xlu2 %3583  ;;  %3633 = vmatpush.bf16.msra.mxu2 %v3590_v24 }
 0x882   : > { %3645 = vmatpush.bf16.msra.mxu3 %v5296_v40  ;;  %v3593_v50 = vsel %vm787_vm9, %v3584_v33, %v3586_v18 }
 0x883   : > { %v3605_v51 = vsel %vm354_vm1, %v3593_v50, 0 }
 0x884   : > { %3618 = vmatpush.bf16.msra.mxu1 %v3605_v51 }
 0x885   : > { %3560 = vmatpush.bf16.msra.mxu0 %v5283_v3 }
 0x886   : > { %3646 = vmatpush.bf16.msra.mxu3 %v3576_v22  ;;  %v3672_v62 = vpop.permute.xlu1 %3671  ;;  %v3660_v6 = vpop.permute.xlu0 %3659 }
 0x887   : > { %v3676_v5 = vsel %vm852_vm10, %v3660_v6, %v3662_v27 }
 0x888   : > { %4028 = vmatmul.msk.bf16.vlgmr.msra.gmra.mxu2 %vm3030_vm11, %v4026_v52  ;;  %3619 = vmatpush.bf16.msra.mxu1 %v3591_v13 }
 0x889   : > { %v3674_v54 = vpop.permute.xlu2 %3673 }
 0x88a   : > { %v3680_v11 = vsel %vm852_vm10, %v3672_v62, %v3674_v54  ;;  %v3697_v16 = vsel %vm354_vm1, %v3674_v54, 0 }
 0x88b   : > { %v3694_v41 = vsel %vm354_vm1, %v3680_v11, 0  ;;  %3730 = vmatpush.bf16.msrb.mxu2 %v3697_v16 }
 0x88c   : > { %3620 = vmatpush.bf16.msra.mxu1 %v3589_v59 }
 0x88e   : > { %v3666_v3 = vpop.permute.xlu1 %3665 }
 0x88f   : > { %4027 = vmatmul.msk.bf16.vlgmr.msra.gmra.mxu1 %vm3030_vm11, %v4026_v52  ;;  %v3678_v14 = vsel %vm852_vm10, %v3666_v3, %v3668_v43  ;;  %4029 = vmatmul.msk.bf16.vlgmr.msra.gmra.mxu3 %vm3030_vm11, %v4026_v52 }
 0x890   : > { %3717 = vmatpush.bf16.msrb.mxu1 %v3694_v41  ;;  %4025 = vmatmul.msk.bf16.vlgmr.msra.gmra.mxu0 %vm3030_vm11, %v4022_v53 }
 0x891   : > { %3731 = vmatpush.bf16.msrb.mxu2 %v3668_v43  ;;  %v3670_v26 = vpop.permute.xlu2 %3669 }
 0x892   : > { %v3679_v15 = vsel %vm852_vm10, %v3670_v26, %v3672_v62 }
 0x893   : > { %v3691_v19 = vsel %vm354_vm1, %v3679_v15, 0 }
 0x894   : > { %3718 = vmatpush.bf16.msrb.mxu1 %v3678_v14  ;;  %3704 = vmatpush.bf16.msrb.mxu0 %v3691_v19 }
 0x895   : > { %3732 = vmatpush.bf16.msrb.mxu2 %v3662_v27 }
 0x896   : > { %v3658_v56 = vpop.permute.xlu1 %3657 }
 0x897   : > { %v3675_v55 = vsel %vm852_vm10, %v3658_v56, %v3660_v6 }
 0x898   : > { %3719 = vmatpush.bf16.msrb.mxu1 %v3676_v5  ;;  %4033 = vmatmul.msk.bf16.vlgmr.msrb.gmra.mxu2 %vm3030_vm11, %v4030_v10 }
 0x899   : > { %v3664_v34 = vpop.permute.xlu2 %3663 }
 0x89a   : > { %v3677_v40 = vsel %vm852_vm10, %v3664_v34, %v3666_v3 }
 0x89b   : > { %3705 = vmatpush.bf16.msrb.mxu0 %v3677_v40 }
 0x89f   : > { %3706 = vmatpush.bf16.msrb.mxu0 %v3675_v55  ;;  %4032 = vmatmul.msk.bf16.vlgmr.msrb.gmra.mxu1 %vm3030_vm11, %v4030_v10 }
 0x8a2   : > { %4031 = vmatmul.msk.bf16.vlgmr.msrb.gmra.mxu0 %vm3030_vm11, %v4030_v10 }
 0x8a9   : > { %v3078_v63 = vpop.f32.mrf.mxu2 }
 0x8b1   : > { %v3052_v31 = vpop.f32.mrf.mxu0  ;;  %v3080_v28 = vpop.f32.mrf.mxu2 }
 0x8b2   : > { %v3110_v39 = vadd.f32 %v3109_v37, %v3052_v31 }
 0x8b3   : > { %v3065_v17 = vpop.f32.mrf.mxu1 }
 0x8b9   : > { %v3054_v44 = vpop.f32.mrf.mxu0 }
 0x8ba   : > { %v3192_v8 = vpop.f32.mrf.mxu2 }
 0x8bb   : > { %v3067_v18 = vpop.f32.mrf.mxu1  ;;  %v3222_v38 = vadd.f32 %v3192_v8, %v3110_v39  ;;  %v3746_v8 = vpop.permute.xlu2 %3745 }
 0x8c1   : > { %v3122_v45 = vpop.f32.mrf.mxu0 }
 0x8c2   : > { %v3123_v58 = vadd.f32 %v3122_v45, %v3065_v17  ;;  %v3194_v60 = vpop.f32.mrf.mxu2 }
 0x8c3   : > { %v3135_v42 = vpop.f32.mrf.mxu1 }
 0x8c4   : > { %v3136_v7 = vadd.f32 %v3135_v42, %v3078_v63 }
 0x8c9   : > { %v3124_v32 = vpop.f32.mrf.mxu0 }
 0x8ca   : > { %v3765_v32 = vpop.permute.xlu1 %3764 }
 0x8cb   : > { %v3137_v46 = vpop.f32.mrf.mxu1 }
 0x8cf   : > { %v3291_v21 = vpop.f32.mrf.mxu2 }
 0x8d2   : > { %v3218_v23 = vpop.f32.mrf.mxu0  ;;  %v3205_v4 = vpop.f32.mrf.mxu3 }
 0x8d3   : > { %v3223_v12 = vadd.f32 %v3205_v4, %v3123_v58  ;;  %v3224_v14 = vadd.f32 %v3218_v23, %v3136_v7  ;;  %v3763_v23 = vpop.permute.xlu0 %3762 }
 0x8d5   : > { %v3309_v49 = vadd.f32 %v3291_v21, %v3223_v12 }
 0x8d7   : > { %v3293_v35 = vpop.f32.mrf.mxu2 }
 0x8da   : > { %v3220_v53 = vpop.f32.mrf.mxu0  ;;  %v3207_v30 = vpop.f32.mrf.mxu3 }
 0x8db   : > { %v3768_v53 = vsel %vm592_vm6, %v3763_v23, %v3765_v32 }
 0x8dc   : > { %v3278_v57 = vpop.f32.mrf.mxu1 }
 0x8dd   : > { %v3308_v56 = vadd.f32 %v3278_v57, %v3222_v38 }
 0x8e2   : > { %v3304_v9 = vpop.f32.mrf.mxu3 }
 0x8e3   : > { %v3310_v6 = vadd.f32 %v3304_v9, %v3224_v14 }
 0x8e4   : > { %v3280_v20 = vpop.f32.mrf.mxu1 }
 0x8ea   : > { %v3306_v0 = vpop.f32.mrf.mxu3 }
 0x8eb   : > { %v3390_v29 = vpop.f32.mrf.mxu2 }
 0x8ec   : > { %v3377_v25 = vpop.f32.mrf.mxu1  ;;  %v3396_v15 = vadd.f32 %v3390_v29, %v3310_v6  ;;  %v3761_v29 = vpop.permute.xlu2 %3760 }
 0x8ed   : > { %v3364_v22 = vpop.f32.mrf.mxu0  ;;  %v3395_v34 = vadd.f32 %v3377_v25, %v3309_v49 }
 0x8ee   : > { %v3394_v63 = vadd.f32 %v3364_v22, %v3308_v56 }
 0x8f2   : > { %v3450_v36 = vpop.f32.mrf.mxu3 }
 0x8f3   : > { %v3392_v43 = vpop.f32.mrf.mxu2  ;;  %v3480_v28 = vadd.f32 %v3450_v36, %v3394_v63 }
 0x8f4   : > { %v3379_v33 = vpop.f32.mrf.mxu1 }
 0x8f5   : > { %v3366_v24 = vpop.f32.mrf.mxu0 }
 0x8fa   : > { %v3452_v51 = vpop.f32.mrf.mxu3 }
 0x8fb   : > { %v3536_v50 = vpop.f32.mrf.mxu2 }
 0x8fc   : > { %v3476_v62 = vpop.f32.mrf.mxu1  ;;  %v3566_v45 = vadd.f32 %v3536_v50, %v3480_v28 }
 0x8fd   : > { %v3463_v52 = vpop.f32.mrf.mxu0  ;;  %v3482_v40 = vadd.f32 %v3476_v62, %v3396_v15 }
 0x8fe   : > { %v3481_v55 = vadd.f32 %v3463_v52, %v3395_v34 }
 0x902   : > { %v3549_v13 = vpop.f32.mrf.mxu3 }
 0x903   : > { %v3538_v27 = vpop.f32.mrf.mxu2  ;;  %v3567_v1 = vadd.f32 %v3549_v13, %v3481_v55 }
 0x904   : > { %v3478_v11 = vpop.f32.mrf.mxu1 }
 0x905   : > { %v3465_v54 = vpop.f32.mrf.mxu0 }
 0x90a   : > { %v3551_v41 = vpop.f32.mrf.mxu3 }
 0x90b   : > { %v3635_v16 = vpop.f32.mrf.mxu2 }
 0x90c   : > { %v3622_v3 = vpop.f32.mrf.mxu1  ;;  %v3653_v39 = vadd.f32 %v3635_v16, %v3567_v1 }
 0x90d   : > { %v3562_v59 = vpop.f32.mrf.mxu0  ;;  %v3652_v7 = vadd.f32 %v3622_v3, %v3566_v45 }
 0x90e   : > { %v3568_v37 = vadd.f32 %v3562_v59, %v3482_v40 }
 0x912   : > { %v3648_v19 = vpop.f32.mrf.mxu3 }
 0x913   : > { %v3637_v26 = vpop.f32.mrf.mxu2  ;;  %v3654_v31 = vadd.f32 %v3648_v19, %v3568_v37 }
 0x914   : > { %v3624_v5 = vpop.f32.mrf.mxu1 }
 0x915   : > { %v3564_v10 = vpop.f32.mrf.mxu0 }
 0x91a   : > { %v3650_v18 = vpop.f32.mrf.mxu3 }
 0x91b   : > { %v3734_v17 = vpop.f32.mrf.mxu2 }
 0x91c   : > { %v3740_v44 = vadd.f32 %v3734_v17, %v3654_v31  ;;  %v3721_v58 = vpop.f32.mrf.mxu1 }
 0x91d   : > { %v3739_v60 = vadd.f32 %v3721_v58, %v3653_v39 }
 0x91e   : > { %v3750_v42 = vadd.f32 %v3746_v8, %v3740_v44 }
 0x91f   : > { %v3749_v46 = vadd.f32 %v3746_v8, %v3739_v60  ;;  %v3708_v21 = vpop.f32.mrf.mxu0 }
 0x920   : > { %v3753_v38 = vmul.f32 %v3750_v42, %v4302_v61  ;;  %v3738_v4 = vadd.f32 %v3708_v21, %v3652_v7 }
 0x921   : > { %v3752_v12 = vmul.f32 %v3749_v46, %v4294_v47  ;;  %v3767_v47 = vsel %vm592_vm6, %v3761_v29, %v3763_v23 }
 0x922   : > { %v3756_v49 = vmul.f32 0.2, %v3753_v38  ;;  %v3748_v35 = vadd.f32 %v3746_v8, %v3738_v4 }
 0x923   : > { %v3736_v30 = vpop.f32.mrf.mxu2  ;;  %v3755_v9 = vmul.f32 0.2, %v3752_v12 }
 0x924   : > { %v3774_v57 = vadd.f32 %v3765_v32, %v3756_v49  ;;  %v3751_v20 = vmul.f32 %v3748_v35, %v4296_v48  ;;  %v3723_v0 = vpop.f32.mrf.mxu1 }
 0x925   : > { %v3773_v22 = vadd.f32 %v3768_v53, %v3755_v9 }
 0x926   : > { %3783 = vrot.lane.b32.xlu1 %v3774_v57, %s4079_s19  ;;  %v3754_v61 = vmul.f32 0.2, %v3751_v20 }
 0x927   : > { %3781 = vrot.lane.b32.xlu0 %v3773_v22, %s4079_s19  ;;  %v3710_v25 = vpop.f32.mrf.mxu0 }
 0x928   : > { %v3772_v43 = vadd.f32 %v3767_v47, %v3754_v61 }
 0x92a   : > { %3779 = vrot.lane.b32.xlu2 %v3772_v43, %s4079_s19 }
 0x984   : > { %v3780_v36 = vpop.permute.xlu2 %3779 }
 0x985   : > { %3790 = vst.msk [vmem:[%s5401_s16] sm:$0xff] %vm951_vm0, %v3780_v36 }
 0x998   : > { %v3784_v48 = vpop.permute.xlu1 %3783 }
 0x999   : > { %v3782_v24 = vpop.permute.xlu0 %3781 }
 0x99a   : > { %v3785_v33 = vsel %vm315_vm14, %v3780_v36, %v3782_v24  ;;  %v3786_v50 = vsel %vm315_vm14, %v3782_v24, %v3784_v48 }
 0x99b   : > { %3791 = vst [vmem:[%s5401_s16 + $0x8] sm:$0xff] %v3785_v33 }
 0x99c   : > { %3792 = vst.msk [vmem:[%s5401_s16 + $0x10] sm:$0xff] %vm954_vm2, %v3786_v50 }
 0x99d   : > { %3793 = vst.msk [vmem:[%s5401_s16 + $0x10] sm:$0xff] %vm320_vm15, %v4080_v2 }
 0x99e PF: > { %s18_s27 = sadd.s32 1, %s4068_s27  }
 0x99f   : > { %p15_p4 = scmp.ge.s32.totalorder %s18_s27, 4  }
 0x9a1   :  { %17 = sbr.rel (!%p15_p4) target bundleno = 1 (0x1), region = 126 }

// kernel: generator_forward.11
= control target key start
LH: loop header
LB: loop body
LE: loop exit
PB: predicated region body
PF: predicated region fallthrough
CT: control target
= control target key end

     0   :  { %s4214_s30 = smov 0   ;;  %s5526_s0 = inlined_call_operand.vmem [shape: f32[2,8,324], index: 0, kind: input, shape index: {}]   ;;  %s5527_s1 = inlined_call_operand.vmem [shape: f32[2,8,324], index: 1, kind: input, shape index: {}]   ;;  %s5528_s2 = inlined_call_operand.vmem [shape: bf16[9,8,8], index: 2, kind: input, shape index: {}]   ;;  %s5529_s3 = inlined_call_operand.vmem [shape: bf16[9,8,16], index: 3, kind: input, shape index: {}]   ;;  %s5530_s4 = inlined_call_operand.vmem [shape: bf16[9,8,24], index: 4, kind: input, shape index: {}]   ;;  %s5531_s5 = inlined_call_operand.vmem [shape: bf16[9,8,32], index: 5, kind: input, shape index: {}]   ;;  %s5532_s6 = inlined_call_operand.vmem [shape: bf16[9,8,40], index: 6, kind: input, shape index: {}]   ;;  %s5533_s7 = inlined_call_operand.vmem [shape: f32[5,8,1], index: 7, kind: input, shape index: {}]   ;;  %s5534_s8 = inlined_call_operand.vmem [shape: f32[1,286], index: 8, kind: input, shape index: {}]   ;;  %s5535_s9 = inlined_call_operand.vmem [shape: f32[2,8,324], index: 9, kind: output, shape index: {}]  }
   0x1 LB: > { %s3931_s10 = sadd.s32 4294967295, %s4151_s30   ;;  %p3935_p0 = scmp.ge.s32.totalorder %s4151_s30, 1  ;;  %s4151_s30 = sphi %s4214_s30, %s19_s30  }
   0x2   : > { %p297_p1 = scmp.lt.s32.totalorder %s4151_s30, 3 }
   0x4   : > { %p298_p2 = pnand %p3935_p0, %p297_p1 }
   0x5   : > { %p338_p3 = scmp.lt.s32.totalorder (!%p298_p2), %s3931_s10, 1  ;;  %s4153_s15 = smov (!%p298_p2), 127  }
   0x6   : > { %301 = sbr.rel (%p298_p2) target bundleno = 2466 (0x9a2), region = 56  ;;  %s4154_s16 = smov (!%p298_p2), 126  }
   0x7   : > { %s4155_s17 = smov (!%p298_p2), 110   ;;  %s4156_s18 = smov (!%p298_p2), 109  }
   0x8   : > { %s4157_s19 = smov (!%p298_p2), 108   ;;  %s4158_s20 = smov (!%p298_p2), 92  }
   0x9   : > { %s4159_s21 = smov (!%p298_p2), 91   ;;  %s4160_s22 = smov (!%p298_p2), 90  }
   0xa   : > { %s4162_s23 = smov (!%p298_p2), 19  }
   0xb   : > { %s5537_s10 = smov (!%p338_p3, %s3931_s10), 1  ;;  %vm360_vm0 = vcmask 556032   ;;  %vm401_vm1 = vcmask 1043456   ;;  %vm397_vm2 = vcmask 64512   ;;  %v377_v13 = vld [vmem:[%s5528_s2] sm:$0xf] }
   0xc   : > { %s4222_s11 = smul.u32 24, %s5537_s10  ;;  %vm509_vm3 = vcmask 1031168   ;;  %v4277_v18 = vld [vmem:[%s5528_s2 + $0x8] sm:$0xf]  ;;  %vm394_vm4 = vcmask 1039360   ;;  %vm574_vm5 = vcmask 900096  }
   0xd   : > { %v4285_v22 = vld [vmem:[%s5528_s2 + $0xc] sm:$0xf]  ;;  %v3939_v30 = vld [vmem:[%s5528_s2 + $0x4] sm:$0xf]  ;;  %vm639_vm6 = vcmask 891904   ;;  %vm704_vm7 = vcmask 883712  }
   0xe   : > { %s342_s14 = scalar_lea.vmem %s5526_s0, %s4222_s11  ;;  %v3958_v58 = vld [vmem:[%s5528_s2 + $0x14] sm:$0xf]  ;;  %vm769_vm8 = vcmask 752640   ;;  %vm834_vm9 = vcmask 744448   ;;  %vm899_vm10 = vcmask 736256   ;;  %vm362_vm14 = vcmask 154624   ;;  %s5498_s25 = scalar_lea.vmem %s5535_s9, %s4222_s11 }
   0xf   : > { %v4228_v0 = vld [vmem:[%s342_s14 + $0x10] sm:$0xff]  ;;  %v355_v1 = vld [vmem:[%s342_s14] sm:$0xff]  ;;  %v356_v2 = vld [vmem:[%s342_s14 + $0x8] sm:$0xff]  ;;  %vm367_vm15 = vcmask 556424  }
  0x10   : > { %361 = vst.msk [vmem:[#allocation2 + $0x10] sm:$0xff] %vm360_vm0, %v4228_v0  ;;  %v375_v3 = vpack.c.bf16 %v356_v2, %v355_v1  ;;  %vm998_vm0 = vcmask 1047704  }
  0x11   : > { %358 = vst [vmem:[#allocation2] sm:$0xff] %v355_v1 }
  0x12   : > { %359 = vst [vmem:[#allocation2 + $0x8] sm:$0xff] %v356_v2  ;;  %v4231_v4 = vunpack.c.l.b16 %v375_v3  ;;  %v4233_v5 = vunpack.c.h.b16 %v375_v3 }
  0x14   : > { %v385_v6 = vpack.c.b16 %v4231_v4, %v4231_v4  ;;  %v386_v7 = vpack.c.b16 %v4233_v5, %v4233_v5 }
  0x16   : > { %388 = vrot.lane.b32.xlu0 %v385_v6, %s4153_s15  ;;  %505 = vrot.lane.b32.xlu2 %v386_v7, %s4154_s16  ;;  %v454_v12 = vsel %vm401_vm1, %v385_v6, 0  ;;  %v457_v25 = vsel %vm401_vm1, %v386_v7, 0 }
  0x17   : > { %v374_v8 = vld [vmem:[#allocation2 + $0x10] sm:$0xff]  ;;  %469 = vmatpush.bf16.msra.mxu3 %v454_v12 }
  0x18   : > { %v376_v9 = vpack.c.bf16 %v374_v8, %v374_v8  ;;  %v3954_v12 = vld [vmem:[%s5528_s2 + $0x10] sm:$0xf] }
  0x1a   : > { %v4241_v10 = vunpack.c.l.b16 %v376_v9  ;;  %3943 = vmatmul.msk.bf16.vlgmr.msra.gmra.mxu3 %vm397_vm2, %v377_v13 }
  0x1c   : > { %v387_v11 = vpack.c.b16 %v4241_v10, %v4241_v10 }
  0x1e   : > { %392 = vrot.lane.b32.xlu1 %v387_v11, %s4153_s15  ;;  %390 = vrot.lane.b32.xlu0 %v386_v7, %s4153_s15  ;;  %v460_v29 = vsel %vm401_vm1, %v387_v11, 0 }
  0x1f   : > { %507 = vrot.lane.b32.xlu2 %v387_v11, %s4154_s16 }
  0x26   : > { %503 = vrot.lane.b32.xlu1 %v385_v6, %s4154_s16  ;;  %568 = vrot.lane.b32.xlu0 %v385_v6, %s4155_s17 }
  0x27   : > { %572 = vrot.lane.b32.xlu2 %v387_v11, %s4155_s17 }
  0x2e   : > { %570 = vrot.lane.b32.xlu1 %v386_v7, %s4155_s17  ;;  %633 = vrot.lane.b32.xlu0 %v385_v6, %s4156_s18 }
  0x2f   : > { %637 = vrot.lane.b32.xlu2 %v387_v11, %s4156_s18 }
  0x36   : > { %635 = vrot.lane.b32.xlu1 %v386_v7, %s4156_s18  ;;  %698 = vrot.lane.b32.xlu0 %v385_v6, %s4157_s19 }
  0x37   : > { %702 = vrot.lane.b32.xlu2 %v387_v11, %s4157_s19 }
  0x3e   : > { %700 = vrot.lane.b32.xlu1 %v386_v7, %s4157_s19  ;;  %763 = vrot.lane.b32.xlu0 %v385_v6, %s4158_s20 }
  0x3f   : > { %767 = vrot.lane.b32.xlu2 %v387_v11, %s4158_s20 }
  0x46   : > { %765 = vrot.lane.b32.xlu1 %v386_v7, %s4158_s20  ;;  %828 = vrot.lane.b32.xlu0 %v385_v6, %s4159_s21 }
  0x47   : > { %832 = vrot.lane.b32.xlu2 %v387_v11, %s4159_s21 }
  0x4e   : > { %830 = vrot.lane.b32.xlu1 %v386_v7, %s4159_s21  ;;  %893 = vrot.lane.b32.xlu0 %v385_v6, %s4160_s22 }
  0x4f   : > { %897 = vrot.lane.b32.xlu2 %v387_v11, %s4160_s22 }
  0x56   : > { %895 = vrot.lane.b32.xlu1 %v386_v7, %s4160_s22 }
  0x70   : > { %v506_v14 = vpop.permute.xlu2 %505 }
  0x79   : > { %v508_v15 = vpop.permute.xlu2 %507 }
  0x7a   : > { %v511_v16 = vsel %vm509_vm3, %v506_v14, %v508_v15  ;;  %v522_v33 = vsel %vm401_vm1, %v508_v15, 0 }
  0x7b   : > { %v519_v17 = vsel %vm401_vm1, %v511_v16, 0 }
  0x7c   : > { %544 = vmatpush.bf16.msrb.mxu3 %v519_v17 }
  0x7f   : > { %3948 = vmatmul.msk.bf16.vlgmr.msrb.gmra.mxu3 %vm397_vm2, %v4277_v18 }
  0x81   : > { %v573_v20 = vpop.permute.xlu2 %572 }
  0x82   : > { %v587_v21 = vsel %vm401_vm1, %v573_v20, 0 }
  0x83   : > { %622 = vmatpush.bf16.msra.mxu3 %v587_v21 }
  0x88   : > { %v389_v19 = vpop.permute.xlu0 %388 }
  0x89   : > { %v638_v38 = vpop.permute.xlu2 %637 }
  0x8a   : > { %v652_v45 = vsel %vm401_vm1, %v638_v38, 0 }
  0x8f   : > { %3953 = vmatmul.msk.bf16.vlgmr.msra.gmra.mxu3 %vm397_vm2, %v4285_v22 }
  0x90   : > { %v393_v23 = vpop.permute.xlu1 %392  ;;  %v391_v24 = vpop.permute.xlu0 %390 }
  0x91   : > { %v409_v26 = vsel %vm401_vm1, %v393_v23, 0  ;;  %v395_v27 = vsel %vm394_vm4, %v389_v19, %v391_v24  ;;  %v396_v28 = vsel %vm394_vm4, %v391_v24, %v393_v23  ;;  %v703_v49 = vpop.permute.xlu2 %702  ;;  %v3966_v23 = vld [vmem:[%s5528_s2 + $0x1c] sm:$0xf] }
  0x92   : > { %444 = vmatpush.bf16.msra.mxu2 %v409_v26  ;;  %v403_v31 = vsel %vm401_vm1, %v395_v27, 0  ;;  %v406_v32 = vsel %vm401_vm1, %v396_v28, 0  ;;  %v717_v60 = vsel %vm401_vm1, %v703_v49, 0  ;;  %v956_v27 = vld [vmem:[%s5533_s7] sm:$0xff]  ;;  %v4161_v28 = vmov 0  }
  0x93   : > { %418 = vmatpush.bf16.msra.mxu0 %v403_v31  ;;  %431 = vmatpush.bf16.msra.mxu1 %v406_v32 }
  0x94   : > { %4140 = vset.pattern.permute.xlu0 %v4161_v28  ;;  %4141 = vset.pattern.permute.xlu2 %v4161_v28 }
  0x95   : > { %3942 = vmatmul.msk.bf16.vlgmr.msra.gmra.mxu2 %vm397_vm2, %v3939_v30  ;;  %959 = vperm.xlu0 %4140, %v956_v27  }
  0x96   : > { %3940 = vmatmul.msk.bf16.vlgmr.msra.gmra.mxu0 %vm397_vm2, %v3939_v30  ;;  %3941 = vmatmul.msk.bf16.vlgmr.msra.gmra.mxu1 %vm397_vm2, %v3939_v30 }
  0x97   : > { %482 = vmatpush.bf16.msrb.mxu0 %v457_v25  ;;  %495 = vmatpush.bf16.msrb.mxu1 %v460_v29  ;;  %v3970_v29 = vld [vmem:[%s5528_s2 + $0x20] sm:$0xf] }
  0x98   : > { %v504_v34 = vpop.permute.xlu1 %503  ;;  %v569_v37 = vpop.permute.xlu0 %568  ;;  %4142 = vset.pattern.permute.xlu1 %v4161_v28 }
  0x99   : > { %v510_v35 = vsel %vm509_vm3, %v504_v34, %v506_v14  ;;  %v768_v57 = vpop.permute.xlu2 %767  ;;  %v3962_v14 = vld [vmem:[%s5528_s2 + $0x18] sm:$0xf] }
  0x9a   : > { %v516_v36 = vsel %vm401_vm1, %v510_v35, 0  ;;  %v782_v16 = vsel %vm401_vm1, %v768_v57, 0 }
  0x9b   : > { %557 = vmatpush.bf16.msra.mxu0 %v522_v33  ;;  %531 = vmatpush.bf16.msrb.mxu2 %v516_v36 }
  0x9d   : > { %v471_v30 = vpop.f32.mrf.mxu3 }
  0xa0   : > { %v571_v39 = vpop.permute.xlu1 %570  ;;  %v634_v44 = vpop.permute.xlu0 %633 }
  0xa1   : > { %v576_v40 = vsel %vm574_vm5, %v571_v39, %v573_v20  ;;  %v575_v41 = vsel %vm574_vm5, %v569_v37, %v571_v39  ;;  %v833_v6 = vpop.permute.xlu2 %832 }
  0xa2   : > { %v584_v42 = vsel %vm401_vm1, %v576_v40, 0  ;;  %v581_v43 = vsel %vm401_vm1, %v575_v41, 0  ;;  %v847_v7 = vsel %vm401_vm1, %v833_v6, 0 }
  0xa3   : > { %609 = vmatpush.bf16.msra.mxu2 %v584_v42  ;;  %596 = vmatpush.bf16.msra.mxu1 %v581_v43 }
  0xa5   : > { %3947 = vmatmul.msk.bf16.vlgmr.msrb.gmra.mxu2 %vm397_vm2, %v4277_v18  ;;  %v473_v31 = vpop.f32.mrf.mxu3 }
  0xa6   : > { %3944 = vmatmul.msk.bf16.vlgmr.msrb.gmra.mxu0 %vm397_vm2, %v377_v13  ;;  %3945 = vmatmul.msk.bf16.vlgmr.msrb.gmra.mxu1 %vm397_vm2, %v377_v13 }
  0xa7   : > { %687 = vmatpush.bf16.msrb.mxu2 %v652_v45 }
  0xa8   : > { %v636_v46 = vpop.permute.xlu1 %635  ;;  %v699_v52 = vpop.permute.xlu0 %698 }
  0xa9   : > { %v640_v47 = vsel %vm639_vm6, %v634_v44, %v636_v46  ;;  %v641_v48 = vsel %vm639_vm6, %v636_v46, %v638_v38 }
  0xaa   : > { %v646_v50 = vsel %vm401_vm1, %v640_v47, 0  ;;  %v649_v51 = vsel %vm401_vm1, %v641_v48, 0 }
  0xab   : > { %661 = vmatpush.bf16.msrb.mxu0 %v646_v50  ;;  %674 = vmatpush.bf16.msrb.mxu1 %v649_v51 }
  0xb0   : > { %v701_v53 = vpop.permute.xlu1 %700  ;;  %v764_v61 = vpop.permute.xlu0 %763 }
  0xb1   : > { %v705_v54 = vsel %vm704_vm7, %v699_v52, %v701_v53  ;;  %v706_v55 = vsel %vm704_vm7, %v701_v53, %v703_v49 }
  0xb2   : > { %v711_v56 = vsel %vm401_vm1, %v705_v54, 0  ;;  %v714_v59 = vsel %vm401_vm1, %v706_v55, 0 }
  0xb3   : > { %726 = vmatpush.bf16.msrb.mxu3 %v711_v56 }
  0xb5   : > { %3952 = vmatmul.msk.bf16.vlgmr.msra.gmra.mxu2 %vm397_vm2, %v4285_v22 }
  0xb6   : > { %3949 = vmatmul.msk.bf16.vlgmr.msra.gmra.mxu0 %vm397_vm2, %v4277_v18  ;;  %3951 = vmatmul.msk.bf16.vlgmr.msra.gmra.mxu1 %vm397_vm2, %v4285_v22  ;;  %v898_v18 = vpop.permute.xlu2 %897 }
  0xb7   : > { %3959 = vmatmul.msk.bf16.vlgmr.msrb.gmra.mxu3 %vm397_vm2, %v3958_v58  ;;  %739 = vmatpush.bf16.msra.mxu0 %v714_v59  ;;  %v912_v24 = vsel %vm401_vm1, %v898_v18, 0 }
  0xb8   : > { %v766_v62 = vpop.permute.xlu1 %765  ;;  %752 = vmatpush.bf16.msra.mxu1 %v717_v60  ;;  %v829_v9 = vpop.permute.xlu0 %828 }
  0xb9   : > { %v770_v63 = vsel %vm769_vm8, %v764_v61, %v766_v62  ;;  %v771_v1 = vsel %vm769_vm8, %v766_v62, %v768_v57 }
  0xba   : > { %v776_v2 = vsel %vm401_vm1, %v770_v63, 0  ;;  %v779_v3 = vsel %vm401_vm1, %v771_v1, 0 }
  0xbb   : > { %791 = vmatpush.bf16.msra.mxu2 %v776_v2  ;;  %804 = vmatpush.bf16.msra.mxu3 %v779_v3 }
  0xbf   : > { %882 = vmatpush.bf16.msrb.mxu3 %v847_v7 }
  0xc0   : > { %v831_v8 = vpop.permute.xlu1 %830  ;;  %v894_v20 = vpop.permute.xlu0 %893 }
  0xc1   : > { %v836_v11 = vsel %vm834_vm9, %v831_v8, %v833_v6  ;;  %v835_v13 = vsel %vm834_vm9, %v829_v9, %v831_v8 }
  0xc2   : > { %v844_v15 = vsel %vm401_vm1, %v836_v11, 0  ;;  %v841_v17 = vsel %vm401_vm1, %v835_v13, 0 }
  0xc5   : > { %3957 = vmatmul.msk.bf16.vlgmr.msrb.gmra.mxu2 %vm397_vm2, %v3954_v12 }
  0xc6   : > { %3955 = vmatmul.msk.bf16.vlgmr.msrb.gmra.mxu0 %vm397_vm2, %v3954_v12  ;;  %3956 = vmatmul.msk.bf16.vlgmr.msrb.gmra.mxu1 %vm397_vm2, %v3954_v12 }
  0xc7   : > { %3964 = vmatmul.msk.bf16.vlgmr.msra.gmra.mxu3 %vm397_vm2, %v3962_v14  ;;  %869 = vmatpush.bf16.msrb.mxu2 %v844_v15 }
  0xc8   : > { %817 = vmatpush.bf16.msrb.mxu0 %v782_v16  ;;  %856 = vmatpush.bf16.msrb.mxu1 %v841_v17  ;;  %v896_v19 = vpop.permute.xlu1 %895 }
  0xc9   : > { %v901_v21 = vsel %vm899_vm10, %v896_v19, %v898_v18  ;;  %v900_v22 = vsel %vm899_vm10, %v894_v20, %v896_v19 }
  0xca   : > { %v906_v25 = vsel %vm401_vm1, %v900_v22, 0  ;;  %v909_v26 = vsel %vm401_vm1, %v901_v21, 0 }
  0xd5   : > { %3963 = vmatmul.msk.bf16.vlgmr.msra.gmra.mxu2 %vm397_vm2, %v3962_v14 }
  0xd6   : > { %3960 = vmatmul.msk.bf16.vlgmr.msra.gmra.mxu0 %vm397_vm2, %v3958_v58  ;;  %3961 = vmatmul.msk.bf16.vlgmr.msra.gmra.mxu1 %vm397_vm2, %v3958_v58 }
  0xd7   : > { %3969 = vmatmul.msk.bf16.vlgmr.msrb.gmra.mxu3 %vm397_vm2, %v3966_v23  ;;  %947 = vmatpush.bf16.msra.mxu2 %v912_v24 }
  0xd8   : > { %921 = vmatpush.bf16.msra.mxu0 %v906_v25  ;;  %934 = vmatpush.bf16.msra.mxu1 %v909_v26 }
  0xe5   : > { %3968 = vmatmul.msk.bf16.vlgmr.msrb.gmra.mxu2 %vm397_vm2, %v3966_v23 }
  0xe6   : > { %3965 = vmatmul.msk.bf16.vlgmr.msrb.gmra.mxu0 %vm397_vm2, %v3962_v14  ;;  %3967 = vmatmul.msk.bf16.vlgmr.msrb.gmra.mxu1 %vm397_vm2, %v3966_v23 }
  0xf5   : > { %3973 = vmatmul.msk.bf16.vlgmr.msra.gmra.mxu2 %vm397_vm2, %v3970_v29 }
  0xf6   : > { %3971 = vmatmul.msk.bf16.vlgmr.msra.gmra.mxu0 %vm397_vm2, %v3970_v29  ;;  %3972 = vmatmul.msk.bf16.vlgmr.msra.gmra.mxu1 %vm397_vm2, %v3970_v29  ;;  %vm1001_vm2 = vcmask 400384  }
 0x102   : > { %v546_v32 = vpop.f32.mrf.mxu3 }
 0x10a   : > { %v548_v33 = vpop.f32.mrf.mxu3 }
 0x112   : > { %v624_v37 = vpop.f32.mrf.mxu3 }
 0x113   : > { %v420_v34 = vpop.f32.mrf.mxu0  ;;  %v433_v35 = vpop.f32.mrf.mxu1 }
 0x114   : > { %v472_v36 = vadd.f32 %v471_v30, %v420_v34 }
 0x118   : > { %v446_v38 = vpop.f32.mrf.mxu2 }
 0x11a   : > { %v626_v41 = vpop.f32.mrf.mxu3 }
 0x11b   : > { %v422_v39 = vpop.f32.mrf.mxu0  ;;  %v435_v40 = vpop.f32.mrf.mxu1 }
 0x120   : > { %v448_v42 = vpop.f32.mrf.mxu2 }
 0x123   : > { %v484_v43 = vpop.f32.mrf.mxu0  ;;  %v497_v44 = vpop.f32.mrf.mxu1 }
 0x124   : > { %v485_v45 = vadd.f32 %v484_v43, %v433_v35  ;;  %v498_v46 = vadd.f32 %v497_v44, %v446_v38  ;;  %v960_v38 = vpop.permute.xlu0 %959  ;;  %v354_v43 = vld [vmem:[%s5534_s8] sm:$0x7] }
 0x126   : > { %v564_v47 = vadd.f32 %v546_v32, %v485_v45 }
 0x128   : > { %v533_v48 = vpop.f32.mrf.mxu2 }
 0x129   : > { %v563_v20 = vadd.f32 %v533_v48, %v472_v36  ;;  %v4382_v48 = vperm.slane %v354_v43, 0 }
 0x12b   : > { %v486_v49 = vpop.f32.mrf.mxu0  ;;  %v499_v50 = vpop.f32.mrf.mxu1 }
 0x130   : > { %v535_v51 = vpop.f32.mrf.mxu2 }
 0x133   : > { %v559_v52 = vpop.f32.mrf.mxu0  ;;  %v598_v53 = vpop.f32.mrf.mxu1 }
 0x134   : > { %v565_v54 = vadd.f32 %v559_v52, %v498_v46  ;;  %v628_v22 = vadd.f32 %v598_v53, %v563_v20 }
 0x136   : > { %v630_v55 = vadd.f32 %v624_v37, %v565_v54 }
 0x138   : > { %v611_v56 = vpop.f32.mrf.mxu2 }
 0x139   : > { %v629_v21 = vadd.f32 %v611_v56, %v564_v47  ;;  %v4380_v47 = vperm.slane %v354_v43, 1 }
 0x13a   : > { %v728_v57 = vpop.f32.mrf.mxu3 }
 0x13b   : > { %v561_v58 = vpop.f32.mrf.mxu0  ;;  %v600_v59 = vpop.f32.mrf.mxu1 }
 0x140   : > { %v613_v60 = vpop.f32.mrf.mxu2 }
 0x142   : > { %v730_v61 = vpop.f32.mrf.mxu3 }
 0x143   : > { %v663_v62 = vpop.f32.mrf.mxu0  ;;  %v676_v63 = vpop.f32.mrf.mxu1  ;;  %v4388_v61 = vperm.slane %v354_v43, 2 }
 0x144   : > { %v693_v24 = vadd.f32 %v663_v62, %v628_v22  ;;  %v694_v25 = vadd.f32 %v676_v63, %v629_v21 }
 0x146   : > { %v758_v29 = vadd.f32 %v728_v57, %v693_v24 }
 0x148   : > { %v689_v1 = vpop.f32.mrf.mxu2 }
 0x149   : > { %v695_v30 = vadd.f32 %v689_v1, %v630_v55 }
 0x14a   : > { %v806_v2 = vpop.f32.mrf.mxu3 }
 0x14b   : > { %v665_v3 = vpop.f32.mrf.mxu0  ;;  %v678_v6 = vpop.f32.mrf.mxu1 }
 0x150   : > { %v691_v7 = vpop.f32.mrf.mxu2 }
 0x152   : > { %v808_v8 = vpop.f32.mrf.mxu3 }
 0x153   : > { %v741_v9 = vpop.f32.mrf.mxu0  ;;  %v754_v11 = vpop.f32.mrf.mxu1 }
 0x154   : > { %v759_v28 = vadd.f32 %v741_v9, %v694_v25  ;;  %v760_v34 = vadd.f32 %v754_v11, %v695_v30 }
 0x156   : > { %v824_v32 = vadd.f32 %v806_v2, %v759_v28  ;;  %v4163_v2 = vmov 0.0  }
 0x157   : > { %363 = vst.msk [vmem:[#allocation2 + $0x18] sm:$0xff] %vm362_vm14, %v4163_v2 }
 0x158   : > { %v793_v12 = vpop.f32.mrf.mxu2  ;;  %364 = vst.msk [vmem:[#allocation2 + $0x30] sm:$0xff] %vm362_vm14, %v4163_v2 }
 0x159   : > { %v823_v31 = vadd.f32 %v793_v12, %v758_v29  ;;  %365 = vst.msk [vmem:[#allocation2 + $0x48] sm:$0xff] %vm362_vm14, %v4163_v2 }
 0x15a   : > { %v884_v13 = vpop.f32.mrf.mxu3  ;;  %366 = vst.msk [vmem:[#allocation2 + $0x60] sm:$0xff] %vm362_vm14, %v4163_v2 }
 0x15b   : > { %v743_v14 = vpop.f32.mrf.mxu0  ;;  %v756_v15 = vpop.f32.mrf.mxu1  ;;  %368 = vst.msk [vmem:[#allocation2 + $0x28] sm:$0xff] %vm367_vm15, %v4163_v2 }
 0x15c   : > { %369 = vst.msk [vmem:[#allocation2 + $0x40] sm:$0xff] %vm367_vm15, %v4163_v2 }
 0x15d   : > { %370 = vst.msk [vmem:[#allocation2 + $0x58] sm:$0xff] %vm367_vm15, %v4163_v2 }
 0x15e   : > { %371 = vst.msk [vmem:[#allocation2 + $0x70] sm:$0xff] %vm367_vm15, %v4163_v2 }
 0x15f   : > { %3845 = vst.msk [vmem:[%s5498_s25] sm:$0xff] %vm362_vm14, %v4163_v2 }
 0x160   : > { %v795_v16 = vpop.f32.mrf.mxu2 }
 0x162   : > { %v886_v17 = vpop.f32.mrf.mxu3 }
 0x163   : > { %v819_v18 = vpop.f32.mrf.mxu0  ;;  %v858_v19 = vpop.f32.mrf.mxu1 }
 0x164   : > { %v888_v37 = vadd.f32 %v858_v19, %v823_v31  ;;  %v825_v39 = vadd.f32 %v819_v18, %v760_v34 }
 0x166   : > { %v890_v46 = vadd.f32 %v884_v13, %v825_v39 }
 0x168   : > { %v871_v23 = vpop.f32.mrf.mxu2 }
 0x169   : > { %v889_v35 = vadd.f32 %v871_v23, %v824_v32  ;;  %v3974_v23 = vld [vmem:[%s5529_s3 + $0x4] sm:$0xf] }
 0x16b   : > { %v821_v26 = vpop.f32.mrf.mxu0  ;;  %v860_v27 = vpop.f32.mrf.mxu1 }
 0x170   : > { %v873_v33 = vpop.f32.mrf.mxu2 }
 0x171   : > { %v3981_v33 = vld [vmem:[%s5529_s3 + $0x8] sm:$0xf] }
 0x173   : > { %v923_v40 = vpop.f32.mrf.mxu0  ;;  %v936_v36 = vpop.f32.mrf.mxu1 }
 0x174   : > { %v953_v41 = vadd.f32 %v923_v40, %v888_v37  ;;  %v954_v42 = vadd.f32 %v936_v36, %v889_v35 }
 0x176   : > { %v962_v44 = vadd.f32 %v960_v38, %v953_v41  ;;  %v963_v45 = vadd.f32 %v960_v38, %v954_v42 }
 0x178   : > { %v949_v49 = vpop.f32.mrf.mxu2  ;;  %vm965_vm11 = vcmp.gt.f32.partialorder %v962_v44, 0.0  ;;  %v968_v50 = vmul.f32 0.01, %v962_v44  ;;  %vm966_vm12 = vcmp.gt.f32.partialorder %v963_v45, 0.0  ;;  %v969_v51 = vmul.f32 0.01, %v963_v45 }
 0x179   : > { %v955_v52 = vadd.f32 %v949_v49, %v890_v46 }
 0x17a   : > { %v972_v53 = vsel %vm966_vm12, %v963_v45, %v969_v51  ;;  %v971_v54 = vsel %vm965_vm11, %v962_v44, %v968_v50  ;;  %vm1040_vm11 = vcmask 130048   ;;  %v3985_v44 = vld [vmem:[%s5529_s3 + $0xc] sm:$0xf] }
 0x17b   : > { %v964_v55 = vadd.f32 %v960_v38, %v955_v52  ;;  %v925_v56 = vpop.f32.mrf.mxu0  ;;  %v982_v57 = vmul.f32 %v4380_v47, %v972_v53  ;;  %v981_v58 = vmul.f32 %v4382_v48, %v971_v54  ;;  %v938_v59 = vpop.f32.mrf.mxu1  ;;  %v3989_v54 = vld [vmem:[%s5529_s3 + $0x10] sm:$0xf] }
 0x17d   : > { %989 = vrot.lane.b32.xlu2 %v982_v57, %s4162_s23  ;;  %987 = vrot.lane.b32.xlu1 %v981_v58, %s4162_s23  ;;  %vm967_vm13 = vcmp.gt.f32.partialorder %v964_v55, 0.0  ;;  %v970_v60 = vmul.f32 0.01, %v964_v55 }
 0x17f   : > { %v973_v63 = vsel %vm967_vm13, %v964_v55, %v970_v60  ;;  %v3993_v55 = vld [vmem:[%s5529_s3 + $0x14] sm:$0xf] }
 0x180   : > { %v951_v62 = vpop.f32.mrf.mxu2  ;;  %v983_v1 = vmul.f32 %v4388_v61, %v973_v63  ;;  %v3997_v63 = vld [vmem:[%s5529_s3 + $0x18] sm:$0xf] }
 0x185   : > { %991 = vrot.lane.b32.xlu1 %v983_v1, %s4162_s23 }
 0x1d7   : > { %v990_v3 = vpop.permute.xlu2 %989 }
 0x1ef   : > { %v988_v6 = vpop.permute.xlu1 %987 }
 0x1f0   : > { %v993_v7 = vsel %vm362_vm14, %v988_v6, %v990_v3  ;;  %999 = vst.msk [vmem:[#allocation2 + $0x18] sm:$0xff] %vm998_vm0, %v988_v6 }
 0x1f7   : > { %v1006_v8 = vld [vmem:[#allocation2 + $0x18] sm:$0xff]  ;;  %v992_v9 = vpop.permute.xlu1 %991 }
 0x1f8   : > { %v4410_v11 = vpack.c.bf16 %v993_v7, %v1006_v8  ;;  %v994_v12 = vsel %vm362_vm14, %v990_v3, %v992_v9  ;;  %v4001_v8 = vld [vmem:[%s5529_s3 + $0x1c] sm:$0xf]  ;;  %v4005_v9 = vld [vmem:[%s5529_s3 + $0x20] sm:$0xf] }
 0x1f9   : > { %1002 = vst.msk [vmem:[#allocation2 + $0x28] sm:$0xff] %vm1001_vm2, %v994_v12 }
 0x1fa   : > { %v1023_v13 = vunpack.c.l.b16 %v4410_v11  ;;  %v1024_v14 = vunpack.c.h.b16 %v4410_v11 }
 0x1fc   : > { %v1027_v15 = vpack.c.b16 %v1024_v14, %v4233_v5  ;;  %v1026_v16 = vpack.c.b16 %v1023_v13, %v4231_v4  ;;  %v1013_v4 = vld [vmem:[%s5529_s3] sm:$0xf] }
 0x1fe   : > { %1031 = vrot.lane.b32.xlu0 %v1027_v15, %s4153_s15  ;;  %1029 = vrot.lane.b32.xlu2 %v1026_v16, %s4153_s15 }
 0x1ff   : > { %1096 = vmatpush.bf16.msrb.mxu2 %v1026_v16 }
 0x200   : > { %v1008_v17 = vld [vmem:[#allocation2 + $0x28] sm:$0xff] }
 0x201   : > { %v1012_v18 = vpack.c.bf16 %v1008_v17, %v1008_v17 }
 0x202   : > { %3978 = vmatmul.msk.bf16.vlgmr.msrb.gmra.mxu2 %vm1040_vm11, %v1013_v4 }
 0x203   : > { %v1025_v19 = vunpack.c.l.b16 %v1012_v18 }
 0x205   : > { %v4425_v20 = vpack.c.b16 %v1025_v19, %v4241_v10 }
 0x206   : > { %1132 = vrot.lane.b32.xlu0 %v1027_v15, %s4154_s16  ;;  %1130 = vrot.lane.b32.xlu2 %v1026_v16, %s4154_s16 }
 0x207   : > { %1033 = vrot.lane.b32.xlu1 %v4425_v20, %s4153_s15 }
 0x20e   : > { %1190 = vrot.lane.b32.xlu0 %v1027_v15, %s4155_s17  ;;  %1188 = vrot.lane.b32.xlu2 %v1026_v16, %s4155_s17 }
 0x20f   : > { %1134 = vrot.lane.b32.xlu1 %v4425_v20, %s4154_s16 }
 0x216   : > { %1248 = vrot.lane.b32.xlu0 %v1027_v15, %s4156_s18  ;;  %1246 = vrot.lane.b32.xlu2 %v1026_v16, %s4156_s18 }
 0x217   : > { %1192 = vrot.lane.b32.xlu1 %v4425_v20, %s4155_s17 }
 0x21e   : > { %1306 = vrot.lane.b32.xlu0 %v1027_v15, %s4157_s19  ;;  %1304 = vrot.lane.b32.xlu2 %v1026_v16, %s4157_s19 }
 0x21f   : > { %1250 = vrot.lane.b32.xlu1 %v4425_v20, %s4156_s18 }
 0x226   : > { %1364 = vrot.lane.b32.xlu0 %v1027_v15, %s4158_s20  ;;  %1362 = vrot.lane.b32.xlu2 %v1026_v16, %s4158_s20 }
 0x227   : > { %1308 = vrot.lane.b32.xlu1 %v4425_v20, %s4157_s19 }
 0x22e   : > { %1422 = vrot.lane.b32.xlu0 %v1027_v15, %s4159_s21  ;;  %1420 = vrot.lane.b32.xlu2 %v1026_v16, %s4159_s21 }
 0x22f   : > { %1366 = vrot.lane.b32.xlu1 %v4425_v20, %s4158_s20 }
 0x236   : > { %1480 = vrot.lane.b32.xlu0 %v1027_v15, %s4160_s22  ;;  %1478 = vrot.lane.b32.xlu2 %v1026_v16, %s4160_s22 }
 0x237   : > { %1424 = vrot.lane.b32.xlu1 %v4425_v20, %s4159_s21 }
 0x23f   : > { %1482 = vrot.lane.b32.xlu1 %v4425_v20, %s4160_s22 }
 0x258   : > { %v1030_v5 = vpop.permute.xlu2 %1029 }
 0x260   : > { %v1131_v22 = vpop.permute.xlu2 %1130 }
 0x268   : > { %v1189_v28 = vpop.permute.xlu2 %1188 }
 0x270   : > { %v1032_v10 = vpop.permute.xlu0 %1031  ;;  %v1247_v34 = vpop.permute.xlu2 %1246 }
 0x271   : > { %v1035_v21 = vsel %vm394_vm4, %v1030_v5, %v1032_v10 }
 0x272   : > { %1051 = vmatpush.bf16.msra.mxu3 %v1035_v21 }
 0x275   : > { %3975 = vmatmul.msk.bf16.vlgmr.msra.gmra.mxu3 %vm1040_vm11, %v3974_v23 }
 0x276   : > { %1109 = vmatpush.bf16.msrb.mxu3 %v1027_v15  ;;  %v4009_v15 = vld [vmem:[%s5533_s7 + $0x8] sm:$0xff] }
 0x277   : > { %1538 = vperm.xlu2 %4141, %v4009_v15  }
 0x278   : > { %v1133_v24 = vpop.permute.xlu0 %1132  ;;  %v1305_v40 = vpop.permute.xlu2 %1304 }
 0x279   : > { %v1034_v25 = vpop.permute.xlu1 %1033  ;;  %v1136_v26 = vsel %vm509_vm3, %v1131_v22, %v1133_v24 }
 0x27a   : > { %1077 = vmatpush.bf16.msrb.mxu1 %v1034_v25  ;;  %v1036_v27 = vsel %vm394_vm4, %v1032_v10, %v1034_v25 }
 0x27b   : > { %1064 = vmatpush.bf16.msrb.mxu0 %v1036_v27 }
 0x27d   : > { %3977 = vmatmul.msk.bf16.vlgmr.msrb.gmra.mxu1 %vm1040_vm11, %v3974_v23 }
 0x27e   : > { %1151 = vmatpush.bf16.msra.mxu1 %v1136_v26  ;;  %3976 = vmatmul.msk.bf16.vlgmr.msrb.gmra.mxu0 %vm1040_vm11, %v3974_v23 }
 0x27f   : > { %1122 = vmatpush.bf16.msra.mxu0 %v4425_v20 }
 0x280   : > { %v1191_v29 = vpop.permute.xlu0 %1190  ;;  %v1363_v50 = vpop.permute.xlu2 %1362 }
 0x281   : > { %v1135_v30 = vpop.permute.xlu1 %1134  ;;  %v1194_v31 = vsel %vm574_vm5, %v1189_v28, %v1191_v29 }
 0x282   : > { %1177 = vmatpush.bf16.msra.mxu3 %v1135_v30  ;;  %v1137_v32 = vsel %vm509_vm3, %v1133_v24, %v1135_v30 }
 0x283   : > { %1209 = vmatpush.bf16.msrb.mxu0 %v1194_v31  ;;  %1164 = vmatpush.bf16.msra.mxu2 %v1137_v32 }
 0x285   : > { %3979 = vmatmul.msk.bf16.vlgmr.msrb.gmra.mxu3 %vm1040_vm11, %v1013_v4  ;;  %v1098_v12 = vpop.f32.mrf.mxu2 }
 0x286   : > { %3983 = vmatmul.msk.bf16.vlgmr.msra.gmra.mxu2 %vm1040_vm11, %v3981_v33 }
 0x288   : > { %v1249_v35 = vpop.permute.xlu0 %1248  ;;  %v1421_v58 = vpop.permute.xlu2 %1420 }
 0x289   : > { %v1193_v37 = vpop.permute.xlu1 %1192  ;;  %v1252_v38 = vsel %vm639_vm6, %v1247_v34, %v1249_v35 }
 0x28a   : > { %1235 = vmatpush.bf16.msrb.mxu2 %v1193_v37  ;;  %v1195_v39 = vsel %vm574_vm5, %v1191_v29, %v1193_v37  ;;  %1267 = vmatpush.bf16.msrb.mxu3 %v1252_v38 }
 0x28b   : > { %1222 = vmatpush.bf16.msrb.mxu1 %v1195_v39 }
 0x28d   : > { %3982 = vmatmul.msk.bf16.vlgmr.msra.gmra.mxu1 %vm1040_vm11, %v3981_v33  ;;  %v1100_v16 = vpop.f32.mrf.mxu2 }
 0x28e   : > { %3980 = vmatmul.msk.bf16.vlgmr.msra.gmra.mxu0 %vm1040_vm11, %v1013_v4 }
 0x290   : > { %v1307_v36 = vpop.permute.xlu0 %1306  ;;  %v1479_v1 = vpop.permute.xlu2 %1478 }
 0x291   : > { %v1251_v41 = vpop.permute.xlu1 %1250  ;;  %v1310_v42 = vsel %vm704_vm7, %v1305_v40, %v1307_v36 }
 0x292   : > { %1293 = vmatpush.bf16.msra.mxu1 %v1251_v41  ;;  %v1253_v43 = vsel %vm639_vm6, %v1249_v35, %v1251_v41  ;;  %1325 = vmatpush.bf16.msra.mxu2 %v1310_v42 }
 0x293   : > { %1280 = vmatpush.bf16.msra.mxu0 %v1253_v43 }
 0x295   : > { %3984 = vmatmul.msk.bf16.vlgmr.msra.gmra.mxu3 %vm1040_vm11, %v3981_v33 }
 0x296   : > { %3988 = vmatmul.msk.bf16.vlgmr.msrb.gmra.mxu2 %vm1040_vm11, %v3985_v44 }
 0x298   : > { %v1365_v46 = vpop.permute.xlu0 %1364 }
 0x299   : > { %v1309_v45 = vpop.permute.xlu1 %1308  ;;  %v1368_v51 = vsel %vm769_vm8, %v1363_v50, %v1365_v46 }
 0x29a   : > { %v1311_v49 = vsel %vm704_vm7, %v1307_v36, %v1309_v45 }
 0x29b   : > { %1338 = vmatpush.bf16.msra.mxu3 %v1311_v49 }
 0x29d   : > { %3987 = vmatmul.msk.bf16.vlgmr.msrb.gmra.mxu1 %vm1040_vm11, %v3985_v44 }
 0x29e   : > { %1383 = vmatpush.bf16.msrb.mxu1 %v1368_v51  ;;  %3986 = vmatmul.msk.bf16.vlgmr.msrb.gmra.mxu0 %vm1040_vm11, %v3985_v44 }
 0x29f   : > { %1351 = vmatpush.bf16.msrb.mxu0 %v1309_v45 }
 0x2a0   : > { %v1423_v56 = vpop.permute.xlu0 %1422 }
 0x2a1   : > { %v1367_v52 = vpop.permute.xlu1 %1366  ;;  %v1426_v60 = vsel %vm834_vm9, %v1421_v58, %v1423_v56 }
 0x2a2   : > { %v1369_v53 = vsel %vm769_vm8, %v1365_v46, %v1367_v52 }
 0x2a3   : > { %1396 = vmatpush.bf16.msrb.mxu2 %v1369_v53 }
 0x2a5   : > { %3990 = vmatmul.msk.bf16.vlgmr.msrb.gmra.mxu3 %vm1040_vm11, %v3989_v54 }
 0x2a6   : > { %1409 = vmatpush.bf16.msrb.mxu3 %v1367_v52  ;;  %3994 = vmatmul.msk.bf16.vlgmr.msra.gmra.mxu2 %vm1040_vm11, %v3993_v55 }
 0x2a8   : > { %v1481_v62 = vpop.permute.xlu0 %1480 }
 0x2a9   : > { %v1425_v57 = vpop.permute.xlu1 %1424  ;;  %v1484_v3 = vsel %vm899_vm10, %v1479_v1, %v1481_v62 }
 0x2aa   : > { %1467 = vmatpush.bf16.msra.mxu2 %v1425_v57  ;;  %v1427_v59 = vsel %vm834_vm9, %v1423_v56, %v1425_v57 }
 0x2ad   : > { %3992 = vmatmul.msk.bf16.vlgmr.msra.gmra.mxu1 %vm1040_vm11, %v3989_v54 }
 0x2ae   : > { %1454 = vmatpush.bf16.msra.mxu1 %v1427_v59  ;;  %3991 = vmatmul.msk.bf16.vlgmr.msra.gmra.mxu0 %vm1040_vm11, %v3989_v54 }
 0x2af   : > { %1441 = vmatpush.bf16.msra.mxu0 %v1426_v60 }
 0x2b1   : > { %v1483_v6 = vpop.permute.xlu1 %1482 }
 0x2b2   : > { %v1485_v7 = vsel %vm899_vm10, %v1481_v62, %v1483_v6 }
 0x2b5   : > { %3995 = vmatmul.msk.bf16.vlgmr.msra.gmra.mxu3 %vm1040_vm11, %v3993_v55 }
 0x2b6   : > { %1499 = vmatpush.bf16.msra.mxu3 %v1484_v3  ;;  %3999 = vmatmul.msk.bf16.vlgmr.msrb.gmra.mxu2 %vm1040_vm11, %v3997_v63 }
 0x2bd   : > { %3998 = vmatmul.msk.bf16.vlgmr.msrb.gmra.mxu1 %vm1040_vm11, %v3997_v63 }
 0x2be   : > { %1525 = vmatpush.bf16.msrb.mxu1 %v1483_v6  ;;  %3996 = vmatmul.msk.bf16.vlgmr.msrb.gmra.mxu0 %vm1040_vm11, %v3993_v55 }
 0x2bf   : > { %1512 = vmatpush.bf16.msrb.mxu0 %v1485_v7 }
 0x2c5   : > { %4000 = vmatmul.msk.bf16.vlgmr.msrb.gmra.mxu3 %vm1040_vm11, %v3997_v63 }
 0x2c6   : > { %4004 = vmatmul.msk.bf16.vlgmr.msra.gmra.mxu2 %vm1040_vm11, %v4001_v8 }
 0x2cd   : > { %4003 = vmatmul.msk.bf16.vlgmr.msra.gmra.mxu1 %vm1040_vm11, %v4001_v8 }
 0x2ce   : > { %4002 = vmatmul.msk.bf16.vlgmr.msra.gmra.mxu0 %vm1040_vm11, %v4001_v8 }
 0x2d5   : > { %4006 = vmatmul.msk.bf16.vlgmr.msra.gmra.mxu3 %vm1040_vm11, %v4005_v9 }
 0x2dd   : > { %4008 = vmatmul.msk.bf16.vlgmr.msrb.gmra.mxu1 %vm1040_vm11, %v4005_v9 }
 0x2de   : > { %4007 = vmatmul.msk.bf16.vlgmr.msrb.gmra.mxu0 %vm1040_vm11, %v4005_v9 }
 0x2f8   : > { %v1053_v17 = vpop.f32.mrf.mxu3 }
 0x2f9   : > { %v1099_v18 = vadd.f32 %v1098_v12, %v1053_v17 }
 0x2fa   : > { %v1079_v19 = vpop.f32.mrf.mxu1 }
 0x2fb   : > { %v1066_v4 = vpop.f32.mrf.mxu0 }
 0x300   : > { %v1055_v5 = vpop.f32.mrf.mxu3 }
 0x302   : > { %v1081_v10 = vpop.f32.mrf.mxu1 }
 0x303   : > { %v1068_v21 = vpop.f32.mrf.mxu0 }
 0x308   : > { %v1111_v22 = vpop.f32.mrf.mxu3 }
 0x309   : > { %v1112_v23 = vadd.f32 %v1111_v22, %v1066_v4  ;;  %v1166_v24 = vpop.f32.mrf.mxu2 }
 0x30a   : > { %v1153_v25 = vpop.f32.mrf.mxu1 }
 0x30b   : > { %v1183_v26 = vadd.f32 %v1153_v25, %v1099_v18  ;;  %v1124_v27 = vpop.f32.mrf.mxu0  ;;  %v1184_v28 = vadd.f32 %v1166_v24, %v1112_v23 }
 0x30c   : > { %v1125_v29 = vadd.f32 %v1124_v27, %v1079_v19  ;;  %v1539_v27 = vpop.permute.xlu2 %1538 }
 0x310   : > { %v1113_v30 = vpop.f32.mrf.mxu3 }
 0x311   : > { %v1168_v31 = vpop.f32.mrf.mxu2 }
 0x312   : > { %v1155_v32 = vpop.f32.mrf.mxu1 }
 0x313   : > { %v1126_v33 = vpop.f32.mrf.mxu0 }
 0x318   : > { %v1179_v34 = vpop.f32.mrf.mxu3 }
 0x319   : > { %v1237_v35 = vpop.f32.mrf.mxu2  ;;  %v1185_v1 = vadd.f32 %v1179_v34, %v1125_v29 }
 0x31a   : > { %v1224_v37 = vpop.f32.mrf.mxu1 }
 0x31b   : > { %v1211_v38 = vpop.f32.mrf.mxu0  ;;  %v1243_v7 = vadd.f32 %v1237_v35, %v1185_v1  ;;  %v1242_v9 = vadd.f32 %v1224_v37, %v1184_v28 }
 0x31c   : > { %v1241_v6 = vadd.f32 %v1211_v38, %v1183_v26  ;;  %v1573_v38 = vld [vmem:[#allocation2] sm:$0xff] }
 0x320   : > { %v1181_v39 = vpop.f32.mrf.mxu3 }
 0x321   : > { %v1239_v40 = vpop.f32.mrf.mxu2  ;;  %v1574_v39 = vld [vmem:[#allocation2 + $0x8] sm:$0xff] }
 0x322   : > { %v1226_v36 = vpop.f32.mrf.mxu1 }
 0x323   : > { %v1213_v41 = vpop.f32.mrf.mxu0 }
 0x328   : > { %v1269_v42 = vpop.f32.mrf.mxu3 }
 0x329   : > { %v1327_v43 = vpop.f32.mrf.mxu2  ;;  %v1299_v8 = vadd.f32 %v1269_v42, %v1241_v6 }
 0x32a   : > { %v1295_v44 = vpop.f32.mrf.mxu1 }
 0x32b   : > { %v1282_v45 = vpop.f32.mrf.mxu0  ;;  %v1301_v15 = vadd.f32 %v1295_v44, %v1243_v7  ;;  %v1357_v19 = vadd.f32 %v1327_v43, %v1299_v8 }
 0x32c   : > { %v1300_v17 = vadd.f32 %v1282_v45, %v1242_v9  ;;  %v1582_v45 = vpack.c.bf16 %v1574_v39, %v1573_v38 }
 0x330   : > { %v1271_v46 = vpop.f32.mrf.mxu3 }
 0x331   : > { %v1329_v49 = vpop.f32.mrf.mxu2 }
 0x332   : > { %v1297_v50 = vpop.f32.mrf.mxu1 }
 0x333   : > { %v1284_v51 = vpop.f32.mrf.mxu0 }
 0x338   : > { %v1340_v52 = vpop.f32.mrf.mxu3 }
 0x339   : > { %v1398_v53 = vpop.f32.mrf.mxu2  ;;  %v1358_v10 = vadd.f32 %v1340_v52, %v1300_v17 }
 0x33a   : > { %v1385_v54 = vpop.f32.mrf.mxu1 }
 0x33b   : > { %v1353_v55 = vpop.f32.mrf.mxu0  ;;  %v1415_v21 = vadd.f32 %v1385_v54, %v1357_v19  ;;  %v1416_v24 = vadd.f32 %v1398_v53, %v1358_v10  ;;  %v1597_v54 = vunpack.c.l.b16 %v1582_v45  ;;  %v1588_v10 = vld [vmem:[%s5530_s4] sm:$0xf] }
 0x33c   : > { %v1359_v4 = vadd.f32 %v1353_v55, %v1301_v15  ;;  %v1598_v55 = vunpack.c.h.b16 %v1582_v45 }
 0x340   : > { %v1342_v56 = vpop.f32.mrf.mxu3 }
 0x341   : > { %v1400_v57 = vpop.f32.mrf.mxu2  ;;  %v4539_v56 = vpack.c.b16 %v1023_v13, %v1597_v54 }
 0x342   : > { %v1387_v58 = vpop.f32.mrf.mxu1  ;;  %v4545_v57 = vpack.c.b16 %v1024_v14, %v1598_v55 }
 0x343   : > { %v1355_v59 = vpop.f32.mrf.mxu0 }
 0x348   : > { %v1411_v60 = vpop.f32.mrf.mxu3 }
 0x349   : > { %v1469_v62 = vpop.f32.mrf.mxu2  ;;  %v1417_v22 = vadd.f32 %v1411_v60, %v1359_v4 }
 0x34a   : > { %v1456_v63 = vpop.f32.mrf.mxu1 }
 0x34b   : > { %v1443_v3 = vpop.f32.mrf.mxu0  ;;  %v1475_v29 = vadd.f32 %v1469_v62, %v1417_v22  ;;  %v1474_v30 = vadd.f32 %v1456_v63, %v1416_v24  ;;  %v4010_v22 = vld [vmem:[%s5530_s4 + $0x4] sm:$0xf] }
 0x34c   : > { %v1473_v23 = vadd.f32 %v1443_v3, %v1415_v21 }
 0x350   : > { %v1413_v12 = vpop.f32.mrf.mxu3 }
 0x351   : > { %v1471_v16 = vpop.f32.mrf.mxu2 }
 0x352   : > { %v1458_v18 = vpop.f32.mrf.mxu1 }
 0x353   : > { %v1445_v5 = vpop.f32.mrf.mxu0 }
 0x358   : > { %v1501_v25 = vpop.f32.mrf.mxu3 }
 0x359   : > { %v1531_v26 = vadd.f32 %v1501_v25, %v1473_v23  ;;  %v4045_v25 = vld [vmem:[%s5533_s7 + $0x10] sm:$0xff] }
 0x35a   : > { %v1527_v31 = vpop.f32.mrf.mxu1 }
 0x35b   : > { %v1533_v28 = vadd.f32 %v1527_v31, %v1475_v29  ;;  %v1541_v32 = vadd.f32 %v1539_v27, %v1531_v26  ;;  %v1514_v33 = vpop.f32.mrf.mxu0 }
 0x35c   : > { %v1532_v34 = vadd.f32 %v1514_v33, %v1474_v30 }
 0x35d   : > { %v1543_v35 = vadd.f32 %v1539_v27, %v1533_v28  ;;  %vm1544_vm12 = vcmp.gt.f32.partialorder %v1541_v32, 0.0  ;;  %v1547_v37 = vmul.f32 0.01, %v1541_v32 }
 0x35e   : > { %v1542_v40 = vadd.f32 %v1539_v27, %v1532_v34 }
 0x35f   : > { %v1550_v36 = vsel %vm1544_vm12, %v1541_v32, %v1547_v37  ;;  %vm1546_vm13 = vcmp.gt.f32.partialorder %v1543_v35, 0.0  ;;  %v1549_v41 = vmul.f32 0.01, %v1543_v35  ;;  %vm1631_vm12 = vcmask 195584  }
 0x360   : > { %vm1545_vm11 = vcmp.gt.f32.partialorder %v1542_v40, 0.0  ;;  %v1548_v42 = vmul.f32 0.01, %v1542_v40  ;;  %v1503_v43 = vpop.f32.mrf.mxu3  ;;  %v1553_v44 = vmul.f32 %v1550_v36, %v4382_v48 }
 0x361   : > { %v1552_v46 = vsel %vm1546_vm13, %v1543_v35, %v1549_v41 }
 0x362   : > { %1559 = vrot.lane.b32.xlu0 %v1553_v44, %s4162_s23  ;;  %v1555_v49 = vmul.f32 %v1552_v46, %v4388_v61  ;;  %v1551_v50 = vsel %vm1545_vm11, %v1542_v40, %v1548_v42  ;;  %v1529_v51 = vpop.f32.mrf.mxu1 }
 0x363   : > { %v1516_v52 = vpop.f32.mrf.mxu0  ;;  %v1554_v53 = vmul.f32 %v1551_v50, %v4380_v47 }
 0x364   : > { %1563 = vrot.lane.b32.xlu2 %v1555_v49, %s4162_s23 }
 0x365   : > { %1561 = vrot.lane.b32.xlu1 %v1554_v53, %s4162_s23 }
 0x36a   : > { %1612 = vrot.lane.b32.xlu0 %v4539_v56, %s4153_s15 }
 0x36c   : > { %1616 = vrot.lane.b32.xlu2 %v4425_v20, %s4153_s15 }
 0x36d   : > { %1614 = vrot.lane.b32.xlu1 %v4545_v57, %s4153_s15 }
 0x372   : > { %1741 = vrot.lane.b32.xlu0 %v4545_v57, %s4154_s16 }
 0x374   : > { %1739 = vrot.lane.b32.xlu2 %v4539_v56, %s4154_s16 }
 0x375   : > { %1814 = vrot.lane.b32.xlu1 %v4539_v56, %s4155_s17 }
 0x3be   : > { %v1564_v11 = vpop.permute.xlu2 %1563 }
 0x3c6   : > { %v1617_v16 = vpop.permute.xlu2 %1616 }
 0x3ce   : > { %v4638_v17 = vpop.permute.xlu2 %1739 }
 0x3d4   : > { %v1560_v13 = vpop.permute.xlu0 %1559 }
 0x3d5   : > { %1570 = vst.msk [vmem:[#allocation2 + $0x30] sm:$0xff] %vm998_vm0, %v1560_v13 }
 0x3d7   : > { %v1562_v14 = vpop.permute.xlu1 %1561 }
 0x3d8   : > { %v1565_v58 = vsel %vm362_vm14, %v1560_v13, %v1562_v14  ;;  %v1566_v59 = vsel %vm362_vm14, %v1562_v14, %v1564_v11 }
 0x3d9   : > { %1572 = vst.msk [vmem:[#allocation2 + $0x40] sm:$0xff] %vm1001_vm2, %v1566_v59 }
 0x3dc   : > { %v1579_v60 = vld [vmem:[#allocation2 + $0x30] sm:$0xff]  ;;  %v1613_v19 = vpop.permute.xlu0 %1612 }
 0x3dd   : > { %v1586_v62 = vpack.c.bf16 %v1565_v58, %v1579_v60  ;;  %v4017_v58 = vld [vmem:[%s5530_s4 + $0x8] sm:$0xf] }
 0x3df   : > { %v4561_v63 = vunpack.c.l.b16 %v1586_v62  ;;  %v4563_v1 = vunpack.c.h.b16 %v1586_v62  ;;  %v1615_v4 = vpop.permute.xlu1 %1614 }
 0x3e0   : > { %v1581_v3 = vld [vmem:[#allocation2 + $0x40] sm:$0xff]  ;;  %v1624_v34 = vsel %vm394_vm4, %v1613_v19, %v1615_v4  ;;  %v1625_v35 = vsel %vm394_vm4, %v1615_v4, %v1617_v16 }
 0x3e1   : > { %v1609_v6 = vpack.c.b16 %v4561_v63, %v4561_v63  ;;  %v4569_v7 = vpack.c.b16 %v4563_v1, %v4563_v1  ;;  %v1587_v8 = vpack.c.bf16 %v1581_v3, %v1581_v3 }
 0x3e3   : > { %1620 = vrot.lane.b32.xlu1 %v4569_v7, %s4153_s15  ;;  %1618 = vrot.lane.b32.xlu0 %v1609_v6, %s4153_s15  ;;  %v1690_v9 = vsel %vm401_vm1, %v1609_v6, 0  ;;  %v4575_v12 = vunpack.c.l.b16 %v1587_v8  ;;  %v1693_v37 = vsel %vm401_vm1, %v4569_v7, 0 }
 0x3e4   : > { %1704 = vmatpush.bf16.msra.mxu1 %v1690_v9  ;;  %v1742_v23 = vpop.permute.xlu0 %1741 }
 0x3e5   : > { %v4579_v15 = vpack.c.b16 %v4575_v12, %v4575_v12  ;;  %v1751_v55 = vsel %vm509_vm3, %v4638_v17, %v1742_v23 }
 0x3e7   : > { %1622 = vrot.lane.b32.xlu2 %v4579_v15, %s4153_s15  ;;  %v4666_v24 = vpop.permute.xlu1 %1814  ;;  %v1696_v38 = vsel %vm401_vm1, %v4579_v15, 0 }
 0x3e8   : > { %1705 = vmatpush.bf16.msra.mxu1 %v4539_v56 }
 0x3eb   : > { %1824 = vrot.lane.b32.xlu1 %v4579_v15, %s4155_s17  ;;  %1749 = vrot.lane.b32.xlu0 %v4579_v15, %s4154_s16 }
 0x3ec   : > { %4014 = vmatmul.msk.bf16.vlgmr.msra.gmra.mxu1 %vm1631_vm12, %v1588_v10 }
 0x3ef   : > { %1816 = vrot.lane.b32.xlu2 %v4545_v57, %s4155_s17 }
 0x3f3   : > { %1891 = vrot.lane.b32.xlu1 %v4545_v57, %s4156_s18  ;;  %1743 = vrot.lane.b32.xlu0 %v4425_v20, %s4154_s16 }
 0x3f7   : > { %1818 = vrot.lane.b32.xlu2 %v4425_v20, %s4155_s17 }
 0x3fb   : > { %1747 = vrot.lane.b32.xlu1 %v4569_v7, %s4154_s16  ;;  %1745 = vrot.lane.b32.xlu0 %v1609_v6, %s4154_s16 }
 0x3ff   : > { %1899 = vrot.lane.b32.xlu2 %v4579_v15, %s4156_s18 }
 0x403   : > { %1820 = vrot.lane.b32.xlu1 %v1609_v6, %s4155_s17  ;;  %1889 = vrot.lane.b32.xlu0 %v4539_v56, %s4156_s18 }
 0x407   : > { %1822 = vrot.lane.b32.xlu2 %v4569_v7, %s4155_s17 }
 0x40b   : > { %1974 = vrot.lane.b32.xlu1 %v4579_v15, %s4157_s19  ;;  %1966 = vrot.lane.b32.xlu0 %v4545_v57, %s4157_s19 }
 0x40f   : > { %1893 = vrot.lane.b32.xlu2 %v4425_v20, %s4156_s18 }
 0x413   : > { %1897 = vrot.lane.b32.xlu1 %v4569_v7, %s4156_s18  ;;  %1895 = vrot.lane.b32.xlu0 %v1609_v6, %s4156_s18 }
 0x417   : > { %2039 = vrot.lane.b32.xlu2 %v4539_v56, %s4158_s20 }
 0x41b   : > { %1968 = vrot.lane.b32.xlu1 %v4425_v20, %s4157_s19  ;;  %2041 = vrot.lane.b32.xlu0 %v4545_v57, %s4158_s20 }
 0x41f   : > { %1970 = vrot.lane.b32.xlu2 %v1609_v6, %s4157_s19 }
 0x423   : > { %1964 = vrot.lane.b32.xlu1 %v4539_v56, %s4157_s19  ;;  %1972 = vrot.lane.b32.xlu0 %v4569_v7, %s4157_s19 }
 0x427   : > { %2045 = vrot.lane.b32.xlu2 %v1609_v6, %s4158_s20 }
 0x42b   : > { %2114 = vrot.lane.b32.xlu1 %v4539_v56, %s4159_s21  ;;  %2047 = vrot.lane.b32.xlu0 %v4569_v7, %s4158_s20 }
 0x42f   : > { %2116 = vrot.lane.b32.xlu2 %v4545_v57, %s4159_s21 }
 0x433   : > { %2120 = vrot.lane.b32.xlu1 %v1609_v6, %s4159_s21  ;;  %2049 = vrot.lane.b32.xlu0 %v4579_v15, %s4158_s20 }
 0x437   : > { %2122 = vrot.lane.b32.xlu2 %v4569_v7, %s4159_s21 }
 0x43b   : > { %2124 = vrot.lane.b32.xlu1 %v4579_v15, %s4159_s21  ;;  %2043 = vrot.lane.b32.xlu0 %v4425_v20, %s4158_s20 }
 0x43f   : > { %2118 = vrot.lane.b32.xlu2 %v4425_v20, %s4159_s21 }
 0x441   : > { %v1623_v18 = vpop.permute.xlu2 %1622 }
 0x442   : > { %v1642_v5 = vsel %vm401_vm1, %v1623_v18, 0 }
 0x443   : > { %2197 = vrot.lane.b32.xlu1 %v4569_v7, %s4160_s22  ;;  %2195 = vrot.lane.b32.xlu0 %v1609_v6, %s4160_s22 }
 0x444   : > { %1676 = vmatpush.bf16.msra.mxu0 %v1642_v5 }
 0x447   : > { %2199 = vrot.lane.b32.xlu2 %v4579_v15, %s4160_s22  ;;  %v4021_v15 = vld [vmem:[%s5530_s4 + $0xc] sm:$0xf] }
 0x448   : > { %1677 = vmatpush.bf16.msra.mxu0 %v1617_v16 }
 0x449   : > { %v4656_v21 = vpop.permute.xlu2 %1816 }
 0x44a   : > { %v1826_v8 = vsel %vm574_vm5, %v4666_v24, %v4656_v21 }
 0x44b   : > { %2191 = vrot.lane.b32.xlu1 %v4545_v57, %s4160_s22  ;;  %2189 = vrot.lane.b32.xlu0 %v4539_v56, %s4160_s22 }
 0x44c   : > { %4013 = vmatmul.msk.bf16.vlgmr.msra.gmra.mxu0 %vm1631_vm12, %v4010_v22 }
 0x44f   : > { %2193 = vrot.lane.b32.xlu2 %v4425_v20, %s4160_s22 }
 0x451   : > { %v1819_v27 = vpop.permute.xlu2 %1818 }
 0x452   : > { %v1827_v6 = vsel %vm574_vm5, %v4656_v21, %v1819_v27 }
 0x453   : > { %2266 = vperm.xlu0 %4140, %v4045_v25  }
 0x455   : > { %v1619_v29 = vpop.permute.xlu0 %1618  ;;  %v1621_v26 = vpop.permute.xlu1 %1620 }
 0x456   : > { %v1626_v30 = vsel %vm394_vm4, %v1619_v29, %v1621_v26  ;;  %v1627_v31 = vsel %vm394_vm4, %v1621_v26, %v1623_v18 }
 0x457   : > { %v1636_v28 = vsel %vm401_vm1, %v1626_v30, 0  ;;  %v1639_v32 = vsel %vm401_vm1, %v1627_v31, 0 }
 0x458   : > { %1650 = vmatpush.bf16.msrb.mxu2 %v1636_v28  ;;  %1663 = vmatpush.bf16.msrb.mxu3 %v1639_v32 }
 0x459   : > { %v4677_v33 = vpop.permute.xlu2 %1899 }
 0x45a   : > { %v1918_v7 = vsel %vm401_vm1, %v4677_v33, 0 }
 0x45c   : > { %1651 = vmatpush.bf16.msrb.mxu2 %v1624_v34  ;;  %1664 = vmatpush.bf16.msrb.mxu3 %v1625_v35 }
 0x45d   : > { %v1750_v39 = vpop.permute.xlu0 %1749  ;;  %v1825_v40 = vpop.permute.xlu1 %1824 }
 0x45e   : > { %v1768_v36 = vsel %vm401_vm1, %v1750_v39, 0  ;;  %v1843_v14 = vsel %vm401_vm1, %v1825_v40, 0 }
 0x45f   : > { %4011 = vmatmul.msk.bf16.vlgmr.msrb.gmra.mxu2 %vm1631_vm12, %v4010_v22  ;;  %4012 = vmatmul.msk.bf16.vlgmr.msrb.gmra.mxu3 %vm1631_vm12, %v4010_v22 }
 0x460   : > { %1717 = vmatpush.bf16.msra.mxu2 %v1693_v37  ;;  %1730 = vmatpush.bf16.msra.mxu3 %v1696_v38 }
 0x461   : > { %v1823_v41 = vpop.permute.xlu2 %1822 }
 0x462   : > { %v1829_v53 = vsel %vm574_vm5, %v1823_v41, %v1825_v40  ;;  %v4029_v40 = vld [vmem:[%s5530_s4 + $0x14] sm:$0xf] }
 0x463   : > { %v1840_v11 = vsel %vm401_vm1, %v1829_v53, 0 }
 0x464   : > { %1718 = vmatpush.bf16.msra.mxu2 %v4545_v57  ;;  %1731 = vmatpush.bf16.msra.mxu3 %v4425_v20 }
 0x465   : > { %v1744_v42 = vpop.permute.xlu0 %1743  ;;  %v1892_v43 = vpop.permute.xlu1 %1891 }
 0x466   : > { %v1752_v13 = vsel %vm509_vm3, %v1742_v23, %v1744_v42 }
 0x468   : > { %1802 = vmatpush.bf16.msrb.mxu2 %v1768_v36 }
 0x469   : > { %v1894_v44 = vpop.permute.xlu2 %1893 }
 0x46a   : > { %v1902_v24 = vsel %vm639_vm6, %v1892_v43, %v1894_v44 }
 0x46c   : > { %1803 = vmatpush.bf16.msrb.mxu2 %v1744_v42 }
 0x46d   : > { %v1746_v45 = vpop.permute.xlu0 %1745  ;;  %v1748_v46 = vpop.permute.xlu1 %1747 }
 0x46e   : > { %v1753_v49 = vsel %vm509_vm3, %v1746_v45, %v1748_v46  ;;  %v1754_v50 = vsel %vm509_vm3, %v1748_v46, %v1750_v39  ;;  %v4033_v46 = vld [vmem:[%s5530_s4 + $0x18] sm:$0xf] }
 0x46f   : > { %4015 = vmatmul.msk.bf16.vlgmr.msra.gmra.mxu2 %vm1631_vm12, %v1588_v10  ;;  %4016 = vmatmul.msk.bf16.vlgmr.msra.gmra.mxu3 %vm1631_vm12, %v1588_v10  ;;  %v1762_v51 = vsel %vm401_vm1, %v1753_v49, 0  ;;  %v1765_v52 = vsel %vm401_vm1, %v1754_v50, 0 }
 0x470   : > { %1776 = vmatpush.bf16.msrb.mxu0 %v1762_v51  ;;  %1789 = vmatpush.bf16.msrb.mxu1 %v1765_v52 }
 0x471   : > { %v4697_v54 = vpop.permute.xlu2 %2039 }
 0x474   : > { %1777 = vmatpush.bf16.msrb.mxu0 %v1751_v55  ;;  %1790 = vmatpush.bf16.msrb.mxu1 %v1752_v13 }
 0x475   : > { %v1890_v59 = vpop.permute.xlu0 %1889  ;;  %v1821_v60 = vpop.permute.xlu1 %1820 }
 0x476   : > { %v1828_v62 = vsel %vm574_vm5, %v1821_v60, %v1823_v41  ;;  %v1901_v23 = vsel %vm639_vm6, %v1890_v59, %v1892_v43 }
 0x477   : > { %v1837_v3 = vsel %vm401_vm1, %v1828_v62, 0  ;;  %4018 = vmatmul.msk.bf16.vlgmr.msrb.gmra.mxu0 %vm1631_vm12, %v4017_v58  ;;  %4019 = vmatmul.msk.bf16.vlgmr.msrb.gmra.mxu1 %vm1631_vm12, %v4017_v58 }
 0x478   : > { %1864 = vmatpush.bf16.msra.mxu0 %v1840_v11  ;;  %1877 = vmatpush.bf16.msra.mxu1 %v1843_v14 }
 0x479   : > { %1851 = vmatpush.bf16.msrb.mxu3 %v1837_v3  ;;  %v1971_v9 = vpop.permute.xlu2 %1970 }
 0x47c   : > { %1865 = vmatpush.bf16.msra.mxu0 %v1827_v6  ;;  %1878 = vmatpush.bf16.msra.mxu1 %v1819_v27  ;;  %v4025_v27 = vld [vmem:[%s5530_s4 + $0x10] sm:$0xf] }
 0x47d   : > { %1852 = vmatpush.bf16.msrb.mxu3 %v1826_v8  ;;  %v1967_v16 = vpop.permute.xlu0 %1966  ;;  %v1975_v17 = vpop.permute.xlu1 %1974 }
 0x47e   : > { %v1993_v25 = vsel %vm401_vm1, %v1975_v17, 0 }
 0x47f   : > { %4020 = vmatmul.msk.bf16.vlgmr.msrb.gmra.mxu2 %vm1631_vm12, %v4017_v58  ;;  %v4037_v58 = vld [vmem:[%s5530_s4 + $0x1c] sm:$0xf] }
 0x480   : > { %1952 = vmatpush.bf16.msrb.mxu0 %v1918_v7  ;;  %4022 = vmatmul.msk.bf16.vlgmr.msrb.gmra.mxu3 %vm1631_vm12, %v4021_v15 }
 0x481   : > { %v2046_v4 = vpop.permute.xlu2 %2045 }
 0x484   : > { %1953 = vmatpush.bf16.msrb.mxu0 %v1894_v44 }
 0x485   : > { %v1896_v18 = vpop.permute.xlu0 %1895  ;;  %v1898_v19 = vpop.permute.xlu1 %1897 }
 0x486   : > { %v1903_v5 = vsel %vm639_vm6, %v1896_v18, %v1898_v19  ;;  %v1904_v10 = vsel %vm639_vm6, %v1898_v19, %v4677_v33 }
 0x487   : > { %4023 = vmatmul.msk.bf16.vlgmr.msra.gmra.mxu0 %vm1631_vm12, %v4021_v15  ;;  %4024 = vmatmul.msk.bf16.vlgmr.msra.gmra.mxu1 %vm1631_vm12, %v4021_v15  ;;  %v1912_v21 = vsel %vm401_vm1, %v1903_v5, 0  ;;  %v1915_v22 = vsel %vm401_vm1, %v1904_v10, 0 }
 0x488   : > { %1926 = vmatpush.bf16.msra.mxu2 %v1912_v21  ;;  %1939 = vmatpush.bf16.msra.mxu3 %v1915_v22 }
 0x489   : > { %v2117_v30 = vpop.permute.xlu2 %2116 }
 0x48c   : > { %1927 = vmatpush.bf16.msra.mxu2 %v1901_v23  ;;  %1940 = vmatpush.bf16.msra.mxu3 %v1902_v24  ;;  %v4041_v23 = vld [vmem:[%s5530_s4 + $0x20] sm:$0xf]  ;;  %v1707_v24 = vpop.f32.mrf.mxu1 }
 0x48d   : > { %v2042_v29 = vpop.permute.xlu0 %2041  ;;  %v1969_v26 = vpop.permute.xlu1 %1968 }
 0x48e   : > { %v1977_v39 = vsel %vm704_vm7, %v1967_v16, %v1969_v26  ;;  %v2051_v44 = vsel %vm769_vm8, %v4697_v54, %v2042_v29 }
 0x48f   : > { %4026 = vmatmul.msk.bf16.vlgmr.msra.gmra.mxu2 %vm1631_vm12, %v4025_v27 }
 0x490   : > { %2027 = vmatpush.bf16.msrb.mxu3 %v1993_v25 }
 0x491   : > { %4027 = vmatmul.msk.bf16.vlgmr.msra.gmra.mxu3 %vm1631_vm12, %v4025_v27  ;;  %v2123_v37 = vpop.permute.xlu2 %2122 }
 0x494   : > { %2028 = vmatpush.bf16.msrb.mxu3 %v1969_v26 }
 0x495   : > { %v1973_v31 = vpop.permute.xlu0 %1972  ;;  %v1965_v28 = vpop.permute.xlu1 %1964 }
 0x496   : > { %v1978_v32 = vsel %vm704_vm7, %v1971_v9, %v1973_v31  ;;  %v1979_v33 = vsel %vm704_vm7, %v1973_v31, %v1975_v17  ;;  %v1976_v38 = vsel %vm704_vm7, %v1965_v28, %v1967_v16 }
 0x497   : > { %4028 = vmatmul.msk.bf16.vlgmr.msrb.gmra.mxu0 %vm1631_vm12, %v4025_v27  ;;  %v1987_v34 = vsel %vm401_vm1, %v1978_v32, 0  ;;  %v1990_v35 = vsel %vm401_vm1, %v1979_v33, 0  ;;  %v1709_v27 = vpop.f32.mrf.mxu1 }
 0x498   : > { %2001 = vmatpush.bf16.msrb.mxu1 %v1987_v34  ;;  %2014 = vmatpush.bf16.msrb.mxu2 %v1990_v35 }
 0x499   : > { %v2119_v45 = vpop.permute.xlu2 %2118 }
 0x49a   : > { %v2127_v7 = vsel %vm834_vm9, %v2117_v30, %v2119_v45 }
 0x49c   : > { %2002 = vmatpush.bf16.msrb.mxu1 %v1976_v38  ;;  %2015 = vmatpush.bf16.msrb.mxu2 %v1977_v39 }
 0x49d   : > { %v2048_v36 = vpop.permute.xlu0 %2047  ;;  %v2115_v41 = vpop.permute.xlu1 %2114 }
 0x49e   : > { %v2053_v42 = vsel %vm769_vm8, %v2046_v4, %v2048_v36  ;;  %v2126_v13 = vsel %vm834_vm9, %v2115_v41, %v2117_v30 }
 0x49f   : > { %4030 = vmatmul.msk.bf16.vlgmr.msrb.gmra.mxu1 %vm1631_vm12, %v4029_v40  ;;  %4031 = vmatmul.msk.bf16.vlgmr.msrb.gmra.mxu2 %vm1631_vm12, %v4029_v40  ;;  %v2062_v43 = vsel %vm401_vm1, %v2053_v42, 0 }
 0x4a0   : > { %2076 = vmatpush.bf16.msra.mxu0 %v2062_v43 }
 0x4a1   : > { %4032 = vmatmul.msk.bf16.vlgmr.msrb.gmra.mxu3 %vm1631_vm12, %v4029_v40  ;;  %v2200_v59 = vpop.permute.xlu2 %2199 }
 0x4a2   : > { %v2218_v8 = vsel %vm401_vm1, %v2200_v59, 0 }
 0x4a4   : > { %2077 = vmatpush.bf16.msra.mxu0 %v2051_v44 }
 0x4a5   : > { %v2050_v49 = vpop.permute.xlu0 %2049  ;;  %v2121_v50 = vpop.permute.xlu1 %2120 }
 0x4a6   : > { %v2054_v51 = vsel %vm769_vm8, %v2048_v36, %v2050_v49  ;;  %v2128_v52 = vsel %vm834_vm9, %v2121_v50, %v2123_v37  ;;  %v2068_v53 = vsel %vm401_vm1, %v2050_v49, 0 }
 0x4a7   : > { %v2137_v55 = vsel %vm401_vm1, %v2128_v52, 0  ;;  %4034 = vmatmul.msk.bf16.vlgmr.msra.gmra.mxu0 %vm1631_vm12, %v4033_v46  ;;  %2102 = vmatpush.bf16.msra.mxu2 %v2068_v53  ;;  %v2065_v54 = vsel %vm401_vm1, %v2054_v51, 0 }
 0x4a8   : > { %2089 = vmatpush.bf16.msra.mxu1 %v2065_v54  ;;  %2151 = vmatpush.bf16.msra.mxu3 %v2137_v55 }
 0x4a9   : > { %v2194_v4 = vpop.permute.xlu2 %2193 }
 0x4ac   : > { %2152 = vmatpush.bf16.msra.mxu3 %v2126_v13 }
 0x4ad   : > { %v2044_v11 = vpop.permute.xlu0 %2043  ;;  %v2125_v14 = vpop.permute.xlu1 %2124 }
 0x4ae   : > { %v2129_v60 = vsel %vm834_vm9, %v2123_v37, %v2125_v14  ;;  %v2143_v62 = vsel %vm401_vm1, %v2125_v14, 0  ;;  %2103 = vmatpush.bf16.msra.mxu2 %v2044_v11  ;;  %v2052_v3 = vsel %vm769_vm8, %v2042_v29, %v2044_v11 }
 0x4af   : > { %v2140_v6 = vsel %vm401_vm1, %v2129_v60, 0  ;;  %2090 = vmatpush.bf16.msra.mxu1 %v2052_v3 }
 0x4b0   : > { %2164 = vmatpush.bf16.msrb.mxu0 %v2140_v6 }
 0x4b1   : > { %4038 = vmatmul.msk.bf16.vlgmr.msra.gmra.mxu3 %vm1631_vm12, %v4037_v58  ;;  %4036 = vmatmul.msk.bf16.vlgmr.msra.gmra.mxu2 %vm1631_vm12, %v4033_v46 }
 0x4b2   : > { %4035 = vmatmul.msk.bf16.vlgmr.msra.gmra.mxu1 %vm1631_vm12, %v4033_v46 }
 0x4b3   : > { %2177 = vmatpush.bf16.msrb.mxu1 %v2143_v62 }
 0x4b4   : > { %2165 = vmatpush.bf16.msrb.mxu0 %v2127_v7 }
 0x4b5   : > { %v2196_v9 = vpop.permute.xlu0 %2195  ;;  %v2198_v15 = vpop.permute.xlu1 %2197 }
 0x4b6   : > { %v2203_v16 = vsel %vm899_vm10, %v2196_v9, %v2198_v15  ;;  %v2204_v17 = vsel %vm899_vm10, %v2198_v15, %v2200_v59 }
 0x4b7   : > { %2178 = vmatpush.bf16.msrb.mxu1 %v2119_v45  ;;  %v2212_v18 = vsel %vm401_vm1, %v2203_v16, 0  ;;  %v2215_v19 = vsel %vm401_vm1, %v2204_v17, 0  ;;  %4039 = vmatmul.msk.bf16.vlgmr.msrb.gmra.mxu0 %vm1631_vm12, %v4037_v58 }
 0x4b8   : > { %2252 = vmatpush.bf16.msra.mxu0 %v2218_v8  ;;  %2226 = vmatpush.bf16.msrb.mxu2 %v2212_v18 }
 0x4b9   : > { %2239 = vmatpush.bf16.msrb.mxu3 %v2215_v19 }
 0x4bc   : > { %2253 = vmatpush.bf16.msra.mxu0 %v2194_v4 }
 0x4bd   : > { %v2190_v5 = vpop.permute.xlu0 %2189  ;;  %v2192_v10 = vpop.permute.xlu1 %2191 }
 0x4be   : > { %v2201_v21 = vsel %vm899_vm10, %v2190_v5, %v2192_v10  ;;  %v2202_v22 = vsel %vm899_vm10, %v2192_v10, %v2194_v4 }
 0x4bf   : > { %2227 = vmatpush.bf16.msrb.mxu2 %v2201_v21  ;;  %2240 = vmatpush.bf16.msrb.mxu3 %v2202_v22 }
 0x4c2   : > { %4040 = vmatmul.msk.bf16.vlgmr.msrb.gmra.mxu1 %vm1631_vm12, %v4037_v58  ;;  %4042 = vmatmul.msk.bf16.vlgmr.msrb.gmra.mxu2 %vm1631_vm12, %v4041_v23 }
 0x4c3   : > { %4043 = vmatmul.msk.bf16.vlgmr.msrb.gmra.mxu3 %vm1631_vm12, %v4041_v23 }
 0x4c7   : > { %4044 = vmatmul.msk.bf16.vlgmr.msra.gmra.mxu0 %vm1631_vm12, %v4041_v23 }
 0x4c9   : > { %v1679_v25 = vpop.f32.mrf.mxu0 }
 0x4d1   : > { %v1681_v29 = vpop.f32.mrf.mxu0 }
 0x4e2   : > { %v1653_v26 = vpop.f32.mrf.mxu2  ;;  %v1666_v30 = vpop.f32.mrf.mxu3 }
 0x4e3   : > { %v1708_v31 = vadd.f32 %v1707_v24, %v1653_v26 }
 0x4ea   : > { %v1655_v28 = vpop.f32.mrf.mxu2  ;;  %v1668_v32 = vpop.f32.mrf.mxu3 }
 0x4f2   : > { %v1720_v33 = vpop.f32.mrf.mxu2  ;;  %v1733_v34 = vpop.f32.mrf.mxu3 }
 0x4f3   : > { %v1721_v35 = vadd.f32 %v1720_v33, %v1666_v30  ;;  %v1734_v37 = vadd.f32 %v1733_v34, %v1679_v25 }
 0x4f4   : > { %v1779_v38 = vpop.f32.mrf.mxu0  ;;  %v1792_v39 = vpop.f32.mrf.mxu1 }
 0x4f5   : > { %v1809_v40 = vadd.f32 %v1779_v38, %v1708_v31  ;;  %v1810_v36 = vadd.f32 %v1792_v39, %v1721_v35 }
 0x4fa   : > { %v1722_v41 = vpop.f32.mrf.mxu2  ;;  %v1735_v42 = vpop.f32.mrf.mxu3 }
 0x4fc   : > { %v1781_v43 = vpop.f32.mrf.mxu0  ;;  %v1794_v44 = vpop.f32.mrf.mxu1 }
 0x502   : > { %v1805_v45 = vpop.f32.mrf.mxu2 }
 0x503   : > { %v1854_v46 = vpop.f32.mrf.mxu3  ;;  %v1811_v4 = vadd.f32 %v1805_v45, %v1734_v37 }
 0x504   : > { %v1867_v49 = vpop.f32.mrf.mxu0  ;;  %v1880_v50 = vpop.f32.mrf.mxu1  ;;  %v1884_v22 = vadd.f32 %v1854_v46, %v1809_v40 }
 0x505   : > { %v1886_v10 = vadd.f32 %v1880_v50, %v1811_v4  ;;  %v1885_v25 = vadd.f32 %v1867_v49, %v1810_v36  ;;  %v2267_v40 = vpop.permute.xlu0 %2266 }
 0x50a   : > { %v1807_v51 = vpop.f32.mrf.mxu2 }
 0x50b   : > { %v1856_v52 = vpop.f32.mrf.mxu3 }
 0x50c   : > { %v1869_v53 = vpop.f32.mrf.mxu0  ;;  %v1882_v55 = vpop.f32.mrf.mxu1 }
 0x512   : > { %v1929_v54 = vpop.f32.mrf.mxu2 }
 0x513   : > { %v1959_v29 = vadd.f32 %v1929_v54, %v1884_v22 }
 0x514   : > { %v1942_v13 = vpop.f32.mrf.mxu3  ;;  %v1955_v11 = vpop.f32.mrf.mxu0 }
 0x515   : > { %v1961_v27 = vadd.f32 %v1955_v11, %v1886_v10  ;;  %v1960_v26 = vadd.f32 %v1942_v13, %v1885_v25 }
 0x51a   : > { %v1931_v14 = vpop.f32.mrf.mxu2 }
 0x51c   : > { %v1944_v58 = vpop.f32.mrf.mxu3  ;;  %v1957_v59 = vpop.f32.mrf.mxu0 }
 0x51d   : > { %v2004_v60 = vpop.f32.mrf.mxu1 }
 0x51e   : > { %v2034_v28 = vadd.f32 %v2004_v60, %v1959_v29  ;;  %v4909_v29 = vld [vmem:[%s5531_s5] sm:$0xf] }
 0x522   : > { %v2017_v62 = vpop.f32.mrf.mxu2 }
 0x523   : > { %v2035_v32 = vadd.f32 %v2017_v62, %v1960_v26 }
 0x524   : > { %v2030_v3 = vpop.f32.mrf.mxu3  ;;  %v2079_v6 = vpop.f32.mrf.mxu0 }
 0x525   : > { %v2006_v7 = vpop.f32.mrf.mxu1  ;;  %v2036_v30 = vadd.f32 %v2030_v3, %v1961_v27  ;;  %v2109_v34 = vadd.f32 %v2079_v6, %v2034_v28 }
 0x52a   : > { %v2019_v8 = vpop.f32.mrf.mxu2 }
 0x52c   : > { %v2032_v9 = vpop.f32.mrf.mxu3  ;;  %v2081_v15 = vpop.f32.mrf.mxu0 }
 0x52f   : > { %v2092_v16 = vpop.f32.mrf.mxu1 }
 0x530   : > { %v2110_v35 = vadd.f32 %v2092_v16, %v2035_v32 }
 0x534   : > { %v2154_v17 = vpop.f32.mrf.mxu3  ;;  %v2105_v18 = vpop.f32.mrf.mxu2 }
 0x535   : > { %v2167_v19 = vpop.f32.mrf.mxu0  ;;  %v2111_v33 = vadd.f32 %v2105_v18, %v2036_v30  ;;  %v2184_v39 = vadd.f32 %v2154_v17, %v2109_v34  ;;  %v4046_v30 = vld [vmem:[%s5531_s5 + $0x4] sm:$0xf] }
 0x536   : > { %v2185_v41 = vadd.f32 %v2167_v19, %v2110_v35  ;;  %v4081_v35 = vld [vmem:[%s5533_s7 + $0x18] sm:$0xff] }
 0x537   : > { %v2094_v5 = vpop.f32.mrf.mxu1 }
 0x53c   : > { %v2156_v21 = vpop.f32.mrf.mxu3  ;;  %v2107_v23 = vpop.f32.mrf.mxu2 }
 0x53d   : > { %v2169_v24 = vpop.f32.mrf.mxu0 }
 0x53f   : > { %v2180_v31 = vpop.f32.mrf.mxu1 }
 0x540   : > { %v2186_v38 = vadd.f32 %v2180_v31, %v2111_v33 }
 0x545   : > { %v2255_v37 = vpop.f32.mrf.mxu0  ;;  %v2229_v43 = vpop.f32.mrf.mxu2 }
 0x546   : > { %v2261_v42 = vadd.f32 %v2255_v37, %v2186_v38  ;;  %v2259_v44 = vadd.f32 %v2229_v43, %v2184_v39  ;;  %v2242_v45 = vpop.f32.mrf.mxu3 }
 0x547   : > { %v2260_v46 = vadd.f32 %v2242_v45, %v2185_v41  ;;  %v2182_v49 = vpop.f32.mrf.mxu1 }
 0x548   : > { %v2271_v36 = vadd.f32 %v2267_v40, %v2261_v42  ;;  %v2269_v50 = vadd.f32 %v2267_v40, %v2259_v44 }
 0x549   : > { %v2270_v52 = vadd.f32 %v2267_v40, %v2260_v46 }
 0x54a   : > { %vm2274_vm13 = vcmp.gt.f32.partialorder %v2271_v36, 0.0  ;;  %v2277_v51 = vmul.f32 0.01, %v2271_v36  ;;  %vm2272_vm11 = vcmp.gt.f32.partialorder %v2269_v50, 0.0  ;;  %v2275_v53 = vmul.f32 0.01, %v2269_v50 }
 0x54b   : > { %vm2273_vm12 = vcmp.gt.f32.partialorder %v2270_v52, 0.0  ;;  %v2276_v55 = vmul.f32 0.01, %v2270_v52 }
 0x54c   : > { %v2280_v54 = vsel %vm2274_vm13, %v2271_v36, %v2277_v51  ;;  %v2278_v11 = vsel %vm2272_vm11, %v2269_v50, %v2275_v53  ;;  %vm2372_vm13 = vcmask 261120  }
 0x54d   : > { %v2283_v13 = vmul.f32 %v2280_v54, %v4388_v61  ;;  %v2257_v14 = vpop.f32.mrf.mxu0  ;;  %v2231_v58 = vpop.f32.mrf.mxu2  ;;  %v2281_v59 = vmul.f32 %v2278_v11, %v4382_v48  ;;  %v2279_v60 = vsel %vm2273_vm12, %v2270_v52, %v2276_v55  ;;  %v4053_v11 = vld [vmem:[%s5531_s5 + $0x8] sm:$0xf] }
 0x54e   : > { %v2282_v62 = vmul.f32 %v2279_v60, %v4380_v47  ;;  %v2244_v3 = vpop.f32.mrf.mxu3 }
 0x54f   : > { %2291 = vrot.lane.b32.xlu0 %v2283_v13, %s4162_s23  ;;  %2287 = vrot.lane.b32.xlu1 %v2281_v59, %s4162_s23 }
 0x550   : > { %2289 = vrot.lane.b32.xlu2 %v2282_v62, %s4162_s23 }
 0x557   : > { %2352 = vrot.lane.b32.xlu0 %v4545_v57, %s4153_s15  ;;  %2354 = vrot.lane.b32.xlu1 %v4425_v20, %s4153_s15 }
 0x558   : > { %2538 = vrot.lane.b32.xlu2 %v4425_v20, %s4155_s17 }
 0x55f   : > { %2350 = vrot.lane.b32.xlu0 %v4539_v56, %s4153_s15  ;;  %2467 = vrot.lane.b32.xlu1 %v4545_v57, %s4154_s16 }
 0x567   : > { %2465 = vrot.lane.b32.xlu0 %v4539_v56, %s4154_s16 }
 0x56f   : > { %2534 = vrot.lane.b32.xlu0 %v4539_v56, %s4155_s17 }
 0x577   : > { %2469 = vrot.lane.b32.xlu0 %v4425_v20, %s4154_s16 }
 0x57f   : > { %2605 = vrot.lane.b32.xlu0 %v4545_v57, %s4156_s18 }
 0x5aa   : > { %v2290_v6 = vpop.permute.xlu2 %2289 }
 0x5b2   : > { %v4896_v24 = vpop.permute.xlu2 %2538 }
 0x5c1   : > { %v2292_v7 = vpop.permute.xlu0 %2291  ;;  %v2288_v9 = vpop.permute.xlu1 %2287 }
 0x5c2   : > { %v2294_v8 = vsel %vm362_vm14, %v2290_v6, %v2292_v7  ;;  %v2293_v15 = vsel %vm362_vm14, %v2288_v9, %v2290_v6  ;;  %2298 = vst.msk [vmem:[#allocation2 + $0x48] sm:$0xff] %vm998_vm0, %v2288_v9 }
 0x5c3   : > { %2300 = vst.msk [vmem:[#allocation2 + $0x58] sm:$0xff] %vm1001_vm2, %v2294_v8  ;;  %v4057_v8 = vld [vmem:[%s5531_s5 + $0xc] sm:$0xf] }
 0x5c9   : > { %v2310_v18 = vld [vmem:[#allocation2 + $0x48] sm:$0xff]  ;;  %v2355_v26 = vpop.permute.xlu1 %2354 }
 0x5ca   : > { %v2312_v16 = vld [vmem:[#allocation2 + $0x58] sm:$0xff]  ;;  %v2319_v19 = vpack.c.bf16 %v2293_v15, %v2310_v18 }
 0x5cb   : > { %v2320_v17 = vpack.c.bf16 %v2312_v16, %v2312_v16 }
 0x5cc   : > { %v2341_v5 = vunpack.c.l.b16 %v2319_v19  ;;  %v2342_v10 = vunpack.c.h.b16 %v2319_v19 }
 0x5cd   : > { %v2343_v4 = vunpack.c.l.b16 %v2320_v17 }
 0x5ce   : > { %v4823_v22 = vpack.c.b16 %v2341_v5, %v4561_v63  ;;  %v4826_v23 = vpack.c.b16 %v2342_v10, %v4563_v1  ;;  %v2353_v63 = vpop.permute.xlu0 %2352 }
 0x5cf   : > { %v4820_v21 = vpack.c.b16 %v2343_v4, %v4575_v12  ;;  %v2363_v40 = vsel %vm394_vm4, %v2353_v63, %v2355_v26 }
 0x5d0   : > { %2358 = vrot.lane.b32.xlu1 %v4826_v23, %s4153_s15  ;;  %2430 = vmatpush.bf16.msrb.mxu0 %v4823_v22 }
 0x5d1   : > { %2360 = vrot.lane.b32.xlu2 %v4820_v21, %s4153_s15  ;;  %2542 = vrot.lane.b32.xlu0 %v4826_v23, %s4155_s17  ;;  %v2468_v33 = vpop.permute.xlu1 %2467 }
 0x5d4   : > { %2431 = vmatpush.bf16.msrb.mxu0 %v4539_v56 }
 0x5d6   : > { %v2351_v1 = vpop.permute.xlu0 %2350 }
 0x5d7   : > { %4050 = vmatmul.msk.bf16.vlgmr.msrb.gmra.mxu0 %vm2372_vm13, %v4909_v29  ;;  %v2362_v43 = vsel %vm394_vm4, %v2351_v1, %v2353_v63  ;;  %v4061_v1 = vld [vmem:[%s5531_s5 + $0x10] sm:$0xf] }
 0x5d8   : > { %2536 = vrot.lane.b32.xlu1 %v4545_v57, %s4155_s17 }
 0x5d9   : > { %2356 = vrot.lane.b32.xlu2 %v4823_v22, %s4153_s15  ;;  %2603 = vrot.lane.b32.xlu0 %v4539_v56, %s4156_s18 }
 0x5de   : > { %v4890_v12 = vpop.permute.xlu0 %2465 }
 0x5df   : > { %v2477_v13 = vsel %vm509_vm3, %v4890_v12, %v2468_v33 }
 0x5e0   : > { %2471 = vrot.lane.b32.xlu1 %v4823_v22, %s4154_s16 }
 0x5e1   : > { %2473 = vrot.lane.b32.xlu2 %v4826_v23, %s4154_s16  ;;  %2741 = vrot.lane.b32.xlu0 %v4539_v56, %s4158_s20 }
 0x5e6   : > { %v2535_v25 = vpop.permute.xlu0 %2534 }
 0x5e8   : > { %2607 = vrot.lane.b32.xlu1 %v4425_v20, %s4156_s18 }
 0x5e9   : > { %2540 = vrot.lane.b32.xlu2 %v4823_v22, %s4155_s17  ;;  %2672 = vrot.lane.b32.xlu0 %v4539_v56, %s4157_s19 }
 0x5ee   : > { %v2470_v31 = vpop.permute.xlu0 %2469 }
 0x5ef   : > { %v2478_v54 = vsel %vm509_vm3, %v2468_v33, %v2470_v31  ;;  %v4065_v33 = vld [vmem:[%s5531_s5 + $0x14] sm:$0xf] }
 0x5f0   : > { %2544 = vrot.lane.b32.xlu1 %v4820_v21, %s4155_s17 }
 0x5f1   : > { %2676 = vrot.lane.b32.xlu2 %v4425_v20, %s4157_s19  ;;  %2682 = vrot.lane.b32.xlu0 %v4820_v21, %s4157_s19 }
 0x5f6   : > { %v4927_v34 = vpop.permute.xlu0 %2605 }
 0x5f8   : > { %2743 = vrot.lane.b32.xlu1 %v4545_v57, %s4158_s20 }
 0x5f9   : > { %2475 = vrot.lane.b32.xlu2 %v4820_v21, %s4154_s16  ;;  %2810 = vrot.lane.b32.xlu0 %v4539_v56, %s4159_s21 }
 0x600   : > { %2611 = vrot.lane.b32.xlu1 %v4826_v23, %s4156_s18 }
 0x601   : > { %2613 = vrot.lane.b32.xlu2 %v4820_v21, %s4156_s18  ;;  %2818 = vrot.lane.b32.xlu0 %v4826_v23, %s4159_s21 }
 0x608   : > { %2674 = vrot.lane.b32.xlu1 %v4545_v57, %s4157_s19 }
 0x609   : > { %2609 = vrot.lane.b32.xlu2 %v4823_v22, %s4156_s18  ;;  %2745 = vrot.lane.b32.xlu0 %v4425_v20, %s4158_s20 }
 0x610   : > { %2747 = vrot.lane.b32.xlu1 %v4823_v22, %s4158_s20 }
 0x611   : > { %2749 = vrot.lane.b32.xlu2 %v4826_v23, %s4158_s20  ;;  %2881 = vrot.lane.b32.xlu0 %v4545_v57, %s4160_s22 }
 0x618   : > { %2678 = vrot.lane.b32.xlu1 %v4823_v22, %s4157_s19 }
 0x619   : > { %2680 = vrot.lane.b32.xlu2 %v4826_v23, %s4157_s19  ;;  %2879 = vrot.lane.b32.xlu0 %v4539_v56, %s4160_s22 }
 0x620   : > { %2820 = vrot.lane.b32.xlu1 %v4820_v21, %s4159_s21 }
 0x621   : > { %2816 = vrot.lane.b32.xlu2 %v4823_v22, %s4159_s21  ;;  %3051 = vrot.lane.b32.xlu0 %v4425_v20, %s4153_s15 }
 0x628   : > { %2812 = vrot.lane.b32.xlu1 %v4545_v57, %s4159_s21 }
 0x629   : > { %2751 = vrot.lane.b32.xlu2 %v4820_v21, %s4158_s20  ;;  %3049 = vrot.lane.b32.xlu0 %v4545_v57, %s4153_s15 }
 0x62b   : > { %v2361_v27 = vpop.permute.xlu2 %2360 }
 0x62c   : > { %2408 = vmatpush.bf16.msra.mxu3 %v2361_v27 }
 0x630   : > { %2409 = vmatpush.bf16.msra.mxu3 %v2355_v26  ;;  %2887 = vrot.lane.b32.xlu1 %v4826_v23, %s4160_s22 }
 0x631   : > { %2814 = vrot.lane.b32.xlu2 %v4425_v20, %s4159_s21  ;;  %3057 = vrot.lane.b32.xlu0 %v4820_v21, %s4153_s15 }
 0x633   : > { %v2357_v28 = vpop.permute.xlu2 %2356  ;;  %4049 = vmatmul.msk.bf16.vlgmr.msra.gmra.mxu3 %vm2372_vm13, %v4046_v30 }
 0x638   : > { %2883 = vrot.lane.b32.xlu1 %v4425_v20, %s4160_s22 }
 0x639   : > { %2889 = vrot.lane.b32.xlu2 %v4820_v21, %s4160_s22 }
 0x63b   : > { %v2474_v32 = vpop.permute.xlu2 %2473 }
 0x640   : > { %2950 = vperm.xlu1 %4142, %v4081_v35  }
 0x641   : > { %2885 = vrot.lane.b32.xlu2 %v4823_v22, %s4160_s22 }
 0x642   : > { %v2359_v39 = vpop.permute.xlu1 %2358 }
 0x643   : > { %v2541_v38 = vpop.permute.xlu2 %2540  ;;  %v2364_v37 = vsel %vm394_vm4, %v2357_v28, %v2359_v39  ;;  %v2365_v41 = vsel %vm394_vm4, %v2359_v39, %v2361_v27  ;;  %v2543_v42 = vpop.permute.xlu0 %2542 }
 0x644   : > { %2382 = vmatpush.bf16.msra.mxu1 %v2364_v37  ;;  %2395 = vmatpush.bf16.msra.mxu2 %v2365_v41  ;;  %v2548_v46 = vsel %vm574_vm5, %v2541_v38, %v2543_v42 }
 0x648   : > { %3047 = vrot.lane.b32.xlu1 %v4539_v56, %s4153_s15  ;;  %2383 = vmatpush.bf16.msra.mxu1 %v2362_v43 }
 0x649   : > { %3053 = vrot.lane.b32.xlu2 %v4823_v22, %s4153_s15  ;;  %2396 = vmatpush.bf16.msra.mxu2 %v2363_v40 }
 0x64a   : > { %v2537_v45 = vpop.permute.xlu1 %2536 }
 0x64b   : > { %v4942_v44 = vpop.permute.xlu2 %2676  ;;  %v2604_v36 = vpop.permute.xlu0 %2603  ;;  %4047 = vmatmul.msk.bf16.vlgmr.msra.gmra.mxu1 %vm2372_vm13, %v4046_v30  ;;  %v2546_v52 = vsel %vm574_vm5, %v2535_v25, %v2537_v45  ;;  %v2547_v7 = vsel %vm574_vm5, %v2537_v45, %v4896_v24 }
 0x64c   : > { %2443 = vmatpush.bf16.msrb.mxu1 %v4826_v23  ;;  %4048 = vmatmul.msk.bf16.vlgmr.msra.gmra.mxu2 %vm2372_vm13, %v4046_v30  ;;  %v2615_v5 = vsel %vm639_vm6, %v2604_v36, %v4927_v34 }
 0x64d   : > { %2456 = vmatpush.bf16.msrb.mxu2 %v4820_v21 }
 0x650   : > { %2444 = vmatpush.bf16.msrb.mxu1 %v4545_v57  ;;  %3055 = vrot.lane.b32.xlu1 %v4826_v23, %s4153_s15 }
 0x651   : > { %2457 = vmatpush.bf16.msrb.mxu2 %v4425_v20  ;;  %3196 = vrot.lane.b32.xlu2 %v4826_v23, %s4154_s16 }
 0x652   : > { %v2472_v51 = vpop.permute.xlu1 %2471 }
 0x653   : > { %v2476_v49 = vpop.permute.xlu2 %2475  ;;  %v2479_v53 = vsel %vm509_vm3, %v2472_v51, %v2474_v32  ;;  %v4958_v55 = vpop.permute.xlu0 %2741 }
 0x654   : > { %v2480_v50 = vsel %vm509_vm3, %v2474_v32, %v2476_v49  ;;  %2522 = vmatpush.bf16.msra.mxu1 %v2476_v49  ;;  %2496 = vmatpush.bf16.msrb.mxu3 %v2479_v53 }
 0x655   : > { %2565 = vmatpush.bf16.msra.mxu2 %v2548_v46  ;;  %2509 = vmatpush.bf16.msra.mxu0 %v2480_v50  ;;  %v4073_v50 = vld [vmem:[%s5531_s5 + $0x1c] sm:$0xf] }
 0x658   : > { %2523 = vmatpush.bf16.msra.mxu1 %v2470_v31  ;;  %3194 = vrot.lane.b32.xlu1 %v4823_v22, %s4154_s16 }
 0x659   : > { %2566 = vmatpush.bf16.msra.mxu2 %v2546_v52  ;;  %3198 = vrot.lane.b32.xlu2 %v4820_v21, %s4154_s16 }
 0x65a   : > { %2510 = vmatpush.bf16.msra.mxu0 %v2478_v54  ;;  %2497 = vmatpush.bf16.msrb.mxu3 %v2477_v13  ;;  %v2608_v58 = vpop.permute.xlu1 %2607 }
 0x65b   : > { %v2614_v14 = vpop.permute.xlu2 %2613  ;;  %4051 = vmatmul.msk.bf16.vlgmr.msrb.gmra.mxu1 %vm2372_vm13, %v4909_v29  ;;  %v4976_v59 = vpop.permute.xlu0 %2672  ;;  %v2616_v10 = vsel %vm639_vm6, %v4927_v34, %v2608_v58  ;;  %v4069_v34 = vld [vmem:[%s5531_s5 + $0x18] sm:$0xf] }
 0x65c   : > { %4052 = vmatmul.msk.bf16.vlgmr.msrb.gmra.mxu2 %vm2372_vm13, %v4909_v29 }
 0x65d   : > { %4055 = vmatmul.msk.bf16.vlgmr.msra.gmra.mxu0 %vm2372_vm13, %v4053_v11  ;;  %4054 = vmatmul.msk.bf16.vlgmr.msrb.gmra.mxu3 %vm2372_vm13, %v4053_v11 }
 0x662   : > { %v2545_v62 = vpop.permute.xlu1 %2544 }
 0x663   : > { %v2610_v60 = vpop.permute.xlu2 %2609  ;;  %v2549_v3 = vsel %vm574_vm5, %v2543_v42, %v2545_v62  ;;  %2591 = vmatpush.bf16.msrb.mxu0 %v2545_v62  ;;  %v2683_v6 = vpop.permute.xlu0 %2682 }
 0x664   : > { %2578 = vmatpush.bf16.msra.mxu3 %v2549_v3 }
 0x667   : > { %2592 = vmatpush.bf16.msrb.mxu0 %v4896_v24 }
 0x668   : > { %2579 = vmatpush.bf16.msra.mxu3 %v2547_v7 }
 0x66a   : > { %v2744_v15 = vpop.permute.xlu1 %2743 }
 0x66b   : > { %v2750_v9 = vpop.permute.xlu2 %2749  ;;  %4056 = vmatmul.msk.bf16.vlgmr.msra.gmra.mxu1 %vm2372_vm13, %v4053_v11  ;;  %v2811_v16 = vpop.permute.xlu0 %2810  ;;  %v2753_v32 = vsel %vm769_vm8, %v4958_v55, %v2744_v15  ;;  %v4077_v11 = vld [vmem:[%s5531_s5 + $0x20] sm:$0xf] }
 0x66c   : > { %2660 = vmatpush.bf16.msrb.mxu3 %v2614_v14  ;;  %4058 = vmatmul.msk.bf16.vlgmr.msra.gmra.mxu2 %vm2372_vm13, %v4057_v8 }
 0x66d   : > { %4060 = vmatmul.msk.bf16.vlgmr.msrb.gmra.mxu0 %vm2372_vm13, %v4057_v8  ;;  %4059 = vmatmul.msk.bf16.vlgmr.msra.gmra.mxu3 %vm2372_vm13, %v4057_v8 }
 0x670   : > { %2661 = vmatpush.bf16.msrb.mxu3 %v2608_v58  ;;  %v2433_v58 = vpop.f32.mrf.mxu0 }
 0x672   : > { %v2612_v18 = vpop.permute.xlu1 %2611 }
 0x673   : > { %v2681_v17 = vpop.permute.xlu2 %2680  ;;  %v2617_v19 = vsel %vm639_vm6, %v2610_v60, %v2612_v18  ;;  %v2618_v4 = vsel %vm639_vm6, %v2612_v18, %v2614_v14  ;;  %v2819_v25 = vpop.permute.xlu0 %2818 }
 0x674   : > { %2634 = vmatpush.bf16.msrb.mxu1 %v2617_v19  ;;  %2647 = vmatpush.bf16.msrb.mxu2 %v2618_v4  ;;  %v2687_v63 = vsel %vm704_vm7, %v2681_v17, %v2683_v6 }
 0x678   : > { %2635 = vmatpush.bf16.msrb.mxu1 %v2615_v5  ;;  %2648 = vmatpush.bf16.msrb.mxu2 %v2616_v10  ;;  %v2435_v3 = vpop.f32.mrf.mxu0 }
 0x67a   : > { %v2675_v24 = vpop.permute.xlu1 %2674 }
 0x67b   : > { %v2817_v12 = vpop.permute.xlu2 %2816  ;;  %4062 = vmatmul.msk.bf16.vlgmr.msrb.gmra.mxu1 %vm2372_vm13, %v4061_v1  ;;  %v2685_v27 = vsel %vm704_vm7, %v2675_v24, %v4942_v44  ;;  %v2746_v28 = vpop.permute.xlu0 %2745  ;;  %v2684_v37 = vsel %vm704_vm7, %v4976_v59, %v2675_v24 }
 0x67c   : > { %2716 = vmatpush.bf16.msra.mxu1 %v2687_v63  ;;  %2729 = vmatpush.bf16.msra.mxu2 %v2683_v6  ;;  %v2824_v29 = vsel %vm834_vm9, %v2817_v12, %v2819_v25  ;;  %v2754_v40 = vsel %vm769_vm8, %v2744_v15, %v2746_v28 }
 0x67d   : > { %4064 = vmatmul.msk.bf16.vlgmr.msrb.gmra.mxu3 %vm2372_vm13, %v4061_v1  ;;  %4063 = vmatmul.msk.bf16.vlgmr.msrb.gmra.mxu2 %vm2372_vm13, %v4061_v1 }
 0x680   : > { %2717 = vmatpush.bf16.msra.mxu1 %v2685_v27  ;;  %2730 = vmatpush.bf16.msra.mxu2 %v4942_v44 }
 0x682   : > { %v2748_v30 = vpop.permute.xlu1 %2747 }
 0x683   : > { %v2752_v26 = vpop.permute.xlu2 %2751  ;;  %v2755_v31 = vsel %vm769_vm8, %v2748_v30, %v2750_v9  ;;  %v2882_v45 = vpop.permute.xlu0 %2881 }
 0x684   : > { %2841 = vmatpush.bf16.msrb.mxu2 %v2824_v29  ;;  %2798 = vmatpush.bf16.msrb.mxu1 %v2752_v26  ;;  %v2756_v41 = vsel %vm769_vm8, %v2750_v9, %v2752_v26 }
 0x685   : > { %2772 = vmatpush.bf16.msra.mxu3 %v2755_v31 }
 0x688   : > { %2799 = vmatpush.bf16.msrb.mxu1 %v2746_v28 }
 0x689   : > { %2773 = vmatpush.bf16.msra.mxu3 %v2753_v32 }
 0x68a   : > { %v2679_v35 = vpop.permute.xlu1 %2678 }
 0x68b   : > { %v2686_v38 = vsel %vm704_vm7, %v2679_v35, %v2681_v17  ;;  %4067 = vmatmul.msk.bf16.vlgmr.msra.gmra.mxu1 %vm2372_vm13, %v4065_v33  ;;  %v2815_v39 = vpop.permute.xlu2 %2814  ;;  %v2880_v54 = vpop.permute.xlu0 %2879 }
 0x68c   : > { %2703 = vmatpush.bf16.msra.mxu0 %v2686_v38  ;;  %v2891_v13 = vsel %vm899_vm10, %v2880_v54, %v2882_v45 }
 0x68d   : > { %4070 = vmatmul.msk.bf16.vlgmr.msra.gmra.mxu3 %vm2372_vm13, %v4069_v34  ;;  %4068 = vmatmul.msk.bf16.vlgmr.msra.gmra.mxu2 %vm2372_vm13, %v4065_v33 }
 0x690   : > { %2704 = vmatpush.bf16.msra.mxu0 %v2684_v37 }
 0x692   : > { %v2821_v42 = vpop.permute.xlu1 %2820 }
 0x693   : > { %v2825_v43 = vsel %vm834_vm9, %v2819_v25, %v2821_v42  ;;  %4066 = vmatmul.msk.bf16.vlgmr.msra.gmra.mxu0 %vm2372_vm13, %v4065_v33  ;;  %v2890_v44 = vpop.permute.xlu2 %2889  ;;  %v5044_v60 = vpop.permute.xlu0 %3051 }
 0x694   : > { %2785 = vmatpush.bf16.msrb.mxu0 %v2756_v41  ;;  %2854 = vmatpush.bf16.msrb.mxu3 %v2825_v43 }
 0x698   : > { %2786 = vmatpush.bf16.msrb.mxu0 %v2754_v40 }
 0x69a   : > { %v2813_v36 = vpop.permute.xlu1 %2812 }
 0x69b   : > { %4072 = vmatmul.msk.bf16.vlgmr.msrb.gmra.mxu1 %vm2372_vm13, %v4069_v34  ;;  %v2822_v46 = vsel %vm834_vm9, %v2811_v16, %v2813_v36  ;;  %v2823_v49 = vsel %vm834_vm9, %v2813_v36, %v2815_v39  ;;  %v2886_v51 = vpop.permute.xlu2 %2885  ;;  %v5049_v7 = vpop.permute.xlu0 %3049 }
 0x69c   : > { %2867 = vmatpush.bf16.msra.mxu0 %v2821_v42  ;;  %2842 = vmatpush.bf16.msrb.mxu2 %v2822_v46 }
 0x69d   : > { %2855 = vmatpush.bf16.msrb.mxu3 %v2823_v49 }
 0x69f   : > { %4074 = vmatmul.msk.bf16.vlgmr.msrb.gmra.mxu2 %vm2372_vm13, %v4073_v50 }
 0x6a0   : > { %2868 = vmatpush.bf16.msra.mxu0 %v2815_v39  ;;  %4075 = vmatmul.msk.bf16.vlgmr.msrb.gmra.mxu3 %vm2372_vm13, %v4073_v50 }
 0x6a1   : > { %2936 = vmatpush.bf16.msra.mxu3 %v2890_v44 }
 0x6a2   : > { %v2888_v52 = vpop.permute.xlu1 %2887 }
 0x6a3   : > { %v2893_v53 = vsel %vm899_vm10, %v2886_v51, %v2888_v52  ;;  %v2894_v55 = vsel %vm899_vm10, %v2888_v52, %v2890_v44  ;;  %4071 = vmatmul.msk.bf16.vlgmr.msrb.gmra.mxu0 %vm2372_vm13, %v4069_v34  ;;  %v3054_v16 = vpop.permute.xlu2 %3053 }
 0x6a4   : > { %2910 = vmatpush.bf16.msra.mxu1 %v2893_v53  ;;  %2923 = vmatpush.bf16.msra.mxu2 %v2894_v55 }
 0x6a8   : > { %2911 = vmatpush.bf16.msra.mxu1 %v2891_v13 }
 0x6aa   : > { %v2884_v14 = vpop.permute.xlu1 %2883 }
 0x6ab   : > { %4078 = vmatmul.msk.bf16.vlgmr.msra.gmra.mxu1 %vm2372_vm13, %v4077_v11  ;;  %2937 = vmatpush.bf16.msra.mxu3 %v2884_v14  ;;  %v2892_v59 = vsel %vm899_vm10, %v2882_v45, %v2884_v14 }
 0x6ac   : > { %2924 = vmatpush.bf16.msra.mxu2 %v2892_v59 }
 0x6af   : > { %4079 = vmatmul.msk.bf16.vlgmr.msra.gmra.mxu2 %vm2372_vm13, %v4077_v11 }
 0x6b0   : > { %4080 = vmatmul.msk.bf16.vlgmr.msra.gmra.mxu3 %vm2372_vm13, %v4077_v11 }
 0x6b2   : > { %v5046_v62 = vpop.permute.xlu1 %2950 }
 0x6b3   : > { %4076 = vmatmul.msk.bf16.vlgmr.msra.gmra.mxu0 %vm2372_vm13, %v4073_v50 }
 0x6b6   : > { %v2411_v6 = vpop.f32.mrf.mxu3 }
 0x6ba   : > { %v3048_v8 = vpop.permute.xlu1 %3047 }
 0x6bb   : > { %v5053_v9 = vsel %vm394_vm4, %v3048_v8, %v5049_v7 }
 0x6be   : > { %v2413_v15 = vpop.f32.mrf.mxu3 }
 0x6c2   : > { %v5055_v17 = vpop.permute.xlu1 %3055 }
 0x6c3   : > { %v5059_v18 = vsel %vm394_vm4, %v3054_v16, %v5055_v17 }
 0x6c8   : > { %v2385_v19 = vpop.f32.mrf.mxu1 }
 0x6c9   : > { %v2434_v4 = vadd.f32 %v2433_v58, %v2385_v19 }
 0x6cf   : > { %v2398_v5 = vpop.f32.mrf.mxu2 }
 0x6d0   : > { %v2387_v10 = vpop.f32.mrf.mxu1 }
 0x6d7   : > { %v2400_v63 = vpop.f32.mrf.mxu2 }
 0x6d8   : > { %v2446_v12 = vpop.f32.mrf.mxu1 }
 0x6d9   : > { %v2447_v24 = vadd.f32 %v2446_v12, %v2398_v5 }
 0x6da   : > { %v2512_v1 = vpop.f32.mrf.mxu0 }
 0x6db   : > { %v2530_v25 = vadd.f32 %v2512_v1, %v2447_v24 }
 0x6df   : > { %v2459_v29 = vpop.f32.mrf.mxu2 }
 0x6e0   : > { %v2499_v27 = vpop.f32.mrf.mxu3  ;;  %v2460_v30 = vadd.f32 %v2459_v29, %v2411_v6  ;;  %v2448_v31 = vpop.f32.mrf.mxu1 }
 0x6e1   : > { %v2529_v59 = vadd.f32 %v2499_v27, %v2434_v4 }
 0x6e2   : > { %v2514_v26 = vpop.f32.mrf.mxu0 }
 0x6e7   : > { %v2461_v32 = vpop.f32.mrf.mxu2 }
 0x6e8   : > { %v2501_v28 = vpop.f32.mrf.mxu3  ;;  %v2525_v34 = vpop.f32.mrf.mxu1 }
 0x6e9   : > { %v2531_v35 = vadd.f32 %v2525_v34, %v2460_v30 }
 0x6ea   : > { %v2594_v33 = vpop.f32.mrf.mxu0 }
 0x6eb   : > { %v2600_v38 = vadd.f32 %v2594_v33, %v2531_v35 }
 0x6ef   : > { %v2568_v37 = vpop.f32.mrf.mxu2 }
 0x6f0   : > { %v2581_v39 = vpop.f32.mrf.mxu3  ;;  %v2527_v42 = vpop.f32.mrf.mxu1  ;;  %v2598_v3 = vadd.f32 %v2568_v37, %v2529_v59 }
 0x6f1   : > { %v2599_v63 = vadd.f32 %v2581_v39, %v2530_v25 }
 0x6f2   : > { %v2596_v41 = vpop.f32.mrf.mxu0 }
 0x6f7   : > { %v2570_v40 = vpop.f32.mrf.mxu2 }
 0x6f8   : > { %v2583_v43 = vpop.f32.mrf.mxu3  ;;  %v2637_v44 = vpop.f32.mrf.mxu1 }
 0x6f9   : > { %v2667_v6 = vadd.f32 %v2637_v44, %v2598_v3 }
 0x700   : > { %v2663_v45 = vpop.f32.mrf.mxu3  ;;  %v2650_v36 = vpop.f32.mrf.mxu2 }
 0x701   : > { %v2639_v46 = vpop.f32.mrf.mxu1  ;;  %v2668_v29 = vadd.f32 %v2650_v36, %v2599_v63  ;;  %v2669_v28 = vadd.f32 %v2663_v45, %v2600_v38 }
 0x708   : > { %v2665_v49 = vpop.f32.mrf.mxu3  ;;  %v2652_v50 = vpop.f32.mrf.mxu2 }
 0x709   : > { %v2719_v51 = vpop.f32.mrf.mxu1 }
 0x70a   : > { %v2737_v32 = vadd.f32 %v2719_v51, %v2668_v29 }
 0x710   : > { %v2775_v52 = vpop.f32.mrf.mxu3  ;;  %v2732_v53 = vpop.f32.mrf.mxu2 }
 0x711   : > { %v2706_v55 = vpop.f32.mrf.mxu0  ;;  %v2721_v54 = vpop.f32.mrf.mxu1  ;;  %v2738_v27 = vadd.f32 %v2732_v53, %v2669_v28 }
 0x712   : > { %v2736_v16 = vadd.f32 %v2706_v55, %v2667_v6 }
 0x714   : > { %v2805_v10 = vadd.f32 %v2775_v52, %v2736_v16 }
 0x718   : > { %v2777_v13 = vpop.f32.mrf.mxu3  ;;  %v2734_v11 = vpop.f32.mrf.mxu2 }
 0x719   : > { %v2708_v14 = vpop.f32.mrf.mxu0  ;;  %v2801_v58 = vpop.f32.mrf.mxu1 }
 0x71a   : > { %v2807_v35 = vadd.f32 %v2801_v58, %v2738_v27  ;;  %v5110_v58 = vpop.permute.xlu1 %3194 }
 0x721   : > { %v2788_v8 = vpop.f32.mrf.mxu0  ;;  %v2803_v15 = vpop.f32.mrf.mxu1 }
 0x722   : > { %v2844_v19 = vpop.f32.mrf.mxu2  ;;  %v2806_v33 = vadd.f32 %v2788_v8, %v2737_v32  ;;  %v5114_v8 = vpop.permute.xlu0 %3057 }
 0x723   : > { %v2857_v5 = vpop.f32.mrf.mxu3  ;;  %v2874_v1 = vadd.f32 %v2844_v19, %v2805_v10 }
 0x724   : > { %v2875_v42 = vadd.f32 %v2857_v5, %v2806_v33 }
 0x729   : > { %v2790_v12 = vpop.f32.mrf.mxu0  ;;  %v2913_v24 = vpop.f32.mrf.mxu1 }
 0x72a   : > { %v2943_v26 = vadd.f32 %v2913_v24, %v2874_v1  ;;  %v2846_v30 = vpop.f32.mrf.mxu2 }
 0x72b   : > { %v2859_v31 = vpop.f32.mrf.mxu3 }
 0x72c   : > { %v2953_v4 = vadd.f32 %v5046_v62, %v2943_v26 }
 0x72e   : > { %vm2956_vm11 = vcmp.gt.f32.partialorder %v2953_v4, 0.0  ;;  %v2959_v34 = vmul.f32 0.01, %v2953_v4 }
 0x730   : > { %v2962_v37 = vsel %vm2956_vm11, %v2953_v4, %v2959_v34  ;;  %vm3077_vm11 = vcmask 326656  }
 0x731   : > { %v2870_v41 = vpop.f32.mrf.mxu0  ;;  %v2965_v25 = vmul.f32 %v2962_v37, %v4382_v48  ;;  %v2915_v39 = vpop.f32.mrf.mxu1 }
 0x732   : > { %v2876_v43 = vadd.f32 %v2870_v41, %v2807_v35  ;;  %v2926_v40 = vpop.f32.mrf.mxu2 }
 0x733   : > { %v2939_v44 = vpop.f32.mrf.mxu3  ;;  %2971 = vrot.lane.b32.xlu1 %v2965_v25, %s4162_s23  ;;  %v2944_v38 = vadd.f32 %v2926_v40, %v2875_v42 }
 0x734   : > { %v2945_v45 = vadd.f32 %v2939_v44, %v2876_v43 }
 0x735   : > { %v2954_v36 = vadd.f32 %v5046_v62, %v2944_v38 }
 0x736   : > { %v2955_v46 = vadd.f32 %v5046_v62, %v2945_v45  ;;  %v5106_v62 = vpop.permute.xlu2 %3196 }
 0x737   : > { %vm2957_vm12 = vcmp.gt.f32.partialorder %v2954_v36, 0.0  ;;  %v2960_v49 = vmul.f32 0.01, %v2954_v36 }
 0x738   : > { %vm2958_vm13 = vcmp.gt.f32.partialorder %v2955_v46, 0.0  ;;  %v2961_v50 = vmul.f32 0.01, %v2955_v46 }
 0x739   : > { %v2872_v51 = vpop.f32.mrf.mxu0  ;;  %v2963_v52 = vsel %vm2957_vm12, %v2954_v36, %v2960_v49 }
 0x73a   : > { %v2964_v53 = vsel %vm2958_vm13, %v2955_v46, %v2961_v50  ;;  %v2966_v54 = vmul.f32 %v2963_v52, %v4380_v47  ;;  %v2928_v11 = vpop.f32.mrf.mxu2  ;;  %v4143_v52 = vld [vmem:[#allocation2 + $0x8] sm:$0xff] }
 0x73b   : > { %v2941_v55 = vpop.f32.mrf.mxu3  ;;  %3190 = vrot.lane.b32.xlu1 %v4545_v57, %s4154_s16  ;;  %v2967_v13 = vmul.f32 %v2964_v53, %v4388_v61  ;;  %v4082_v11 = vld [vmem:[%s5532_s6 + $0x4] sm:$0xf] }
 0x73c   : > { %2973 = vrot.lane.b32.xlu2 %v2966_v54, %s4162_s23  ;;  %v5258_v54 = vld [vmem:[%s5532_s6] sm:$0xf] }
 0x73d   : > { %2975 = vrot.lane.b32.xlu0 %v2967_v13, %s4162_s23 }
 0x73e   : > { %v5108_v14 = vpop.permute.xlu2 %3198 }
 0x743   : > { %3284 = vrot.lane.b32.xlu1 %v4820_v21, %s4155_s17 }
 0x744   : > { %3278 = vrot.lane.b32.xlu2 %v4425_v20, %s4155_s17 }
 0x745   : > { %3188 = vrot.lane.b32.xlu0 %v4539_v56, %s4154_s16 }
 0x74b   : > { %3276 = vrot.lane.b32.xlu1 %v4545_v57, %s4155_s17 }
 0x74c   : > { %3366 = vrot.lane.b32.xlu2 %v4823_v22, %s4156_s18 }
 0x74d   : > { %3282 = vrot.lane.b32.xlu0 %v4826_v23, %s4155_s17 }
 0x753   : > { %3274 = vrot.lane.b32.xlu1 %v4539_v56, %s4155_s17 }
 0x754   : > { %3362 = vrot.lane.b32.xlu2 %v4545_v57, %s4156_s18 }
 0x755   : > { %3192 = vrot.lane.b32.xlu0 %v4425_v20, %s4154_s16 }
 0x75b   : > { %3368 = vrot.lane.b32.xlu1 %v4826_v23, %s4156_s18 }
 0x75c   : > { %3538 = vrot.lane.b32.xlu2 %v4823_v22, %s4158_s20 }
 0x75d   : > { %3280 = vrot.lane.b32.xlu0 %v4823_v22, %s4155_s17 }
 0x763   : > { %3454 = vrot.lane.b32.xlu1 %v4826_v23, %s4157_s19 }
 0x765   : > { %3370 = vrot.lane.b32.xlu0 %v4820_v21, %s4156_s18 }
 0x76d   : > { %3364 = vrot.lane.b32.xlu0 %v4425_v20, %s4156_s18 }
 0x775   : > { %3360 = vrot.lane.b32.xlu0 %v4539_v56, %s4156_s18 }
 0x77d   : > { %3452 = vrot.lane.b32.xlu0 %v4823_v22, %s4157_s19 }
 0x796   : > { %v2974_v59 = vpop.permute.xlu2 %2973 }
 0x79e   : > { %v5148_v34 = vpop.permute.xlu2 %3278 }
 0x7a5   : > { %v2972_v3 = vpop.permute.xlu1 %2971 }
 0x7a6   : > { %v2977_v6 = vsel %vm362_vm14, %v2972_v3, %v2974_v59  ;;  %2982 = vst.msk [vmem:[#allocation2 + $0x60] sm:$0xff] %vm998_vm0, %v2972_v3  ;;  %v3367_v25 = vpop.permute.xlu2 %3366 }
 0x7ad   : > { %v2997_v15 = vld [vmem:[#allocation2 + $0x60] sm:$0xff]  ;;  %v5116_v16 = vpop.permute.xlu1 %3190 }
 0x7ae   : > { %v3008_v19 = vpack.c.bf16 %v2977_v6, %v2997_v15  ;;  %v5198_v45 = vpop.permute.xlu2 %3362 }
 0x7af   : > { %v2976_v5 = vpop.permute.xlu0 %2975 }
 0x7b0   : > { %v3035_v10 = vunpack.c.l.b16 %v3008_v19  ;;  %v3036_v63 = vunpack.c.h.b16 %v3008_v19  ;;  %v2978_v1 = vsel %vm362_vm14, %v2974_v59, %v2976_v5 }
 0x7b1   : > { %2984 = vst.msk [vmem:[#allocation2 + $0x70] sm:$0xff] %vm1001_vm2, %v2978_v1  ;;  %v3068_v1 = vsel %vm394_vm4, %v5055_v17, %v5114_v8  ;;  %v3066_v17 = vsel %vm394_vm4, %v5049_v7, %v5044_v60 }
 0x7b2   : > { %v5120_v12 = vpack.c.b16 %v3035_v10, %v3035_v10  ;;  %v5122_v24 = vpack.c.b16 %v3036_v63, %v3036_v63 }
 0x7b4   : > { %3202 = vrot.lane.b32.xlu0 %v5122_v24, %s4154_s16  ;;  %3061 = vrot.lane.b32.xlu1 %v5122_v24, %s4153_s15  ;;  %v3139_v29 = vsel %vm401_vm1, %v5120_v12, 0 }
 0x7b5   : > { %v5130_v26 = vpop.permute.xlu1 %3284  ;;  %3152 = vmatpush.bf16.msrb.mxu3 %v3139_v29 }
 0x7b6   : > { %v5236_v49 = vpop.permute.xlu2 %3538 }
 0x7b7   : > { %v5132_v30 = vpop.permute.xlu0 %3188 }
 0x7b8   : > { %v2999_v31 = vld [vmem:[#allocation2 + $0x70] sm:$0xff] }
 0x7b9   : > { %v3009_v28 = vpack.c.bf16 %v2999_v31, %v2999_v31  ;;  %3153 = vmatpush.bf16.msrb.mxu3 %v4823_v22 }
 0x7bb   : > { %v3037_v32 = vunpack.c.l.b16 %v3009_v28  ;;  %v3208_v28 = vsel %vm509_vm3, %v5110_v58, %v5106_v62  ;;  %v3206_v58 = vsel %vm509_vm3, %v5132_v30, %v5116_v16 }
 0x7bc   : > { %3540 = vrot.lane.b32.xlu0 %v4826_v23, %s4158_s20  ;;  %3446 = vrot.lane.b32.xlu1 %v4539_v56, %s4157_s19 }
 0x7bd   : > { %v5139_v4 = vpack.c.b16 %v3037_v32, %v3037_v32  ;;  %v5141_v27 = vpop.permute.xlu1 %3276  ;;  %3154 = vmatpush.bf16.msrb.mxu3 %v4539_v56 }
 0x7bf   : > { %3063 = vrot.lane.b32.xlu2 %v5139_v4, %s4153_s15  ;;  %v5146_v33 = vpop.permute.xlu0 %3282 }
 0x7c0   : > { %4086 = vmatmul.msk.bf16.vlgmr.msrb.gmra.mxu3 %vm3077_vm11, %v5258_v54 }
 0x7c4   : > { %3288 = vrot.lane.b32.xlu0 %v5122_v24, %s4155_s17  ;;  %3532 = vrot.lane.b32.xlu1 %v4539_v56, %s4158_s20 }
 0x7c5   : > { %v3275_v35 = vpop.permute.xlu1 %3274 }
 0x7c6   : > { %v5156_v37 = vsel %vm574_vm5, %v3275_v35, %v5141_v27 }
 0x7c7   : > { %v5158_v41 = vpop.permute.xlu0 %3192  ;;  %3059 = vrot.lane.b32.xlu2 %v5120_v12, %s4153_s15 }
 0x7cc   : > { %3456 = vrot.lane.b32.xlu0 %v4820_v21, %s4157_s19  ;;  %3290 = vrot.lane.b32.xlu1 %v5139_v4, %s4155_s17 }
 0x7cd   : > { %v5166_v39 = vpop.permute.xlu1 %3368 }
 0x7ce   : > { %v5170_v42 = vsel %vm639_vm6, %v3367_v25, %v5166_v39 }
 0x7cf   : > { %v3281_v43 = vpop.permute.xlu0 %3280  ;;  %3200 = vrot.lane.b32.xlu2 %v5120_v12, %s4154_s16 }
 0x7d0   : > { %v5176_v40 = vsel %vm574_vm5, %v3281_v43, %v5146_v33 }
 0x7d4   : > { %3374 = vrot.lane.b32.xlu1 %v5122_v24, %s4156_s18  ;;  %3458 = vrot.lane.b32.xlu0 %v5120_v12, %s4157_s19 }
 0x7d5   : > { %v5248_v53 = vpop.permute.xlu1 %3454 }
 0x7d7   : > { %v5182_v44 = vpop.permute.xlu0 %3370  ;;  %3448 = vrot.lane.b32.xlu2 %v4545_v57, %s4157_s19 }
 0x7dc   : > { %3460 = vrot.lane.b32.xlu1 %v5122_v24, %s4157_s19  ;;  %3626 = vrot.lane.b32.xlu0 %v4826_v23, %s4159_s21 }
 0x7df   : > { %v5190_v38 = vpop.permute.xlu0 %3364  ;;  %3534 = vrot.lane.b32.xlu2 %v4545_v57, %s4158_s20 }
 0x7e4   : > { %3544 = vrot.lane.b32.xlu1 %v5120_v12, %s4158_s20  ;;  %3536 = vrot.lane.b32.xlu0 %v4425_v20, %s4158_s20 }
 0x7e7   : > { %v3361_v36 = vpop.permute.xlu0 %3360  ;;  %3204 = vrot.lane.b32.xlu2 %v5139_v4, %s4154_s16 }
 0x7e8   : > { %v5204_v46 = vsel %vm639_vm6, %v3361_v36, %v5198_v45  ;;  %v3209_v36 = vsel %vm509_vm3, %v5106_v62, %v5108_v14 }
 0x7ec   : > { %3628 = vrot.lane.b32.xlu1 %v4820_v21, %s4159_s21  ;;  %3462 = vrot.lane.b32.xlu0 %v5139_v4, %s4157_s19 }
 0x7ef   : > { %3450 = vrot.lane.b32.xlu2 %v4425_v20, %s4157_s19  ;;  %v5250_v55 = vpop.permute.xlu0 %3452  ;;  %s5471_s19 = scalar_lea.vmem %s5527_s1, %s4222_s11 }
 0x7f4   : > { %3620 = vrot.lane.b32.xlu1 %v4545_v57, %s4159_s21  ;;  %3632 = vrot.lane.b32.xlu0 %v5122_v24, %s4159_s21 }
 0x7f7   : > { %3286 = vrot.lane.b32.xlu2 %v5120_v12, %s4155_s17 }
 0x7fc   : > { %3548 = vrot.lane.b32.xlu1 %v5139_v4, %s4158_s20  ;;  %3624 = vrot.lane.b32.xlu0 %v4823_v22, %s4159_s21 }
 0x7ff   : > { %3376 = vrot.lane.b32.xlu2 %v5139_v4, %s4156_s18 }
 0x804   : > { %3634 = vrot.lane.b32.xlu1 %v5139_v4, %s4159_s21  ;;  %3714 = vrot.lane.b32.xlu0 %v4820_v21, %s4160_s22 }
 0x807   : > { %3372 = vrot.lane.b32.xlu2 %v5120_v12, %s4156_s18 }
 0x80c   : > { %3618 = vrot.lane.b32.xlu1 %v4539_v56, %s4159_s21  ;;  %3708 = vrot.lane.b32.xlu0 %v4425_v20, %s4160_s22 }
 0x80f   : > { %3546 = vrot.lane.b32.xlu2 %v5122_v24, %s4158_s20 }
 0x814   : > { %3718 = vrot.lane.b32.xlu1 %v5122_v24, %s4160_s22  ;;  %3706 = vrot.lane.b32.xlu0 %v4545_v57, %s4160_s22 }
 0x817   : > { %3542 = vrot.lane.b32.xlu2 %v4820_v21, %s4158_s20 }
 0x819   : > { %v3064_v50 = vpop.permute.xlu2 %3063 }
 0x81a   : > { %v3088_v51 = vsel %vm401_vm1, %v3064_v50, 0 }
 0x81b   : > { %3121 = vmatpush.bf16.msrb.mxu2 %v3088_v51  ;;  %v4093_v51 = vld [vmem:[%s5532_s6 + $0xc] sm:$0xf] }
 0x81c   : > { %3712 = vrot.lane.b32.xlu1 %v4826_v23, %s4160_s22  ;;  %3809 = vrot.lane.b32.xlu0 %v4143_v52, %s4156_s18  ;;  %v3207_v52 = vsel %vm509_vm3, %v5116_v16, %v5158_v41 }
 0x81f   : > { %3122 = vmatpush.bf16.msrb.mxu2 %v5114_v8  ;;  %3622 = vrot.lane.b32.xlu2 %v4425_v20, %s4159_s21  ;;  %v3145_v8 = vsel %vm401_vm1, %v5139_v4, 0 }
 0x821   : > { %v3060_v13 = vpop.permute.xlu2 %3059 }
 0x823   : > { %3123 = vmatpush.bf16.msrb.mxu2 %v5044_v60  ;;  %v4089_v60 = vld [vmem:[%s5532_s6 + $0x8] sm:$0xf] }
 0x824   : > { %3704 = vrot.lane.b32.xlu1 %v4539_v56, %s4160_s22 }
 0x826   : > { %v3203_v59 = vpop.permute.xlu0 %3202  ;;  %v3062_v3 = vpop.permute.xlu1 %3061  ;;  %4085 = vmatmul.msk.bf16.vlgmr.msrb.gmra.mxu2 %vm3077_vm11, %v4082_v11 }
 0x827   : > { %3630 = vrot.lane.b32.xlu2 %v5120_v12, %s4159_s21  ;;  %v3069_v6 = vsel %vm394_vm4, %v3060_v13, %v3062_v3  ;;  %v3070_v15 = vsel %vm394_vm4, %v3062_v3, %v3064_v50 }
 0x828   : > { %v3082_v19 = vsel %vm401_vm1, %v3069_v6, 0  ;;  %v3085_v5 = vsel %vm401_vm1, %v3070_v15, 0  ;;  %v3466_v15 = vsel %vm704_vm7, %v5250_v55, %v5248_v53  ;;  %v3381_v55 = vsel %vm639_vm6, %v5166_v39, %v5182_v44 }
 0x829   : > { %v3201_v10 = vpop.permute.xlu2 %3200  ;;  %3095 = vmatpush.bf16.msrb.mxu0 %v3082_v19  ;;  %3108 = vmatpush.bf16.msrb.mxu1 %v3085_v5 }
 0x82a   : > { %v3210_v56 = vsel %vm509_vm3, %v3201_v10, %v3203_v59 }
 0x82b   : > { %v3222_v63 = vsel %vm401_vm1, %v3210_v56, 0 }
 0x82c   : > { %3235 = vmatpush.bf16.msra.mxu2 %v3222_v63  ;;  %3811 = vrot.lane.b32.xlu1 %v4228_v0, %s4156_s18 }
 0x82d   : > { %3096 = vmatpush.bf16.msrb.mxu0 %v5059_v18  ;;  %3109 = vmatpush.bf16.msrb.mxu1 %v3068_v1  ;;  %v3142_v18 = vsel %vm401_vm1, %v5122_v24, 0 }
 0x82e   : > { %v5283_v29 = vpop.permute.xlu0 %3540  ;;  %v5285_v31 = vpop.permute.xlu1 %3446 }
 0x82f   : > { %3720 = vrot.lane.b32.xlu2 %v5139_v4, %s4160_s22 }
 0x830   : > { %3236 = vmatpush.bf16.msra.mxu2 %v3208_v28  ;;  %v4097_v28 = vld [vmem:[%s5532_s6 + $0x10] sm:$0xf] }
 0x831   : > { %v5295_v0 = vpop.permute.xlu2 %3448  ;;  %3097 = vmatpush.bf16.msrb.mxu0 %v5053_v9  ;;  %3110 = vmatpush.bf16.msrb.mxu1 %v3066_v17 }
 0x834   : > { %3237 = vmatpush.bf16.msra.mxu2 %v3206_v58  ;;  %4083 = vmatmul.msk.bf16.vlgmr.msrb.gmra.mxu0 %vm3077_vm11, %v4082_v11 }
 0x835   : > { %3165 = vmatpush.bf16.msra.mxu0 %v3142_v18  ;;  %3178 = vmatpush.bf16.msra.mxu1 %v3145_v8 }
 0x836   : > { %4084 = vmatmul.msk.bf16.vlgmr.msrb.gmra.mxu1 %vm3077_vm11, %v4082_v11  ;;  %v3289_v7 = vpop.permute.xlu0 %3288  ;;  %v5312_v9 = vpop.permute.xlu1 %3532 }
 0x837   : > { %3716 = vrot.lane.b32.xlu2 %v5120_v12, %s4160_s22  ;;  %4090 = vmatmul.msk.bf16.vlgmr.msra.gmra.mxu2 %vm3077_vm11, %v4089_v60 }
 0x839   : > { %3166 = vmatpush.bf16.msra.mxu0 %v4826_v23  ;;  %3179 = vmatpush.bf16.msra.mxu1 %v4820_v21  ;;  %v5317_v24 = vpop.permute.xlu2 %3534 }
 0x83d   : > { %3167 = vmatpush.bf16.msra.mxu0 %v4545_v57  ;;  %3180 = vmatpush.bf16.msra.mxu1 %v4425_v20  ;;  %v3295_v20 = vsel %vm574_vm5, %v5146_v33, %v5130_v26  ;;  %v3293_v33 = vsel %vm574_vm5, %v5141_v27, %v5148_v34 }
 0x83e   : > { %v5321_v30 = vpop.permute.xlu0 %3456  ;;  %v3291_v32 = vpop.permute.xlu1 %3290 }
 0x83f   : > { %3710 = vrot.lane.b32.xlu2 %v4823_v22, %s4160_s22  ;;  %v3297_v21 = vsel %vm574_vm5, %v3289_v7, %v3291_v32  ;;  %v4117_v22 = vld [vmem:[%s5533_s7 + $0x20] sm:$0xff]  ;;  %v3314_v62 = vsel %vm401_vm1, %v3291_v32, 0  ;;  %v3552_v32 = vsel %vm769_vm8, %v5236_v49, %v5283_v29 }
 0x840   : > { %v3311_v23 = vsel %vm401_vm1, %v3297_v21, 0  ;;  %v3467_v21 = vsel %vm704_vm7, %v5248_v53, %v5321_v30  ;;  %v4105_v53 = vld [vmem:[%s5532_s6 + $0x18] sm:$0xf] }
 0x841   : > { %v3205_v4 = vpop.permute.xlu2 %3204  ;;  %3334 = vmatpush.bf16.msrb.mxu2 %v3311_v23 }
 0x842   : > { %v3211_v12 = vsel %vm509_vm3, %v3203_v59, %v3205_v4  ;;  %v3228_v35 = vsel %vm401_vm1, %v3205_v4, 0 }
 0x843   : > { %v3225_v57 = vsel %vm401_vm1, %v3211_v12, 0  ;;  %3261 = vmatpush.bf16.msrb.mxu0 %v3228_v35  ;;  %v3550_v12 = vsel %vm769_vm8, %v5312_v9, %v5317_v24 }
 0x844   : > { %3248 = vmatpush.bf16.msra.mxu3 %v3225_v57  ;;  %4087 = vmatmul.msk.bf16.vlgmr.msra.gmra.mxu0 %vm3077_vm11, %v5258_v54 }
 0x845   : > { %3335 = vmatpush.bf16.msrb.mxu2 %v3295_v20 }
 0x846   : > { %4088 = vmatmul.msk.bf16.vlgmr.msra.gmra.mxu1 %vm3077_vm11, %v5258_v54  ;;  %v3459_v25 = vpop.permute.xlu0 %3458  ;;  %v3375_v43 = vpop.permute.xlu1 %3374  ;;  %v4144_v54 = vld [vmem:[#allocation2] sm:$0xff] }
 0x847   : > { %3792 = vperm.xlu2 %4141, %v4117_v22   ;;  %3262 = vmatpush.bf16.msrb.mxu0 %v5108_v14 }
 0x848   : > { %3249 = vmatpush.bf16.msra.mxu3 %v3209_v36 }
 0x849   : > { %v5347_v50 = vpop.permute.xlu2 %3450  ;;  %3336 = vmatpush.bf16.msrb.mxu2 %v3293_v33 }
 0x84a   : > { %v3465_v49 = vsel %vm704_vm7, %v5295_v0, %v5347_v50 }
 0x84b   : > { %3263 = vmatpush.bf16.msrb.mxu0 %v5158_v41 }
 0x84c   : > { %3250 = vmatpush.bf16.msra.mxu3 %v3207_v52  ;;  %4095 = vmatmul.msk.bf16.vlgmr.msrb.gmra.mxu2 %vm3077_vm11, %v4093_v51  ;;  %v4109_v52 = vld [vmem:[%s5532_s6 + $0x1c] sm:$0xf] }
 0x84e   : > { %v5358_v14 = vpop.permute.xlu0 %3626  ;;  %v3461_v27 = vpop.permute.xlu1 %3460 }
 0x84f   : > { %4091 = vmatmul.msk.bf16.vlgmr.msra.gmra.mxu3 %vm3077_vm11, %v4089_v60  ;;  %3807 = vrot.lane.b32.xlu2 %v4144_v54, %s4156_s18  ;;  %v3468_v11 = vsel %vm704_vm7, %v3459_v25, %v3461_v27 }
 0x850   : > { %3347 = vmatpush.bf16.msrb.mxu3 %v3314_v62  ;;  %v3480_v59 = vsel %vm401_vm1, %v3468_v11, 0 }
 0x851   : > { %v3287_v13 = vpop.permute.xlu2 %3286 }
 0x852   : > { %v3296_v16 = vsel %vm574_vm5, %v3287_v13, %v3289_v7 }
 0x853   : > { %v3308_v41 = vsel %vm401_vm1, %v3296_v16, 0 }
 0x854   : > { %3348 = vmatpush.bf16.msrb.mxu3 %v5130_v26  ;;  %3321 = vmatpush.bf16.msrb.mxu1 %v3308_v41 }
 0x855   : > { %4092 = vmatmul.msk.bf16.vlgmr.msrb.gmra.mxu0 %vm3077_vm11, %v4089_v60 }
 0x856   : > { %v5369_v3 = vpop.permute.xlu0 %3536  ;;  %v3545_v6 = vpop.permute.xlu1 %3544 }
 0x858   : > { %3349 = vmatpush.bf16.msrb.mxu3 %v5148_v34  ;;  %3322 = vmatpush.bf16.msrb.mxu1 %v5176_v40  ;;  %v3464_v34 = vsel %vm704_vm7, %v5285_v31, %v5295_v0  ;;  %v3379_v31 = vsel %vm639_vm6, %v5198_v45, %v5190_v38 }
 0x859   : > { %v3377_v26 = vpop.permute.xlu2 %3376 }
 0x85a   : > { %v3383_v19 = vsel %vm639_vm6, %v3375_v43, %v3377_v26  ;;  %v3400_v5 = vsel %vm401_vm1, %v3377_v26, 0 }
 0x85b   : > { %v3397_v10 = vsel %vm401_vm1, %v3383_v19, 0  ;;  %3433 = vmatpush.bf16.msra.mxu2 %v3400_v5  ;;  %v3826_v19 = vld [vmem:[%s5471_s19 + $0x8] sm:$0xff] }
 0x85c   : > { %3493 = vmatpush.bf16.msra.mxu3 %v3480_v59  ;;  %3323 = vmatpush.bf16.msrb.mxu1 %v5156_v37 }
 0x85d   : > { %3833 = vrot.lane.b32.xlu0 %v3826_v19, %s4156_s18 }
 0x85e   : > { %v5382_v40 = vpop.permute.xlu1 %3628  ;;  %v3463_v56 = vpop.permute.xlu0 %3462 }
 0x85f   : > { %4094 = vmatmul.msk.bf16.vlgmr.msrb.gmra.mxu1 %vm3077_vm11, %v4093_v51  ;;  %4096 = vmatmul.msk.bf16.vlgmr.msrb.gmra.mxu3 %vm3077_vm11, %v4093_v51  ;;  %v3486_v17 = vsel %vm401_vm1, %v3463_v56, 0  ;;  %v3639_v25 = vsel %vm834_vm9, %v5358_v14, %v5382_v40 }
 0x860   : > { %3494 = vmatpush.bf16.msra.mxu3 %v3466_v15  ;;  %3420 = vmatpush.bf16.msra.mxu1 %v3397_v10  ;;  %v3827_v15 = vld [vmem:[%s5471_s19 + $0x10] sm:$0xff] }
 0x861   : > { %3434 = vmatpush.bf16.msra.mxu2 %v5182_v44  ;;  %v3373_v37 = vpop.permute.xlu2 %3372  ;;  %v3469_v44 = vsel %vm704_vm7, %v3461_v27, %v3463_v56  ;;  %3835 = vrot.lane.b32.xlu1 %v3827_v15, %s4156_s18 }
 0x862   : > { %v3382_v63 = vsel %vm639_vm6, %v3373_v37, %v3375_v43  ;;  %v3483_v58 = vsel %vm401_vm1, %v3469_v44, 0 }
 0x863   : > { %v3394_v1 = vsel %vm401_vm1, %v3382_v63, 0 }
 0x864   : > { %3495 = vmatpush.bf16.msra.mxu3 %v3464_v34  ;;  %3421 = vmatpush.bf16.msra.mxu1 %v3381_v55 }
 0x865   : > { %3435 = vmatpush.bf16.msra.mxu2 %v5190_v38  ;;  %3407 = vmatpush.bf16.msra.mxu0 %v3394_v1  ;;  %v3156_v1 = vpop.f32.mrf.mxu3 }
 0x866   : > { %v5400_v39 = vpop.permute.xlu1 %3620  ;;  %v3633_v18 = vpop.permute.xlu0 %3632 }
 0x868   : > { %3422 = vmatpush.bf16.msra.mxu1 %v3379_v31  ;;  %4100 = vmatmul.msk.bf16.vlgmr.msra.gmra.mxu2 %vm3077_vm11, %v4097_v28 }
 0x869   : > { %3408 = vmatpush.bf16.msra.mxu0 %v5170_v42  ;;  %v3547_v8 = vpop.permute.xlu2 %3546  ;;  %v4101_v42 = vld [vmem:[%s5532_s6 + $0x14] sm:$0xf] }
 0x86a   : > { %v3554_v38 = vsel %vm769_vm8, %v3545_v6, %v3547_v8 }
 0x86b   : > { %v3566_v45 = vsel %vm401_vm1, %v3554_v38, 0 }
 0x86c   : > { %3519 = vmatpush.bf16.msrb.mxu1 %v3486_v17  ;;  %3579 = vmatpush.bf16.msrb.mxu2 %v3566_v45 }
 0x86d   : > { %3409 = vmatpush.bf16.msra.mxu0 %v5204_v46  ;;  %v3158_v17 = vpop.f32.mrf.mxu3 }
 0x86e   : > { %v3549_v60 = vpop.permute.xlu1 %3548  ;;  %v3625_v4 = vpop.permute.xlu0 %3624 }
 0x86f   : > { %4099 = vmatmul.msk.bf16.vlgmr.msra.gmra.mxu1 %vm3077_vm11, %v4097_v28  ;;  %v3555_v7 = vsel %vm769_vm8, %v3547_v8, %v3549_v60  ;;  %4102 = vmatmul.msk.bf16.vlgmr.msra.gmra.mxu3 %vm3077_vm11, %v4101_v42  ;;  %v3638_v54 = vsel %vm834_vm9, %v3625_v4, %v5358_v14 }
 0x870   : > { %3520 = vmatpush.bf16.msrb.mxu1 %v5321_v30  ;;  %4098 = vmatmul.msk.bf16.vlgmr.msra.gmra.mxu0 %vm3077_vm11, %v4097_v28  ;;  %v3569_v46 = vsel %vm401_vm1, %v3555_v7, 0  ;;  %v3572_v30 = vsel %vm401_vm1, %v3549_v60, 0  ;;  %v3825_v28 = vld [vmem:[%s5471_s19] sm:$0xff] }
 0x871   : > { %3506 = vmatpush.bf16.msrb.mxu0 %v3483_v58  ;;  %3580 = vmatpush.bf16.msrb.mxu2 %v3552_v32  ;;  %v3543_v23 = vpop.permute.xlu2 %3542 }
 0x872   : > { %3592 = vmatpush.bf16.msrb.mxu3 %v3569_v46  ;;  %v3553_v35 = vsel %vm769_vm8, %v5283_v29, %v3543_v23  ;;  %v3551_v29 = vsel %vm769_vm8, %v5317_v24, %v5369_v3  ;;  %3831 = vrot.lane.b32.xlu2 %v3825_v28, %s4156_s18 }
 0x874   : > { %3521 = vmatpush.bf16.msrb.mxu1 %v5347_v50 }
 0x875   : > { %3507 = vmatpush.bf16.msrb.mxu0 %v3467_v21  ;;  %3581 = vmatpush.bf16.msrb.mxu2 %v3550_v12 }
 0x876   : > { %3593 = vmatpush.bf16.msrb.mxu3 %v3553_v35  ;;  %v3635_v57 = vpop.permute.xlu1 %3634  ;;  %v3715_v43 = vpop.permute.xlu0 %3714 }
 0x877   : > { %v3641_v9 = vsel %vm834_vm9, %v3633_v18, %v3635_v57  ;;  %v3658_v0 = vsel %vm401_vm1, %v3635_v57, 0 }
 0x878   : > { %4106 = vmatmul.msk.bf16.vlgmr.msrb.gmra.mxu2 %vm3077_vm11, %v4105_v53  ;;  %v3655_v20 = vsel %vm401_vm1, %v3641_v9, 0 }
 0x879   : > { %3508 = vmatpush.bf16.msrb.mxu0 %v3465_v49  ;;  %v3623_v22 = vpop.permute.xlu2 %3622  ;;  %3678 = vmatpush.bf16.msra.mxu2 %v3655_v20 }
 0x87a   : > { %3594 = vmatpush.bf16.msrb.mxu3 %v3551_v29  ;;  %v3637_v24 = vsel %vm834_vm9, %v5400_v39, %v3623_v22 }
 0x87d   : > { %3605 = vmatpush.bf16.msra.mxu0 %v3572_v30  ;;  %3679 = vmatpush.bf16.msra.mxu2 %v3639_v25 }
 0x87e   : > { %3691 = vmatpush.bf16.msra.mxu3 %v3658_v0  ;;  %v3619_v36 = vpop.permute.xlu1 %3618  ;;  %v3709_v27 = vpop.permute.xlu0 %3708 }
 0x87f   : > { %4104 = vmatmul.msk.bf16.vlgmr.msrb.gmra.mxu1 %vm3077_vm11, %v4101_v42  ;;  %4107 = vmatmul.msk.bf16.vlgmr.msrb.gmra.mxu3 %vm3077_vm11, %v4105_v53  ;;  %v3636_v59 = vsel %vm834_vm9, %v3619_v36, %v5400_v39 }
 0x880   : > { %4103 = vmatmul.msk.bf16.vlgmr.msrb.gmra.mxu0 %vm3077_vm11, %v4101_v42 }
 0x881   : > { %3606 = vmatpush.bf16.msra.mxu0 %v3543_v23  ;;  %v3631_v33 = vpop.permute.xlu2 %3630  ;;  %3680 = vmatpush.bf16.msra.mxu2 %v3637_v24 }
 0x882   : > { %3692 = vmatpush.bf16.msra.mxu3 %v5382_v40  ;;  %v3640_v50 = vsel %vm834_vm9, %v3631_v33, %v3633_v18  ;;  %v4113_v40 = vld [vmem:[%s5532_s6 + $0x20] sm:$0xf] }
 0x883   : > { %v3652_v51 = vsel %vm401_vm1, %v3640_v50, 0 }
 0x884   : > { %3665 = vmatpush.bf16.msra.mxu1 %v3652_v51 }
 0x885   : > { %3607 = vmatpush.bf16.msra.mxu0 %v5369_v3 }
 0x886   : > { %3693 = vmatpush.bf16.msra.mxu3 %v3623_v22  ;;  %v3719_v62 = vpop.permute.xlu1 %3718  ;;  %v3707_v6 = vpop.permute.xlu0 %3706 }
 0x887   : > { %v3723_v34 = vsel %vm899_vm10, %v3707_v6, %v3709_v27 }
 0x888   : > { %4111 = vmatmul.msk.bf16.vlgmr.msra.gmra.mxu2 %vm3077_vm11, %v4109_v52  ;;  %3666 = vmatpush.bf16.msra.mxu1 %v3638_v54 }
 0x889   : > { %v3721_v13 = vpop.permute.xlu2 %3720 }
 0x88a   : > { %v3727_v11 = vsel %vm899_vm10, %v3719_v62, %v3721_v13  ;;  %v3744_v16 = vsel %vm401_vm1, %v3721_v13, 0 }
 0x88b   : > { %v3741_v41 = vsel %vm401_vm1, %v3727_v11, 0  ;;  %3777 = vmatpush.bf16.msrb.mxu2 %v3744_v16 }
 0x88c   : > { %3667 = vmatpush.bf16.msra.mxu1 %v3636_v59 }
 0x88e   : > { %v3713_v3 = vpop.permute.xlu1 %3712 }
 0x88f   : > { %4110 = vmatmul.msk.bf16.vlgmr.msra.gmra.mxu1 %vm3077_vm11, %v4109_v52  ;;  %v3725_v14 = vsel %vm899_vm10, %v3713_v3, %v3715_v43  ;;  %4112 = vmatmul.msk.bf16.vlgmr.msra.gmra.mxu3 %vm3077_vm11, %v4109_v52 }
 0x890   : > { %3764 = vmatpush.bf16.msrb.mxu1 %v3741_v41  ;;  %4108 = vmatmul.msk.bf16.vlgmr.msra.gmra.mxu0 %vm3077_vm11, %v4105_v53 }
 0x891   : > { %3778 = vmatpush.bf16.msrb.mxu2 %v3715_v43  ;;  %v3717_v26 = vpop.permute.xlu2 %3716 }
 0x892   : > { %v3726_v5 = vsel %vm899_vm10, %v3717_v26, %v3719_v62 }
 0x893   : > { %v3738_v10 = vsel %vm401_vm1, %v3726_v5, 0 }
 0x894   : > { %3765 = vmatpush.bf16.msrb.mxu1 %v3725_v14  ;;  %3751 = vmatpush.bf16.msrb.mxu0 %v3738_v10 }
 0x895   : > { %3779 = vmatpush.bf16.msrb.mxu2 %v3709_v27 }
 0x896   : > { %v3705_v37 = vpop.permute.xlu1 %3704 }
 0x897   : > { %v3722_v63 = vsel %vm899_vm10, %v3705_v37, %v3707_v6 }
 0x898   : > { %3766 = vmatpush.bf16.msrb.mxu1 %v3723_v34  ;;  %4116 = vmatmul.msk.bf16.vlgmr.msrb.gmra.mxu2 %vm3077_vm11, %v4113_v40 }
 0x899   : > { %v3711_v56 = vpop.permute.xlu2 %3710 }
 0x89a   : > { %v3724_v55 = vsel %vm899_vm10, %v3711_v56, %v3713_v3 }
 0x89b   : > { %3752 = vmatpush.bf16.msrb.mxu0 %v3724_v55 }
 0x89f   : > { %3753 = vmatpush.bf16.msrb.mxu0 %v3722_v63  ;;  %4115 = vmatmul.msk.bf16.vlgmr.msrb.gmra.mxu1 %vm3077_vm11, %v4113_v40 }
 0x8a1   : > { %v3793_v63 = vpop.permute.xlu2 %3792 }
 0x8a2   : > { %4114 = vmatmul.msk.bf16.vlgmr.msrb.gmra.mxu0 %vm3077_vm11, %v4113_v40 }
 0x8a9   : > { %v3125_v31 = vpop.f32.mrf.mxu2 }
 0x8b1   : > { %v3099_v39 = vpop.f32.mrf.mxu0  ;;  %v3127_v44 = vpop.f32.mrf.mxu2 }
 0x8b2   : > { %v3157_v8 = vadd.f32 %v3156_v1, %v3099_v39 }
 0x8b3   : > { %v3112_v18 = vpop.f32.mrf.mxu1 }
 0x8b9   : > { %v3101_v38 = vpop.f32.mrf.mxu0 }
 0x8ba   : > { %v3239_v58 = vpop.f32.mrf.mxu2 }
 0x8bb   : > { %v3114_v45 = vpop.f32.mrf.mxu1  ;;  %v3269_v42 = vadd.f32 %v3239_v58, %v3157_v8  ;;  %v3810_v8 = vpop.permute.xlu0 %3809 }
 0x8c1   : > { %v3169_v60 = vpop.f32.mrf.mxu0 }
 0x8c2   : > { %v3170_v7 = vadd.f32 %v3169_v60, %v3112_v18  ;;  %v3241_v46 = vpop.f32.mrf.mxu2  ;;  %v3812_v18 = vpop.permute.xlu1 %3811 }
 0x8c3   : > { %v3182_v32 = vpop.f32.mrf.mxu1 }
 0x8c4   : > { %v3183_v21 = vadd.f32 %v3182_v32, %v3125_v31 }
 0x8c9   : > { %v3171_v23 = vpop.f32.mrf.mxu0 }
 0x8cb   : > { %v3184_v4 = vpop.f32.mrf.mxu1 }
 0x8cf   : > { %v3338_v12 = vpop.f32.mrf.mxu2 }
 0x8d2   : > { %v3265_v49 = vpop.f32.mrf.mxu0  ;;  %v3252_v35 = vpop.f32.mrf.mxu3 }
 0x8d3   : > { %v3270_v53 = vadd.f32 %v3252_v35, %v3170_v7  ;;  %v3271_v15 = vadd.f32 %v3265_v49, %v3183_v21 }
 0x8d5   : > { %v3356_v30 = vadd.f32 %v3338_v12, %v3270_v53  ;;  %v3808_v12 = vpop.permute.xlu2 %3807 }
 0x8d7   : > { %v3340_v57 = vpop.f32.mrf.mxu2 }
 0x8da   : > { %v3267_v9 = vpop.f32.mrf.mxu0  ;;  %v3254_v20 = vpop.f32.mrf.mxu3 }
 0x8dc   : > { %v3325_v29 = vpop.f32.mrf.mxu1 }
 0x8dd   : > { %v3355_v1 = vadd.f32 %v3325_v29, %v3269_v42 }
 0x8e2   : > { %v3351_v0 = vpop.f32.mrf.mxu3 }
 0x8e3   : > { %v3357_v19 = vadd.f32 %v3351_v0, %v3271_v15 }
 0x8e4   : > { %v3327_v22 = vpop.f32.mrf.mxu1 }
 0x8e5   : > { %v3836_v22 = vpop.permute.xlu1 %3835 }
 0x8ea   : > { %v3353_v43 = vpop.f32.mrf.mxu3 }
 0x8eb   : > { %v3437_v25 = vpop.f32.mrf.mxu2  ;;  %v3815_v43 = vsel %vm639_vm6, %v3810_v8, %v3812_v18 }
 0x8ec   : > { %v3424_v24 = vpop.f32.mrf.mxu1  ;;  %v3443_v10 = vadd.f32 %v3437_v25, %v3357_v19  ;;  %v3834_v25 = vpop.permute.xlu0 %3833 }
 0x8ed   : > { %v3411_v36 = vpop.f32.mrf.mxu0  ;;  %v3442_v55 = vadd.f32 %v3424_v24, %v3356_v30 }
 0x8ee   : > { %v3441_v17 = vadd.f32 %v3411_v36, %v3355_v1 }
 0x8f2   : > { %v3497_v50 = vpop.f32.mrf.mxu3 }
 0x8f3   : > { %v3439_v33 = vpop.f32.mrf.mxu2  ;;  %v3527_v38 = vadd.f32 %v3497_v50, %v3441_v17 }
 0x8f4   : > { %v3426_v52 = vpop.f32.mrf.mxu1 }
 0x8f5   : > { %v3413_v51 = vpop.f32.mrf.mxu0 }
 0x8fa   : > { %v3499_v27 = vpop.f32.mrf.mxu3 }
 0x8fb   : > { %v3583_v62 = vpop.f32.mrf.mxu2 }
 0x8fc   : > { %v3523_v13 = vpop.f32.mrf.mxu1  ;;  %v3613_v32 = vadd.f32 %v3583_v62, %v3527_v38 }
 0x8fd   : > { %v3510_v54 = vpop.f32.mrf.mxu0  ;;  %v3529_v37 = vadd.f32 %v3523_v13, %v3443_v10  ;;  %v3832_v13 = vpop.permute.xlu2 %3831 }
 0x8fe   : > { %v3528_v31 = vadd.f32 %v3510_v54, %v3442_v55 }
 0x902   : > { %v3596_v16 = vpop.f32.mrf.mxu3 }
 0x903   : > { %v3585_v11 = vpop.f32.mrf.mxu2  ;;  %v3614_v39 = vadd.f32 %v3596_v16, %v3528_v31  ;;  %v3837_v16 = vsel %vm639_vm6, %v3832_v13, %v3834_v25 }
 0x904   : > { %v3525_v59 = vpop.f32.mrf.mxu1 }
 0x905   : > { %v3512_v41 = vpop.f32.mrf.mxu0 }
 0x90a   : > { %v3598_v14 = vpop.f32.mrf.mxu3 }
 0x90b   : > { %v3682_v3 = vpop.f32.mrf.mxu2 }
 0x90c   : > { %v3669_v26 = vpop.f32.mrf.mxu1  ;;  %v3700_v58 = vadd.f32 %v3682_v3, %v3614_v39 }
 0x90d   : > { %v3609_v6 = vpop.f32.mrf.mxu0  ;;  %v3699_v4 = vadd.f32 %v3669_v26, %v3613_v32 }
 0x90e   : > { %v3615_v28 = vadd.f32 %v3609_v6, %v3529_v37 }
 0x912   : > { %v3695_v34 = vpop.f32.mrf.mxu3 }
 0x913   : > { %v3684_v5 = vpop.f32.mrf.mxu2  ;;  %v3701_v44 = vadd.f32 %v3695_v34, %v3615_v28 }
 0x914   : > { %v3671_v40 = vpop.f32.mrf.mxu1 }
 0x915   : > { %v3611_v56 = vpop.f32.mrf.mxu0 }
 0x91a   : > { %v3697_v7 = vpop.f32.mrf.mxu3 }
 0x91b   : > { %v3781_v45 = vpop.f32.mrf.mxu2 }
 0x91c   : > { %v3787_v60 = vadd.f32 %v3781_v45, %v3701_v44  ;;  %v3768_v46 = vpop.f32.mrf.mxu1 }
 0x91d   : > { %v3786_v23 = vadd.f32 %v3768_v46, %v3700_v58 }
 0x91e   : > { %v3797_v21 = vadd.f32 %v3793_v63, %v3787_v60 }
 0x91f   : > { %v3796_v49 = vadd.f32 %v3793_v63, %v3786_v23  ;;  %v3755_v35 = vpop.f32.mrf.mxu0 }
 0x920   : > { %v3800_v42 = vmul.f32 %v3797_v21, %v4388_v61  ;;  %v3785_v53 = vadd.f32 %v3755_v35, %v3699_v4  ;;  %v3838_v61 = vsel %vm639_vm6, %v3834_v25, %v3836_v22 }
 0x921   : > { %v3799_v30 = vmul.f32 %v3796_v49, %v4380_v47  ;;  %v3814_v47 = vsel %vm639_vm6, %v3808_v12, %v3810_v8 }
 0x922   : > { %v3803_v57 = vmul.f32 0.2, %v3800_v42  ;;  %v3795_v9 = vadd.f32 %v3793_v63, %v3785_v53 }
 0x923   : > { %v3783_v20 = vpop.f32.mrf.mxu2  ;;  %v3802_v0 = vmul.f32 0.2, %v3799_v30 }
 0x924   : > { %v3821_v29 = vadd.f32 %v3812_v18, %v3803_v57  ;;  %v3798_v36 = vmul.f32 %v3795_v9, %v4382_v48  ;;  %v3770_v24 = vpop.f32.mrf.mxu1 }
 0x925   : > { %v3820_v50 = vadd.f32 %v3815_v43, %v3802_v0 }
 0x926   : > { %v3824_v33 = vmul.f32 0.2, %v3821_v29  ;;  %v3801_v51 = vmul.f32 0.2, %v3798_v36 }
 0x927   : > { %v3823_v52 = vmul.f32 0.2, %v3820_v50  ;;  %v3757_v27 = vpop.f32.mrf.mxu0 }
 0x928   : > { %v3844_v62 = vadd.f32 %v3836_v22, %v3824_v33  ;;  %v3819_v54 = vadd.f32 %v3814_v47, %v3801_v51 }
 0x929   : > { %v3843_v11 = vadd.f32 %v3838_v61, %v3823_v52 }
 0x92a   : > { %3853 = vrot.lane.b32.xlu1 %v3844_v62, %s4162_s23  ;;  %v3822_v48 = vmul.f32 0.2, %v3819_v54 }
 0x92b   : > { %3851 = vrot.lane.b32.xlu0 %v3843_v11, %s4162_s23 }
 0x92c   : > { %v3842_v41 = vadd.f32 %v3837_v16, %v3822_v48 }
 0x92e   : > { %3849 = vrot.lane.b32.xlu2 %v3842_v41, %s4162_s23 }
 0x988   : > { %v3850_v59 = vpop.permute.xlu2 %3849 }
 0x989   : > { %3860 = vst.msk [vmem:[%s5498_s25] sm:$0xff] %vm998_vm0, %v3850_v59 }
 0x99c   : > { %v3854_v3 = vpop.permute.xlu1 %3853 }
 0x99d   : > { %v3852_v14 = vpop.permute.xlu0 %3851 }
 0x99e   : > { %v3855_v6 = vsel %vm362_vm14, %v3850_v59, %v3852_v14  ;;  %v3856_v26 = vsel %vm362_vm14, %v3852_v14, %v3854_v3 }
 0x99f   : > { %3861 = vst [vmem:[%s5498_s25 + $0x8] sm:$0xff] %v3855_v6 }
 0x9a0   : > { %3862 = vst.msk [vmem:[%s5498_s25 + $0x10] sm:$0xff] %vm1001_vm2, %v3856_v26 }
 0x9a1   : > { %3863 = vst.msk [vmem:[%s5498_s25 + $0x10] sm:$0xff] %vm367_vm15, %v4163_v2 }
 0x9a2 PF: > { %s19_s30 = sadd.s32 1, %s4151_s30  }
 0x9a3   : > { %p16_p4 = scmp.ge.s32.totalorder %s19_s30, 4  }
 0x9a5   :  { %18 = sbr.rel (!%p16_p4) target bundleno = 1 (0x1), region = 133 }

</bundles_post_ra>
